<compile_context>
chip_gen: v6e
topology: v6e:2x2x1
jax: 0.10.0
libtpu: 0.0.40
codegen_flags: <defaults>
</compile_context>

<pallas_src>
import jax
import jax.numpy as jnp
import numpy as np
from jax import lax
from jax.experimental import pallas as pl
from jax.experimental.pallas import tpu as pltpu


# ---------------------------------------------------------------------------
# Kernel: full sequence in one invocation; h/c carried in vregs.
# ---------------------------------------------------------------------------
def _lstm_seq_kernel(tokens_ref,            # SMEM (T,) int32   (scalar prefetch)
                     emb_ref,               # (V, 1, H) embedding table, VMEM resident
                     h0_ref, c0_ref,        # (1, H) f32 initial hidden / cell state
                     wih_ref,               # (H, 4H) W_ih^T
                     whh_ref,               # (H, 4H) W_hh^T
                     b_ref,                 # (1, 4H) b_ih + b_hh (f32)
                     out_ref,               # (T, H) f32 per-step outputs (== h_t)
                     hf_ref, cf_ref,        # (1, H) f32 final hidden / cell state
                     x_scr,                 # (T, H)  scratch: gathered embeddings (weight dtype)
                     xproj_scr):            # (T, 4H) scratch: batched input projection (f32)
    T = out_ref.shape[0]
    H = out_ref.shape[1]
    unroll = T <= 32

    # --- 1) Gather the T embedding rows into x_scr (leading-dim dynamic index). ---
    def gather(t, carry):
        tok = tokens_ref[t]                          # SMEM scalar read
        x_scr[pl.ds(t, 1), :] = emb_ref[tok]         # (1, H) row
        return carry
    lax.fori_loop(0, T, gather, 0, unroll=unroll)

    # --- 2) Batched input projection: one (T,H)@(H,4H) MXU matmul + folded bias. ---
    xproj_scr[...] = (
        jnp.dot(x_scr[...], wih_ref[...], preferred_element_type=jnp.float32)
        + b_ref[...])

    # --- 3) Recurrence: h/c carried as vreg values; only h@W_hh^T per step. ---
    def step(t, carry):
        h, c = carry                                  # (1, H) f32 each
        gates = xproj_scr[pl.ds(t, 1), :] + jnp.dot(
            h.astype(whh_ref.dtype), whh_ref[...],
            preferred_element_type=jnp.float32)       # (1, 4H) f32
        # Gate order matches torch.nn.LSTM: i, f, g, o (H multiple of 128 ->
        # lane-aligned free views).
        i_g = jax.nn.sigmoid(gates[:, 0 * H:1 * H])
        f_g = jax.nn.sigmoid(gates[:, 1 * H:2 * H])
        g_g = jnp.tanh(gates[:, 2 * H:3 * H])
        o_g = jax.nn.sigmoid(gates[:, 3 * H:4 * H])
        c_new = f_g * c + i_g * g_g
        h_new = o_g * jnp.tanh(c_new)
        out_ref[pl.ds(t, 1), :] = h_new.astype(out_ref.dtype)
        return (h_new, c_new)

    h_f, c_f = lax.fori_loop(0, T, step, (h0_ref[...], c0_ref[...]),
                             unroll=unroll)
    hf_ref[...] = h_f
    cf_ref[...] = c_f


# ---------------------------------------------------------------------------
# One-time parameter preprocessing (hoisted out of the forward path).
# ---------------------------------------------------------------------------
def prepare_params(params, weight_dtype=jnp.float32):
    """Transpose weights / fold bias once so the forward path does no relayout."""
    V, H = params["embedding"].shape
    return {
        "embedding": params["embedding"].reshape(V, 1, H).astype(weight_dtype),
        "w_ih_t": params["w_ih"].T.astype(weight_dtype),                      # (H, 4H)
        "w_hh_t": params["w_hh"].T.astype(weight_dtype),                      # (H, 4H)
        "bias": (params["b_ih"] + params["b_hh"]).reshape(1, 4 * H).astype(jnp.float32),
        "hidden_size": H,
    }


# ---------------------------------------------------------------------------
# Fused-sequence forward: equivalent to calling EncoderRNN_layers.forward once
# per token while threading the hidden state, in a single pallas_call.
# ---------------------------------------------------------------------------
def encoder_rnn_layers_forward_seq(tokens, hidden, prep):
    H = prep["hidden_size"]
    h0, c0 = hidden
    T = int(tokens.shape[0])

    tokens = tokens.astype(jnp.int32)
    h_in = h0.reshape(1, H).astype(jnp.float32)
    c_in = c0.reshape(1, H).astype(jnp.float32)
    emb = prep["embedding"]          # (V, 1, H)
    w_ih_t = prep["w_ih_t"]          # (H, 4H)
    w_hh_t = prep["w_hh_t"]          # (H, 4H)
    b = prep["bias"]                 # (1, 4H)

    wdt = jnp.dtype(emb.dtype)
    # VMEM budget from the actual footprint (x2 for Pallas' default
    # double-buffering of I/O blocks) + a fixed margin; stays far below the
    # v7x 64 MiB ceiling.  The (V,1,H) table pads each row to 8 sublanes.
    emb_padded = emb.shape[0] * 8 * H * wdt.itemsize
    in_bytes = emb_padded + 2 * (H * 4) + 2 * (H * 4 * H * wdt.itemsize) + 4 * H * 4
    out_bytes = (T * H + 2 * H) * 4
    scratch_bytes = T * H * wdt.itemsize + T * 4 * H * 4
    vmem_limit = int(2 * (in_bytes + out_bytes) + scratch_bytes + (8 << 20))

    outs, h_f, c_f = pl.pallas_call(
        _lstm_seq_kernel,
        out_shape=(
            jax.ShapeDtypeStruct((T, H), jnp.float32),   # per-step outputs (== h_t)
            jax.ShapeDtypeStruct((1, H), jnp.float32),   # final h
            jax.ShapeDtypeStruct((1, H), jnp.float32),   # final c
        ),
        grid_spec=pltpu.PrefetchScalarGridSpec(
            num_scalar_prefetch=1,
            grid=(1,),
            in_specs=[
                pl.BlockSpec(emb.shape, lambda i, toks: (0, 0, 0)),       # embedding table (resident)
                pl.BlockSpec((1, H), lambda i, toks: (0, 0)),             # h0
                pl.BlockSpec((1, H), lambda i, toks: (0, 0)),             # c0
                pl.BlockSpec((H, 4 * H), lambda i, toks: (0, 0)),         # W_ih^T (resident)
                pl.BlockSpec((H, 4 * H), lambda i, toks: (0, 0)),         # W_hh^T (resident)
                pl.BlockSpec((1, 4 * H), lambda i, toks: (0, 0)),         # folded bias
            ],
            out_specs=[
                pl.BlockSpec((T, H), lambda i, toks: (0, 0)),             # one writeback at the end
                pl.BlockSpec((1, H), lambda i, toks: (0, 0)),             # final h
                pl.BlockSpec((1, H), lambda i, toks: (0, 0)),             # final c
            ],
            scratch_shapes=[
                pltpu.VMEM((T, H), wdt),                 # gathered embeddings
                pltpu.VMEM((T, 4 * H), jnp.float32),     # batched input projection
            ],
        ),
        compiler_params=pltpu.CompilerParams(
            dimension_semantics=("arbitrary",),
            vmem_limit_bytes=vmem_limit,
        ),
    )(tokens, emb, h_in, c_in, w_ih_t, w_hh_t, b)

    return (outs.reshape(T, 1, H),
            (h_f.reshape(1, 1, H), c_f.reshape(1, 1, H)))


def encoder_rnn_layers_forward(token, hidden, prep):
    """Single-token forward, matching EncoderRNN_layers.forward(input, hidden)."""
    tokens = jnp.asarray(token, jnp.int32).reshape(1)
    outs, (h, c) = encoder_rnn_layers_forward_seq(tokens, hidden, prep)
    H = prep["hidden_size"]
    return outs.reshape(1, 1, H), (h, c)


# ---------------------------------------------------------------------------
# Parameter init (nn.Embedding N(0,1); nn.LSTM uniform(-1/sqrt(H), 1/sqrt(H))).
# ---------------------------------------------------------------------------
def init_params(key, input_size, hidden_size):
    k_emb, k_wih, k_whh, k_bih, k_bhh = jax.random.split(key, 5)
    H = hidden_size
    bound = 1.0 / np.sqrt(H)
    return {
        "embedding": jax.random.normal(k_emb, (input_size, H), jnp.float32),
        "w_ih": jax.random.uniform(k_wih, (4 * H, H), jnp.float32, -bound, bound),
        "w_hh": jax.random.uniform(k_whh, (4 * H, H), jnp.float32, -bound, bound),
        "b_ih": jax.random.uniform(k_bih, (4 * H,), jnp.float32, -bound, bound),
        "b_hh": jax.random.uniform(k_bhh, (4 * H,), jnp.float32, -bound, bound),
    }


# ---------------------------------------------------------------------------
# Pure-JAX reference of the PyTorch module applied token-by-token.
# ---------------------------------------------------------------------------
def reference_forward_seq(tokens, hidden, params):
    H = params["embedding"].shape[1]
    h0, c0 = hidden
    h = h0.reshape(1, H)
    c = c0.reshape(1, H)
    outs = []
    for t in range(int(tokens.shape[0])):
        x = params["embedding"][tokens[t]].reshape(1, H)
        gates = (x @ params["w_ih"].T + h @ params["w_hh"].T
                 + params["b_ih"] + params["b_hh"])
        i = jax.nn.sigmoid(gates[:, 0 * H:1 * H])
        f = jax.nn.sigmoid(gates[:, 1 * H:2 * H])
        g = jnp.tanh(gates[:, 2 * H:3 * H])
        o = jax.nn.sigmoid(gates[:, 3 * H:4 * H])
        c = f * c + i * g
        h = o * jnp.tanh(c)
        outs.append(h)
    outs = jnp.stack(outs).reshape(-1, 1, H)
    return outs, (h.reshape(1, 1, H), c.reshape(1, 1, H))


if __name__ == "__main__":
    input_size = 100       # vocabulary size
    hidden_size = 256      # module spec; multiple of 128 -> aligned gate slices
    num_layers = 1
    seq_len = 8

    key = jax.random.PRNGKey(0)
    k_params, k_tok, k_h, k_c = jax.random.split(key, 4)
    params = init_params(k_params, input_size, hidden_size)

    tokens = jax.random.randint(k_tok, (seq_len,), 0, input_size, dtype=jnp.int32)
    # initHidden() gives zeros; use small random hidden to exercise all paths.
    h0 = jax.random.normal(k_h, (num_layers, 1, hidden_size), jnp.float32) * 0.1
    c0 = jax.random.normal(k_c, (num_layers, 1, hidden_size), jnp.float32) * 0.1

    ref_out, (ref_h, ref_c) = reference_forward_seq(tokens, (h0, c0), params)

    # --- fused-sequence kernel, f32 weights: exact match with the reference ---
    prep32 = prepare_params(params, weight_dtype=jnp.float32)
    out32, (h32, c32) = encoder_rnn_layers_forward_seq(tokens, (h0, c0), prep32)
    jax.block_until_ready((out32, h32, c32))
    np.testing.assert_allclose(np.asarray(out32), np.asarray(ref_out), rtol=1e-5, atol=1e-5)
    np.testing.assert_allclose(np.asarray(h32), np.asarray(ref_h), rtol=1e-5, atol=1e-5)
    np.testing.assert_allclose(np.asarray(c32), np.asarray(ref_c), rtol=1e-5, atol=1e-5)

    # --- bf16 weights/embedding (half the weight bytes), f32 gate math.
    #     Note: h is quantized to bf16 before the recurrent matmul each step,
    #     so error compounds over long sequences (loose tolerance). ---
    prep16 = prepare_params(params, weight_dtype=jnp.bfloat16)
    out16, (h16, c16) = encoder_rnn_layers_forward_seq(tokens, (h0, c0), prep16)
    jax.block_until_ready((out16, h16, c16))
    np.testing.assert_allclose(np.asarray(out16), np.asarray(ref_out), rtol=3e-2, atol=3e-2)

    # --- single-token forward: semantics of EncoderRNN_layers.forward ---
    one_out, (one_h, one_c) = encoder_rnn_layers_forward(tokens[0], (h0, c0), prep32)
    jax.block_until_ready((one_out, one_h, one_c))
    ref1_out, (ref1_h, ref1_c) = reference_forward_seq(tokens[:1], (h0, c0), params)
    np.testing.assert_allclose(np.asarray(one_out), np.asarray(ref1_out), rtol=1e-5, atol=1e-5)
    np.testing.assert_allclose(np.asarray(one_h), np.asarray(ref1_h), rtol=1e-5, atol=1e-5)
    np.testing.assert_allclose(np.asarray(one_c), np.asarray(ref1_c), rtol=1e-5, atol=1e-5)

    print("KERNEL_OK")
</pallas_src>

<mosaic_0001>
module attributes {stable_mosaic.version = 11 : i64} {
  func.func @_lstm_seq_kernel(%arg0: i32, %arg1: memref<8xi32, #tpu.memory_space<smem>>, %arg2: memref<100x1x256xf32, #tpu.memory_space<vmem>>, %arg3: memref<1x256xf32, #tpu.memory_space<vmem>>, %arg4: memref<1x256xf32, #tpu.memory_space<vmem>>, %arg5: memref<256x1024xf32, #tpu.memory_space<vmem>>, %arg6: memref<256x1024xf32, #tpu.memory_space<vmem>>, %arg7: memref<1x1024xf32, #tpu.memory_space<vmem>>, %arg8: memref<8x256xf32, #tpu.memory_space<vmem>>, %arg9: memref<1x256xf32, #tpu.memory_space<vmem>>, %arg10: memref<1x256xf32, #tpu.memory_space<vmem>>, %arg11: memref<8x256xf32, #tpu.memory_space<vmem>>, %arg12: memref<8x1024xf32, #tpu.memory_space<vmem>>) attributes {dimension_semantics = [#tpu.dimension_semantics<arbitrary>], iteration_bounds = array<i64: 1>, scalar_prefetch = 1 : i64, scratch_operands = 2 : i64, tpu.core_type = #tpu.core_type<tc>, window_params = [{pipeline_mode = #tpu.pipeline_mode<synchronous>, transform_indices = @transform_0, window_bounds = array<i64: 100, 1, 256>}, {pipeline_mode = #tpu.pipeline_mode<synchronous>, transform_indices = @transform_1, window_bounds = array<i64: 1, 256>}, {pipeline_mode = #tpu.pipeline_mode<synchronous>, transform_indices = @transform_2, window_bounds = array<i64: 1, 256>}, {pipeline_mode = #tpu.pipeline_mode<synchronous>, transform_indices = @transform_3, window_bounds = array<i64: 256, 1024>}, {pipeline_mode = #tpu.pipeline_mode<synchronous>, transform_indices = @transform_4, window_bounds = array<i64: 256, 1024>}, {pipeline_mode = #tpu.pipeline_mode<synchronous>, transform_indices = @transform_5, window_bounds = array<i64: 1, 1024>}, {pipeline_mode = #tpu.pipeline_mode<synchronous>, transform_indices = @transform_6, window_bounds = array<i64: 8, 256>}, {pipeline_mode = #tpu.pipeline_mode<synchronous>, transform_indices = @transform_7, window_bounds = array<i64: 1, 256>}, {pipeline_mode = #tpu.pipeline_mode<synchronous>, transform_indices = @transform_8, window_bounds = array<i64: 1, 256>}]} {
    %c0_i32 = arith.constant 0 : i32
    %0 = arith.index_cast %c0_i32 : i32 to index
    %1 = memref.load %arg1[%0] : memref<8xi32, #tpu.memory_space<smem>>
    %2 = arith.index_cast %1 : i32 to index
    %c0 = arith.constant 0 : index
    %c0_0 = arith.constant 0 : index
    %3 = vector.load %arg2[%2, %c0, %c0_0] : memref<100x1x256xf32, #tpu.memory_space<vmem>>, vector<1x1x256xf32>
    %4 = vector.shape_cast %3 : vector<1x1x256xf32> to vector<1x256xf32>
    %5 = arith.index_cast %c0_i32 : i32 to index
    %c0_1 = arith.constant 0 : index
    %6 = vector.load %arg11[%5, %c0_1] : memref<8x256xf32, #tpu.memory_space<vmem>>, vector<1x256xf32>
    tpu.vector_store %arg11[%5, %c0_1], %4 {strides = array<i32>} : memref<8x256xf32, #tpu.memory_space<vmem>>, vector<1x256xf32>,
    %c1_i32 = arith.constant 1 : i32
    %7 = arith.index_cast %c1_i32 : i32 to index
    %8 = memref.load %arg1[%7] : memref<8xi32, #tpu.memory_space<smem>>
    %9 = arith.index_cast %8 : i32 to index
    %c0_2 = arith.constant 0 : index
    %c0_3 = arith.constant 0 : index
    %10 = vector.load %arg2[%9, %c0_2, %c0_3] : memref<100x1x256xf32, #tpu.memory_space<vmem>>, vector<1x1x256xf32>
    %11 = vector.shape_cast %10 : vector<1x1x256xf32> to vector<1x256xf32>
    %12 = arith.index_cast %c1_i32 : i32 to index
    %c0_4 = arith.constant 0 : index
    %13 = vector.load %arg11[%12, %c0_4] : memref<8x256xf32, #tpu.memory_space<vmem>>, vector<1x256xf32>
    tpu.vector_store %arg11[%12, %c0_4], %11 {strides = array<i32>} : memref<8x256xf32, #tpu.memory_space<vmem>>, vector<1x256xf32>,
    %c2_i32 = arith.constant 2 : i32
    %14 = arith.index_cast %c2_i32 : i32 to index
    %15 = memref.load %arg1[%14] : memref<8xi32, #tpu.memory_space<smem>>
    %16 = arith.index_cast %15 : i32 to index
    %c0_5 = arith.constant 0 : index
    %c0_6 = arith.constant 0 : index
    %17 = vector.load %arg2[%16, %c0_5, %c0_6] : memref<100x1x256xf32, #tpu.memory_space<vmem>>, vector<1x1x256xf32>
    %18 = vector.shape_cast %17 : vector<1x1x256xf32> to vector<1x256xf32>
    %19 = arith.index_cast %c2_i32 : i32 to index
    %c0_7 = arith.constant 0 : index
    %20 = vector.load %arg11[%19, %c0_7] : memref<8x256xf32, #tpu.memory_space<vmem>>, vector<1x256xf32>
    tpu.vector_store %arg11[%19, %c0_7], %18 {strides = array<i32>} : memref<8x256xf32, #tpu.memory_space<vmem>>, vector<1x256xf32>,
    %c3_i32 = arith.constant 3 : i32
    %21 = arith.index_cast %c3_i32 : i32 to index
    %22 = memref.load %arg1[%21] : memref<8xi32, #tpu.memory_space<smem>>
    %23 = arith.index_cast %22 : i32 to index
    %c0_8 = arith.constant 0 : index
    %c0_9 = arith.constant 0 : index
    %24 = vector.load %arg2[%23, %c0_8, %c0_9] : memref<100x1x256xf32, #tpu.memory_space<vmem>>, vector<1x1x256xf32>
    %25 = vector.shape_cast %24 : vector<1x1x256xf32> to vector<1x256xf32>
    %26 = arith.index_cast %c3_i32 : i32 to index
    %c0_10 = arith.constant 0 : index
    %27 = vector.load %arg11[%26, %c0_10] : memref<8x256xf32, #tpu.memory_space<vmem>>, vector<1x256xf32>
    tpu.vector_store %arg11[%26, %c0_10], %25 {strides = array<i32>} : memref<8x256xf32, #tpu.memory_space<vmem>>, vector<1x256xf32>,
    %c4_i32 = arith.constant 4 : i32
    %28 = arith.index_cast %c4_i32 : i32 to index
    %29 = memref.load %arg1[%28] : memref<8xi32, #tpu.memory_space<smem>>
    %30 = arith.index_cast %29 : i32 to index
    %c0_11 = arith.constant 0 : index
    %c0_12 = arith.constant 0 : index
    %31 = vector.load %arg2[%30, %c0_11, %c0_12] : memref<100x1x256xf32, #tpu.memory_space<vmem>>, vector<1x1x256xf32>
    %32 = vector.shape_cast %31 : vector<1x1x256xf32> to vector<1x256xf32>
    %33 = arith.index_cast %c4_i32 : i32 to index
    %c0_13 = arith.constant 0 : index
    %34 = vector.load %arg11[%33, %c0_13] : memref<8x256xf32, #tpu.memory_space<vmem>>, vector<1x256xf32>
    tpu.vector_store %arg11[%33, %c0_13], %32 {strides = array<i32>} : memref<8x256xf32, #tpu.memory_space<vmem>>, vector<1x256xf32>,
    %c5_i32 = arith.constant 5 : i32
    %35 = arith.index_cast %c5_i32 : i32 to index
    %36 = memref.load %arg1[%35] : memref<8xi32, #tpu.memory_space<smem>>
    %37 = arith.index_cast %36 : i32 to index
    %c0_14 = arith.constant 0 : index
    %c0_15 = arith.constant 0 : index
    %38 = vector.load %arg2[%37, %c0_14, %c0_15] : memref<100x1x256xf32, #tpu.memory_space<vmem>>, vector<1x1x256xf32>
    %39 = vector.shape_cast %38 : vector<1x1x256xf32> to vector<1x256xf32>
    %40 = arith.index_cast %c5_i32 : i32 to index
    %c0_16 = arith.constant 0 : index
    %41 = vector.load %arg11[%40, %c0_16] : memref<8x256xf32, #tpu.memory_space<vmem>>, vector<1x256xf32>
    tpu.vector_store %arg11[%40, %c0_16], %39 {strides = array<i32>} : memref<8x256xf32, #tpu.memory_space<vmem>>, vector<1x256xf32>,
    %c6_i32 = arith.constant 6 : i32
    %42 = arith.index_cast %c6_i32 : i32 to index
    %43 = memref.load %arg1[%42] : memref<8xi32, #tpu.memory_space<smem>>
    %44 = arith.index_cast %43 : i32 to index
    %c0_17 = arith.constant 0 : index
    %c0_18 = arith.constant 0 : index
    %45 = vector.load %arg2[%44, %c0_17, %c0_18] : memref<100x1x256xf32, #tpu.memory_space<vmem>>, vector<1x1x256xf32>
    %46 = vector.shape_cast %45 : vector<1x1x256xf32> to vector<1x256xf32>
    %47 = arith.index_cast %c6_i32 : i32 to index
    %c0_19 = arith.constant 0 : index
    %48 = vector.load %arg11[%47, %c0_19] : memref<8x256xf32, #tpu.memory_space<vmem>>, vector<1x256xf32>
    tpu.vector_store %arg11[%47, %c0_19], %46 {strides = array<i32>} : memref<8x256xf32, #tpu.memory_space<vmem>>, vector<1x256xf32>,
    %c7_i32 = arith.constant 7 : i32
    %49 = arith.index_cast %c7_i32 : i32 to index
    %50 = memref.load %arg1[%49] : memref<8xi32, #tpu.memory_space<smem>>
    %51 = arith.index_cast %50 : i32 to index
    %c0_20 = arith.constant 0 : index
    %c0_21 = arith.constant 0 : index
    %52 = vector.load %arg2[%51, %c0_20, %c0_21] : memref<100x1x256xf32, #tpu.memory_space<vmem>>, vector<1x1x256xf32>
    %53 = vector.shape_cast %52 : vector<1x1x256xf32> to vector<1x256xf32>
    %54 = arith.index_cast %c7_i32 : i32 to index
    %c0_22 = arith.constant 0 : index
    %55 = vector.load %arg11[%54, %c0_22] : memref<8x256xf32, #tpu.memory_space<vmem>>, vector<1x256xf32>
    tpu.vector_store %arg11[%54, %c0_22], %53 {strides = array<i32>} : memref<8x256xf32, #tpu.memory_space<vmem>>, vector<1x256xf32>,
    %c8_i32 = arith.constant 8 : i32
    %c0_23 = arith.constant 0 : index
    %c0_24 = arith.constant 0 : index
    %56 = vector.load %arg11[%c0_23, %c0_24] : memref<8x256xf32, #tpu.memory_space<vmem>>, vector<8x256xf32>
    %c0_25 = arith.constant 0 : index
    %c0_26 = arith.constant 0 : index
    %57 = vector.load %arg5[%c0_25, %c0_26] : memref<256x1024xf32, #tpu.memory_space<vmem>>, vector<256x1024xf32>
    %cst = arith.constant dense<0.000000e+00> : vector<8x1024xf32>
    %58 = tpu.matmul %56, %57, %cst {dimension_numbers = #tpu.dot_dimension_numbers<[1], [0], [0], [1], [0, 0, 1, 1], [], []>} : vector<8x256xf32>, vector<256x1024xf32>, vector<8x1024xf32> -> vector<8x1024xf32>
    %c0_27 = arith.constant 0 : index
    %c0_28 = arith.constant 0 : index
    %59 = vector.load %arg7[%c0_27, %c0_28] : memref<1x1024xf32, #tpu.memory_space<vmem>>, vector<1x1024xf32>
    %60 = vector.broadcast %59 : vector<1x1024xf32> to vector<8x1024xf32>
    %61 = arith.addf %58, %60 : vector<8x1024xf32>
    %c0_29 = arith.constant 0 : index
    %c0_30 = arith.constant 0 : index
    %62 = vector.load %arg12[%c0_29, %c0_30] : memref<8x1024xf32, #tpu.memory_space<vmem>>, vector<8x1024xf32>
    tpu.vector_store %arg12[%c0_29, %c0_30], %61 {strides = array<i32>} : memref<8x1024xf32, #tpu.memory_space<vmem>>, vector<8x1024xf32>,
    %c0_31 = arith.constant 0 : index
    %c0_32 = arith.constant 0 : index
    %63 = vector.load %arg3[%c0_31, %c0_32] : memref<1x256xf32, #tpu.memory_space<vmem>>, vector<1x256xf32>
    %c0_33 = arith.constant 0 : index
    %c0_34 = arith.constant 0 : index
    %64 = vector.load %arg4[%c0_33, %c0_34] : memref<1x256xf32, #tpu.memory_space<vmem>>, vector<1x256xf32>
    %c0_i32_35 = arith.constant 0 : i32
    %65 = arith.index_cast %c0_i32_35 : i32 to index
    %c0_36 = arith.constant 0 : index
    %66 = vector.load %arg12[%65, %c0_36] : memref<8x1024xf32, #tpu.memory_space<vmem>>, vector<1x1024xf32>
    %c0_37 = arith.constant 0 : index
    %c0_38 = arith.constant 0 : index
    %67 = vector.load %arg6[%c0_37, %c0_38] : memref<256x1024xf32, #tpu.memory_space<vmem>>, vector<256x1024xf32>
    %cst_39 = arith.constant dense<0.000000e+00> : vector<1x1024xf32>
    %68 = tpu.matmul %63, %67, %cst_39 {dimension_numbers = #tpu.dot_dimension_numbers<[1], [0], [0], [1], [0, 0, 1, 1], [], []>} : vector<1x256xf32>, vector<256x1024xf32>, vector<1x1024xf32> -> vector<1x1024xf32>
    %69 = arith.addf %66, %68 : vector<1x1024xf32>
    %70 = vector.extract_strided_slice %69 {offsets = [0, 0], sizes = [1, 256], strides = [1, 1]} : vector<1x1024xf32> to vector<1x256xf32>
    %71 = arith.negf %70 : vector<1x256xf32>
    %72 = math.exp %71 : vector<1x256xf32>
    %cst_40 = arith.constant 1.000000e+00 : f32
    %73 = vector.broadcast %cst_40 : f32 to vector<1x256xf32>
    %74 = arith.addf %73, %72 : vector<1x256xf32>
    %75 = arith.divf %73, %74 : vector<1x256xf32>
    %76 = vector.extract_strided_slice %69 {offsets = [0, 256], sizes = [1, 256], strides = [1, 1]} : vector<1x1024xf32> to vector<1x256xf32>
    %77 = arith.negf %76 : vector<1x256xf32>
    %78 = math.exp %77 : vector<1x256xf32>
    %cst_41 = arith.constant 1.000000e+00 : f32
    %79 = vector.broadcast %cst_41 : f32 to vector<1x256xf32>
    %80 = arith.addf %79, %78 : vector<1x256xf32>
    %81 = arith.divf %79, %80 : vector<1x256xf32>
    %82 = vector.extract_strided_slice %69 {offsets = [0, 512], sizes = [1, 256], strides = [1, 1]} : vector<1x1024xf32> to vector<1x256xf32>
    %83 = math.tanh %82 : vector<1x256xf32>
    %84 = vector.extract_strided_slice %69 {offsets = [0, 768], sizes = [1, 256], strides = [1, 1]} : vector<1x1024xf32> to vector<1x256xf32>
    %85 = arith.negf %84 : vector<1x256xf32>
    %86 = math.exp %85 : vector<1x256xf32>
    %cst_42 = arith.constant 1.000000e+00 : f32
    %87 = vector.broadcast %cst_42 : f32 to vector<1x256xf32>
    %88 = arith.addf %87, %86 : vector<1x256xf32>
    %89 = arith.divf %87, %88 : vector<1x256xf32>
    %90 = arith.mulf %81, %64 : vector<1x256xf32>
    %91 = arith.mulf %75, %83 : vector<1x256xf32>
    %92 = arith.addf %90, %91 : vector<1x256xf32>
    %93 = math.tanh %92 : vector<1x256xf32>
    %94 = arith.mulf %89, %93 : vector<1x256xf32>
    %95 = arith.index_cast %c0_i32_35 : i32 to index
    %c0_43 = arith.constant 0 : index
    %96 = vector.load %arg8[%95, %c0_43] : memref<8x256xf32, #tpu.memory_space<vmem>>, vector<1x256xf32>
    tpu.vector_store %arg8[%95, %c0_43], %94 {strides = array<i32>} : memref<8x256xf32, #tpu.memory_space<vmem>>, vector<1x256xf32>,
    %c1_i32_44 = arith.constant 1 : i32
    %97 = arith.index_cast %c1_i32_44 : i32 to index
    %c0_45 = arith.constant 0 : index
    %98 = vector.load %arg12[%97, %c0_45] : memref<8x1024xf32, #tpu.memory_space<vmem>>, vector<1x1024xf32>
    %c0_46 = arith.constant 0 : index
    %c0_47 = arith.constant 0 : index
    %99 = vector.load %arg6[%c0_46, %c0_47] : memref<256x1024xf32, #tpu.memory_space<vmem>>, vector<256x1024xf32>
    %cst_48 = arith.constant dense<0.000000e+00> : vector<1x1024xf32>
    %100 = tpu.matmul %94, %99, %cst_48 {dimension_numbers = #tpu.dot_dimension_numbers<[1], [0], [0], [1], [0, 0, 1, 1], [], []>} : vector<1x256xf32>, vector<256x1024xf32>, vector<1x1024xf32> -> vector<1x1024xf32>
    %101 = arith.addf %98, %100 : vector<1x1024xf32>
    %102 = vector.extract_strided_slice %101 {offsets = [0, 0], sizes = [1, 256], strides = [1, 1]} : vector<1x1024xf32> to vector<1x256xf32>
    %103 = arith.negf %102 : vector<1x256xf32>
    %104 = math.exp %103 : vector<1x256xf32>
    %cst_49 = arith.constant 1.000000e+00 : f32
    %105 = vector.broadcast %cst_49 : f32 to vector<1x256xf32>
    %106 = arith.addf %105, %104 : vector<1x256xf32>
    %107 = arith.divf %105, %106 : vector<1x256xf32>
    %108 = vector.extract_strided_slice %101 {offsets = [0, 256], sizes = [1, 256], strides = [1, 1]} : vector<1x1024xf32> to vector<1x256xf32>
    %109 = arith.negf %108 : vector<1x256xf32>
    %110 = math.exp %109 : vector<1x256xf32>
    %cst_50 = arith.constant 1.000000e+00 : f32
    %111 = vector.broadcast %cst_50 : f32 to vector<1x256xf32>
    %112 = arith.addf %111, %110 : vector<1x256xf32>
    %113 = arith.divf %111, %112 : vector<1x256xf32>
    %114 = vector.extract_strided_slice %101 {offsets = [0, 512], sizes = [1, 256], strides = [1, 1]} : vector<1x1024xf32> to vector<1x256xf32>
    %115 = math.tanh %114 : vector<1x256xf32>
    %116 = vector.extract_strided_slice %101 {offsets = [0, 768], sizes = [1, 256], strides = [1, 1]} : vector<1x1024xf32> to vector<1x256xf32>
    %117 = arith.negf %116 : vector<1x256xf32>
    %118 = math.exp %117 : vector<1x256xf32>
    %cst_51 = arith.constant 1.000000e+00 : f32
    %119 = vector.broadcast %cst_51 : f32 to vector<1x256xf32>
    %120 = arith.addf %119, %118 : vector<1x256xf32>
    %121 = arith.divf %119, %120 : vector<1x256xf32>
    %122 = arith.mulf %113, %92 : vector<1x256xf32>
    %123 = arith.mulf %107, %115 : vector<1x256xf32>
    %124 = arith.addf %122, %123 : vector<1x256xf32>
    %125 = math.tanh %124 : vector<1x256xf32>
    %126 = arith.mulf %121, %125 : vector<1x256xf32>
    %127 = arith.index_cast %c1_i32_44 : i32 to index
    %c0_52 = arith.constant 0 : index
    %128 = vector.load %arg8[%127, %c0_52] : memref<8x256xf32, #tpu.memory_space<vmem>>, vector<1x256xf32>
    tpu.vector_store %arg8[%127, %c0_52], %126 {strides = array<i32>} : memref<8x256xf32, #tpu.memory_space<vmem>>, vector<1x256xf32>,
    %c2_i32_53 = arith.constant 2 : i32
    %129 = arith.index_cast %c2_i32_53 : i32 to index
    %c0_54 = arith.constant 0 : index
    %130 = vector.load %arg12[%129, %c0_54] : memref<8x1024xf32, #tpu.memory_space<vmem>>, vector<1x1024xf32>
    %c0_55 = arith.constant 0 : index
    %c0_56 = arith.constant 0 : index
    %131 = vector.load %arg6[%c0_55, %c0_56] : memref<256x1024xf32, #tpu.memory_space<vmem>>, vector<256x1024xf32>
    %cst_57 = arith.constant dense<0.000000e+00> : vector<1x1024xf32>
    %132 = tpu.matmul %126, %131, %cst_57 {dimension_numbers = #tpu.dot_dimension_numbers<[1], [0], [0], [1], [0, 0, 1, 1], [], []>} : vector<1x256xf32>, vector<256x1024xf32>, vector<1x1024xf32> -> vector<1x1024xf32>
    %133 = arith.addf %130, %132 : vector<1x1024xf32>
    %134 = vector.extract_strided_slice %133 {offsets = [0, 0], sizes = [1, 256], strides = [1, 1]} : vector<1x1024xf32> to vector<1x256xf32>
    %135 = arith.negf %134 : vector<1x256xf32>
    %136 = math.exp %135 : vector<1x256xf32>
    %cst_58 = arith.constant 1.000000e+00 : f32
    %137 = vector.broadcast %cst_58 : f32 to vector<1x256xf32>
    %138 = arith.addf %137, %136 : vector<1x256xf32>
    %139 = arith.divf %137, %138 : vector<1x256xf32>
    %140 = vector.extract_strided_slice %133 {offsets = [0, 256], sizes = [1, 256], strides = [1, 1]} : vector<1x1024xf32> to vector<1x256xf32>
    %141 = arith.negf %140 : vector<1x256xf32>
    %142 = math.exp %141 : vector<1x256xf32>
    %cst_59 = arith.constant 1.000000e+00 : f32
    %143 = vector.broadcast %cst_59 : f32 to vector<1x256xf32>
    %144 = arith.addf %143, %142 : vector<1x256xf32>
    %145 = arith.divf %143, %144 : vector<1x256xf32>
    %146 = vector.extract_strided_slice %133 {offsets = [0, 512], sizes = [1, 256], strides = [1, 1]} : vector<1x1024xf32> to vector<1x256xf32>
    %147 = math.tanh %146 : vector<1x256xf32>
    %148 = vector.extract_strided_slice %133 {offsets = [0, 768], sizes = [1, 256], strides = [1, 1]} : vector<1x1024xf32> to vector<1x256xf32>
    %149 = arith.negf %148 : vector<1x256xf32>
    %150 = math.exp %149 : vector<1x256xf32>
    %cst_60 = arith.constant 1.000000e+00 : f32
    %151 = vector.broadcast %cst_60 : f32 to vector<1x256xf32>
    %152 = arith.addf %151, %150 : vector<1x256xf32>
    %153 = arith.divf %151, %152 : vector<1x256xf32>
    %154 = arith.mulf %145, %124 : vector<1x256xf32>
    %155 = arith.mulf %139, %147 : vector<1x256xf32>
    %156 = arith.addf %154, %155 : vector<1x256xf32>
    %157 = math.tanh %156 : vector<1x256xf32>
    %158 = arith.mulf %153, %157 : vector<1x256xf32>
    %159 = arith.index_cast %c2_i32_53 : i32 to index
    %c0_61 = arith.constant 0 : index
    %160 = vector.load %arg8[%159, %c0_61] : memref<8x256xf32, #tpu.memory_space<vmem>>, vector<1x256xf32>
    tpu.vector_store %arg8[%159, %c0_61], %158 {strides = array<i32>} : memref<8x256xf32, #tpu.memory_space<vmem>>, vector<1x256xf32>,
    %c3_i32_62 = arith.constant 3 : i32
    %161 = arith.index_cast %c3_i32_62 : i32 to index
    %c0_63 = arith.constant 0 : index
    %162 = vector.load %arg12[%161, %c0_63] : memref<8x1024xf32, #tpu.memory_space<vmem>>, vector<1x1024xf32>
    %c0_64 = arith.constant 0 : index
    %c0_65 = arith.constant 0 : index
    %163 = vector.load %arg6[%c0_64, %c0_65] : memref<256x1024xf32, #tpu.memory_space<vmem>>, vector<256x1024xf32>
    %cst_66 = arith.constant dense<0.000000e+00> : vector<1x1024xf32>
    %164 = tpu.matmul %158, %163, %cst_66 {dimension_numbers = #tpu.dot_dimension_numbers<[1], [0], [0], [1], [0, 0, 1, 1], [], []>} : vector<1x256xf32>, vector<256x1024xf32>, vector<1x1024xf32> -> vector<1x1024xf32>
    %165 = arith.addf %162, %164 : vector<1x1024xf32>
    %166 = vector.extract_strided_slice %165 {offsets = [0, 0], sizes = [1, 256], strides = [1, 1]} : vector<1x1024xf32> to vector<1x256xf32>
    %167 = arith.negf %166 : vector<1x256xf32>
    %168 = math.exp %167 : vector<1x256xf32>
    %cst_67 = arith.constant 1.000000e+00 : f32
    %169 = vector.broadcast %cst_67 : f32 to vector<1x256xf32>
    %170 = arith.addf %169, %168 : vector<1x256xf32>
    %171 = arith.divf %169, %170 : vector<1x256xf32>
    %172 = vector.extract_strided_slice %165 {offsets = [0, 256], sizes = [1, 256], strides = [1, 1]} : vector<1x1024xf32> to vector<1x256xf32>
    %173 = arith.negf %172 : vector<1x256xf32>
    %174 = math.exp %173 : vector<1x256xf32>
    %cst_68 = arith.constant 1.000000e+00 : f32
    %175 = vector.broadcast %cst_68 : f32 to vector<1x256xf32>
    %176 = arith.addf %175, %174 : vector<1x256xf32>
    %177 = arith.divf %175, %176 : vector<1x256xf32>
    %178 = vector.extract_strided_slice %165 {offsets = [0, 512], sizes = [1, 256], strides = [1, 1]} : vector<1x1024xf32> to vector<1x256xf32>
    %179 = math.tanh %178 : vector<1x256xf32>
    %180 = vector.extract_strided_slice %165 {offsets = [0, 768], sizes = [1, 256], strides = [1, 1]} : vector<1x1024xf32> to vector<1x256xf32>
    %181 = arith.negf %180 : vector<1x256xf32>
    %182 = math.exp %181 : vector<1x256xf32>
    %cst_69 = arith.constant 1.000000e+00 : f32
    %183 = vector.broadcast %cst_69 : f32 to vector<1x256xf32>
    %184 = arith.addf %183, %182 : vector<1x256xf32>
    %185 = arith.divf %183, %184 : vector<1x256xf32>
    %186 = arith.mulf %177, %156 : vector<1x256xf32>
    %187 = arith.mulf %171, %179 : vector<1x256xf32>
    %188 = arith.addf %186, %187 : vector<1x256xf32>
    %189 = math.tanh %188 : vector<1x256xf32>
    %190 = arith.mulf %185, %189 : vector<1x256xf32>
    %191 = arith.index_cast %c3_i32_62 : i32 to index
    %c0_70 = arith.constant 0 : index
    %192 = vector.load %arg8[%191, %c0_70] : memref<8x256xf32, #tpu.memory_space<vmem>>, vector<1x256xf32>
    tpu.vector_store %arg8[%191, %c0_70], %190 {strides = array<i32>} : memref<8x256xf32, #tpu.memory_space<vmem>>, vector<1x256xf32>,
    %c4_i32_71 = arith.constant 4 : i32
    %193 = arith.index_cast %c4_i32_71 : i32 to index
    %c0_72 = arith.constant 0 : index
    %194 = vector.load %arg12[%193, %c0_72] : memref<8x1024xf32, #tpu.memory_space<vmem>>, vector<1x1024xf32>
    %c0_73 = arith.constant 0 : index
    %c0_74 = arith.constant 0 : index
    %195 = vector.load %arg6[%c0_73, %c0_74] : memref<256x1024xf32, #tpu.memory_space<vmem>>, vector<256x1024xf32>
    %cst_75 = arith.constant dense<0.000000e+00> : vector<1x1024xf32>
    %196 = tpu.matmul %190, %195, %cst_75 {dimension_numbers = #tpu.dot_dimension_numbers<[1], [0], [0], [1], [0, 0, 1, 1], [], []>} : vector<1x256xf32>, vector<256x1024xf32>, vector<1x1024xf32> -> vector<1x1024xf32>
    %197 = arith.addf %194, %196 : vector<1x1024xf32>
    %198 = vector.extract_strided_slice %197 {offsets = [0, 0], sizes = [1, 256], strides = [1, 1]} : vector<1x1024xf32> to vector<1x256xf32>
    %199 = arith.negf %198 : vector<1x256xf32>
    %200 = math.exp %199 : vector<1x256xf32>
    %cst_76 = arith.constant 1.000000e+00 : f32
    %201 = vector.broadcast %cst_76 : f32 to vector<1x256xf32>
    %202 = arith.addf %201, %200 : vector<1x256xf32>
    %203 = arith.divf %201, %202 : vector<1x256xf32>
    %204 = vector.extract_strided_slice %197 {offsets = [0, 256], sizes = [1, 256], strides = [1, 1]} : vector<1x1024xf32> to vector<1x256xf32>
    %205 = arith.negf %204 : vector<1x256xf32>
    %206 = math.exp %205 : vector<1x256xf32>
    %cst_77 = arith.constant 1.000000e+00 : f32
    %207 = vector.broadcast %cst_77 : f32 to vector<1x256xf32>
    %208 = arith.addf %207, %206 : vector<1x256xf32>
    %209 = arith.divf %207, %208 : vector<1x256xf32>
    %210 = vector.extract_strided_slice %197 {offsets = [0, 512], sizes = [1, 256], strides = [1, 1]} : vector<1x1024xf32> to vector<1x256xf32>
    %211 = math.tanh %210 : vector<1x256xf32>
    %212 = vector.extract_strided_slice %197 {offsets = [0, 768], sizes = [1, 256], strides = [1, 1]} : vector<1x1024xf32> to vector<1x256xf32>
    %213 = arith.negf %212 : vector<1x256xf32>
    %214 = math.exp %213 : vector<1x256xf32>
    %cst_78 = arith.constant 1.000000e+00 : f32
    %215 = vector.broadcast %cst_78 : f32 to vector<1x256xf32>
    %216 = arith.addf %215, %214 : vector<1x256xf32>
    %217 = arith.divf %215, %216 : vector<1x256xf32>
    %218 = arith.mulf %209, %188 : vector<1x256xf32>
    %219 = arith.mulf %203, %211 : vector<1x256xf32>
    %220 = arith.addf %218, %219 : vector<1x256xf32>
    %221 = math.tanh %220 : vector<1x256xf32>
    %222 = arith.mulf %217, %221 : vector<1x256xf32>
    %223 = arith.index_cast %c4_i32_71 : i32 to index
    %c0_79 = arith.constant 0 : index
    %224 = vector.load %arg8[%223, %c0_79] : memref<8x256xf32, #tpu.memory_space<vmem>>, vector<1x256xf32>
    tpu.vector_store %arg8[%223, %c0_79], %222 {strides = array<i32>} : memref<8x256xf32, #tpu.memory_space<vmem>>, vector<1x256xf32>,
    %c5_i32_80 = arith.constant 5 : i32
    %225 = arith.index_cast %c5_i32_80 : i32 to index
    %c0_81 = arith.constant 0 : index
    %226 = vector.load %arg12[%225, %c0_81] : memref<8x1024xf32, #tpu.memory_space<vmem>>, vector<1x1024xf32>
    %c0_82 = arith.constant 0 : index
    %c0_83 = arith.constant 0 : index
    %227 = vector.load %arg6[%c0_82, %c0_83] : memref<256x1024xf32, #tpu.memory_space<vmem>>, vector<256x1024xf32>
    %cst_84 = arith.constant dense<0.000000e+00> : vector<1x1024xf32>
    %228 = tpu.matmul %222, %227, %cst_84 {dimension_numbers = #tpu.dot_dimension_numbers<[1], [0], [0], [1], [0, 0, 1, 1], [], []>} : vector<1x256xf32>, vector<256x1024xf32>, vector<1x1024xf32> -> vector<1x1024xf32>
    %229 = arith.addf %226, %228 : vector<1x1024xf32>
    %230 = vector.extract_strided_slice %229 {offsets = [0, 0], sizes = [1, 256], strides = [1, 1]} : vector<1x1024xf32> to vector<1x256xf32>
    %231 = arith.negf %230 : vector<1x256xf32>
    %232 = math.exp %231 : vector<1x256xf32>
    %cst_85 = arith.constant 1.000000e+00 : f32
    %233 = vector.broadcast %cst_85 : f32 to vector<1x256xf32>
    %234 = arith.addf %233, %232 : vector<1x256xf32>
    %235 = arith.divf %233, %234 : vector<1x256xf32>
    %236 = vector.extract_strided_slice %229 {offsets = [0, 256], sizes = [1, 256], strides = [1, 1]} : vector<1x1024xf32> to vector<1x256xf32>
    %237 = arith.negf %236 : vector<1x256xf32>
    %238 = math.exp %237 : vector<1x256xf32>
    %cst_86 = arith.constant 1.000000e+00 : f32
    %239 = vector.broadcast %cst_86 : f32 to vector<1x256xf32>
    %240 = arith.addf %239, %238 : vector<1x256xf32>
    %241 = arith.divf %239, %240 : vector<1x256xf32>
    %242 = vector.extract_strided_slice %229 {offsets = [0, 512], sizes = [1, 256], strides = [1, 1]} : vector<1x1024xf32> to vector<1x256xf32>
    %243 = math.tanh %242 : vector<1x256xf32>
    %244 = vector.extract_strided_slice %229 {offsets = [0, 768], sizes = [1, 256], strides = [1, 1]} : vector<1x1024xf32> to vector<1x256xf32>
    %245 = arith.negf %244 : vector<1x256xf32>
    %246 = math.exp %245 : vector<1x256xf32>
    %cst_87 = arith.constant 1.000000e+00 : f32
    %247 = vector.broadcast %cst_87 : f32 to vector<1x256xf32>
    %248 = arith.addf %247, %246 : vector<1x256xf32>
    %249 = arith.divf %247, %248 : vector<1x256xf32>
    %250 = arith.mulf %241, %220 : vector<1x256xf32>
    %251 = arith.mulf %235, %243 : vector<1x256xf32>
    %252 = arith.addf %250, %251 : vector<1x256xf32>
    %253 = math.tanh %252 : vector<1x256xf32>
    %254 = arith.mulf %249, %253 : vector<1x256xf32>
    %255 = arith.index_cast %c5_i32_80 : i32 to index
    %c0_88 = arith.constant 0 : index
    %256 = vector.load %arg8[%255, %c0_88] : memref<8x256xf32, #tpu.memory_space<vmem>>, vector<1x256xf32>
    tpu.vector_store %arg8[%255, %c0_88], %254 {strides = array<i32>} : memref<8x256xf32, #tpu.memory_space<vmem>>, vector<1x256xf32>,
    %c6_i32_89 = arith.constant 6 : i32
    %257 = arith.index_cast %c6_i32_89 : i32 to index
    %c0_90 = arith.constant 0 : index
    %258 = vector.load %arg12[%257, %c0_90] : memref<8x1024xf32, #tpu.memory_space<vmem>>, vector<1x1024xf32>
    %c0_91 = arith.constant 0 : index
    %c0_92 = arith.constant 0 : index
    %259 = vector.load %arg6[%c0_91, %c0_92] : memref<256x1024xf32, #tpu.memory_space<vmem>>, vector<256x1024xf32>
    %cst_93 = arith.constant dense<0.000000e+00> : vector<1x1024xf32>
    %260 = tpu.matmul %254, %259, %cst_93 {dimension_numbers = #tpu.dot_dimension_numbers<[1], [0], [0], [1], [0, 0, 1, 1], [], []>} : vector<1x256xf32>, vector<256x1024xf32>, vector<1x1024xf32> -> vector<1x1024xf32>
    %261 = arith.addf %258, %260 : vector<1x1024xf32>
    %262 = vector.extract_strided_slice %261 {offsets = [0, 0], sizes = [1, 256], strides = [1, 1]} : vector<1x1024xf32> to vector<1x256xf32>
    %263 = arith.negf %262 : vector<1x256xf32>
    %264 = math.exp %263 : vector<1x256xf32>
    %cst_94 = arith.constant 1.000000e+00 : f32
    %265 = vector.broadcast %cst_94 : f32 to vector<1x256xf32>
    %266 = arith.addf %265, %264 : vector<1x256xf32>
    %267 = arith.divf %265, %266 : vector<1x256xf32>
    %268 = vector.extract_strided_slice %261 {offsets = [0, 256], sizes = [1, 256], strides = [1, 1]} : vector<1x1024xf32> to vector<1x256xf32>
    %269 = arith.negf %268 : vector<1x256xf32>
    %270 = math.exp %269 : vector<1x256xf32>
    %cst_95 = arith.constant 1.000000e+00 : f32
    %271 = vector.broadcast %cst_95 : f32 to vector<1x256xf32>
    %272 = arith.addf %271, %270 : vector<1x256xf32>
    %273 = arith.divf %271, %272 : vector<1x256xf32>
    %274 = vector.extract_strided_slice %261 {offsets = [0, 512], sizes = [1, 256], strides = [1, 1]} : vector<1x1024xf32> to vector<1x256xf32>
    %275 = math.tanh %274 : vector<1x256xf32>
    %276 = vector.extract_strided_slice %261 {offsets = [0, 768], sizes = [1, 256], strides = [1, 1]} : vector<1x1024xf32> to vector<1x256xf32>
    %277 = arith.negf %276 : vector<1x256xf32>
    %278 = math.exp %277 : vector<1x256xf32>
    %cst_96 = arith.constant 1.000000e+00 : f32
    %279 = vector.broadcast %cst_96 : f32 to vector<1x256xf32>
    %280 = arith.addf %279, %278 : vector<1x256xf32>
    %281 = arith.divf %279, %280 : vector<1x256xf32>
    %282 = arith.mulf %273, %252 : vector<1x256xf32>
    %283 = arith.mulf %267, %275 : vector<1x256xf32>
    %284 = arith.addf %282, %283 : vector<1x256xf32>
    %285 = math.tanh %284 : vector<1x256xf32>
    %286 = arith.mulf %281, %285 : vector<1x256xf32>
    %287 = arith.index_cast %c6_i32_89 : i32 to index
    %c0_97 = arith.constant 0 : index
    %288 = vector.load %arg8[%287, %c0_97] : memref<8x256xf32, #tpu.memory_space<vmem>>, vector<1x256xf32>
    tpu.vector_store %arg8[%287, %c0_97], %286 {strides = array<i32>} : memref<8x256xf32, #tpu.memory_space<vmem>>, vector<1x256xf32>,
    %c7_i32_98 = arith.constant 7 : i32
    %289 = arith.index_cast %c7_i32_98 : i32 to index
    %c0_99 = arith.constant 0 : index
    %290 = vector.load %arg12[%289, %c0_99] : memref<8x1024xf32, #tpu.memory_space<vmem>>, vector<1x1024xf32>
    %c0_100 = arith.constant 0 : index
    %c0_101 = arith.constant 0 : index
    %291 = vector.load %arg6[%c0_100, %c0_101] : memref<256x1024xf32, #tpu.memory_space<vmem>>, vector<256x1024xf32>
    %cst_102 = arith.constant dense<0.000000e+00> : vector<1x1024xf32>
    %292 = tpu.matmul %286, %291, %cst_102 {dimension_numbers = #tpu.dot_dimension_numbers<[1], [0], [0], [1], [0, 0, 1, 1], [], []>} : vector<1x256xf32>, vector<256x1024xf32>, vector<1x1024xf32> -> vector<1x1024xf32>
    %293 = arith.addf %290, %292 : vector<1x1024xf32>
    %294 = vector.extract_strided_slice %293 {offsets = [0, 0], sizes = [1, 256], strides = [1, 1]} : vector<1x1024xf32> to vector<1x256xf32>
    %295 = arith.negf %294 : vector<1x256xf32>
    %296 = math.exp %295 : vector<1x256xf32>
    %cst_103 = arith.constant 1.000000e+00 : f32
    %297 = vector.broadcast %cst_103 : f32 to vector<1x256xf32>
    %298 = arith.addf %297, %296 : vector<1x256xf32>
    %299 = arith.divf %297, %298 : vector<1x256xf32>
    %300 = vector.extract_strided_slice %293 {offsets = [0, 256], sizes = [1, 256], strides = [1, 1]} : vector<1x1024xf32> to vector<1x256xf32>
    %301 = arith.negf %300 : vector<1x256xf32>
    %302 = math.exp %301 : vector<1x256xf32>
    %cst_104 = arith.constant 1.000000e+00 : f32
    %303 = vector.broadcast %cst_104 : f32 to vector<1x256xf32>
    %304 = arith.addf %303, %302 : vector<1x256xf32>
    %305 = arith.divf %303, %304 : vector<1x256xf32>
    %306 = vector.extract_strided_slice %293 {offsets = [0, 512], sizes = [1, 256], strides = [1, 1]} : vector<1x1024xf32> to vector<1x256xf32>
    %307 = math.tanh %306 : vector<1x256xf32>
    %308 = vector.extract_strided_slice %293 {offsets = [0, 768], sizes = [1, 256], strides = [1, 1]} : vector<1x1024xf32> to vector<1x256xf32>
    %309 = arith.negf %308 : vector<1x256xf32>
    %310 = math.exp %309 : vector<1x256xf32>
    %cst_105 = arith.constant 1.000000e+00 : f32
    %311 = vector.broadcast %cst_105 : f32 to vector<1x256xf32>
    %312 = arith.addf %311, %310 : vector<1x256xf32>
    %313 = arith.divf %311, %312 : vector<1x256xf32>
    %314 = arith.mulf %305, %284 : vector<1x256xf32>
    %315 = arith.mulf %299, %307 : vector<1x256xf32>
    %316 = arith.addf %314, %315 : vector<1x256xf32>
    %317 = math.tanh %316 : vector<1x256xf32>
    %318 = arith.mulf %313, %317 : vector<1x256xf32>
    %319 = arith.index_cast %c7_i32_98 : i32 to index
    %c0_106 = arith.constant 0 : index
    %320 = vector.load %arg8[%319, %c0_106] : memref<8x256xf32, #tpu.memory_space<vmem>>, vector<1x256xf32>
    tpu.vector_store %arg8[%319, %c0_106], %318 {strides = array<i32>} : memref<8x256xf32, #tpu.memory_space<vmem>>, vector<1x256xf32>,
    %c8_i32_107 = arith.constant 8 : i32
    %c0_108 = arith.constant 0 : index
    %c0_109 = arith.constant 0 : index
    %321 = vector.load %arg9[%c0_108, %c0_109] : memref<1x256xf32, #tpu.memory_space<vmem>>, vector<1x256xf32>
    tpu.vector_store %arg9[%c0_108, %c0_109], %318 {strides = array<i32>} : memref<1x256xf32, #tpu.memory_space<vmem>>, vector<1x256xf32>,
    %c0_110 = arith.constant 0 : index
    %c0_111 = arith.constant 0 : index
    %322 = vector.load %arg10[%c0_110, %c0_111] : memref<1x256xf32, #tpu.memory_space<vmem>>, vector<1x256xf32>
    tpu.vector_store %arg10[%c0_110, %c0_111], %316 {strides = array<i32>} : memref<1x256xf32, #tpu.memory_space<vmem>>, vector<1x256xf32>,
    return
  }
  func.func @transform_0(%arg0: i32, %arg1: memref<8xi32, #tpu.memory_space<smem>>) -> (i32, i32, i32) {
    %c0_i32 = arith.constant 0 : i32
    %c0_i32_0 = arith.constant 0 : i32
    %c0_i32_1 = arith.constant 0 : i32
    %c0_i32_2 = arith.constant 0 : i32
    return %c0_i32, %c0_i32_0, %c0_i32_1 : i32, i32, i32
  }
  func.func @transform_1(%arg0: i32, %arg1: memref<8xi32, #tpu.memory_space<smem>>) -> (i32, i32) {
    %c0_i32 = arith.constant 0 : i32
    %c0_i32_0 = arith.constant 0 : i32
    %c0_i32_1 = arith.constant 0 : i32
    return %c0_i32, %c0_i32_0 : i32, i32
  }
  func.func @transform_2(%arg0: i32, %arg1: memref<8xi32, #tpu.memory_space<smem>>) -> (i32, i32) {
    %c0_i32 = arith.constant 0 : i32
    %c0_i32_0 = arith.constant 0 : i32
    %c0_i32_1 = arith.constant 0 : i32
    return %c0_i32, %c0_i32_0 : i32, i32
  }
  func.func @transform_3(%arg0: i32, %arg1: memref<8xi32, #tpu.memory_space<smem>>) -> (i32, i32) {
    %c0_i32 = arith.constant 0 : i32
    %c0_i32_0 = arith.constant 0 : i32
    %c0_i32_1 = arith.constant 0 : i32
    return %c0_i32, %c0_i32_0 : i32, i32
  }
  func.func @transform_4(%arg0: i32, %arg1: memref<8xi32, #tpu.memory_space<smem>>) -> (i32, i32) {
    %c0_i32 = arith.constant 0 : i32
    %c0_i32_0 = arith.constant 0 : i32
    %c0_i32_1 = arith.constant 0 : i32
    return %c0_i32, %c0_i32_0 : i32, i32
  }
  func.func @transform_5(%arg0: i32, %arg1: memref<8xi32, #tpu.memory_space<smem>>) -> (i32, i32) {
    %c0_i32 = arith.constant 0 : i32
    %c0_i32_0 = arith.constant 0 : i32
    %c0_i32_1 = arith.constant 0 : i32
    return %c0_i32, %c0_i32_0 : i32, i32
  }
  func.func @transform_6(%arg0: i32, %arg1: memref<8xi32, #tpu.memory_space<smem>>) -> (i32, i32) {
    %c0_i32 = arith.constant 0 : i32
    %c0_i32_0 = arith.constant 0 : i32
    %c0_i32_1 = arith.constant 0 : i32
    return %c0_i32, %c0_i32_0 : i32, i32
  }
  func.func @transform_7(%arg0: i32, %arg1: memref<8xi32, #tpu.memory_space<smem>>) -> (i32, i32) {
    %c0_i32 = arith.constant 0 : i32
    %c0_i32_0 = arith.constant 0 : i32
    %c0_i32_1 = arith.constant 0 : i32
    return %c0_i32, %c0_i32_0 : i32, i32
  }
  func.func @transform_8(%arg0: i32, %arg1: memref<8xi32, #tpu.memory_space<smem>>) -> (i32, i32) {
    %c0_i32 = arith.constant 0 : i32
    %c0_i32_0 = arith.constant 0 : i32
    %c0_i32_1 = arith.constant 0 : i32
    return %c0_i32, %c0_i32_0 : i32, i32
  }
}

</mosaic_0001>

<bundles_post_ra>
// kernel: tpu_custom_call.1
= control target key start
LH: loop header
LB: loop body
LE: loop exit
PB: predicated region body
PF: predicated region fallthrough
CT: control target
= control target key end

     0   :  { %s6323_s30 = smov [#allocation5]   ;;  %s6685_s0 = inlined_call_operand.hbm [shape: s32[8], index: 0, kind: input, shape index: {}]   ;;  %s6686_s1 = inlined_call_operand.hbm [shape: f32[100,1,256], index: 1, kind: input, shape index: {}]   ;;  %s6687_s2 = inlined_call_operand.vmem [shape: f32[1,256], index: 2, kind: input, shape index: {}]   ;;  %s6688_s3 = inlined_call_operand.hbm [shape: f32[1,256], index: 3, kind: input, shape index: {}]   ;;  %s6689_s4 = inlined_call_operand.hbm [shape: f32[256,1024], index: 4, kind: input, shape index: {}]   ;;  %s6690_s5 = inlined_call_operand.hbm [shape: f32[256,1024], index: 5, kind: input, shape index: {}]   ;;  %s6691_s6 = inlined_call_operand.vmem [shape: f32[1,1024], index: 6, kind: input, shape index: {}]   ;;  %s6692_s7 = inlined_call_operand.hbm [shape: f32[8,256], index: 7, kind: output, shape index: {0}]   ;;  %s6693_s8 = inlined_call_operand.hbm [shape: f32[1,256], index: 8, kind: output, shape index: {1}]   ;;  %s6694_s9 = inlined_call_operand.hbm [shape: f32[1,256], index: 9, kind: output, shape index: {2}]  }
   0x1   :  { %16 = dma.hbm_to_smem %s6685_s0, 16, %s6323_s30, [#allocation4] }
   0x2   :  { %6311 = dma.done.wait [#allocation4], 16 }
   0x3   :  { %6312 = vsyncadd [#allocation4], 4294967280 }
   0x4   :  { %18 = sfence }
   0x5   :  { %19 = vsyncpa [#allocation7], 0 }
   0x6   :  { %20 = vsyncpa [#allocation10], 0 }
   0x7   :  { %21 = vsyncpa [#allocation13], 0 }
   0x8   :  { %22 = vsyncpa [#allocation8], 0 }
   0x9   :  { %23 = vsyncpa [#allocation16], 0  ;;  %s6324_s12 = smov [#allocation9]   ;;  %s6325_s14 = smov [#allocation6]  }
   0xa   :  { %s44_s13 = sshll.u32 %s6324_s12, 4  ;;  %s29_s15 = sshll.u32 %s6325_s14, 4  ;;  %s45_s13 = int_to_ptr.vmem [resolvable:$true] %s44_s13  ;;  %s30_s15 = int_to_ptr.vmem [resolvable:$true] %s29_s15 }
   0xb   :  { %s6179_s16 = scalar_lea.vmem %s45_s13, 32  ;;  %p6184_p1 = scmp.lt.s32.totalorder %s45_s13, %s45_s13 }
   0xc   :  { %p6180_p0 = scmp.ne.s32.totalorder %s45_s13, %s6179_s16  ;;  %p6185_p2 = scmp.lt.s32.totalorder %s6179_s16, %s6179_s16 }
   0xe   :  { %p6186_p3 = por %p6185_p2, %p6184_p1 }
  0x10   :  { %p6187_p4 = pnand %p6186_p3, %p6180_p0 }
  0x12   :  { %6190 = shalt.err (!%p6187_p4)
}
  0x13   :  { %47 = dma.hbm_to_vmem [thread:$0]  %s6688_s3, 32, %s45_s13, [#allocation10]  }
  0x14   :  { %s6199_s18 = scalar_lea.vmem %s30_s15, 3200  ;;  %p6204_p6 = scmp.lt.s32.totalorder %s30_s15, %s30_s15 }
  0x15   :  { %p6200_p5 = scmp.ne.s32.totalorder %s30_s15, %s6199_s18  ;;  %p6205_p7 = scmp.lt.s32.totalorder %s6199_s18, %s6199_s18 }
  0x17   :  { %p6206_p8 = por %p6205_p7, %p6204_p6 }
  0x19   :  { %p6207_p9 = pnand %p6206_p8, %p6200_p5 }
  0x1b   :  { %6210 = shalt.err (!%p6207_p9)
}
  0x1c   :  { %s6326_s19 = smov 32   ;;  %s6327_s20 = smov 2  }
  0x1d   :  { %35 = dma.hbm_to_vmem [thread:$0]  %s6686_s1, 3200, %s30_s15, [#allocation7], %s6326_s19, %s6326_s19, %s6327_s20  }
  0x1e   :  { %s6328_s23 = smov [#allocation11]  }
  0x1f   :  { %s53_s24 = sshll.u32 %s6328_s23, 4  ;;  %s54_s24 = int_to_ptr.vmem [resolvable:$true] %s53_s24 }
  0x20   :  { %s6219_s25 = scalar_lea.vmem %s54_s24, 32768  ;;  %p6224_p11 = scmp.lt.s32.totalorder %s54_s24, %s54_s24 }
  0x21   :  { %p6220_p10 = scmp.ne.s32.totalorder %s54_s24, %s6219_s25  ;;  %p6225_p12 = scmp.lt.s32.totalorder %s6219_s25, %s6219_s25 }
  0x23   :  { %p6226_p13 = por %p6225_p12, %p6224_p11 }
  0x25   :  { %p6227_p0 = pnand %p6226_p13, %p6220_p10 }
  0x27   :  { %6230 = shalt.err (!%p6227_p0)
}
  0x28   :  { %s6329_s3 = smov 1024   ;;  %s6330_s26 = smov 64  }
  0x29   :  { %59 = dma.hbm_to_vmem [thread:$0]  %s6689_s4, 32768, %s54_s24, [#allocation10], %s6329_s3, %s6329_s3, %s6330_s26  }
  0x2a   :  { %s6331_s29 = smov [#allocation12]  }
  0x2b   :  { %s65_s30 = sshll.u32 %s6331_s29, 4  ;;  %s66_s30 = int_to_ptr.vmem [resolvable:$true] %s65_s30 }
  0x2c   :  { %s6239_s1 = scalar_lea.vmem %s66_s30, 32768  ;;  %p6244_p2 = scmp.lt.s32.totalorder %s66_s30, %s66_s30 }
  0x2d   :  { %p6240_p1 = scmp.ne.s32.totalorder %s66_s30, %s6239_s1  ;;  %p6245_p3 = scmp.lt.s32.totalorder %s6239_s1, %s6239_s1 }
  0x2f   :  { %p6246_p4 = por %p6245_p3, %p6244_p2 }
  0x31   :  { %p6247_p5 = pnand %p6246_p4, %p6240_p1 }
  0x33   :  { %6250 = shalt.err (!%p6247_p5)
}
  0x34   :  { %71 = dma.hbm_to_vmem [thread:$0]  %s6690_s5, 32768, %s66_s30, [#allocation13], %s6329_s3, %s6329_s3, %s6330_s26  }
  0x35   :  { %6313 = dma.done.wait [#allocation7], 3200  }
  0x36   :  { %6314 = vsyncadd [#allocation7], 4294964096 }
  0x37   :  { %6315 = dma.done.wait [#allocation10], 32800  }
  0x38   :  { %6316 = vsyncadd [#allocation10], 4294934496 }
  0x39   :  { %6317 = dma.done.wait [#allocation13], 32768  }
  0x3a   :  { %6318 = vsyncadd [#allocation13], 4294934528  ;;  %v268_v0 = vld [vmem:[#allocation11 + $0x3c8] sm:$0xff]  ;;  %v270_v1 = vld [vmem:[#allocation11 + $0x3d8] sm:$0xff]  ;;  %s6401_s4 = sld [smem:[#allocation5]] }
  0x3b   :  { %v267_v2 = vld [vmem:[#allocation11 + $0x3c0] sm:$0xff]  ;;  %445 = vmatprep.subr.mxu0 %v268_v0  ;;  %516 = vmatprep.subr.mxu1 %v270_v1  ;;  %v269_v3 = vld [vmem:[#allocation11 + $0x3d0] sm:$0xff]  ;;  %v260_v4 = vld [vmem:[#allocation11 + $0x388] sm:$0xff]  ;;  %s6403_s5 = sld [smem:[#allocation5 + $0x1]] }
  0x3c   :  { %v262_v5 = vld [vmem:[#allocation11 + $0x398] sm:$0xff]  ;;  %446 = vmatpush1.msra.mxu0 %v267_v2  ;;  %517 = vmatpush1.msra.mxu1 %v269_v3  ;;  %v259_v6 = vld [vmem:[#allocation11 + $0x380] sm:$0xff]  ;;  %v261_v7 = vld [vmem:[#allocation11 + $0x390] sm:$0xff]  ;;  %s6405_s12 = sld [smem:[#allocation5 + $0x2]] }
  0x3d   :  { %v252_v8 = vld [vmem:[#allocation11 + $0x348] sm:$0xff]  ;;  %447 = vmatprep.subr.mxu0 %v260_v4  ;;  %518 = vmatprep.subr.mxu1 %v262_v5  ;;  %v254_v9 = vld [vmem:[#allocation11 + $0x358] sm:$0xff]  ;;  %v251_v10 = vld [vmem:[#allocation11 + $0x340] sm:$0xff]  ;;  %s6407_s13 = sld [smem:[#allocation5 + $0x3]] }
  0x3e   :  { %v253_v11 = vld [vmem:[#allocation11 + $0x350] sm:$0xff]  ;;  %448 = vmatpush1.msra.mxu0 %v259_v6  ;;  %519 = vmatpush1.msra.mxu1 %v261_v7  ;;  %v244_v12 = vld [vmem:[#allocation11 + $0x308] sm:$0xff]  ;;  %v246_v13 = vld [vmem:[#allocation11 + $0x318] sm:$0xff]  ;;  %s6409_s14 = sld [smem:[#allocation5 + $0x4]] }
  0x3f   :  { %449 = vmatprep.subr.mxu0 %v252_v8  ;;  %520 = vmatprep.subr.mxu1 %v254_v9  ;;  %v243_v14 = vld [vmem:[#allocation11 + $0x300] sm:$0xff]  ;;  %v245_v15 = vld [vmem:[#allocation11 + $0x310] sm:$0xff]  ;;  %v236_v16 = vld [vmem:[#allocation11 + $0x2c8] sm:$0xff]  ;;  %s6411_s15 = sld [smem:[#allocation5 + $0x5]] }
  0x40   :  { %450 = vmatpush1.msra.mxu0 %v251_v10  ;;  %521 = vmatpush1.msra.mxu1 %v253_v11  ;;  %v238_v17 = vld [vmem:[#allocation11 + $0x2d8] sm:$0xff]  ;;  %v235_v18 = vld [vmem:[#allocation11 + $0x2c0] sm:$0xff]  ;;  %v237_v19 = vld [vmem:[#allocation11 + $0x2d0] sm:$0xff]  ;;  %s6413_s16 = sld [smem:[#allocation5 + $0x6]]  ;;  %s5983_s17 = sshll.u32 %s6401_s4, 1 }
  0x41   :  { %451 = vmatprep.subr.mxu0 %v244_v12  ;;  %522 = vmatprep.subr.mxu1 %v246_v13  ;;  %v228_v20 = vld [vmem:[#allocation11 + $0x288] sm:$0xff]  ;;  %v230_v21 = vld [vmem:[#allocation11 + $0x298] sm:$0xff]  ;;  %v227_v22 = vld [vmem:[#allocation11 + $0x280] sm:$0xff]  ;;  %s6415_s0 = sld [smem:[#allocation5 + $0x7]]  ;;  %s5985_s18 = sshll.u32 %s6403_s5, 1 }
  0x42   :  { %452 = vmatpush1.msra.mxu0 %v243_v14  ;;  %523 = vmatpush1.msra.mxu1 %v245_v15  ;;  %v229_v23 = vld [vmem:[#allocation11 + $0x290] sm:$0xff]  ;;  %v220_v24 = vld [vmem:[#allocation11 + $0x248] sm:$0xff]  ;;  %v222_v25 = vld [vmem:[#allocation11 + $0x258] sm:$0xff]  ;;  %v90_v14 = vlaneseq  ;;  %s5987_s19 = sshll.u32 %s6405_s12, 1  ;;  %s88_s25 = scalar_lea.vmem [#allocation6], %s5983_s17 }
  0x43   :  { %453 = vmatprep.subr.mxu0 %v236_v16  ;;  %524 = vmatprep.subr.mxu1 %v238_v17  ;;  %v219_v26 = vld [vmem:[#allocation11 + $0x240] sm:$0xff]  ;;  %v221_v27 = vld [vmem:[#allocation11 + $0x250] sm:$0xff]  ;;  %v212_v28 = vld [vmem:[#allocation11 + $0x208] sm:$0xff]  ;;  %s5989_s20 = sshll.u32 %s6407_s13, 1  ;;  %s98_s3 = scalar_lea.vmem [#allocation6], %s5985_s18 }
  0x44   :  { %454 = vmatpush1.msra.mxu0 %v235_v18  ;;  %525 = vmatpush1.msra.mxu1 %v237_v19  ;;  %v214_v29 = vld [vmem:[#allocation11 + $0x218] sm:$0xff]  ;;  %v211_v30 = vld [vmem:[#allocation11 + $0x200] sm:$0xff]  ;;  %v213_v31 = vld [vmem:[#allocation11 + $0x210] sm:$0xff]  ;;  %s5991_s21 = sshll.u32 %s6409_s14, 1  ;;  %vm6426_vm0 = vcmp.lt.s32.totalorder %v90_v14, 256  ;;  %s105_s26 = scalar_lea.vmem [#allocation6], %s5987_s19 }
  0x45   :  { %455 = vmatprep.subr.mxu0 %v228_v20  ;;  %526 = vmatprep.subr.mxu1 %v230_v21  ;;  %v204_v32 = vld [vmem:[#allocation11 + $0x1c8] sm:$0xff]  ;;  %v206_v33 = vld [vmem:[#allocation11 + $0x1d8] sm:$0xff]  ;;  %v203_v34 = vld [vmem:[#allocation11 + $0x1c0] sm:$0xff]  ;;  %s5993_s22 = sshll.u32 %s6411_s15, 1  ;;  %s112_s27 = scalar_lea.vmem [#allocation6], %s5989_s20 }
  0x46   :  { %456 = vmatpush1.msra.mxu0 %v227_v22  ;;  %527 = vmatpush1.msra.mxu1 %v229_v23  ;;  %v205_v35 = vld [vmem:[#allocation11 + $0x1d0] sm:$0xff]  ;;  %v196_v36 = vld [vmem:[#allocation11 + $0x188] sm:$0xff]  ;;  %v198_v37 = vld [vmem:[#allocation11 + $0x198] sm:$0xff]  ;;  %s5995_s23 = sshll.u32 %s6413_s16, 1  ;;  %s119_s28 = scalar_lea.vmem [#allocation6], %s5991_s21 }
  0x47   :  { %457 = vmatprep.subr.mxu0 %v220_v24  ;;  %528 = vmatprep.subr.mxu1 %v222_v25  ;;  %v195_v38 = vld [vmem:[#allocation11 + $0x180] sm:$0xff]  ;;  %v197_v39 = vld [vmem:[#allocation11 + $0x190] sm:$0xff]  ;;  %v188_v40 = vld [vmem:[#allocation11 + $0x148] sm:$0xff]  ;;  %s5997_s24 = sshll.u32 %s6415_s0, 1  ;;  %s126_s29 = scalar_lea.vmem [#allocation6], %s5993_s22 }
  0x48   :  { %458 = vmatpush1.msra.mxu0 %v219_v26  ;;  %529 = vmatpush1.msra.mxu1 %v221_v27  ;;  %v190_v41 = vld [vmem:[#allocation11 + $0x158] sm:$0xff]  ;;  %v187_v42 = vld [vmem:[#allocation11 + $0x140] sm:$0xff]  ;;  %v189_v43 = vld [vmem:[#allocation11 + $0x150] sm:$0xff]  ;;  %s133_s30 = scalar_lea.vmem [#allocation6], %s5995_s23  ;;  %s140_s1 = scalar_lea.vmem [#allocation6], %s5997_s24 }
  0x49   :  { %459 = vmatprep.subr.mxu0 %v212_v28  ;;  %530 = vmatprep.subr.mxu1 %v214_v29  ;;  %v180_v44 = vld [vmem:[#allocation11 + $0x108] sm:$0xff]  ;;  %v182_v45 = vld [vmem:[#allocation11 + $0x118] sm:$0xff]  ;;  %v179_v46 = vld [vmem:[#allocation11 + $0x100] sm:$0xff]  ;;  %s6334_s12 = smov [#allocation14]   ;;  %s6335_s14 = smov [#allocation17]  }
  0x4a   :  { %460 = vmatpush1.msra.mxu0 %v211_v30  ;;  %531 = vmatpush1.msra.mxu1 %v213_v31  ;;  %v181_v47 = vld [vmem:[#allocation11 + $0x110] sm:$0xff]  ;;  %v172_v48 = vld [vmem:[#allocation11 + $0xc8] sm:$0xff]  ;;  %v174_v49 = vld [vmem:[#allocation11 + $0xd8] sm:$0xff]  ;;  %s5929_s13 = sshll.u32 %s6334_s12, 4  ;;  %s5949_s15 = sshll.u32 %s6335_s14, 4  ;;  %s5930_s13 = int_to_ptr.vmem [resolvable:$true] %s5929_s13  ;;  %s5950_s15 = int_to_ptr.vmem [resolvable:$true] %s5949_s15 }
  0x4b   :  { %461 = vmatprep.subr.mxu0 %v204_v32  ;;  %532 = vmatprep.subr.mxu1 %v206_v33  ;;  %v171_v50 = vld [vmem:[#allocation11 + $0xc0] sm:$0xff]  ;;  %v173_v51 = vld [vmem:[#allocation11 + $0xd0] sm:$0xff]  ;;  %v164_v52 = vld [vmem:[#allocation11 + $0x88] sm:$0xff] }
  0x4c   :  { %462 = vmatpush1.msra.mxu0 %v203_v34  ;;  %533 = vmatpush1.msra.mxu1 %v205_v35  ;;  %v166_v53 = vld [vmem:[#allocation11 + $0x98] sm:$0xff]  ;;  %v163_v54 = vld [vmem:[#allocation11 + $0x80] sm:$0xff]  ;;  %v165_v55 = vld [vmem:[#allocation11 + $0x90] sm:$0xff] }
  0x4d   :  { %463 = vmatprep.subr.mxu0 %v196_v36  ;;  %534 = vmatprep.subr.mxu1 %v198_v37  ;;  %v156_v56 = vld [vmem:[#allocation11 + $0x48] sm:$0xff]  ;;  %v158_v57 = vld [vmem:[#allocation11 + $0x58] sm:$0xff]  ;;  %v155_v58 = vld [vmem:[#allocation11 + $0x40] sm:$0xff] }
  0x4e   :  { %464 = vmatpush1.msra.mxu0 %v195_v38  ;;  %535 = vmatpush1.msra.mxu1 %v197_v39  ;;  %v157_v59 = vld [vmem:[#allocation11 + $0x50] sm:$0xff]  ;;  %v148_v60 = vld [vmem:[#allocation11 + $0x8] sm:$0xff]  ;;  %v150_v61 = vld [vmem:[#allocation11 + $0x18] sm:$0xff] }
  0x4f   :  { %465 = vmatprep.subr.mxu0 %v188_v40  ;;  %536 = vmatprep.subr.mxu1 %v190_v41  ;;  %v147_v62 = vld [vmem:[#allocation11] sm:$0xff]  ;;  %v149_v63 = vld [vmem:[#allocation11 + $0x10] sm:$0xff]  ;;  %v396_v0 = vld [vmem:[#allocation11 + $0x7c8] sm:$0xff] }
  0x50   :  { %466 = vmatpush1.msra.mxu0 %v187_v42  ;;  %537 = vmatpush1.msra.mxu1 %v189_v43  ;;  %v398_v1 = vld [vmem:[#allocation11 + $0x7d8] sm:$0xff]  ;;  %v395_v2 = vld [vmem:[#allocation11 + $0x7c0] sm:$0xff]  ;;  %v397_v3 = vld [vmem:[#allocation11 + $0x7d0] sm:$0xff] }
  0x51   :  { %467 = vmatprep.subr.mxu0 %v180_v44  ;;  %538 = vmatprep.subr.mxu1 %v182_v45  ;;  %v388_v4 = vld [vmem:[#allocation11 + $0x788] sm:$0xff]  ;;  %v390_v5 = vld [vmem:[#allocation11 + $0x798] sm:$0xff]  ;;  %v387_v6 = vld [vmem:[#allocation11 + $0x780] sm:$0xff] }
  0x52   :  { %468 = vmatpush1.msra.mxu0 %v179_v46  ;;  %539 = vmatpush1.msra.mxu1 %v181_v47  ;;  %v389_v7 = vld [vmem:[#allocation11 + $0x790] sm:$0xff]  ;;  %v380_v8 = vld [vmem:[#allocation11 + $0x748] sm:$0xff]  ;;  %v382_v9 = vld [vmem:[#allocation11 + $0x758] sm:$0xff] }
  0x53   :  { %469 = vmatprep.subr.mxu0 %v172_v48  ;;  %540 = vmatprep.subr.mxu1 %v174_v49  ;;  %v379_v10 = vld [vmem:[#allocation11 + $0x740] sm:$0xff]  ;;  %v381_v11 = vld [vmem:[#allocation11 + $0x750] sm:$0xff]  ;;  %v372_v12 = vld [vmem:[#allocation11 + $0x708] sm:$0xff] }
  0x54   :  { %470 = vmatpush1.msra.mxu0 %v171_v50  ;;  %541 = vmatpush1.msra.mxu1 %v173_v51  ;;  %v374_v13 = vld [vmem:[#allocation11 + $0x718] sm:$0xff]  ;;  %v371_v15 = vld [vmem:[#allocation11 + $0x700] sm:$0xff]  ;;  %v373_v16 = vld [vmem:[#allocation11 + $0x710] sm:$0xff] }
  0x55   :  { %471 = vmatprep.subr.mxu0 %v164_v52  ;;  %542 = vmatprep.subr.mxu1 %v166_v53  ;;  %v364_v17 = vld [vmem:[#allocation11 + $0x6c8] sm:$0xff]  ;;  %v366_v18 = vld [vmem:[#allocation11 + $0x6d8] sm:$0xff]  ;;  %v363_v19 = vld [vmem:[#allocation11 + $0x6c0] sm:$0xff] }
  0x56   :  { %472 = vmatpush1.msra.mxu0 %v163_v54  ;;  %543 = vmatpush1.msra.mxu1 %v165_v55  ;;  %v365_v20 = vld [vmem:[#allocation11 + $0x6d0] sm:$0xff]  ;;  %v356_v21 = vld [vmem:[#allocation11 + $0x688] sm:$0xff]  ;;  %v358_v22 = vld [vmem:[#allocation11 + $0x698] sm:$0xff] }
  0x57   :  { %473 = vmatprep.subr.mxu0 %v156_v56  ;;  %544 = vmatprep.subr.mxu1 %v158_v57  ;;  %v355_v23 = vld [vmem:[#allocation11 + $0x680] sm:$0xff]  ;;  %v357_v24 = vld [vmem:[#allocation11 + $0x690] sm:$0xff]  ;;  %v348_v25 = vld [vmem:[#allocation11 + $0x648] sm:$0xff] }
  0x58   :  { %474 = vmatpush1.msra.mxu0 %v155_v58  ;;  %545 = vmatpush1.msra.mxu1 %v157_v59  ;;  %v350_v27 = vld [vmem:[#allocation11 + $0x658] sm:$0xff]  ;;  %v347_v28 = vld [vmem:[#allocation11 + $0x640] sm:$0xff]  ;;  %v349_v29 = vld [vmem:[#allocation11 + $0x650] sm:$0xff] }
  0x59   :  { %475 = vmatprep.subr.mxu0 %v148_v60  ;;  %546 = vmatprep.subr.mxu1 %v150_v61  ;;  %v340_v30 = vld [vmem:[#allocation11 + $0x608] sm:$0xff]  ;;  %v342_v31 = vld [vmem:[#allocation11 + $0x618] sm:$0xff]  ;;  %v339_v40 = vld [vmem:[#allocation11 + $0x600] sm:$0xff] }
  0x5a   :  { %476 = vmatpush1.msra.mxu0 %v147_v62  ;;  %547 = vmatpush1.msra.mxu1 %v149_v63  ;;  %v89_v32 = vld [vmem:[%s88_s25] sm:$0x3]  ;;  %v341_v41 = vld [vmem:[#allocation11 + $0x610] sm:$0xff]  ;;  %v332_v42 = vld [vmem:[#allocation11 + $0x5c8] sm:$0xff] }
  0x5b   :  { %477 = vmatprep.subr.mxu0 %v396_v0  ;;  %548 = vmatprep.subr.mxu1 %v398_v1  ;;  %v99_v33 = vld [vmem:[%s98_s3] sm:$0x3]  ;;  %94 = vst.msk [vmem:[#allocation2] ss:$8 sm:$0x3] %vm6426_vm0, %v89_v32  ;;  %v331_v44 = vld [vmem:[#allocation11 + $0x5c0] sm:$0xff] }
  0x5c   :  { %478 = vmatpush2.msra.mxu0 %v395_v2  ;;  %549 = vmatpush2.msra.mxu1 %v397_v3  ;;  %101 = vst.msk [vmem:[#allocation2 + $0x1] ss:$8 sm:$0x3] %vm6426_vm0, %v99_v33  ;;  %v106_v34 = vld [vmem:[%s105_s26] sm:$0x3]  ;;  %v333_v45 = vld [vmem:[#allocation11 + $0x5d0] sm:$0xff] }
  0x5d   :  { %479 = vmatprep.subr.mxu0 %v388_v4  ;;  %550 = vmatprep.subr.mxu1 %v390_v5  ;;  %v113_v35 = vld [vmem:[%s112_s27] sm:$0x3]  ;;  %108 = vst.msk [vmem:[#allocation2 + $0x2] ss:$8 sm:$0x3] %vm6426_vm0, %v106_v34  ;;  %v324_v46 = vld [vmem:[#allocation11 + $0x588] sm:$0xff] }
  0x5e   :  { %480 = vmatpush2.msra.mxu0 %v387_v6  ;;  %551 = vmatpush2.msra.mxu1 %v389_v7  ;;  %v120_v36 = vld [vmem:[%s119_s28] sm:$0x3]  ;;  %115 = vst.msk [vmem:[#allocation2 + $0x3] ss:$8 sm:$0x3] %vm6426_vm0, %v113_v35  ;;  %v323_v48 = vld [vmem:[#allocation11 + $0x580] sm:$0xff] }
  0x5f   :  { %481 = vmatprep.subr.mxu0 %v380_v8  ;;  %552 = vmatprep.subr.mxu1 %v382_v9  ;;  %122 = vst.msk [vmem:[#allocation2 + $0x4] ss:$8 sm:$0x3] %vm6426_vm0, %v120_v36  ;;  %v127_v37 = vld [vmem:[%s126_s29] sm:$0x3]  ;;  %v325_v49 = vld [vmem:[#allocation11 + $0x590] sm:$0xff] }
  0x60   :  { %482 = vmatpush2.msra.mxu0 %v379_v10  ;;  %553 = vmatpush2.msra.mxu1 %v381_v11  ;;  %v134_v38 = vld [vmem:[%s133_s30] sm:$0x3]  ;;  %129 = vst.msk [vmem:[#allocation2 + $0x5] ss:$8 sm:$0x3] %vm6426_vm0, %v127_v37  ;;  %v316_v50 = vld [vmem:[#allocation11 + $0x548] sm:$0xff] }
  0x61   :  { %483 = vmatprep.subr.mxu0 %v372_v12  ;;  %554 = vmatprep.subr.mxu1 %v374_v13  ;;  %v141_v39 = vld [vmem:[%s140_s1] sm:$0x3]  ;;  %136 = vst.msk [vmem:[#allocation2 + $0x6] ss:$8 sm:$0x3] %vm6426_vm0, %v134_v38  ;;  %v315_v52 = vld [vmem:[#allocation11 + $0x540] sm:$0xff] }
  0x62   :  { %484 = vmatpush2.msra.mxu0 %v371_v15  ;;  %555 = vmatpush2.msra.mxu1 %v373_v16  ;;  %143 = vst.msk [vmem:[#allocation2 + $0x7] ss:$8 sm:$0x3] %vm6426_vm0, %v141_v39  ;;  %v334_v43 = vld [vmem:[#allocation11 + $0x5d8] sm:$0xff]  ;;  %v317_v53 = vld [vmem:[#allocation11 + $0x550] sm:$0xff]  ;;  %v308_v54 = vld [vmem:[#allocation11 + $0x508] sm:$0xff] }
  0x63   :  { %485 = vmatprep.subr.mxu0 %v364_v17  ;;  %556 = vmatprep.subr.mxu1 %v366_v18  ;;  %v326_v47 = vld [vmem:[#allocation11 + $0x598] sm:$0xff]  ;;  %v307_v56 = vld [vmem:[#allocation11 + $0x500] sm:$0xff]  ;;  %v309_v57 = vld [vmem:[#allocation11 + $0x510] sm:$0xff] }
  0x64   :  { %486 = vmatpush2.msra.mxu0 %v363_v19  ;;  %557 = vmatpush2.msra.mxu1 %v365_v20  ;;  %v318_v51 = vld [vmem:[#allocation11 + $0x558] sm:$0xff]  ;;  %v300_v58 = vld [vmem:[#allocation11 + $0x4c8] sm:$0xff]  ;;  %v299_v60 = vld [vmem:[#allocation11 + $0x4c0] sm:$0xff] }
  0x65   :  { %487 = vmatprep.subr.mxu0 %v356_v21  ;;  %558 = vmatprep.subr.mxu1 %v358_v22  ;;  %v310_v55 = vld [vmem:[#allocation11 + $0x518] sm:$0xff]  ;;  %v301_v61 = vld [vmem:[#allocation11 + $0x4d0] sm:$0xff]  ;;  %v292_v62 = vld [vmem:[#allocation11 + $0x488] sm:$0xff] }
  0x66   :  { %488 = vmatpush2.msra.mxu0 %v355_v23  ;;  %559 = vmatpush2.msra.mxu1 %v357_v24  ;;  %v302_v59 = vld [vmem:[#allocation11 + $0x4d8] sm:$0xff]  ;;  %v291_v0 = vld [vmem:[#allocation11 + $0x480] sm:$0xff]  ;;  %v293_v1 = vld [vmem:[#allocation11 + $0x490] sm:$0xff] }
  0x67   :  { %489 = vmatprep.subr.mxu0 %v348_v25  ;;  %560 = vmatprep.subr.mxu1 %v350_v27  ;;  %v294_v63 = vld [vmem:[#allocation11 + $0x498] sm:$0xff]  ;;  %v284_v2 = vld [vmem:[#allocation11 + $0x448] sm:$0xff]  ;;  %v283_v4 = vld [vmem:[#allocation11 + $0x440] sm:$0xff] }
  0x68   :  { %490 = vmatpush2.msra.mxu0 %v347_v28  ;;  %561 = vmatpush2.msra.mxu1 %v349_v29  ;;  %v286_v3 = vld [vmem:[#allocation11 + $0x458] sm:$0xff]  ;;  %v285_v5 = vld [vmem:[#allocation11 + $0x450] sm:$0xff]  ;;  %v276_v6 = vld [vmem:[#allocation11 + $0x408] sm:$0xff] }
  0x69   :  { %491 = vmatprep.subr.mxu0 %v340_v30  ;;  %562 = vmatprep.subr.mxu1 %v342_v31  ;;  %v278_v7 = vld [vmem:[#allocation11 + $0x418] sm:$0xff]  ;;  %v275_v8 = vld [vmem:[#allocation11 + $0x400] sm:$0xff]  ;;  %v6462_v9 = vld [vmem:[#allocation2 + $0x8] sm:$0xff] }
  0x6a   :  { %492 = vmatpush2.msra.mxu0 %v339_v40  ;;  %563 = vmatpush2.msra.mxu1 %v341_v41  ;;  %v277_v10 = vld [vmem:[#allocation11 + $0x410] sm:$0xff]  ;;  %v6464_v11 = vld [vmem:[#allocation2] sm:$0xff]  ;;  %v274_v13 = vld [vmem:[#allocation11 + $0x3f8] sm:$0xff] }
  0x6b   :  { %493 = vmatprep.subr.mxu0 %v332_v42  ;;  %564 = vmatprep.subr.mxu1 %v334_v43  ;;  %v272_v12 = vld [vmem:[#allocation11 + $0x3e8] sm:$0xff]  ;;  %v271_v15 = vld [vmem:[#allocation11 + $0x3e0] sm:$0xff]  ;;  %v273_v16 = vld [vmem:[#allocation11 + $0x3f0] sm:$0xff] }
  0x6c   :  { %494 = vmatpush2.msra.mxu0 %v331_v44  ;;  %565 = vmatpush2.msra.mxu1 %v333_v45  ;;  %v264_v17 = vld [vmem:[#allocation11 + $0x3a8] sm:$0xff]  ;;  %v266_v18 = vld [vmem:[#allocation11 + $0x3b8] sm:$0xff]  ;;  %v263_v19 = vld [vmem:[#allocation11 + $0x3a0] sm:$0xff] }
  0x6d   :  { %495 = vmatprep.subr.mxu0 %v324_v46  ;;  %566 = vmatprep.subr.mxu1 %v326_v47  ;;  %v265_v20 = vld [vmem:[#allocation11 + $0x3b0] sm:$0xff]  ;;  %v256_v21 = vld [vmem:[#allocation11 + $0x368] sm:$0xff]  ;;  %v258_v22 = vld [vmem:[#allocation11 + $0x378] sm:$0xff] }
  0x6e   :  { %496 = vmatpush2.msra.mxu0 %v323_v48  ;;  %567 = vmatpush2.msra.mxu1 %v325_v49  ;;  %v255_v23 = vld [vmem:[#allocation11 + $0x360] sm:$0xff]  ;;  %v257_v24 = vld [vmem:[#allocation11 + $0x370] sm:$0xff]  ;;  %v248_v25 = vld [vmem:[#allocation11 + $0x328] sm:$0xff] }
  0x6f   :  { %497 = vmatprep.subr.mxu0 %v316_v50  ;;  %568 = vmatprep.subr.mxu1 %v318_v51  ;;  %v250_v27 = vld [vmem:[#allocation11 + $0x338] sm:$0xff]  ;;  %v247_v28 = vld [vmem:[#allocation11 + $0x320] sm:$0xff]  ;;  %v249_v29 = vld [vmem:[#allocation11 + $0x330] sm:$0xff] }
  0x70   :  { %498 = vmatpush2.msra.mxu0 %v315_v52  ;;  %569 = vmatpush2.msra.mxu1 %v317_v53  ;;  %v240_v30 = vld [vmem:[#allocation11 + $0x2e8] sm:$0xff]  ;;  %v242_v31 = vld [vmem:[#allocation11 + $0x2f8] sm:$0xff]  ;;  %v239_v32 = vld [vmem:[#allocation11 + $0x2e0] sm:$0xff] }
  0x71   :  { %499 = vmatprep.subr.mxu0 %v308_v54  ;;  %570 = vmatprep.subr.mxu1 %v310_v55  ;;  %v241_v33 = vld [vmem:[#allocation11 + $0x2f0] sm:$0xff]  ;;  %v232_v34 = vld [vmem:[#allocation11 + $0x2a8] sm:$0xff]  ;;  %v234_v35 = vld [vmem:[#allocation11 + $0x2b8] sm:$0xff] }
  0x72   :  { %500 = vmatpush2.msra.mxu0 %v307_v56  ;;  %571 = vmatpush2.msra.mxu1 %v309_v57  ;;  %v231_v36 = vld [vmem:[#allocation11 + $0x2a0] sm:$0xff]  ;;  %v233_v37 = vld [vmem:[#allocation11 + $0x2b0] sm:$0xff]  ;;  %v224_v38 = vld [vmem:[#allocation11 + $0x268] sm:$0xff] }
  0x73   :  { %501 = vmatprep.subr.mxu0 %v300_v58  ;;  %572 = vmatprep.subr.mxu1 %v302_v59  ;;  %v226_v39 = vld [vmem:[#allocation11 + $0x278] sm:$0xff]  ;;  %v223_v40 = vld [vmem:[#allocation11 + $0x260] sm:$0xff]  ;;  %v225_v41 = vld [vmem:[#allocation11 + $0x270] sm:$0xff] }
  0x74   :  { %502 = vmatpush2.msra.mxu0 %v299_v60  ;;  %573 = vmatpush2.msra.mxu1 %v301_v61  ;;  %v216_v42 = vld [vmem:[#allocation11 + $0x228] sm:$0xff]  ;;  %v218_v43 = vld [vmem:[#allocation11 + $0x238] sm:$0xff]  ;;  %v215_v44 = vld [vmem:[#allocation11 + $0x220] sm:$0xff] }
  0x75   :  { %503 = vmatprep.subr.mxu0 %v292_v62  ;;  %574 = vmatprep.subr.mxu1 %v294_v63  ;;  %v217_v45 = vld [vmem:[#allocation11 + $0x230] sm:$0xff]  ;;  %v208_v46 = vld [vmem:[#allocation11 + $0x1e8] sm:$0xff]  ;;  %v210_v47 = vld [vmem:[#allocation11 + $0x1f8] sm:$0xff] }
  0x76   :  { %504 = vmatpush2.msra.mxu0 %v291_v0  ;;  %575 = vmatpush2.msra.mxu1 %v293_v1  ;;  %v207_v48 = vld [vmem:[#allocation11 + $0x1e0] sm:$0xff]  ;;  %v209_v49 = vld [vmem:[#allocation11 + $0x1f0] sm:$0xff]  ;;  %v200_v50 = vld [vmem:[#allocation11 + $0x1a8] sm:$0xff] }
  0x77   :  { %505 = vmatprep.subr.mxu0 %v284_v2  ;;  %576 = vmatprep.subr.mxu1 %v286_v3  ;;  %v202_v51 = vld [vmem:[#allocation11 + $0x1b8] sm:$0xff]  ;;  %v199_v52 = vld [vmem:[#allocation11 + $0x1a0] sm:$0xff]  ;;  %v201_v53 = vld [vmem:[#allocation11 + $0x1b0] sm:$0xff] }
  0x78   :  { %506 = vmatpush2.msra.mxu0 %v283_v4  ;;  %577 = vmatpush2.msra.mxu1 %v285_v5  ;;  %v192_v54 = vld [vmem:[#allocation11 + $0x168] sm:$0xff]  ;;  %v194_v55 = vld [vmem:[#allocation11 + $0x178] sm:$0xff]  ;;  %v191_v56 = vld [vmem:[#allocation11 + $0x160] sm:$0xff] }
  0x79   :  { %507 = vmatprep.subr.mxu0 %v276_v6  ;;  %578 = vmatprep.subr.mxu1 %v278_v7  ;;  %v193_v57 = vld [vmem:[#allocation11 + $0x170] sm:$0xff]  ;;  %v184_v58 = vld [vmem:[#allocation11 + $0x128] sm:$0xff]  ;;  %v186_v59 = vld [vmem:[#allocation11 + $0x138] sm:$0xff] }
  0x7a   :  { %508 = vmatpush2.msra.mxu0 %v275_v8  ;;  %509 = vmatprep.mubr.f32.mxu0 %v6462_v9  ;;  %v183_v60 = vld [vmem:[#allocation11 + $0x120] sm:$0xff]  ;;  %v185_v61 = vld [vmem:[#allocation11 + $0x130] sm:$0xff]  ;;  %v176_v62 = vld [vmem:[#allocation11 + $0xe8] sm:$0xff] }
  0x7b   :  { %579 = vmatpush2.msra.mxu1 %v277_v10  ;;  %580 = vmatprep.mubr.f32.mxu1 %v6462_v9  ;;  %v178_v63 = vld [vmem:[#allocation11 + $0xf8] sm:$0xff]  ;;  %v175_v0 = vld [vmem:[#allocation11 + $0xe0] sm:$0xff]  ;;  %v177_v1 = vld [vmem:[#allocation11 + $0xf0] sm:$0xff] }
  0x7c   :  { %510 = vmatmul.mubr.f32.vlgmr.msra.gmra.mxu0 %v6464_v11  ;;  %581 = vmatmul.mubr.f32.vlgmr.msra.gmra.mxu1 %v6464_v11  ;;  %v168_v2 = vld [vmem:[#allocation11 + $0xa8] sm:$0xff]  ;;  %v170_v3 = vld [vmem:[#allocation11 + $0xb8] sm:$0xff]  ;;  %v167_v4 = vld [vmem:[#allocation11 + $0xa0] sm:$0xff] }
  0x7d   :  { %587 = vmatprep.subr.mxu0 %v272_v12  ;;  %658 = vmatprep.subr.mxu1 %v274_v13  ;;  %v169_v5 = vld [vmem:[#allocation11 + $0xb0] sm:$0xff]  ;;  %v160_v6 = vld [vmem:[#allocation11 + $0x68] sm:$0xff]  ;;  %v162_v7 = vld [vmem:[#allocation11 + $0x78] sm:$0xff] }
  0x7e   :  { %588 = vmatpush1.msra.mxu0 %v271_v15  ;;  %659 = vmatpush1.msra.mxu1 %v273_v16  ;;  %v159_v8 = vld [vmem:[#allocation11 + $0x60] sm:$0xff]  ;;  %v161_v10 = vld [vmem:[#allocation11 + $0x70] sm:$0xff]  ;;  %v152_v12 = vld [vmem:[#allocation11 + $0x28] sm:$0xff] }
  0x7f   :  { %589 = vmatprep.subr.mxu0 %v264_v17  ;;  %660 = vmatprep.subr.mxu1 %v266_v18  ;;  %v154_v13 = vld [vmem:[#allocation11 + $0x38] sm:$0xff]  ;;  %v151_v15 = vld [vmem:[#allocation11 + $0x20] sm:$0xff]  ;;  %v153_v16 = vld [vmem:[#allocation11 + $0x30] sm:$0xff] }
  0x80   :  { %590 = vmatpush1.msra.mxu0 %v263_v19  ;;  %661 = vmatpush1.msra.mxu1 %v265_v20  ;;  %v400_v17 = vld [vmem:[#allocation11 + $0x7e8] sm:$0xff]  ;;  %v402_v18 = vld [vmem:[#allocation11 + $0x7f8] sm:$0xff]  ;;  %v399_v19 = vld [vmem:[#allocation11 + $0x7e0] sm:$0xff] }
  0x81   :  { %591 = vmatprep.subr.mxu0 %v256_v21  ;;  %662 = vmatprep.subr.mxu1 %v258_v22  ;;  %v401_v20 = vld [vmem:[#allocation11 + $0x7f0] sm:$0xff]  ;;  %v392_v21 = vld [vmem:[#allocation11 + $0x7a8] sm:$0xff]  ;;  %v394_v22 = vld [vmem:[#allocation11 + $0x7b8] sm:$0xff] }
  0x82   :  { %592 = vmatpush1.msra.mxu0 %v255_v23  ;;  %663 = vmatpush1.msra.mxu1 %v257_v24  ;;  %v391_v23 = vld [vmem:[#allocation11 + $0x7a0] sm:$0xff]  ;;  %v393_v24 = vld [vmem:[#allocation11 + $0x7b0] sm:$0xff] }
  0x83   :  { %593 = vmatprep.subr.mxu0 %v248_v25  ;;  %664 = vmatprep.subr.mxu1 %v250_v27  ;;  %v384_v25 = vld [vmem:[#allocation11 + $0x768] sm:$0xff]  ;;  %v386_v27 = vld [vmem:[#allocation11 + $0x778] sm:$0xff] }
  0x84   :  { %594 = vmatpush1.msra.mxu0 %v247_v28  ;;  %665 = vmatpush1.msra.mxu1 %v249_v29  ;;  %v383_v28 = vld [vmem:[#allocation11 + $0x760] sm:$0xff]  ;;  %v385_v29 = vld [vmem:[#allocation11 + $0x770] sm:$0xff] }
  0x85   :  { %595 = vmatprep.subr.mxu0 %v240_v30  ;;  %666 = vmatprep.subr.mxu1 %v242_v31  ;;  %v376_v30 = vld [vmem:[#allocation11 + $0x728] sm:$0xff]  ;;  %v378_v31 = vld [vmem:[#allocation11 + $0x738] sm:$0xff] }
  0x86   :  { %596 = vmatpush1.msra.mxu0 %v239_v32  ;;  %667 = vmatpush1.msra.mxu1 %v241_v33  ;;  %v375_v32 = vld [vmem:[#allocation11 + $0x720] sm:$0xff]  ;;  %v377_v33 = vld [vmem:[#allocation11 + $0x730] sm:$0xff] }
  0x87   :  { %597 = vmatprep.subr.mxu0 %v232_v34  ;;  %668 = vmatprep.subr.mxu1 %v234_v35  ;;  %v368_v34 = vld [vmem:[#allocation11 + $0x6e8] sm:$0xff]  ;;  %v370_v35 = vld [vmem:[#allocation11 + $0x6f8] sm:$0xff] }
  0x88   :  { %598 = vmatpush1.msra.mxu0 %v231_v36  ;;  %669 = vmatpush1.msra.mxu1 %v233_v37  ;;  %v367_v36 = vld [vmem:[#allocation11 + $0x6e0] sm:$0xff]  ;;  %v369_v37 = vld [vmem:[#allocation11 + $0x6f0] sm:$0xff] }
  0x89   :  { %599 = vmatprep.subr.mxu0 %v224_v38  ;;  %670 = vmatprep.subr.mxu1 %v226_v39  ;;  %v360_v38 = vld [vmem:[#allocation11 + $0x6a8] sm:$0xff]  ;;  %v362_v39 = vld [vmem:[#allocation11 + $0x6b8] sm:$0xff] }
  0x8a   :  { %600 = vmatpush1.msra.mxu0 %v223_v40  ;;  %671 = vmatpush1.msra.mxu1 %v225_v41  ;;  %v359_v40 = vld [vmem:[#allocation11 + $0x6a0] sm:$0xff]  ;;  %v361_v41 = vld [vmem:[#allocation11 + $0x6b0] sm:$0xff] }
  0x8b   :  { %601 = vmatprep.subr.mxu0 %v216_v42  ;;  %672 = vmatprep.subr.mxu1 %v218_v43  ;;  %v352_v42 = vld [vmem:[#allocation11 + $0x668] sm:$0xff]  ;;  %v354_v43 = vld [vmem:[#allocation11 + $0x678] sm:$0xff] }
  0x8c   :  { %602 = vmatpush1.msra.mxu0 %v215_v44  ;;  %673 = vmatpush1.msra.mxu1 %v217_v45  ;;  %v351_v44 = vld [vmem:[#allocation11 + $0x660] sm:$0xff]  ;;  %v353_v45 = vld [vmem:[#allocation11 + $0x670] sm:$0xff] }
  0x8d   :  { %603 = vmatprep.subr.mxu0 %v208_v46  ;;  %674 = vmatprep.subr.mxu1 %v210_v47  ;;  %v344_v46 = vld [vmem:[#allocation11 + $0x628] sm:$0xff]  ;;  %v346_v47 = vld [vmem:[#allocation11 + $0x638] sm:$0xff] }
  0x8e   :  { %604 = vmatpush1.msra.mxu0 %v207_v48  ;;  %675 = vmatpush1.msra.mxu1 %v209_v49  ;;  %v343_v48 = vld [vmem:[#allocation11 + $0x620] sm:$0xff]  ;;  %v345_v49 = vld [vmem:[#allocation11 + $0x630] sm:$0xff] }
  0x8f   :  { %605 = vmatprep.subr.mxu0 %v200_v50  ;;  %676 = vmatprep.subr.mxu1 %v202_v51  ;;  %v336_v50 = vld [vmem:[#allocation11 + $0x5e8] sm:$0xff]  ;;  %v338_v51 = vld [vmem:[#allocation11 + $0x5f8] sm:$0xff] }
  0x90   :  { %606 = vmatpush1.msra.mxu0 %v199_v52  ;;  %677 = vmatpush1.msra.mxu1 %v201_v53  ;;  %v335_v52 = vld [vmem:[#allocation11 + $0x5e0] sm:$0xff]  ;;  %v337_v53 = vld [vmem:[#allocation11 + $0x5f0] sm:$0xff] }
  0x91   :  { %607 = vmatprep.subr.mxu0 %v192_v54  ;;  %678 = vmatprep.subr.mxu1 %v194_v55  ;;  %v328_v54 = vld [vmem:[#allocation11 + $0x5a8] sm:$0xff]  ;;  %v330_v55 = vld [vmem:[#allocation11 + $0x5b8] sm:$0xff] }
  0x92   :  { %608 = vmatpush1.msra.mxu0 %v191_v56  ;;  %679 = vmatpush1.msra.mxu1 %v193_v57  ;;  %v327_v56 = vld [vmem:[#allocation11 + $0x5a0] sm:$0xff]  ;;  %v329_v57 = vld [vmem:[#allocation11 + $0x5b0] sm:$0xff] }
  0x93   :  { %609 = vmatprep.subr.mxu0 %v184_v58  ;;  %680 = vmatprep.subr.mxu1 %v186_v59  ;;  %v320_v58 = vld [vmem:[#allocation11 + $0x568] sm:$0xff]  ;;  %v322_v59 = vld [vmem:[#allocation11 + $0x578] sm:$0xff] }
  0x94   :  { %610 = vmatpush1.msra.mxu0 %v183_v60  ;;  %681 = vmatpush1.msra.mxu1 %v185_v61  ;;  %v319_v60 = vld [vmem:[#allocation11 + $0x560] sm:$0xff]  ;;  %v321_v61 = vld [vmem:[#allocation11 + $0x570] sm:$0xff] }
  0x95   :  { %611 = vmatprep.subr.mxu0 %v176_v62  ;;  %682 = vmatprep.subr.mxu1 %v178_v63  ;;  %v312_v62 = vld [vmem:[#allocation11 + $0x528] sm:$0xff]  ;;  %v314_v63 = vld [vmem:[#allocation11 + $0x538] sm:$0xff] }
  0x96   :  { %612 = vmatpush1.msra.mxu0 %v175_v0  ;;  %683 = vmatpush1.msra.mxu1 %v177_v1  ;;  %v311_v0 = vld [vmem:[#allocation11 + $0x520] sm:$0xff]  ;;  %v313_v1 = vld [vmem:[#allocation11 + $0x530] sm:$0xff] }
  0x97   :  { %613 = vmatprep.subr.mxu0 %v168_v2  ;;  %684 = vmatprep.subr.mxu1 %v170_v3  ;;  %v304_v2 = vld [vmem:[#allocation11 + $0x4e8] sm:$0xff]  ;;  %v306_v3 = vld [vmem:[#allocation11 + $0x4f8] sm:$0xff] }
  0x98   :  { %614 = vmatpush1.msra.mxu0 %v167_v4  ;;  %685 = vmatpush1.msra.mxu1 %v169_v5  ;;  %v303_v4 = vld [vmem:[#allocation11 + $0x4e0] sm:$0xff]  ;;  %v305_v5 = vld [vmem:[#allocation11 + $0x4f0] sm:$0xff] }
  0x99   :  { %615 = vmatprep.subr.mxu0 %v160_v6  ;;  %686 = vmatprep.subr.mxu1 %v162_v7  ;;  %v296_v6 = vld [vmem:[#allocation11 + $0x4a8] sm:$0xff]  ;;  %v298_v7 = vld [vmem:[#allocation11 + $0x4b8] sm:$0xff] }
  0x9a   :  { %616 = vmatpush1.msra.mxu0 %v159_v8  ;;  %687 = vmatpush1.msra.mxu1 %v161_v10  ;;  %v295_v8 = vld [vmem:[#allocation11 + $0x4a0] sm:$0xff]  ;;  %v297_v10 = vld [vmem:[#allocation11 + $0x4b0] sm:$0xff] }
  0x9b   :  { %617 = vmatprep.subr.mxu0 %v152_v12  ;;  %688 = vmatprep.subr.mxu1 %v154_v13  ;;  %v288_v12 = vld [vmem:[#allocation11 + $0x468] sm:$0xff]  ;;  %v290_v13 = vld [vmem:[#allocation11 + $0x478] sm:$0xff] }
  0x9c   :  { %618 = vmatpush1.msra.mxu0 %v151_v15  ;;  %689 = vmatpush1.msra.mxu1 %v153_v16  ;;  %v287_v15 = vld [vmem:[#allocation11 + $0x460] sm:$0xff]  ;;  %v289_v16 = vld [vmem:[#allocation11 + $0x470] sm:$0xff] }
  0x9d   :  { %619 = vmatprep.subr.mxu0 %v400_v17  ;;  %690 = vmatprep.subr.mxu1 %v402_v18  ;;  %v280_v17 = vld [vmem:[#allocation11 + $0x428] sm:$0xff]  ;;  %v282_v18 = vld [vmem:[#allocation11 + $0x438] sm:$0xff] }
  0x9e   :  { %620 = vmatpush2.msra.mxu0 %v399_v19  ;;  %691 = vmatpush2.msra.mxu1 %v401_v20  ;;  %v279_v19 = vld [vmem:[#allocation11 + $0x420] sm:$0xff]  ;;  %v281_v20 = vld [vmem:[#allocation11 + $0x430] sm:$0xff] }
  0x9f   :  { %621 = vmatprep.subr.mxu0 %v392_v21  ;;  %692 = vmatprep.subr.mxu1 %v394_v22  ;;  %v863_v21 = vld [vmem:[#allocation12 + $0x3c8] sm:$0xff]  ;;  %v865_v22 = vld [vmem:[#allocation12 + $0x3d8] sm:$0xff] }
  0xa0   :  { %622 = vmatpush2.msra.mxu0 %v391_v23  ;;  %693 = vmatpush2.msra.mxu1 %v393_v24  ;;  %v862_v23 = vld [vmem:[#allocation12 + $0x3c0] sm:$0xff]  ;;  %v864_v24 = vld [vmem:[#allocation12 + $0x3d0] sm:$0xff] }
  0xa1   :  { %623 = vmatprep.subr.mxu0 %v384_v25  ;;  %694 = vmatprep.subr.mxu1 %v386_v27  ;;  %v855_v25 = vld [vmem:[#allocation12 + $0x388] sm:$0xff]  ;;  %v857_v27 = vld [vmem:[#allocation12 + $0x398] sm:$0xff] }
  0xa2   :  { %624 = vmatpush2.msra.mxu0 %v383_v28  ;;  %695 = vmatpush2.msra.mxu1 %v385_v29  ;;  %v854_v28 = vld [vmem:[#allocation12 + $0x380] sm:$0xff]  ;;  %v856_v29 = vld [vmem:[#allocation12 + $0x390] sm:$0xff] }
  0xa3   :  { %625 = vmatprep.subr.mxu0 %v376_v30  ;;  %696 = vmatprep.subr.mxu1 %v378_v31  ;;  %v847_v30 = vld [vmem:[#allocation12 + $0x348] sm:$0xff]  ;;  %v849_v31 = vld [vmem:[#allocation12 + $0x358] sm:$0xff] }
  0xa4   :  { %626 = vmatpush2.msra.mxu0 %v375_v32  ;;  %697 = vmatpush2.msra.mxu1 %v377_v33  ;;  %v846_v32 = vld [vmem:[#allocation12 + $0x340] sm:$0xff]  ;;  %v839_v33 = vld [vmem:[#allocation12 + $0x308] sm:$0xff] }
  0xa5   :  { %627 = vmatprep.subr.mxu0 %v368_v34  ;;  %698 = vmatprep.subr.mxu1 %v370_v35  ;;  %v841_v34 = vld [vmem:[#allocation12 + $0x318] sm:$0xff]  ;;  %v840_v35 = vld [vmem:[#allocation12 + $0x310] sm:$0xff] }
  0xa6   :  { %628 = vmatpush2.msra.mxu0 %v367_v36  ;;  %699 = vmatpush2.msra.mxu1 %v369_v37  ;;  %v831_v36 = vld [vmem:[#allocation12 + $0x2c8] sm:$0xff]  ;;  %v833_v37 = vld [vmem:[#allocation12 + $0x2d8] sm:$0xff] }
  0xa7   :  { %629 = vmatprep.subr.mxu0 %v360_v38  ;;  %700 = vmatprep.subr.mxu1 %v362_v39  ;;  %v830_v38 = vld [vmem:[#allocation12 + $0x2c0] sm:$0xff]  ;;  %v832_v39 = vld [vmem:[#allocation12 + $0x2d0] sm:$0xff] }
  0xa8   :  { %630 = vmatpush2.msra.mxu0 %v359_v40  ;;  %701 = vmatpush2.msra.mxu1 %v361_v41  ;;  %v823_v40 = vld [vmem:[#allocation12 + $0x288] sm:$0xff]  ;;  %v825_v41 = vld [vmem:[#allocation12 + $0x298] sm:$0xff] }
  0xa9   :  { %631 = vmatprep.subr.mxu0 %v352_v42  ;;  %702 = vmatprep.subr.mxu1 %v354_v43  ;;  %v822_v42 = vld [vmem:[#allocation12 + $0x280] sm:$0xff]  ;;  %v824_v43 = vld [vmem:[#allocation12 + $0x290] sm:$0xff] }
  0xaa   :  { %632 = vmatpush2.msra.mxu0 %v351_v44  ;;  %703 = vmatpush2.msra.mxu1 %v353_v45  ;;  %v815_v44 = vld [vmem:[#allocation12 + $0x248] sm:$0xff]  ;;  %v817_v45 = vld [vmem:[#allocation12 + $0x258] sm:$0xff] }
  0xab   :  { %633 = vmatprep.subr.mxu0 %v344_v46  ;;  %704 = vmatprep.subr.mxu1 %v346_v47  ;;  %v814_v46 = vld [vmem:[#allocation12 + $0x240] sm:$0xff]  ;;  %v816_v47 = vld [vmem:[#allocation12 + $0x250] sm:$0xff] }
  0xac   :  { %634 = vmatpush2.msra.mxu0 %v343_v48  ;;  %705 = vmatpush2.msra.mxu1 %v345_v49  ;;  %v807_v48 = vld [vmem:[#allocation12 + $0x208] sm:$0xff]  ;;  %v809_v49 = vld [vmem:[#allocation12 + $0x218] sm:$0xff] }
  0xad   :  { %635 = vmatprep.subr.mxu0 %v336_v50  ;;  %706 = vmatprep.subr.mxu1 %v338_v51  ;;  %v806_v50 = vld [vmem:[#allocation12 + $0x200] sm:$0xff]  ;;  %v808_v51 = vld [vmem:[#allocation12 + $0x210] sm:$0xff] }
  0xae   :  { %636 = vmatpush2.msra.mxu0 %v335_v52  ;;  %707 = vmatpush2.msra.mxu1 %v337_v53  ;;  %v799_v52 = vld [vmem:[#allocation12 + $0x1c8] sm:$0xff]  ;;  %v801_v53 = vld [vmem:[#allocation12 + $0x1d8] sm:$0xff] }
  0xaf   :  { %637 = vmatprep.subr.mxu0 %v328_v54  ;;  %708 = vmatprep.subr.mxu1 %v330_v55  ;;  %v798_v54 = vld [vmem:[#allocation12 + $0x1c0] sm:$0xff]  ;;  %v800_v55 = vld [vmem:[#allocation12 + $0x1d0] sm:$0xff] }
  0xb0   :  { %638 = vmatpush2.msra.mxu0 %v327_v56  ;;  %709 = vmatpush2.msra.mxu1 %v329_v57  ;;  %v791_v56 = vld [vmem:[#allocation12 + $0x188] sm:$0xff]  ;;  %v793_v57 = vld [vmem:[#allocation12 + $0x198] sm:$0xff] }
  0xb1   :  { %639 = vmatprep.subr.mxu0 %v320_v58  ;;  %710 = vmatprep.subr.mxu1 %v322_v59  ;;  %v790_v58 = vld [vmem:[#allocation12 + $0x180] sm:$0xff]  ;;  %v792_v59 = vld [vmem:[#allocation12 + $0x190] sm:$0xff] }
  0xb2   :  { %640 = vmatpush2.msra.mxu0 %v319_v60  ;;  %711 = vmatpush2.msra.mxu1 %v321_v61  ;;  %v783_v60 = vld [vmem:[#allocation12 + $0x148] sm:$0xff]  ;;  %v785_v61 = vld [vmem:[#allocation12 + $0x158] sm:$0xff] }
  0xb3   :  { %641 = vmatprep.subr.mxu0 %v312_v62  ;;  %712 = vmatprep.subr.mxu1 %v314_v63  ;;  %v782_v62 = vld [vmem:[#allocation12 + $0x140] sm:$0xff]  ;;  %v784_v63 = vld [vmem:[#allocation12 + $0x150] sm:$0xff] }
  0xb4   :  { %642 = vmatpush2.msra.mxu0 %v311_v0  ;;  %713 = vmatpush2.msra.mxu1 %v313_v1  ;;  %v775_v0 = vld [vmem:[#allocation12 + $0x108] sm:$0xff]  ;;  %v777_v1 = vld [vmem:[#allocation12 + $0x118] sm:$0xff] }
  0xb5   :  { %643 = vmatprep.subr.mxu0 %v304_v2  ;;  %714 = vmatprep.subr.mxu1 %v306_v3  ;;  %v774_v2 = vld [vmem:[#allocation12 + $0x100] sm:$0xff]  ;;  %v776_v3 = vld [vmem:[#allocation12 + $0x110] sm:$0xff] }
  0xb6   :  { %644 = vmatpush2.msra.mxu0 %v303_v4  ;;  %715 = vmatpush2.msra.mxu1 %v305_v5  ;;  %v767_v4 = vld [vmem:[#allocation12 + $0xc8] sm:$0xff]  ;;  %v769_v5 = vld [vmem:[#allocation12 + $0xd8] sm:$0xff] }
  0xb7   :  { %645 = vmatprep.subr.mxu0 %v296_v6  ;;  %716 = vmatprep.subr.mxu1 %v298_v7  ;;  %v766_v6 = vld [vmem:[#allocation12 + $0xc0] sm:$0xff]  ;;  %v768_v7 = vld [vmem:[#allocation12 + $0xd0] sm:$0xff] }
  0xb8   :  { %646 = vmatpush2.msra.mxu0 %v295_v8  ;;  %717 = vmatpush2.msra.mxu1 %v297_v10  ;;  %v759_v8 = vld [vmem:[#allocation12 + $0x88] sm:$0xff]  ;;  %v761_v10 = vld [vmem:[#allocation12 + $0x98] sm:$0xff] }
  0xb9   :  { %647 = vmatprep.subr.mxu0 %v288_v12  ;;  %718 = vmatprep.subr.mxu1 %v290_v13  ;;  %v758_v12 = vld [vmem:[#allocation12 + $0x80] sm:$0xff]  ;;  %v760_v13 = vld [vmem:[#allocation12 + $0x90] sm:$0xff] }
  0xba   :  { %648 = vmatpush2.msra.mxu0 %v287_v15  ;;  %719 = vmatpush2.msra.mxu1 %v289_v16  ;;  %v751_v15 = vld [vmem:[#allocation12 + $0x48] sm:$0xff]  ;;  %v753_v16 = vld [vmem:[#allocation12 + $0x58] sm:$0xff] }
  0xbb   :  { %649 = vmatprep.subr.mxu0 %v280_v17  ;;  %720 = vmatprep.subr.mxu1 %v282_v18  ;;  %v750_v17 = vld [vmem:[#allocation12 + $0x40] sm:$0xff]  ;;  %v752_v18 = vld [vmem:[#allocation12 + $0x50] sm:$0xff] }
  0xbc   :  { %650 = vmatpush2.msra.mxu0 %v279_v19  ;;  %651 = vmatprep.mubr.f32.mxu0 %v6462_v9  ;;  %v743_v19 = vld [vmem:[#allocation12 + $0x8] sm:$0xff] }
  0xbd   :  { %721 = vmatpush2.msra.mxu1 %v281_v20  ;;  %722 = vmatprep.mubr.f32.mxu1 %v6462_v9  ;;  %v848_v9 = vld [vmem:[#allocation12 + $0x350] sm:$0xff]  ;;  %v745_v20 = vld [vmem:[#allocation12 + $0x18] sm:$0xff] }
  0xbe   :  { %652 = vmatmul.mubr.f32.vlgmr.msra.gmra.mxu0 %v6464_v11  ;;  %723 = vmatmul.mubr.f32.vlgmr.msra.gmra.mxu1 %v6464_v11  ;;  %v838_v11 = vld [vmem:[#allocation12 + $0x300] sm:$0xff] }
  0xbf   :  { %1009 = vmatprep.subr.mxu0 %v863_v21  ;;  %1080 = vmatprep.subr.mxu1 %v865_v22  ;;  %v742_v21 = vld [vmem:[#allocation12] sm:$0xff]  ;;  %v744_v22 = vld [vmem:[#allocation12 + $0x10] sm:$0xff] }
  0xc0   :  { %1010 = vmatpush1.msra.mxu0 %v862_v23  ;;  %1081 = vmatpush1.msra.mxu1 %v864_v24  ;;  %v991_v23 = vld [vmem:[#allocation12 + $0x7c8] sm:$0xff]  ;;  %v993_v24 = vld [vmem:[#allocation12 + $0x7d8] sm:$0xff] }
  0xc1   :  { %1011 = vmatprep.subr.mxu0 %v855_v25  ;;  %1082 = vmatprep.subr.mxu1 %v857_v27  ;;  %v990_v25 = vld [vmem:[#allocation12 + $0x7c0] sm:$0xff]  ;;  %v992_v27 = vld [vmem:[#allocation12 + $0x7d0] sm:$0xff] }
  0xc2   :  { %1012 = vmatpush1.msra.mxu0 %v854_v28  ;;  %1083 = vmatpush1.msra.mxu1 %v856_v29  ;;  %v983_v28 = vld [vmem:[#allocation12 + $0x788] sm:$0xff]  ;;  %v985_v29 = vld [vmem:[#allocation12 + $0x798] sm:$0xff] }
  0xc3   :  { %1013 = vmatprep.subr.mxu0 %v847_v30  ;;  %1084 = vmatprep.subr.mxu1 %v849_v31  ;;  %v982_v30 = vld [vmem:[#allocation12 + $0x780] sm:$0xff]  ;;  %v984_v31 = vld [vmem:[#allocation12 + $0x790] sm:$0xff] }
  0xc4   :  { %1014 = vmatpush1.msra.mxu0 %v846_v32  ;;  %1085 = vmatpush1.msra.mxu1 %v848_v9  ;;  %v975_v32 = vld [vmem:[#allocation12 + $0x748] sm:$0xff]  ;;  %v977_v9 = vld [vmem:[#allocation12 + $0x758] sm:$0xff] }
  0xc5   :  { %1015 = vmatprep.subr.mxu0 %v839_v33  ;;  %1086 = vmatprep.subr.mxu1 %v841_v34  ;;  %v974_v33 = vld [vmem:[#allocation12 + $0x740] sm:$0xff]  ;;  %v976_v34 = vld [vmem:[#allocation12 + $0x750] sm:$0xff] }
  0xc6   :  { %1016 = vmatpush1.msra.mxu0 %v838_v11  ;;  %1087 = vmatpush1.msra.mxu1 %v840_v35  ;;  %v967_v11 = vld [vmem:[#allocation12 + $0x708] sm:$0xff]  ;;  %v969_v35 = vld [vmem:[#allocation12 + $0x718] sm:$0xff] }
  0xc7   :  { %1017 = vmatprep.subr.mxu0 %v831_v36  ;;  %1088 = vmatprep.subr.mxu1 %v833_v37  ;;  %v966_v36 = vld [vmem:[#allocation12 + $0x700] sm:$0xff]  ;;  %v968_v37 = vld [vmem:[#allocation12 + $0x710] sm:$0xff] }
  0xc8   :  { %1018 = vmatpush1.msra.mxu0 %v830_v38  ;;  %1089 = vmatpush1.msra.mxu1 %v832_v39  ;;  %v959_v38 = vld [vmem:[#allocation12 + $0x6c8] sm:$0xff]  ;;  %v961_v39 = vld [vmem:[#allocation12 + $0x6d8] sm:$0xff] }
  0xc9   :  { %1019 = vmatprep.subr.mxu0 %v823_v40  ;;  %1090 = vmatprep.subr.mxu1 %v825_v41  ;;  %v958_v40 = vld [vmem:[#allocation12 + $0x6c0] sm:$0xff]  ;;  %v960_v41 = vld [vmem:[#allocation12 + $0x6d0] sm:$0xff] }
  0xca   :  { %1020 = vmatpush1.msra.mxu0 %v822_v42  ;;  %1091 = vmatpush1.msra.mxu1 %v824_v43  ;;  %v951_v42 = vld [vmem:[#allocation12 + $0x688] sm:$0xff]  ;;  %v953_v43 = vld [vmem:[#allocation12 + $0x698] sm:$0xff] }
  0xcb   :  { %1021 = vmatprep.subr.mxu0 %v815_v44  ;;  %1092 = vmatprep.subr.mxu1 %v817_v45  ;;  %v950_v44 = vld [vmem:[#allocation12 + $0x680] sm:$0xff]  ;;  %v952_v45 = vld [vmem:[#allocation12 + $0x690] sm:$0xff] }
  0xcc   :  { %1022 = vmatpush1.msra.mxu0 %v814_v46  ;;  %1093 = vmatpush1.msra.mxu1 %v816_v47  ;;  %v943_v46 = vld [vmem:[#allocation12 + $0x648] sm:$0xff]  ;;  %v945_v47 = vld [vmem:[#allocation12 + $0x658] sm:$0xff] }
  0xcd   :  { %1023 = vmatprep.subr.mxu0 %v807_v48  ;;  %1094 = vmatprep.subr.mxu1 %v809_v49  ;;  %v942_v48 = vld [vmem:[#allocation12 + $0x640] sm:$0xff]  ;;  %v944_v49 = vld [vmem:[#allocation12 + $0x650] sm:$0xff] }
  0xce   :  { %1024 = vmatpush1.msra.mxu0 %v806_v50  ;;  %1095 = vmatpush1.msra.mxu1 %v808_v51  ;;  %v935_v50 = vld [vmem:[#allocation12 + $0x608] sm:$0xff]  ;;  %v937_v51 = vld [vmem:[#allocation12 + $0x618] sm:$0xff] }
  0xcf   :  { %1025 = vmatprep.subr.mxu0 %v799_v52  ;;  %1096 = vmatprep.subr.mxu1 %v801_v53  ;;  %v934_v52 = vld [vmem:[#allocation12 + $0x600] sm:$0xff]  ;;  %v936_v53 = vld [vmem:[#allocation12 + $0x610] sm:$0xff] }
  0xd0   :  { %1026 = vmatpush1.msra.mxu0 %v798_v54  ;;  %1097 = vmatpush1.msra.mxu1 %v800_v55  ;;  %v927_v54 = vld [vmem:[#allocation12 + $0x5c8] sm:$0xff]  ;;  %v929_v55 = vld [vmem:[#allocation12 + $0x5d8] sm:$0xff] }
  0xd1   :  { %1027 = vmatprep.subr.mxu0 %v791_v56  ;;  %1098 = vmatprep.subr.mxu1 %v793_v57  ;;  %v926_v56 = vld [vmem:[#allocation12 + $0x5c0] sm:$0xff]  ;;  %v928_v57 = vld [vmem:[#allocation12 + $0x5d0] sm:$0xff] }
  0xd2   :  { %1028 = vmatpush1.msra.mxu0 %v790_v58  ;;  %1099 = vmatpush1.msra.mxu1 %v792_v59  ;;  %v919_v58 = vld [vmem:[#allocation12 + $0x588] sm:$0xff]  ;;  %v921_v59 = vld [vmem:[#allocation12 + $0x598] sm:$0xff] }
  0xd3   :  { %1029 = vmatprep.subr.mxu0 %v783_v60  ;;  %1100 = vmatprep.subr.mxu1 %v785_v61  ;;  %v918_v60 = vld [vmem:[#allocation12 + $0x580] sm:$0xff]  ;;  %v920_v61 = vld [vmem:[#allocation12 + $0x590] sm:$0xff] }
  0xd4   :  { %1030 = vmatpush1.msra.mxu0 %v782_v62  ;;  %1101 = vmatpush1.msra.mxu1 %v784_v63  ;;  %v911_v62 = vld [vmem:[#allocation12 + $0x548] sm:$0xff]  ;;  %v913_v63 = vld [vmem:[#allocation12 + $0x558] sm:$0xff] }
  0xd5   :  { %1031 = vmatprep.subr.mxu0 %v775_v0  ;;  %1102 = vmatprep.subr.mxu1 %v777_v1  ;;  %v910_v0 = vld [vmem:[#allocation12 + $0x540] sm:$0xff]  ;;  %v912_v1 = vld [vmem:[#allocation12 + $0x550] sm:$0xff] }
  0xd6   :  { %1032 = vmatpush1.msra.mxu0 %v774_v2  ;;  %1103 = vmatpush1.msra.mxu1 %v776_v3  ;;  %v903_v2 = vld [vmem:[#allocation12 + $0x508] sm:$0xff]  ;;  %v905_v3 = vld [vmem:[#allocation12 + $0x518] sm:$0xff] }
  0xd7   :  { %1033 = vmatprep.subr.mxu0 %v767_v4  ;;  %1104 = vmatprep.subr.mxu1 %v769_v5  ;;  %v6475_v4 = vshrl.u32 %v90_v14, 7  ;;  %v902_v5 = vld [vmem:[#allocation12 + $0x500] sm:$0xff] }
  0xd8   :  { %1034 = vmatpush1.msra.mxu0 %v766_v6  ;;  %1105 = vmatpush1.msra.mxu1 %v768_v7  ;;  %v904_v6 = vld [vmem:[#allocation12 + $0x510] sm:$0xff]  ;;  %v895_v7 = vld [vmem:[#allocation12 + $0x4c8] sm:$0xff]  ;;  %v886_v14 = vld [vmem:[#allocation12 + $0x480] sm:$0xff] }
  0xd9   :  { %1035 = vmatprep.subr.mxu0 %v759_v8  ;;  %1106 = vmatprep.subr.mxu1 %v761_v10  ;;  %v897_v8 = vld [vmem:[#allocation12 + $0x4d8] sm:$0xff]  ;;  %v894_v10 = vld [vmem:[#allocation12 + $0x4c0] sm:$0xff] }
  0xda   :  { %1036 = vmatpush1.msra.mxu0 %v758_v12  ;;  %1107 = vmatpush1.msra.mxu1 %v760_v13  ;;  %v896_v12 = vld [vmem:[#allocation12 + $0x4d0] sm:$0xff]  ;;  %v887_v13 = vld [vmem:[#allocation12 + $0x488] sm:$0xff] }
  0xdb   :  { %1037 = vmatprep.subr.mxu0 %v751_v15  ;;  %1108 = vmatprep.subr.mxu1 %v753_v16  ;;  %v889_v15 = vld [vmem:[#allocation12 + $0x498] sm:$0xff]  ;;  %v6478_v16 = vsub.s32 1, %v6475_v4 }
  0xdc   :  { %1038 = vmatpush1.msra.mxu0 %v750_v17  ;;  %1109 = vmatpush1.msra.mxu1 %v752_v18  ;;  %v888_v17 = vld [vmem:[#allocation12 + $0x490] sm:$0xff]  ;;  %v737_v18 = vld [vmem:[%s6687_s2] sm:$0x3] }
  0xdd   :  { %1039 = vmatprep.subr.mxu0 %v743_v19  ;;  %1110 = vmatprep.subr.mxu1 %v745_v20  ;;  %v879_v19 = vld [vmem:[#allocation12 + $0x448] sm:$0xff]  ;;  %v881_v20 = vld [vmem:[#allocation12 + $0x458] sm:$0xff] }
  0xde   :  { %1040 = vmatpush1.msra.mxu0 %v742_v21  ;;  %1111 = vmatpush1.msra.mxu1 %v744_v22  ;;  %v6484_v21 = vsub.s32 0, %v6475_v4  ;;  %v878_v22 = vld [vmem:[#allocation12 + $0x440] sm:$0xff] }
  0xdf   :  { %1041 = vmatprep.subr.mxu0 %v991_v23  ;;  %1112 = vmatprep.subr.mxu1 %v993_v24  ;;  %v880_v23 = vld [vmem:[#allocation12 + $0x450] sm:$0xff]  ;;  %v871_v24 = vld [vmem:[#allocation12 + $0x408] sm:$0xff] }
  0xe0   :  { %1042 = vmatpush2.msra.mxu0 %v990_v25  ;;  %1113 = vmatpush2.msra.mxu1 %v992_v27  ;;  %v873_v25 = vld [vmem:[#allocation12 + $0x418] sm:$0xff]  ;;  %v6487_v27 = vrot.slane %v737_v18, %v6478_v16 }
  0xe1   :  { %1043 = vmatprep.subr.mxu0 %v983_v28  ;;  %1114 = vmatprep.subr.mxu1 %v985_v29  ;;  %v870_v28 = vld [vmem:[#allocation12 + $0x400] sm:$0xff]  ;;  %v872_v29 = vld [vmem:[#allocation12 + $0x410] sm:$0xff] }
  0xe2   :  { %1044 = vmatpush2.msra.mxu0 %v982_v30  ;;  %1115 = vmatpush2.msra.mxu1 %v984_v31  ;;  %v6490_v30 = vrot.slane %v737_v18, %v6484_v21  ;;  %v867_v31 = vld [vmem:[#allocation12 + $0x3e8] sm:$0xff]  ;;  %v773_v18 = vld [vmem:[#allocation12 + $0xf8] sm:$0xff] }
  0xe3   :  { %1045 = vmatprep.subr.mxu0 %v975_v32  ;;  %1116 = vmatprep.subr.mxu1 %v977_v9  ;;  %v869_v32 = vld [vmem:[#allocation12 + $0x3f8] sm:$0xff]  ;;  %v866_v9 = vld [vmem:[#allocation12 + $0x3e0] sm:$0xff] }
  0xe4   :  { %1046 = vmatpush2.msra.mxu0 %v974_v33  ;;  %1117 = vmatpush2.msra.mxu1 %v976_v34  ;;  %v868_v33 = vld [vmem:[#allocation12 + $0x3f0] sm:$0xff]  ;;  %v859_v34 = vld [vmem:[#allocation12 + $0x3a8] sm:$0xff] }
  0xe5   :  { %1047 = vmatprep.subr.mxu0 %v967_v11  ;;  %1118 = vmatprep.subr.mxu1 %v969_v35  ;;  %v861_v11 = vld [vmem:[#allocation12 + $0x3b8] sm:$0xff]  ;;  %v858_v35 = vld [vmem:[#allocation12 + $0x3a0] sm:$0xff] }
  0xe6   :  { %1048 = vmatpush2.msra.mxu0 %v966_v36  ;;  %1119 = vmatpush2.msra.mxu1 %v968_v37  ;;  %v860_v36 = vld [vmem:[#allocation12 + $0x3b0] sm:$0xff]  ;;  %v851_v37 = vld [vmem:[#allocation12 + $0x368] sm:$0xff] }
  0xe7   :  { %1049 = vmatprep.subr.mxu0 %v959_v38  ;;  %1120 = vmatprep.subr.mxu1 %v961_v39  ;;  %v853_v38 = vld [vmem:[#allocation12 + $0x378] sm:$0xff]  ;;  %v850_v39 = vld [vmem:[#allocation12 + $0x360] sm:$0xff] }
  0xe8   :  { %1050 = vmatpush2.msra.mxu0 %v958_v40  ;;  %1121 = vmatpush2.msra.mxu1 %v960_v41  ;;  %v852_v40 = vld [vmem:[#allocation12 + $0x370] sm:$0xff]  ;;  %v843_v41 = vld [vmem:[#allocation12 + $0x328] sm:$0xff] }
  0xe9   :  { %1051 = vmatprep.subr.mxu0 %v951_v42  ;;  %1122 = vmatprep.subr.mxu1 %v953_v43  ;;  %v845_v42 = vld [vmem:[#allocation12 + $0x338] sm:$0xff]  ;;  %v842_v43 = vld [vmem:[#allocation12 + $0x320] sm:$0xff] }
  0xea   :  { %1052 = vmatpush2.msra.mxu0 %v950_v44  ;;  %1123 = vmatpush2.msra.mxu1 %v952_v45  ;;  %v844_v44 = vld [vmem:[#allocation12 + $0x330] sm:$0xff]  ;;  %v835_v45 = vld [vmem:[#allocation12 + $0x2e8] sm:$0xff] }
  0xeb   :  { %1053 = vmatprep.subr.mxu0 %v943_v46  ;;  %1124 = vmatprep.subr.mxu1 %v945_v47  ;;  %v837_v46 = vld [vmem:[#allocation12 + $0x2f8] sm:$0xff]  ;;  %v834_v47 = vld [vmem:[#allocation12 + $0x2e0] sm:$0xff] }
  0xec   :  { %1054 = vmatpush2.msra.mxu0 %v942_v48  ;;  %1125 = vmatpush2.msra.mxu1 %v944_v49  ;;  %v836_v48 = vld [vmem:[#allocation12 + $0x2f0] sm:$0xff]  ;;  %v827_v49 = vld [vmem:[#allocation12 + $0x2a8] sm:$0xff] }
  0xed   :  { %1055 = vmatprep.subr.mxu0 %v935_v50  ;;  %1126 = vmatprep.subr.mxu1 %v937_v51  ;;  %v829_v50 = vld [vmem:[#allocation12 + $0x2b8] sm:$0xff]  ;;  %v826_v51 = vld [vmem:[#allocation12 + $0x2a0] sm:$0xff] }
  0xee   :  { %1056 = vmatpush2.msra.mxu0 %v934_v52  ;;  %1127 = vmatpush2.msra.mxu1 %v936_v53  ;;  %v828_v52 = vld [vmem:[#allocation12 + $0x2b0] sm:$0xff]  ;;  %v819_v53 = vld [vmem:[#allocation12 + $0x268] sm:$0xff] }
  0xef   :  { %1057 = vmatprep.subr.mxu0 %v927_v54  ;;  %1128 = vmatprep.subr.mxu1 %v929_v55  ;;  %v821_v54 = vld [vmem:[#allocation12 + $0x278] sm:$0xff]  ;;  %v818_v55 = vld [vmem:[#allocation12 + $0x260] sm:$0xff] }
  0xf0   :  { %1058 = vmatpush2.msra.mxu0 %v926_v56  ;;  %1129 = vmatpush2.msra.mxu1 %v928_v57  ;;  %v820_v56 = vld [vmem:[#allocation12 + $0x270] sm:$0xff]  ;;  %v811_v57 = vld [vmem:[#allocation12 + $0x228] sm:$0xff] }
  0xf1   :  { %1059 = vmatprep.subr.mxu0 %v919_v58  ;;  %1130 = vmatprep.subr.mxu1 %v921_v59  ;;  %v813_v58 = vld [vmem:[#allocation12 + $0x238] sm:$0xff]  ;;  %v810_v59 = vld [vmem:[#allocation12 + $0x220] sm:$0xff] }
  0xf2   :  { %1060 = vmatpush2.msra.mxu0 %v918_v60  ;;  %1131 = vmatpush2.msra.mxu1 %v920_v61  ;;  %v812_v60 = vld [vmem:[#allocation12 + $0x230] sm:$0xff]  ;;  %v803_v61 = vld [vmem:[#allocation12 + $0x1e8] sm:$0xff] }
  0xf3   :  { %1061 = vmatprep.subr.mxu0 %v911_v62  ;;  %1132 = vmatprep.subr.mxu1 %v913_v63  ;;  %v805_v62 = vld [vmem:[#allocation12 + $0x1f8] sm:$0xff]  ;;  %v802_v63 = vld [vmem:[#allocation12 + $0x1e0] sm:$0xff] }
  0xf4   :  { %1062 = vmatpush2.msra.mxu0 %v910_v0  ;;  %1133 = vmatpush2.msra.mxu1 %v912_v1  ;;  %v804_v0 = vld [vmem:[#allocation12 + $0x1f0] sm:$0xff]  ;;  %v795_v1 = vld [vmem:[#allocation12 + $0x1a8] sm:$0xff] }
  0xf5   :  { %1063 = vmatprep.subr.mxu0 %v903_v2  ;;  %1134 = vmatprep.subr.mxu1 %v905_v3  ;;  %v797_v2 = vld [vmem:[#allocation12 + $0x1b8] sm:$0xff]  ;;  %v794_v3 = vld [vmem:[#allocation12 + $0x1a0] sm:$0xff] }
  0xf6   :  { %1064 = vmatpush2.msra.mxu0 %v902_v5  ;;  %1135 = vmatpush2.msra.mxu1 %v904_v6  ;;  %v796_v5 = vld [vmem:[#allocation12 + $0x1b0] sm:$0xff]  ;;  %v787_v6 = vld [vmem:[#allocation12 + $0x168] sm:$0xff] }
  0xf7   :  { %1065 = vmatprep.subr.mxu0 %v895_v7  ;;  %1136 = vmatprep.subr.mxu1 %v897_v8  ;;  %v789_v7 = vld [vmem:[#allocation12 + $0x178] sm:$0xff]  ;;  %v786_v8 = vld [vmem:[#allocation12 + $0x160] sm:$0xff] }
  0xf8   :  { %1066 = vmatpush2.msra.mxu0 %v894_v10  ;;  %1137 = vmatpush2.msra.mxu1 %v896_v12  ;;  %v788_v10 = vld [vmem:[#allocation12 + $0x170] sm:$0xff]  ;;  %v779_v12 = vld [vmem:[#allocation12 + $0x128] sm:$0xff] }
  0xf9   :  { %1067 = vmatprep.subr.mxu0 %v887_v13  ;;  %1138 = vmatprep.subr.mxu1 %v889_v15  ;;  %v781_v13 = vld [vmem:[#allocation12 + $0x138] sm:$0xff]  ;;  %v778_v15 = vld [vmem:[#allocation12 + $0x120] sm:$0xff] }
  0xfa   :  { %1068 = vmatpush2.msra.mxu0 %v886_v14  ;;  %1139 = vmatpush2.msra.mxu1 %v888_v17  ;;  %v780_v14 = vld [vmem:[#allocation12 + $0x130] sm:$0xff]  ;;  %v771_v17 = vld [vmem:[#allocation12 + $0xe8] sm:$0xff] }
  0xfb   :  { %1069 = vmatprep.subr.mxu0 %v879_v19  ;;  %1140 = vmatprep.subr.mxu1 %v881_v20  ;;  %v770_v19 = vld [vmem:[#allocation12 + $0xe0] sm:$0xff]  ;;  %v772_v20 = vld [vmem:[#allocation12 + $0xf0] sm:$0xff] }
  0xfc   :  { %1070 = vmatpush2.msra.mxu0 %v878_v22  ;;  %1141 = vmatpush2.msra.mxu1 %v880_v23  ;;  %v763_v22 = vld [vmem:[#allocation12 + $0xa8] sm:$0xff]  ;;  %v765_v23 = vld [vmem:[#allocation12 + $0xb8] sm:$0xff] }
  0xfd   :  { %1071 = vmatprep.subr.mxu0 %v871_v24  ;;  %1142 = vmatprep.subr.mxu1 %v873_v25  ;;  %v762_v24 = vld [vmem:[#allocation12 + $0xa0] sm:$0xff]  ;;  %v764_v25 = vld [vmem:[#allocation12 + $0xb0] sm:$0xff] }
  0xfe   :  { %1072 = vmatpush2.msra.mxu0 %v870_v28  ;;  %1073 = vmatprep.mubr.f32.mxu0 %v6487_v27  ;;  %v755_v28 = vld [vmem:[#allocation12 + $0x68] sm:$0xff] }
  0xff   :  { %1143 = vmatpush2.msra.mxu1 %v872_v29  ;;  %1144 = vmatprep.mubr.f32.mxu1 %v6487_v27  ;;  %v757_v29 = vld [vmem:[#allocation12 + $0x78] sm:$0xff] }
 0x100   :  { %1074 = vmatmul.mubr.f32.vlgmr.msra.gmra.mxu0 %v6490_v30  ;;  %1145 = vmatmul.mubr.f32.vlgmr.msra.gmra.mxu1 %v6490_v30 }
 0x101   :  { %1151 = vmatprep.subr.mxu0 %v867_v31  ;;  %1222 = vmatprep.subr.mxu1 %v869_v32  ;;  %v754_v31 = vld [vmem:[#allocation12 + $0x60] sm:$0xff]  ;;  %v756_v32 = vld [vmem:[#allocation12 + $0x70] sm:$0xff] }
 0x102   :  { %1152 = vmatpush1.msra.mxu0 %v866_v9  ;;  %1223 = vmatpush1.msra.mxu1 %v868_v33  ;;  %v747_v9 = vld [vmem:[#allocation12 + $0x28] sm:$0xff]  ;;  %v749_v33 = vld [vmem:[#allocation12 + $0x38] sm:$0xff] }
 0x103   :  { %1153 = vmatprep.subr.mxu0 %v859_v34  ;;  %1224 = vmatprep.subr.mxu1 %v861_v11  ;;  %v746_v34 = vld [vmem:[#allocation12 + $0x20] sm:$0xff]  ;;  %v748_v11 = vld [vmem:[#allocation12 + $0x30] sm:$0xff] }
 0x104   :  { %1154 = vmatpush1.msra.mxu0 %v858_v35  ;;  %1225 = vmatpush1.msra.mxu1 %v860_v36  ;;  %v995_v35 = vld [vmem:[#allocation12 + $0x7e8] sm:$0xff]  ;;  %v997_v36 = vld [vmem:[#allocation12 + $0x7f8] sm:$0xff] }
 0x105   :  { %1155 = vmatprep.subr.mxu0 %v851_v37  ;;  %1226 = vmatprep.subr.mxu1 %v853_v38  ;;  %v994_v37 = vld [vmem:[#allocation12 + $0x7e0] sm:$0xff]  ;;  %v996_v38 = vld [vmem:[#allocation12 + $0x7f0] sm:$0xff] }
 0x106   :  { %1156 = vmatpush1.msra.mxu0 %v850_v39  ;;  %1227 = vmatpush1.msra.mxu1 %v852_v40  ;;  %v987_v39 = vld [vmem:[#allocation12 + $0x7a8] sm:$0xff]  ;;  %v989_v40 = vld [vmem:[#allocation12 + $0x7b8] sm:$0xff] }
 0x107   :  { %1157 = vmatprep.subr.mxu0 %v843_v41  ;;  %1228 = vmatprep.subr.mxu1 %v845_v42  ;;  %v986_v41 = vld [vmem:[#allocation12 + $0x7a0] sm:$0xff]  ;;  %v988_v42 = vld [vmem:[#allocation12 + $0x7b0] sm:$0xff] }
 0x108   :  { %1158 = vmatpush1.msra.mxu0 %v842_v43  ;;  %1229 = vmatpush1.msra.mxu1 %v844_v44  ;;  %v979_v43 = vld [vmem:[#allocation12 + $0x768] sm:$0xff]  ;;  %v981_v44 = vld [vmem:[#allocation12 + $0x778] sm:$0xff] }
 0x109   :  { %1159 = vmatprep.subr.mxu0 %v835_v45  ;;  %1230 = vmatprep.subr.mxu1 %v837_v46  ;;  %v978_v45 = vld [vmem:[#allocation12 + $0x760] sm:$0xff]  ;;  %v980_v46 = vld [vmem:[#allocation12 + $0x770] sm:$0xff] }
 0x10a   :  { %1160 = vmatpush1.msra.mxu0 %v834_v47  ;;  %1231 = vmatpush1.msra.mxu1 %v836_v48  ;;  %v971_v47 = vld [vmem:[#allocation12 + $0x728] sm:$0xff]  ;;  %v973_v48 = vld [vmem:[#allocation12 + $0x738] sm:$0xff] }
 0x10b   :  { %1161 = vmatprep.subr.mxu0 %v827_v49  ;;  %1232 = vmatprep.subr.mxu1 %v829_v50  ;;  %v970_v49 = vld [vmem:[#allocation12 + $0x720] sm:$0xff]  ;;  %v972_v50 = vld [vmem:[#allocation12 + $0x730] sm:$0xff] }
 0x10c   :  { %1162 = vmatpush1.msra.mxu0 %v826_v51  ;;  %1233 = vmatpush1.msra.mxu1 %v828_v52  ;;  %v963_v51 = vld [vmem:[#allocation12 + $0x6e8] sm:$0xff]  ;;  %v965_v52 = vld [vmem:[#allocation12 + $0x6f8] sm:$0xff] }
 0x10d   :  { %1163 = vmatprep.subr.mxu0 %v819_v53  ;;  %1234 = vmatprep.subr.mxu1 %v821_v54  ;;  %v962_v53 = vld [vmem:[#allocation12 + $0x6e0] sm:$0xff]  ;;  %v964_v54 = vld [vmem:[#allocation12 + $0x6f0] sm:$0xff] }
 0x10e   :  { %1164 = vmatpush1.msra.mxu0 %v818_v55  ;;  %1235 = vmatpush1.msra.mxu1 %v820_v56  ;;  %v955_v55 = vld [vmem:[#allocation12 + $0x6a8] sm:$0xff]  ;;  %v957_v56 = vld [vmem:[#allocation12 + $0x6b8] sm:$0xff] }
 0x10f   :  { %1165 = vmatprep.subr.mxu0 %v811_v57  ;;  %1236 = vmatprep.subr.mxu1 %v813_v58  ;;  %v954_v57 = vld [vmem:[#allocation12 + $0x6a0] sm:$0xff]  ;;  %v956_v58 = vld [vmem:[#allocation12 + $0x6b0] sm:$0xff] }
 0x110   :  { %1166 = vmatpush1.msra.mxu0 %v810_v59  ;;  %1237 = vmatpush1.msra.mxu1 %v812_v60  ;;  %v947_v59 = vld [vmem:[#allocation12 + $0x668] sm:$0xff]  ;;  %v949_v60 = vld [vmem:[#allocation12 + $0x678] sm:$0xff] }
 0x111   :  { %1167 = vmatprep.subr.mxu0 %v803_v61  ;;  %1238 = vmatprep.subr.mxu1 %v805_v62  ;;  %v946_v61 = vld [vmem:[#allocation12 + $0x660] sm:$0xff]  ;;  %v948_v62 = vld [vmem:[#allocation12 + $0x670] sm:$0xff] }
 0x112   :  { %1168 = vmatpush1.msra.mxu0 %v802_v63  ;;  %1239 = vmatpush1.msra.mxu1 %v804_v0  ;;  %v939_v63 = vld [vmem:[#allocation12 + $0x628] sm:$0xff]  ;;  %v941_v0 = vld [vmem:[#allocation12 + $0x638] sm:$0xff] }
 0x113   :  { %1169 = vmatprep.subr.mxu0 %v795_v1  ;;  %1240 = vmatprep.subr.mxu1 %v797_v2  ;;  %v938_v1 = vld [vmem:[#allocation12 + $0x620] sm:$0xff]  ;;  %v940_v2 = vld [vmem:[#allocation12 + $0x630] sm:$0xff] }
 0x114   :  { %1170 = vmatpush1.msra.mxu0 %v794_v3  ;;  %1241 = vmatpush1.msra.mxu1 %v796_v5  ;;  %v931_v3 = vld [vmem:[#allocation12 + $0x5e8] sm:$0xff]  ;;  %v933_v5 = vld [vmem:[#allocation12 + $0x5f8] sm:$0xff] }
 0x115   :  { %1171 = vmatprep.subr.mxu0 %v787_v6  ;;  %1242 = vmatprep.subr.mxu1 %v789_v7  ;;  %v930_v6 = vld [vmem:[#allocation12 + $0x5e0] sm:$0xff]  ;;  %v932_v7 = vld [vmem:[#allocation12 + $0x5f0] sm:$0xff] }
 0x116   :  { %1172 = vmatpush1.msra.mxu0 %v786_v8  ;;  %1243 = vmatpush1.msra.mxu1 %v788_v10  ;;  %v923_v8 = vld [vmem:[#allocation12 + $0x5a8] sm:$0xff]  ;;  %v925_v10 = vld [vmem:[#allocation12 + $0x5b8] sm:$0xff] }
 0x117   :  { %1173 = vmatprep.subr.mxu0 %v779_v12  ;;  %1244 = vmatprep.subr.mxu1 %v781_v13  ;;  %v922_v12 = vld [vmem:[#allocation12 + $0x5a0] sm:$0xff]  ;;  %v924_v13 = vld [vmem:[#allocation12 + $0x5b0] sm:$0xff] }
 0x118   :  { %1174 = vmatpush1.msra.mxu0 %v778_v15  ;;  %1245 = vmatpush1.msra.mxu1 %v780_v14  ;;  %v915_v15 = vld [vmem:[#allocation12 + $0x568] sm:$0xff]  ;;  %v917_v14 = vld [vmem:[#allocation12 + $0x578] sm:$0xff] }
 0x119   :  { %1175 = vmatprep.subr.mxu0 %v771_v17  ;;  %1246 = vmatprep.subr.mxu1 %v773_v18  ;;  %v914_v17 = vld [vmem:[#allocation12 + $0x560] sm:$0xff]  ;;  %v916_v18 = vld [vmem:[#allocation12 + $0x570] sm:$0xff] }
 0x11a   :  { %1176 = vmatpush1.msra.mxu0 %v770_v19  ;;  %1247 = vmatpush1.msra.mxu1 %v772_v20  ;;  %v907_v19 = vld [vmem:[#allocation12 + $0x528] sm:$0xff]  ;;  %v909_v20 = vld [vmem:[#allocation12 + $0x538] sm:$0xff] }
 0x11b   :  { %1177 = vmatprep.subr.mxu0 %v763_v22  ;;  %1248 = vmatprep.subr.mxu1 %v765_v23  ;;  %v906_v22 = vld [vmem:[#allocation12 + $0x520] sm:$0xff]  ;;  %v908_v23 = vld [vmem:[#allocation12 + $0x530] sm:$0xff] }
 0x11c   :  { %1178 = vmatpush1.msra.mxu0 %v762_v24  ;;  %1249 = vmatpush1.msra.mxu1 %v764_v25  ;;  %v415_v24 = vsub.s32 2, %v6475_v4  ;;  %v899_v25 = vld [vmem:[#allocation12 + $0x4e8] sm:$0xff] }
 0x11d   :  { %1179 = vmatprep.subr.mxu0 %v755_v28  ;;  %1250 = vmatprep.subr.mxu1 %v757_v29  ;;  %v901_v28 = vld [vmem:[#allocation12 + $0x4f8] sm:$0xff] }
 0x11e   :  { %1180 = vmatpush1.msra.mxu0 %v754_v31  ;;  %1251 = vmatpush1.msra.mxu1 %v756_v32  ;;  %v6500_v29 = vld [vmem:[%s6691_s6] sm:$0xff]  ;;  %v900_v32 = vld [vmem:[#allocation12 + $0x4f0] sm:$0xff]  ;;  %s6333_s6 = smov [#allocation15]  }
 0x11f   :  { %1181 = vmatprep.subr.mxu0 %v747_v9  ;;  %1252 = vmatprep.subr.mxu1 %v749_v33  ;;  %v898_v31 = vld [vmem:[#allocation12 + $0x4e0] sm:$0xff]  ;;  %v419_v9 = vsub.s32 3, %v6475_v4  ;;  %v891_v33 = vld [vmem:[#allocation12 + $0x4a8] sm:$0xff]  ;;  %s5939_s5 = sshll.u32 %s6333_s6, 4  ;;  %s5940_s5 = int_to_ptr.vmem [resolvable:$true] %s5939_s5 }
 0x120   :  { %1182 = vmatpush1.msra.mxu0 %v746_v34  ;;  %1253 = vmatpush1.msra.mxu1 %v748_v11  ;;  %v893_v34 = vld [vmem:[#allocation12 + $0x4b8] sm:$0xff]  ;;  %v890_v11 = vld [vmem:[#allocation12 + $0x4a0] sm:$0xff]  ;;  %s6251_s16 = scalar_lea.vmem %s5940_s5, 32  ;;  %p6256_p7 = scmp.lt.s32.totalorder %s5940_s5, %s5940_s5 }
 0x121   :  { %1183 = vmatprep.subr.mxu0 %v995_v35  ;;  %1254 = vmatprep.subr.mxu1 %v997_v36  ;;  %v892_v35 = vld [vmem:[#allocation12 + $0x4b0] sm:$0xff]  ;;  %v408_v36 = vrot.slane %v6500_v29, %v6484_v21  ;;  %p6252_p6 = scmp.ne.s32.totalorder %s5940_s5, %s6251_s16  ;;  %p6257_p8 = scmp.lt.s32.totalorder %s6251_s16, %s6251_s16 }
 0x122   :  { %1184 = vmatpush2.msra.mxu0 %v994_v37  ;;  %1255 = vmatpush2.msra.mxu1 %v996_v38  ;;  %v416_v37 = vrot.slane %v6500_v29, %v415_v24  ;;  %v883_v38 = vld [vmem:[#allocation12 + $0x468] sm:$0xff]  ;;  %v1488_v24 = vld [vmem:[#allocation12 + $0x318] sm:$0xff] }
 0x123   :  { %1185 = vmatprep.subr.mxu0 %v987_v39  ;;  %1256 = vmatprep.subr.mxu1 %v989_v40  ;;  %v885_v39 = vld [vmem:[#allocation12 + $0x478] sm:$0xff]  ;;  %v882_v40 = vld [vmem:[#allocation12 + $0x460] sm:$0xff]  ;;  %p6258_p9 = por %p6257_p8, %p6256_p7 }
 0x124   :  { %1186 = vmatpush2.msra.mxu0 %v986_v41  ;;  %1257 = vmatpush2.msra.mxu1 %v988_v42  ;;  %v884_v41 = vld [vmem:[#allocation12 + $0x470] sm:$0xff]  ;;  %v412_v42 = vrot.slane %v6500_v29, %v6478_v16 }
 0x125   :  { %1187 = vmatprep.subr.mxu0 %v979_v43  ;;  %1258 = vmatprep.subr.mxu1 %v981_v44  ;;  %v420_v43 = vrot.slane %v6500_v29, %v419_v9  ;;  %v875_v44 = vld [vmem:[#allocation12 + $0x428] sm:$0xff]  ;;  %v1479_v9 = vld [vmem:[#allocation12 + $0x2d0] sm:$0xff]  ;;  %p6259_p10 = pnand %p6258_p9, %p6252_p6 }
 0x126   :  { %1188 = vmatpush2.msra.mxu0 %v978_v45  ;;  %1259 = vmatpush2.msra.mxu1 %v980_v46  ;;  %v877_v45 = vld [vmem:[#allocation12 + $0x438] sm:$0xff] }
 0x127   :  { %1189 = vmatprep.subr.mxu0 %v971_v47  ;;  %1260 = vmatprep.subr.mxu1 %v973_v48  ;;  %v874_v48 = vld [vmem:[#allocation12 + $0x420] sm:$0xff] }
 0x128   :  { %1190 = vmatpush2.msra.mxu0 %v970_v49  ;;  %1261 = vmatpush2.msra.mxu1 %v972_v50 }
 0x129   :  { %1191 = vmatprep.subr.mxu0 %v963_v51  ;;  %1262 = vmatprep.subr.mxu1 %v965_v52  ;;  %v876_v51 = vld [vmem:[#allocation12 + $0x430] sm:$0xff] }
 0x12a   :  { %1192 = vmatpush2.msra.mxu0 %v962_v53  ;;  %1263 = vmatpush2.msra.mxu1 %v964_v54 }
 0x12b   :  { %1193 = vmatprep.subr.mxu0 %v955_v55  ;;  %1264 = vmatprep.subr.mxu1 %v957_v56  ;;  %v423_v56 = vsub.s32 4, %v6475_v4 }
 0x12c   :  { %1194 = vmatpush2.msra.mxu0 %v954_v57  ;;  %1265 = vmatpush2.msra.mxu1 %v956_v58  ;;  %v431_v57 = vsub.s32 6, %v6475_v4  ;;  %v427_v58 = vsub.s32 5, %v6475_v4 }
 0x12d   :  { %1195 = vmatprep.subr.mxu0 %v947_v59  ;;  %1266 = vmatprep.subr.mxu1 %v949_v60  ;;  %v435_v59 = vsub.s32 7, %v6475_v4  ;;  %v424_v60 = vrot.slane %v6500_v29, %v423_v56  ;;  %v1422_v56 = vld [vmem:[#allocation12 + $0x108] sm:$0xff] }
 0x12e   :  { %1196 = vmatpush2.msra.mxu0 %v946_v61  ;;  %1267 = vmatpush2.msra.mxu1 %v948_v62  ;;  %v432_v61 = vrot.slane %v6500_v29, %v431_v57  ;;  %v1424_v57 = vld [vmem:[#allocation12 + $0x118] sm:$0xff] }
 0x12f   :  { %1197 = vmatprep.subr.mxu0 %v939_v63  ;;  %1268 = vmatprep.subr.mxu1 %v941_v0  ;;  %v436_v62 = vrot.slane %v6500_v29, %v435_v59  ;;  %v1423_v59 = vld [vmem:[#allocation12 + $0x110] sm:$0xff] }
 0x130   :  { %1198 = vmatpush2.msra.mxu0 %v938_v1  ;;  %1269 = vmatpush2.msra.mxu1 %v940_v2 }
 0x131   :  { %1199 = vmatprep.subr.mxu0 %v931_v3  ;;  %1270 = vmatprep.subr.mxu1 %v933_v5 }
 0x132   :  { %1200 = vmatpush2.msra.mxu0 %v930_v6  ;;  %1271 = vmatpush2.msra.mxu1 %v932_v7  ;;  %v1510_v7 = vld [vmem:[#allocation12 + $0x3c8] sm:$0xff] }
 0x133   :  { %1201 = vmatprep.subr.mxu0 %v923_v8  ;;  %1272 = vmatprep.subr.mxu1 %v925_v10  ;;  %v1512_v8 = vld [vmem:[#allocation12 + $0x3d8] sm:$0xff]  ;;  %v1509_v10 = vld [vmem:[#allocation12 + $0x3c0] sm:$0xff] }
 0x134   :  { %1202 = vmatpush2.msra.mxu0 %v922_v12  ;;  %1273 = vmatpush2.msra.mxu1 %v924_v13  ;;  %v1511_v12 = vld [vmem:[#allocation12 + $0x3d0] sm:$0xff]  ;;  %v1502_v13 = vld [vmem:[#allocation12 + $0x388] sm:$0xff] }
 0x135   :  { %1203 = vmatprep.subr.mxu0 %v915_v15  ;;  %1274 = vmatprep.subr.mxu1 %v917_v14  ;;  %v1504_v15 = vld [vmem:[#allocation12 + $0x398] sm:$0xff]  ;;  %v1501_v14 = vld [vmem:[#allocation12 + $0x380] sm:$0xff] }
 0x136   :  { %1204 = vmatpush2.msra.mxu0 %v914_v17  ;;  %1275 = vmatpush2.msra.mxu1 %v916_v18  ;;  %v1503_v17 = vld [vmem:[#allocation12 + $0x390] sm:$0xff]  ;;  %v1494_v18 = vld [vmem:[#allocation12 + $0x348] sm:$0xff] }
 0x137   :  { %1205 = vmatprep.subr.mxu0 %v907_v19  ;;  %1276 = vmatprep.subr.mxu1 %v909_v20  ;;  %v1496_v19 = vld [vmem:[#allocation12 + $0x358] sm:$0xff]  ;;  %v1493_v20 = vld [vmem:[#allocation12 + $0x340] sm:$0xff] }
 0x138   :  { %1206 = vmatpush2.msra.mxu0 %v906_v22  ;;  %1277 = vmatpush2.msra.mxu1 %v908_v23  ;;  %v1495_v22 = vld [vmem:[#allocation12 + $0x350] sm:$0xff]  ;;  %v1486_v23 = vld [vmem:[#allocation12 + $0x308] sm:$0xff] }
 0x139   :  { %1207 = vmatprep.subr.mxu0 %v899_v25  ;;  %1278 = vmatprep.subr.mxu1 %v901_v28  ;;  %v1485_v25 = vld [vmem:[#allocation12 + $0x300] sm:$0xff]  ;;  %v1487_v28 = vld [vmem:[#allocation12 + $0x310] sm:$0xff] }
 0x13a   :  { %1208 = vmatpush2.msra.mxu0 %v898_v31  ;;  %1279 = vmatpush2.msra.mxu1 %v900_v32  ;;  %v1480_v31 = vld [vmem:[#allocation12 + $0x2d8] sm:$0xff]  ;;  %v1477_v32 = vld [vmem:[#allocation12 + $0x2c0] sm:$0xff] }
 0x13b   :  { %1209 = vmatprep.subr.mxu0 %v891_v33  ;;  %1280 = vmatprep.subr.mxu1 %v893_v34  ;;  %v1470_v33 = vld [vmem:[#allocation12 + $0x288] sm:$0xff]  ;;  %v1472_v34 = vld [vmem:[#allocation12 + $0x298] sm:$0xff] }
 0x13c   :  { %1210 = vmatpush2.msra.mxu0 %v890_v11  ;;  %1281 = vmatpush2.msra.mxu1 %v892_v35  ;;  %v511_v46 = vpop.f32.mrf.mxu0  ;;  %v582_v47 = vpop.f32.mrf.mxu1  ;;  %v1469_v11 = vld [vmem:[#allocation12 + $0x280] sm:$0xff]  ;;  %v1471_v35 = vld [vmem:[#allocation12 + $0x290] sm:$0xff] }
 0x13d   :  { %1211 = vmatprep.subr.mxu0 %v883_v38  ;;  %1282 = vmatprep.subr.mxu1 %v885_v39  ;;  %v512_v49 = vadd.f32 %v511_v46, %v408_v36  ;;  %v583_v50 = vadd.f32 %v582_v47, %v416_v37  ;;  %v1462_v36 = vld [vmem:[#allocation12 + $0x248] sm:$0xff]  ;;  %v1464_v37 = vld [vmem:[#allocation12 + $0x258] sm:$0xff]  ;;  %v1461_v38 = vld [vmem:[#allocation12 + $0x240] sm:$0xff] }
 0x13e   :  { %1212 = vmatpush2.msra.mxu0 %v882_v40  ;;  %1283 = vmatpush2.msra.mxu1 %v884_v41  ;;  %v513_v52 = vpop.f32.mrf.mxu0  ;;  %v584_v53 = vpop.f32.mrf.mxu1  ;;  %v1463_v39 = vld [vmem:[#allocation12 + $0x250] sm:$0xff]  ;;  %v1454_v40 = vld [vmem:[#allocation12 + $0x208] sm:$0xff]  ;;  %v1456_v41 = vld [vmem:[#allocation12 + $0x218] sm:$0xff] }
 0x13f   :  { %1213 = vmatprep.subr.mxu0 %v875_v44  ;;  %1284 = vmatprep.subr.mxu1 %v877_v45  ;;  %729 = vst [vmem:[#allocation3] sm:$0xff] %v512_v49  ;;  %731 = vst [vmem:[#allocation3 + $0x10] sm:$0xff] %v583_v50  ;;  %v514_v54 = vadd.f32 %v513_v52, %v412_v42  ;;  %v585_v55 = vadd.f32 %v584_v53, %v420_v43  ;;  %v1453_v42 = vld [vmem:[#allocation12 + $0x200] sm:$0xff]  ;;  %v1455_v43 = vld [vmem:[#allocation12 + $0x210] sm:$0xff] }
 0x140   :  { %1214 = vmatpush2.msra.mxu0 %v874_v48  ;;  %1215 = vmatprep.mubr.f32.mxu0 %v6487_v27  ;;  %v1446_v44 = vld [vmem:[#allocation12 + $0x1c8] sm:$0xff]  ;;  %v1448_v45 = vld [vmem:[#allocation12 + $0x1d8] sm:$0xff]  ;;  %v1445_v46 = vld [vmem:[#allocation12 + $0x1c0] sm:$0xff] }
 0x141   :  { %1285 = vmatpush2.msra.mxu1 %v876_v51  ;;  %1286 = vmatprep.mubr.f32.mxu1 %v6487_v27  ;;  %730 = vst [vmem:[#allocation3 + $0x8] sm:$0xff] %v514_v54  ;;  %732 = vst [vmem:[#allocation3 + $0x18] sm:$0xff] %v585_v55  ;;  %v428_v27 = vrot.slane %v6500_v29, %v427_v58  ;;  %v1478_v29 = vld [vmem:[#allocation12 + $0x2c8] sm:$0xff]  ;;  %v1447_v47 = vld [vmem:[#allocation12 + $0x1d0] sm:$0xff] }
 0x142   :  { %1216 = vmatmul.mubr.f32.vlgmr.msra.gmra.mxu0 %v6490_v30  ;;  %1287 = vmatmul.mubr.f32.vlgmr.msra.gmra.mxu1 %v6490_v30  ;;  %v1438_v48 = vld [vmem:[#allocation12 + $0x188] sm:$0xff]  ;;  %v1440_v49 = vld [vmem:[#allocation12 + $0x198] sm:$0xff]  ;;  %v1437_v50 = vld [vmem:[#allocation12 + $0x180] sm:$0xff] }
 0x143   :  { %1656 = vmatprep.subr.mxu0 %v1510_v7  ;;  %1727 = vmatprep.subr.mxu1 %v1512_v8  ;;  %v1439_v51 = vld [vmem:[#allocation12 + $0x190] sm:$0xff]  ;;  %v1430_v52 = vld [vmem:[#allocation12 + $0x148] sm:$0xff]  ;;  %v1432_v53 = vld [vmem:[#allocation12 + $0x158] sm:$0xff] }
 0x144   :  { %1657 = vmatpush1.msra.mxu0 %v1509_v10  ;;  %1728 = vmatpush1.msra.mxu1 %v1511_v12  ;;  %v1429_v54 = vld [vmem:[#allocation12 + $0x140] sm:$0xff]  ;;  %v1431_v55 = vld [vmem:[#allocation12 + $0x150] sm:$0xff]  ;;  %v1390_v7 = vld [vmem:[#allocation12 + $0x8] sm:$0xff] }
 0x145   :  { %1658 = vmatprep.subr.mxu0 %v1502_v13  ;;  %1729 = vmatprep.subr.mxu1 %v1504_v15  ;;  %v1421_v58 = vld [vmem:[#allocation12 + $0x100] sm:$0xff]  ;;  %v1392_v8 = vld [vmem:[#allocation12 + $0x18] sm:$0xff]  ;;  %v1391_v12 = vld [vmem:[#allocation12 + $0x10] sm:$0xff] }
 0x146   :  { %1659 = vmatpush1.msra.mxu0 %v1501_v14  ;;  %1730 = vmatpush1.msra.mxu1 %v1503_v17  ;;  %v1389_v10 = vld [vmem:[#allocation12] sm:$0xff]  ;;  %v1638_v13 = vld [vmem:[#allocation12 + $0x7c8] sm:$0xff]  ;;  %v1640_v15 = vld [vmem:[#allocation12 + $0x7d8] sm:$0xff] }
 0x147   :  { %1660 = vmatprep.subr.mxu0 %v1494_v18  ;;  %1731 = vmatprep.subr.mxu1 %v1496_v19  ;;  %v1637_v14 = vld [vmem:[#allocation12 + $0x7c0] sm:$0xff]  ;;  %v1639_v17 = vld [vmem:[#allocation12 + $0x7d0] sm:$0xff]  ;;  %v1630_v18 = vld [vmem:[#allocation12 + $0x788] sm:$0xff] }
 0x148   :  { %1661 = vmatpush1.msra.mxu0 %v1493_v20  ;;  %1732 = vmatpush1.msra.mxu1 %v1495_v22  ;;  %v1632_v19 = vld [vmem:[#allocation12 + $0x798] sm:$0xff]  ;;  %v1629_v20 = vld [vmem:[#allocation12 + $0x780] sm:$0xff]  ;;  %v1631_v22 = vld [vmem:[#allocation12 + $0x790] sm:$0xff] }
 0x149   :  { %1662 = vmatprep.subr.mxu0 %v1486_v23  ;;  %1733 = vmatprep.subr.mxu1 %v1488_v24  ;;  %v1622_v23 = vld [vmem:[#allocation12 + $0x748] sm:$0xff]  ;;  %v1624_v24 = vld [vmem:[#allocation12 + $0x758] sm:$0xff] }
 0x14a   :  { %1663 = vmatpush1.msra.mxu0 %v1485_v25  ;;  %1734 = vmatpush1.msra.mxu1 %v1487_v28  ;;  %v1621_v25 = vld [vmem:[#allocation12 + $0x740] sm:$0xff]  ;;  %v1623_v28 = vld [vmem:[#allocation12 + $0x750] sm:$0xff] }
 0x14b   :  { %1664 = vmatprep.subr.mxu0 %v1478_v29  ;;  %1735 = vmatprep.subr.mxu1 %v1480_v31  ;;  %v1614_v29 = vld [vmem:[#allocation12 + $0x708] sm:$0xff]  ;;  %v1616_v31 = vld [vmem:[#allocation12 + $0x718] sm:$0xff] }
 0x14c   :  { %1665 = vmatpush1.msra.mxu0 %v1477_v32  ;;  %1736 = vmatpush1.msra.mxu1 %v1479_v9  ;;  %v1613_v32 = vld [vmem:[#allocation12 + $0x700] sm:$0xff]  ;;  %v1615_v9 = vld [vmem:[#allocation12 + $0x710] sm:$0xff] }
 0x14d   :  { %1666 = vmatprep.subr.mxu0 %v1470_v33  ;;  %1737 = vmatprep.subr.mxu1 %v1472_v34  ;;  %v1606_v33 = vld [vmem:[#allocation12 + $0x6c8] sm:$0xff]  ;;  %v1608_v34 = vld [vmem:[#allocation12 + $0x6d8] sm:$0xff] }
 0x14e   :  { %1667 = vmatpush1.msra.mxu0 %v1469_v11  ;;  %1738 = vmatpush1.msra.mxu1 %v1471_v35  ;;  %v1605_v11 = vld [vmem:[#allocation12 + $0x6c0] sm:$0xff]  ;;  %v1607_v35 = vld [vmem:[#allocation12 + $0x6d0] sm:$0xff] }
 0x14f   :  { %1668 = vmatprep.subr.mxu0 %v1462_v36  ;;  %1739 = vmatprep.subr.mxu1 %v1464_v37  ;;  %v1598_v36 = vld [vmem:[#allocation12 + $0x688] sm:$0xff]  ;;  %v1600_v37 = vld [vmem:[#allocation12 + $0x698] sm:$0xff] }
 0x150   :  { %1669 = vmatpush1.msra.mxu0 %v1461_v38  ;;  %1740 = vmatpush1.msra.mxu1 %v1463_v39  ;;  %v1597_v38 = vld [vmem:[#allocation12 + $0x680] sm:$0xff]  ;;  %v1599_v39 = vld [vmem:[#allocation12 + $0x690] sm:$0xff] }
 0x151   :  { %1670 = vmatprep.subr.mxu0 %v1454_v40  ;;  %1741 = vmatprep.subr.mxu1 %v1456_v41  ;;  %v1590_v40 = vld [vmem:[#allocation12 + $0x648] sm:$0xff]  ;;  %v1592_v41 = vld [vmem:[#allocation12 + $0x658] sm:$0xff] }
 0x152   :  { %1671 = vmatpush1.msra.mxu0 %v1453_v42  ;;  %1742 = vmatpush1.msra.mxu1 %v1455_v43  ;;  %v1589_v42 = vld [vmem:[#allocation12 + $0x640] sm:$0xff]  ;;  %v1591_v43 = vld [vmem:[#allocation12 + $0x650] sm:$0xff] }
 0x153   :  { %1672 = vmatprep.subr.mxu0 %v1446_v44  ;;  %1743 = vmatprep.subr.mxu1 %v1448_v45  ;;  %v1582_v44 = vld [vmem:[#allocation12 + $0x608] sm:$0xff]  ;;  %v1584_v45 = vld [vmem:[#allocation12 + $0x618] sm:$0xff] }
 0x154   :  { %1673 = vmatpush1.msra.mxu0 %v1445_v46  ;;  %1744 = vmatpush1.msra.mxu1 %v1447_v47  ;;  %v1581_v46 = vld [vmem:[#allocation12 + $0x600] sm:$0xff]  ;;  %v1583_v47 = vld [vmem:[#allocation12 + $0x610] sm:$0xff] }
 0x155   :  { %1674 = vmatprep.subr.mxu0 %v1438_v48  ;;  %1745 = vmatprep.subr.mxu1 %v1440_v49  ;;  %v1574_v48 = vld [vmem:[#allocation12 + $0x5c8] sm:$0xff]  ;;  %v1576_v49 = vld [vmem:[#allocation12 + $0x5d8] sm:$0xff] }
 0x156   :  { %1675 = vmatpush1.msra.mxu0 %v1437_v50  ;;  %1746 = vmatpush1.msra.mxu1 %v1439_v51  ;;  %v1573_v50 = vld [vmem:[#allocation12 + $0x5c0] sm:$0xff]  ;;  %v1575_v51 = vld [vmem:[#allocation12 + $0x5d0] sm:$0xff] }
 0x157   :  { %1676 = vmatprep.subr.mxu0 %v1430_v52  ;;  %1747 = vmatprep.subr.mxu1 %v1432_v53  ;;  %v1566_v52 = vld [vmem:[#allocation12 + $0x588] sm:$0xff]  ;;  %v1568_v53 = vld [vmem:[#allocation12 + $0x598] sm:$0xff] }
 0x158   :  { %1677 = vmatpush1.msra.mxu0 %v1429_v54  ;;  %1748 = vmatpush1.msra.mxu1 %v1431_v55  ;;  %v1565_v54 = vld [vmem:[#allocation12 + $0x580] sm:$0xff]  ;;  %v1567_v55 = vld [vmem:[#allocation12 + $0x590] sm:$0xff] }
 0x159   :  { %1678 = vmatprep.subr.mxu0 %v1422_v56  ;;  %1749 = vmatprep.subr.mxu1 %v1424_v57  ;;  %v1558_v56 = vld [vmem:[#allocation12 + $0x548] sm:$0xff]  ;;  %v1560_v57 = vld [vmem:[#allocation12 + $0x558] sm:$0xff] }
 0x15a   :  { %1679 = vmatpush1.msra.mxu0 %v1421_v58  ;;  %1750 = vmatpush1.msra.mxu1 %v1423_v59  ;;  %v1557_v58 = vld [vmem:[#allocation12 + $0x540] sm:$0xff]  ;;  %v1559_v59 = vld [vmem:[#allocation12 + $0x550] sm:$0xff] }
 0x17e   :  { %v653_v63 = vpop.f32.mrf.mxu0  ;;  %v724_v0 = vpop.f32.mrf.mxu1 }
 0x17f   :  { %v654_v1 = vadd.f32 %v653_v63, %v424_v60  ;;  %v725_v30 = vadd.f32 %v724_v0, %v432_v61  ;;  %v1414_v60 = vld [vmem:[#allocation12 + $0xc8] sm:$0xff]  ;;  %v1416_v61 = vld [vmem:[#allocation12 + $0xd8] sm:$0xff] }
 0x180   :  { %v655_v2 = vpop.f32.mrf.mxu0  ;;  %v726_v3 = vpop.f32.mrf.mxu1  ;;  %1680 = vmatprep.subr.mxu0 %v1414_v60  ;;  %1751 = vmatprep.subr.mxu1 %v1416_v61  ;;  %v1406_v63 = vld [vmem:[#allocation12 + $0x88] sm:$0xff]  ;;  %v1408_v0 = vld [vmem:[#allocation12 + $0x98] sm:$0xff] }
 0x181   :  { %733 = vst [vmem:[#allocation3 + $0x20] sm:$0xff] %v654_v1  ;;  %735 = vst [vmem:[#allocation3 + $0x30] sm:$0xff] %v725_v30  ;;  %v656_v5 = vadd.f32 %v655_v2, %v428_v27  ;;  %v727_v6 = vadd.f32 %v726_v3, %v436_v62  ;;  %v1413_v27 = vld [vmem:[#allocation12 + $0xc0] sm:$0xff]  ;;  %v1415_v62 = vld [vmem:[#allocation12 + $0xd0] sm:$0xff] }
 0x182   :  { %1681 = vmatpush1.msra.mxu0 %v1413_v27  ;;  %1752 = vmatpush1.msra.mxu1 %v1415_v62  ;;  %v1405_v1 = vld [vmem:[#allocation12 + $0x80] sm:$0xff]  ;;  %v1407_v30 = vld [vmem:[#allocation12 + $0x90] sm:$0xff]  ;;  %v1398_v2 = vld [vmem:[#allocation12 + $0x48] sm:$0xff] }
 0x183   :  { %734 = vst [vmem:[#allocation3 + $0x28] sm:$0xff] %v656_v5  ;;  %736 = vst [vmem:[#allocation3 + $0x38] sm:$0xff] %v727_v6  ;;  %1682 = vmatprep.subr.mxu0 %v1406_v63  ;;  %1753 = vmatprep.subr.mxu1 %v1408_v0  ;;  %v1400_v3 = vld [vmem:[#allocation12 + $0x58] sm:$0xff]  ;;  %v1397_v5 = vld [vmem:[#allocation12 + $0x40] sm:$0xff] }
 0x184   :  { %1683 = vmatpush1.msra.mxu0 %v1405_v1  ;;  %1754 = vmatpush1.msra.mxu1 %v1407_v30  ;;  %v1399_v6 = vld [vmem:[#allocation12 + $0x50] sm:$0xff]  ;;  %v1550_v60 = vld [vmem:[#allocation12 + $0x508] sm:$0xff]  ;;  %v1552_v61 = vld [vmem:[#allocation12 + $0x518] sm:$0xff] }
 0x185   :  { %1684 = vmatprep.subr.mxu0 %v1398_v2  ;;  %1755 = vmatprep.subr.mxu1 %v1400_v3  ;;  %v1549_v27 = vld [vmem:[#allocation12 + $0x500] sm:$0xff]  ;;  %v1551_v62 = vld [vmem:[#allocation12 + $0x510] sm:$0xff]  ;;  %v1542_v63 = vld [vmem:[#allocation12 + $0x4c8] sm:$0xff] }
 0x186   :  { %1685 = vmatpush1.msra.mxu0 %v1397_v5  ;;  %1756 = vmatpush1.msra.mxu1 %v1399_v6  ;;  %v1544_v0 = vld [vmem:[#allocation12 + $0x4d8] sm:$0xff]  ;;  %v1541_v1 = vld [vmem:[#allocation12 + $0x4c0] sm:$0xff]  ;;  %v1543_v30 = vld [vmem:[#allocation12 + $0x4d0] sm:$0xff] }
 0x187   :  { %1686 = vmatprep.subr.mxu0 %v1390_v7  ;;  %1757 = vmatprep.subr.mxu1 %v1392_v8  ;;  %v1534_v2 = vld [vmem:[#allocation12 + $0x488] sm:$0xff]  ;;  %v1536_v3 = vld [vmem:[#allocation12 + $0x498] sm:$0xff]  ;;  %v1533_v5 = vld [vmem:[#allocation12 + $0x480] sm:$0xff] }
 0x188   :  { %1687 = vmatpush1.msra.mxu0 %v1389_v10  ;;  %1758 = vmatpush1.msra.mxu1 %v1391_v12  ;;  %v1535_v6 = vld [vmem:[#allocation12 + $0x490] sm:$0xff]  ;;  %v1526_v7 = vld [vmem:[#allocation12 + $0x448] sm:$0xff]  ;;  %v1528_v8 = vld [vmem:[#allocation12 + $0x458] sm:$0xff] }
 0x189   :  { %1688 = vmatprep.subr.mxu0 %v1638_v13  ;;  %1759 = vmatprep.subr.mxu1 %v1640_v15  ;;  %v1525_v10 = vld [vmem:[#allocation12 + $0x440] sm:$0xff]  ;;  %v1527_v12 = vld [vmem:[#allocation12 + $0x450] sm:$0xff]  ;;  %v1518_v13 = vld [vmem:[#allocation12 + $0x408] sm:$0xff] }
 0x18a   :  { %1689 = vmatpush2.msra.mxu0 %v1637_v14  ;;  %1760 = vmatpush2.msra.mxu1 %v1639_v17  ;;  %v1520_v15 = vld [vmem:[#allocation12 + $0x418] sm:$0xff]  ;;  %v1517_v14 = vld [vmem:[#allocation12 + $0x400] sm:$0xff]  ;;  %v1519_v17 = vld [vmem:[#allocation12 + $0x410] sm:$0xff] }
 0x18b   :  { %1690 = vmatprep.subr.mxu0 %v1630_v18  ;;  %1761 = vmatprep.subr.mxu1 %v1632_v19  ;;  %v1514_v18 = vld [vmem:[#allocation12 + $0x3e8] sm:$0xff]  ;;  %v1516_v19 = vld [vmem:[#allocation12 + $0x3f8] sm:$0xff] }
 0x18c   :  { %1691 = vmatpush2.msra.mxu0 %v1629_v20  ;;  %1762 = vmatpush2.msra.mxu1 %v1631_v22  ;;  %v6332_v20 = vmov 1966171168  }
 0x18d   :  { %1692 = vmatprep.subr.mxu0 %v1622_v23  ;;  %1763 = vmatprep.subr.mxu1 %v1624_v24  ;;  %v1306_v22 = vunpack.c.l.s4 %v6332_v20  ;;  %v1497_v20 = vld [vmem:[#allocation12 + $0x360] sm:$0xff] }
 0x18e   :  { %1693 = vmatpush2.msra.mxu0 %v1621_v25  ;;  %1764 = vmatpush2.msra.mxu1 %v1623_v28 }
 0x18f   :  { %1694 = vmatprep.subr.mxu0 %v1614_v29  ;;  %1765 = vmatprep.subr.mxu1 %v1616_v31  ;;  %v1307_v25 = vunpack.c.0.s8 %v1306_v22  ;;  %v1499_v22 = vld [vmem:[#allocation12 + $0x370] sm:$0xff] }
 0x190   :  { %1695 = vmatpush2.msra.mxu0 %v1613_v32  ;;  %1766 = vmatpush2.msra.mxu1 %v1615_v9 }
 0x191   :  { %1696 = vmatprep.subr.mxu0 %v1606_v33  ;;  %1767 = vmatprep.subr.mxu1 %v1608_v34  ;;  %v6522_v31 = vsub.s32 %v1307_v25, %v6475_v4  ;;  %v740_v4 = vld [vmem:[#allocation3] ss:$8 sm:$0xf0] }
 0x192   :  { %1697 = vmatpush2.msra.mxu0 %v1605_v11  ;;  %1768 = vmatpush2.msra.mxu1 %v1607_v35  ;;  %v1489_v25 = vld [vmem:[#allocation12 + $0x320] sm:$0xff] }
 0x193   :  { %1698 = vmatprep.subr.mxu0 %v1598_v36  ;;  %1769 = vmatprep.subr.mxu1 %v1600_v37 }
 0x194   :  { %1699 = vmatpush2.msra.mxu0 %v1597_v38  ;;  %1770 = vmatpush2.msra.mxu1 %v1599_v39 }
 0x195   :  { %1700 = vmatprep.subr.mxu0 %v1590_v40  ;;  %1771 = vmatprep.subr.mxu1 %v1592_v41 }
 0x196   :  { %1701 = vmatpush2.msra.mxu0 %v1589_v42  ;;  %1772 = vmatpush2.msra.mxu1 %v1591_v43 }
 0x197   :  { %1702 = vmatprep.subr.mxu0 %v1582_v44  ;;  %1773 = vmatprep.subr.mxu1 %v1584_v45 }
 0x198   :  { %1703 = vmatpush2.msra.mxu0 %v1581_v46  ;;  %1774 = vmatpush2.msra.mxu1 %v1583_v47  ;;  %v739_v46 = vld [vmem:[#allocation3] ss:$8 sm:$0xf] }
 0x199   :  { %1704 = vmatprep.subr.mxu0 %v1574_v48  ;;  %1775 = vmatprep.subr.mxu1 %v1576_v49  ;;  %v741_v47 = vor.u32 %v740_v4, %v739_v46  ;;  %v1459_v4 = vld [vmem:[#allocation12 + $0x230] sm:$0xff]  ;;  %v1449_v46 = vld [vmem:[#allocation12 + $0x1e0] sm:$0xff] }
 0x19a   :  { %1705 = vmatpush2.msra.mxu0 %v1573_v50  ;;  %1776 = vmatpush2.msra.mxu1 %v1575_v51 }
 0x19b   :  { %1706 = vmatprep.subr.mxu0 %v1566_v52  ;;  %1777 = vmatprep.subr.mxu1 %v1568_v53 }
 0x19c   :  { %1707 = vmatpush2.msra.mxu0 %v1565_v54  ;;  %1778 = vmatpush2.msra.mxu1 %v1567_v55 }
 0x19d   :  { %1708 = vmatprep.subr.mxu0 %v1558_v56  ;;  %1779 = vmatprep.subr.mxu1 %v1560_v57 }
 0x19e   :  { %1709 = vmatpush2.msra.mxu0 %v1557_v58  ;;  %1780 = vmatpush2.msra.mxu1 %v1559_v59 }
 0x19f   :  { %1710 = vmatprep.subr.mxu0 %v1550_v60  ;;  %1781 = vmatprep.subr.mxu1 %v1552_v61 }
 0x1a0   :  { %1711 = vmatpush2.msra.mxu0 %v1549_v27  ;;  %1782 = vmatpush2.msra.mxu1 %v1551_v62  ;;  %v738_v27 = vld [vmem:[#allocation9] sm:$0x3] }
 0x1a1   :  { %1712 = vmatprep.subr.mxu0 %v1542_v63  ;;  %1783 = vmatprep.subr.mxu1 %v1544_v0 }
 0x1a2   :  { %1713 = vmatpush2.msra.mxu0 %v1541_v1  ;;  %1784 = vmatpush2.msra.mxu1 %v1543_v30 }
 0x1a3   :  { %1714 = vmatprep.subr.mxu0 %v1534_v2  ;;  %1785 = vmatprep.subr.mxu1 %v1536_v3 }
 0x1a4   :  { %1715 = vmatpush2.msra.mxu0 %v1533_v5  ;;  %1786 = vmatpush2.msra.mxu1 %v1535_v6 }
 0x1a5   :  { %1716 = vmatprep.subr.mxu0 %v1526_v7  ;;  %1787 = vmatprep.subr.mxu1 %v1528_v8 }
 0x1a6   :  { %1717 = vmatpush2.msra.mxu0 %v1525_v10  ;;  %1788 = vmatpush2.msra.mxu1 %v1527_v12  ;;  %v1513_v10 = vld [vmem:[#allocation12 + $0x3e0] sm:$0xff]  ;;  %v1515_v12 = vld [vmem:[#allocation12 + $0x3f0] sm:$0xff] }
 0x1a7   :  { %1718 = vmatprep.subr.mxu0 %v1518_v13  ;;  %1789 = vmatprep.subr.mxu1 %v1520_v15  ;;  %v1506_v13 = vld [vmem:[#allocation12 + $0x3a8] sm:$0xff]  ;;  %v1508_v15 = vld [vmem:[#allocation12 + $0x3b8] sm:$0xff] }
 0x1a8   :  { %1719 = vmatpush2.msra.mxu0 %v1517_v14  ;;  %1790 = vmatpush2.msra.mxu1 %v1519_v17  ;;  %v1505_v14 = vld [vmem:[#allocation12 + $0x3a0] sm:$0xff]  ;;  %v1507_v17 = vld [vmem:[#allocation12 + $0x3b0] sm:$0xff] }
 0x1a9   :  { %1798 = vmatprep.subr.mxu0 %v1514_v18  ;;  %1869 = vmatprep.subr.mxu1 %v1516_v19  ;;  %v1498_v18 = vld [vmem:[#allocation12 + $0x368] sm:$0xff]  ;;  %v1500_v19 = vld [vmem:[#allocation12 + $0x378] sm:$0xff] }
 0x1c0   :  { %v1075_v23 = vpop.f32.mrf.mxu0  ;;  %v1146_v24 = vpop.f32.mrf.mxu1 }
 0x1c2   :  { %v1077_v28 = vpop.f32.mrf.mxu0  ;;  %v1148_v29 = vpop.f32.mrf.mxu1 }
 0x1c3   :  { %v1301_v32 = vcombine.low %v1075_v23, %v1077_v28  ;;  %v1302_v9 = vcombine.low %v1146_v24, %v1148_v29  ;;  %v1490_v23 = vld [vmem:[#allocation12 + $0x328] sm:$0xff]  ;;  %v1492_v24 = vld [vmem:[#allocation12 + $0x338] sm:$0xff]  ;;  %v1491_v28 = vld [vmem:[#allocation12 + $0x330] sm:$0xff] }
 0x1c4   :  { %v1482_v29 = vld [vmem:[#allocation12 + $0x2e8] sm:$0xff] }
 0x1c5   :  { %v1311_v11 = vrot.slane %v1301_v32, %v6522_v31  ;;  %v1318_v35 = vrot.slane %v1302_v9, %v6522_v31  ;;  %v1484_v32 = vld [vmem:[#allocation12 + $0x2f8] sm:$0xff]  ;;  %v1481_v9 = vld [vmem:[#allocation12 + $0x2e0] sm:$0xff] }
 0x1c7   :  { %v1333_v40 = vcombine.low %v1311_v11, %v1318_v35  ;;  %v1476_v11 = vld [vmem:[#allocation12 + $0x2b8] sm:$0xff]  ;;  %v1473_v35 = vld [vmem:[#allocation12 + $0x2a0] sm:$0xff] }
 0x1c9   :  { %v1341_v44 = vrot.slane %v1333_v40, %v6522_v31  ;;  %v1467_v40 = vld [vmem:[#allocation12 + $0x270] sm:$0xff] }
 0x202   :  { %v1217_v33 = vpop.f32.mrf.mxu0  ;;  %v1288_v34 = vpop.f32.mrf.mxu1 }
 0x204   :  { %v1219_v36 = vpop.f32.mrf.mxu0  ;;  %v1290_v37 = vpop.f32.mrf.mxu1 }
 0x205   :  { %v1303_v38 = vcombine.low %v1217_v33, %v1219_v36  ;;  %v1304_v39 = vcombine.low %v1288_v34, %v1290_v37  ;;  %v1483_v33 = vld [vmem:[#allocation12 + $0x2f0] sm:$0xff]  ;;  %v1474_v34 = vld [vmem:[#allocation12 + $0x2a8] sm:$0xff] }
 0x206   :  { %v1475_v36 = vld [vmem:[#allocation12 + $0x2b0] sm:$0xff]  ;;  %v1466_v37 = vld [vmem:[#allocation12 + $0x268] sm:$0xff] }
 0x207   :  { %v1325_v41 = vrot.slane %v1303_v38, %v6522_v31  ;;  %v1332_v42 = vrot.slane %v1304_v39, %v6522_v31  ;;  %v1468_v38 = vld [vmem:[#allocation12 + $0x278] sm:$0xff]  ;;  %v1465_v39 = vld [vmem:[#allocation12 + $0x260] sm:$0xff] }
 0x209   :  { %v1334_v43 = vcombine.low %v1325_v41, %v1332_v42  ;;  %v1458_v41 = vld [vmem:[#allocation12 + $0x228] sm:$0xff]  ;;  %v1460_v42 = vld [vmem:[#allocation12 + $0x238] sm:$0xff] }
 0x20b   :  { %v1348_v45 = vrot.slane %v1334_v43, %v6522_v31  ;;  %v1457_v43 = vld [vmem:[#allocation12 + $0x220] sm:$0xff] }
 0x20d   :  { %v1349_v48 = vcombine.low %v1341_v44, %v1348_v45  ;;  %v1450_v44 = vld [vmem:[#allocation12 + $0x1e8] sm:$0xff]  ;;  %v1452_v45 = vld [vmem:[#allocation12 + $0x1f8] sm:$0xff] }
 0x20f   :  { %v1351_v49 = vadd.f32 %v1349_v48, %v741_v47  ;;  %v1451_v47 = vld [vmem:[#allocation12 + $0x1f0] sm:$0xff]  ;;  %v1442_v48 = vld [vmem:[#allocation12 + $0x1a8] sm:$0xff] }
 0x211   :  { %v5998_v50 = vmul.f32 -1.442695, %v1351_v49  ;;  %v1359_v51 = vrot.slane %v1351_v49, 2  ;;  %v1370_v53 = vrot.slane %v1351_v49, 6  ;;  %v1367_v56 = vrot.slane %v1351_v49, 4  ;;  %v1444_v49 = vld [vmem:[#allocation12 + $0x1b8] sm:$0xff] }
 0x213   :  { %6035 = vpow2.f32 %v5998_v50  ;;  %v5999_v52 = vmul.f32 -1.442695, %v1359_v51  ;;  %v6000_v54 = vmul.f32 -1.442695, %v1370_v53  ;;  %v1441_v50 = vld [vmem:[#allocation12 + $0x1a0] sm:$0xff]  ;;  %v1443_v51 = vld [vmem:[#allocation12 + $0x1b0] sm:$0xff] }
 0x214   :  { %v1436_v53 = vld [vmem:[#allocation12 + $0x178] sm:$0xff] }
 0x215   :  { %6037 = vpow2.f32 %v5999_v52  ;;  %v1434_v52 = vld [vmem:[#allocation12 + $0x168] sm:$0xff] }
 0x216   :  { %6039 = vpow2.f32 %v6000_v54  ;;  %v1433_v54 = vld [vmem:[#allocation12 + $0x160] sm:$0xff] }
 0x220   :  { %v6036_v55 = vpop.eup %6035 }
 0x221   :  { %v1355_v57 = vadd.f32 1.0, %v6036_v55  ;;  %v1435_v55 = vld [vmem:[#allocation12 + $0x170] sm:$0xff] }
 0x222   :  { %v6038_v58 = vpop.eup %6037 }
 0x223   :  { %6041 = vrcp.f32 %v1355_v57  ;;  %v1364_v59 = vadd.f32 1.0, %v6038_v58  ;;  %v6040_v60 = vpop.eup %6039  ;;  %v1428_v57 = vld [vmem:[#allocation12 + $0x138] sm:$0xff]  ;;  %v1425_v58 = vld [vmem:[#allocation12 + $0x120] sm:$0xff] }
 0x224   :  { %6043 = vtanh.f32 %v1367_v56  ;;  %v1375_v0 = vadd.f32 1.0, %v6040_v60  ;;  %v1426_v56 = vld [vmem:[#allocation12 + $0x128] sm:$0xff] }
 0x225   :  { %6045 = vrcp.f32 %v1364_v59  ;;  %v1427_v59 = vld [vmem:[#allocation12 + $0x130] sm:$0xff]  ;;  %v1418_v60 = vld [vmem:[#allocation12 + $0xe8] sm:$0xff] }
 0x226   :  { %6047 = vrcp.f32 %v1375_v0  ;;  %v1412_v0 = vld [vmem:[#allocation12 + $0xb8] sm:$0xff] }
 0x230   :  { %v6042_v61 = vpop.eup %6041 }
 0x231   :  { %v6044_v62 = vpop.eup %6043 }
 0x232   :  { %v6046_v63 = vpop.eup %6045  ;;  %v1379_v30 = vmul.f32 %v6044_v62, %v6042_v61  ;;  %v1420_v61 = vld [vmem:[#allocation12 + $0xf8] sm:$0xff]  ;;  %v1419_v62 = vld [vmem:[#allocation12 + $0xf0] sm:$0xff] }
 0x233   :  { %v1378_v1 = vmul.f32 %v6046_v63, %v738_v27  ;;  %v6048_v3 = vpop.eup %6047  ;;  %v1417_v27 = vld [vmem:[#allocation12 + $0xe0] sm:$0xff]  ;;  %v1410_v63 = vld [vmem:[#allocation12 + $0xa8] sm:$0xff] }
 0x235   :  { %v6530_v2 = vadd.f32 %v1379_v30, %v1378_v1  ;;  %v1409_v1 = vld [vmem:[#allocation12 + $0xa0] sm:$0xff]  ;;  %v1411_v30 = vld [vmem:[#allocation12 + $0xb0] sm:$0xff] }
 0x237   :  { %6049 = vtanh.f32 %v6530_v2 }
 0x244   :  { %v6050_v5 = vpop.eup %6049 }
 0x245   :  { %v1382_v6 = vmul.f32 %v6050_v5, %v6048_v3  ;;  %v1402_v3 = vld [vmem:[#allocation12 + $0x68] sm:$0xff]  ;;  %v1404_v5 = vld [vmem:[#allocation12 + $0x78] sm:$0xff] }
 0x247   :  { %1383 = vst.msk [vmem:[#allocation14] ss:$8 sm:$0x3] %vm6426_vm0, %v1382_v6  ;;  %v1653_v7 = vrot.slane %v1382_v6, %v6478_v16  ;;  %v6537_v8 = vrot.slane %v1382_v6, %v6484_v21  ;;  %v1401_v6 = vld [vmem:[#allocation12 + $0x60] sm:$0xff] }
 0x249   :  { %1720 = vmatprep.mubr.f32.mxu0 %v1653_v7  ;;  %1791 = vmatprep.mubr.f32.mxu1 %v1653_v7 }
 0x24a   :  { %1721 = vmatmul.mubr.f32.vlgmr.msra.gmra.mxu0 %v6537_v8  ;;  %1792 = vmatmul.mubr.f32.vlgmr.msra.gmra.mxu1 %v6537_v8 }
 0x24b   :  { %1799 = vmatpush1.msra.mxu0 %v1513_v10  ;;  %1870 = vmatpush1.msra.mxu1 %v1515_v12  ;;  %v1394_v10 = vld [vmem:[#allocation12 + $0x28] sm:$0xff]  ;;  %v1396_v12 = vld [vmem:[#allocation12 + $0x38] sm:$0xff] }
 0x24c   :  { %1800 = vmatprep.subr.mxu0 %v1506_v13  ;;  %1862 = vmatprep.mubr.f32.mxu0 %v1653_v7  ;;  %v1393_v13 = vld [vmem:[#allocation12 + $0x20] sm:$0xff] }
 0x24d   :  { %1871 = vmatprep.subr.mxu1 %v1508_v15  ;;  %1933 = vmatprep.mubr.f32.mxu1 %v1653_v7  ;;  %v1403_v7 = vld [vmem:[#allocation12 + $0x70] sm:$0xff] }
 0x24e   :  { %1801 = vmatpush1.msra.mxu0 %v1505_v14  ;;  %1872 = vmatpush1.msra.mxu1 %v1507_v17  ;;  %v1395_v15 = vld [vmem:[#allocation12 + $0x30] sm:$0xff]  ;;  %v1642_v14 = vld [vmem:[#allocation12 + $0x7e8] sm:$0xff]  ;;  %v1644_v17 = vld [vmem:[#allocation12 + $0x7f8] sm:$0xff] }
 0x24f   :  { %1802 = vmatprep.subr.mxu0 %v1498_v18  ;;  %1873 = vmatprep.subr.mxu1 %v1500_v19  ;;  %v1641_v18 = vld [vmem:[#allocation12 + $0x7e0] sm:$0xff]  ;;  %v1643_v19 = vld [vmem:[#allocation12 + $0x7f0] sm:$0xff] }
 0x250   :  { %1803 = vmatpush1.msra.mxu0 %v1497_v20  ;;  %1874 = vmatpush1.msra.mxu1 %v1499_v22  ;;  %v1634_v20 = vld [vmem:[#allocation12 + $0x7a8] sm:$0xff]  ;;  %v1636_v22 = vld [vmem:[#allocation12 + $0x7b8] sm:$0xff] }
 0x251   :  { %1804 = vmatprep.subr.mxu0 %v1490_v23  ;;  %1875 = vmatprep.subr.mxu1 %v1492_v24  ;;  %v1633_v23 = vld [vmem:[#allocation12 + $0x7a0] sm:$0xff]  ;;  %v1635_v24 = vld [vmem:[#allocation12 + $0x7b0] sm:$0xff] }
 0x252   :  { %1805 = vmatpush1.msra.mxu0 %v1489_v25  ;;  %1876 = vmatpush1.msra.mxu1 %v1491_v28  ;;  %v1626_v25 = vld [vmem:[#allocation12 + $0x768] sm:$0xff]  ;;  %v1628_v28 = vld [vmem:[#allocation12 + $0x778] sm:$0xff] }
 0x253   :  { %1806 = vmatprep.subr.mxu0 %v1482_v29  ;;  %1877 = vmatprep.subr.mxu1 %v1484_v32  ;;  %v1625_v29 = vld [vmem:[#allocation12 + $0x760] sm:$0xff]  ;;  %v1627_v32 = vld [vmem:[#allocation12 + $0x770] sm:$0xff] }
 0x254   :  { %1807 = vmatpush1.msra.mxu0 %v1481_v9  ;;  %1878 = vmatpush1.msra.mxu1 %v1483_v33  ;;  %v1618_v9 = vld [vmem:[#allocation12 + $0x728] sm:$0xff]  ;;  %v1620_v33 = vld [vmem:[#allocation12 + $0x738] sm:$0xff] }
 0x255   :  { %1808 = vmatprep.subr.mxu0 %v1474_v34  ;;  %1879 = vmatprep.subr.mxu1 %v1476_v11  ;;  %v1617_v34 = vld [vmem:[#allocation12 + $0x720] sm:$0xff]  ;;  %v1619_v11 = vld [vmem:[#allocation12 + $0x730] sm:$0xff] }
 0x256   :  { %1809 = vmatpush1.msra.mxu0 %v1473_v35  ;;  %1880 = vmatpush1.msra.mxu1 %v1475_v36  ;;  %v1610_v35 = vld [vmem:[#allocation12 + $0x6e8] sm:$0xff]  ;;  %v1612_v36 = vld [vmem:[#allocation12 + $0x6f8] sm:$0xff] }
 0x257   :  { %1810 = vmatprep.subr.mxu0 %v1466_v37  ;;  %1881 = vmatprep.subr.mxu1 %v1468_v38  ;;  %v1609_v37 = vld [vmem:[#allocation12 + $0x6e0] sm:$0xff]  ;;  %v1611_v38 = vld [vmem:[#allocation12 + $0x6f0] sm:$0xff] }
 0x258   :  { %1811 = vmatpush1.msra.mxu0 %v1465_v39  ;;  %1882 = vmatpush1.msra.mxu1 %v1467_v40  ;;  %v1602_v39 = vld [vmem:[#allocation12 + $0x6a8] sm:$0xff]  ;;  %v1604_v40 = vld [vmem:[#allocation12 + $0x6b8] sm:$0xff] }
 0x259   :  { %1812 = vmatprep.subr.mxu0 %v1458_v41  ;;  %1883 = vmatprep.subr.mxu1 %v1460_v42  ;;  %v1601_v41 = vld [vmem:[#allocation12 + $0x6a0] sm:$0xff]  ;;  %v1603_v42 = vld [vmem:[#allocation12 + $0x6b0] sm:$0xff] }
 0x25a   :  { %1813 = vmatpush1.msra.mxu0 %v1457_v43  ;;  %1884 = vmatpush1.msra.mxu1 %v1459_v4  ;;  %v1594_v43 = vld [vmem:[#allocation12 + $0x668] sm:$0xff]  ;;  %v1596_v4 = vld [vmem:[#allocation12 + $0x678] sm:$0xff] }
 0x25b   :  { %1814 = vmatprep.subr.mxu0 %v1450_v44  ;;  %1885 = vmatprep.subr.mxu1 %v1452_v45  ;;  %v1593_v44 = vld [vmem:[#allocation12 + $0x660] sm:$0xff]  ;;  %v1595_v45 = vld [vmem:[#allocation12 + $0x670] sm:$0xff] }
 0x25c   :  { %1815 = vmatpush1.msra.mxu0 %v1449_v46  ;;  %1886 = vmatpush1.msra.mxu1 %v1451_v47  ;;  %v1586_v46 = vld [vmem:[#allocation12 + $0x628] sm:$0xff]  ;;  %v1588_v47 = vld [vmem:[#allocation12 + $0x638] sm:$0xff] }
 0x25d   :  { %1816 = vmatprep.subr.mxu0 %v1442_v48  ;;  %1887 = vmatprep.subr.mxu1 %v1444_v49  ;;  %v1585_v48 = vld [vmem:[#allocation12 + $0x620] sm:$0xff]  ;;  %v1587_v49 = vld [vmem:[#allocation12 + $0x630] sm:$0xff] }
 0x25e   :  { %1817 = vmatpush1.msra.mxu0 %v1441_v50  ;;  %1888 = vmatpush1.msra.mxu1 %v1443_v51  ;;  %v1578_v50 = vld [vmem:[#allocation12 + $0x5e8] sm:$0xff]  ;;  %v1580_v51 = vld [vmem:[#allocation12 + $0x5f8] sm:$0xff] }
 0x25f   :  { %1818 = vmatprep.subr.mxu0 %v1434_v52  ;;  %1889 = vmatprep.subr.mxu1 %v1436_v53  ;;  %v1577_v52 = vld [vmem:[#allocation12 + $0x5e0] sm:$0xff]  ;;  %v1579_v53 = vld [vmem:[#allocation12 + $0x5f0] sm:$0xff] }
 0x260   :  { %1819 = vmatpush1.msra.mxu0 %v1433_v54  ;;  %1890 = vmatpush1.msra.mxu1 %v1435_v55  ;;  %v1570_v54 = vld [vmem:[#allocation12 + $0x5a8] sm:$0xff]  ;;  %v1572_v55 = vld [vmem:[#allocation12 + $0x5b8] sm:$0xff] }
 0x261   :  { %1820 = vmatprep.subr.mxu0 %v1426_v56  ;;  %1891 = vmatprep.subr.mxu1 %v1428_v57  ;;  %v1569_v56 = vld [vmem:[#allocation12 + $0x5a0] sm:$0xff]  ;;  %v1571_v57 = vld [vmem:[#allocation12 + $0x5b0] sm:$0xff] }
 0x262   :  { %1821 = vmatpush1.msra.mxu0 %v1425_v58  ;;  %1892 = vmatpush1.msra.mxu1 %v1427_v59  ;;  %v1562_v58 = vld [vmem:[#allocation12 + $0x568] sm:$0xff]  ;;  %v1564_v59 = vld [vmem:[#allocation12 + $0x578] sm:$0xff] }
 0x263   :  { %1822 = vmatprep.subr.mxu0 %v1418_v60  ;;  %1893 = vmatprep.subr.mxu1 %v1420_v61  ;;  %v1561_v60 = vld [vmem:[#allocation12 + $0x560] sm:$0xff]  ;;  %v1563_v61 = vld [vmem:[#allocation12 + $0x570] sm:$0xff] }
 0x264   :  { %1823 = vmatpush1.msra.mxu0 %v1417_v27  ;;  %1894 = vmatpush1.msra.mxu1 %v1419_v62  ;;  %v1554_v27 = vld [vmem:[#allocation12 + $0x528] sm:$0xff]  ;;  %v1556_v62 = vld [vmem:[#allocation12 + $0x538] sm:$0xff] }
 0x265   :  { %1824 = vmatprep.subr.mxu0 %v1410_v63  ;;  %1895 = vmatprep.subr.mxu1 %v1412_v0  ;;  %v1553_v63 = vld [vmem:[#allocation12 + $0x520] sm:$0xff]  ;;  %v1555_v0 = vld [vmem:[#allocation12 + $0x530] sm:$0xff] }
 0x266   :  { %1825 = vmatpush1.msra.mxu0 %v1409_v1  ;;  %1896 = vmatpush1.msra.mxu1 %v1411_v30  ;;  %v1546_v1 = vld [vmem:[#allocation12 + $0x4e8] sm:$0xff]  ;;  %v1548_v30 = vld [vmem:[#allocation12 + $0x4f8] sm:$0xff] }
 0x267   :  { %1826 = vmatprep.subr.mxu0 %v1402_v3  ;;  %1897 = vmatprep.subr.mxu1 %v1404_v5  ;;  %v1545_v3 = vld [vmem:[#allocation12 + $0x4e0] sm:$0xff]  ;;  %v1547_v5 = vld [vmem:[#allocation12 + $0x4f0] sm:$0xff] }
 0x268   :  { %1827 = vmatpush1.msra.mxu0 %v1401_v6  ;;  %1898 = vmatpush1.msra.mxu1 %v1403_v7  ;;  %v1538_v6 = vld [vmem:[#allocation12 + $0x4a8] sm:$0xff]  ;;  %v1540_v7 = vld [vmem:[#allocation12 + $0x4b8] sm:$0xff] }
 0x269   :  { %1828 = vmatprep.subr.mxu0 %v1394_v10  ;;  %1899 = vmatprep.subr.mxu1 %v1396_v12  ;;  %v1537_v10 = vld [vmem:[#allocation12 + $0x4a0] sm:$0xff]  ;;  %v1539_v12 = vld [vmem:[#allocation12 + $0x4b0] sm:$0xff] }
 0x26a   :  { %1829 = vmatpush1.msra.mxu0 %v1393_v13  ;;  %1900 = vmatpush1.msra.mxu1 %v1395_v15  ;;  %v1530_v13 = vld [vmem:[#allocation12 + $0x468] sm:$0xff]  ;;  %v1532_v15 = vld [vmem:[#allocation12 + $0x478] sm:$0xff] }
 0x26b   :  { %1830 = vmatprep.subr.mxu0 %v1642_v14  ;;  %1901 = vmatprep.subr.mxu1 %v1644_v17  ;;  %v1529_v14 = vld [vmem:[#allocation12 + $0x460] sm:$0xff]  ;;  %v1531_v17 = vld [vmem:[#allocation12 + $0x470] sm:$0xff] }
 0x26c   :  { %1831 = vmatpush2.msra.mxu0 %v1641_v18  ;;  %1902 = vmatpush2.msra.mxu1 %v1643_v19  ;;  %v1522_v18 = vld [vmem:[#allocation12 + $0x428] sm:$0xff]  ;;  %v1524_v19 = vld [vmem:[#allocation12 + $0x438] sm:$0xff] }
 0x26d   :  { %1832 = vmatprep.subr.mxu0 %v1634_v20  ;;  %1903 = vmatprep.subr.mxu1 %v1636_v22  ;;  %v1521_v20 = vld [vmem:[#allocation12 + $0x420] sm:$0xff]  ;;  %v1523_v22 = vld [vmem:[#allocation12 + $0x430] sm:$0xff] }
 0x26e   :  { %1833 = vmatpush2.msra.mxu0 %v1633_v23  ;;  %1904 = vmatpush2.msra.mxu1 %v1635_v24  ;;  %v2158_v23 = vld [vmem:[#allocation12 + $0x3c8] sm:$0xff]  ;;  %v2160_v24 = vld [vmem:[#allocation12 + $0x3d8] sm:$0xff] }
 0x26f   :  { %1834 = vmatprep.subr.mxu0 %v1626_v25  ;;  %1905 = vmatprep.subr.mxu1 %v1628_v28  ;;  %v2157_v25 = vld [vmem:[#allocation12 + $0x3c0] sm:$0xff]  ;;  %v2159_v28 = vld [vmem:[#allocation12 + $0x3d0] sm:$0xff] }
 0x270   :  { %1835 = vmatpush2.msra.mxu0 %v1625_v29  ;;  %1906 = vmatpush2.msra.mxu1 %v1627_v32  ;;  %v2150_v29 = vld [vmem:[#allocation12 + $0x388] sm:$0xff]  ;;  %v2152_v32 = vld [vmem:[#allocation12 + $0x398] sm:$0xff] }
 0x271   :  { %1836 = vmatprep.subr.mxu0 %v1618_v9  ;;  %1907 = vmatprep.subr.mxu1 %v1620_v33  ;;  %v2149_v9 = vld [vmem:[#allocation12 + $0x380] sm:$0xff]  ;;  %v2151_v33 = vld [vmem:[#allocation12 + $0x390] sm:$0xff] }
 0x272   :  { %1837 = vmatpush2.msra.mxu0 %v1617_v34  ;;  %1908 = vmatpush2.msra.mxu1 %v1619_v11  ;;  %v2142_v34 = vld [vmem:[#allocation12 + $0x348] sm:$0xff]  ;;  %v2144_v11 = vld [vmem:[#allocation12 + $0x358] sm:$0xff] }
 0x273   :  { %1838 = vmatprep.subr.mxu0 %v1610_v35  ;;  %1909 = vmatprep.subr.mxu1 %v1612_v36  ;;  %v2143_v35 = vld [vmem:[#allocation12 + $0x350] sm:$0xff]  ;;  %v2134_v36 = vld [vmem:[#allocation12 + $0x308] sm:$0xff] }
 0x274   :  { %1839 = vmatpush2.msra.mxu0 %v1609_v37  ;;  %1910 = vmatpush2.msra.mxu1 %v1611_v38  ;;  %v2136_v37 = vld [vmem:[#allocation12 + $0x318] sm:$0xff]  ;;  %v2133_v38 = vld [vmem:[#allocation12 + $0x300] sm:$0xff] }
 0x275   :  { %1840 = vmatprep.subr.mxu0 %v1602_v39  ;;  %1911 = vmatprep.subr.mxu1 %v1604_v40  ;;  %v2135_v39 = vld [vmem:[#allocation12 + $0x310] sm:$0xff]  ;;  %v2126_v40 = vld [vmem:[#allocation12 + $0x2c8] sm:$0xff] }
 0x276   :  { %1841 = vmatpush2.msra.mxu0 %v1601_v41  ;;  %1912 = vmatpush2.msra.mxu1 %v1603_v42  ;;  %v2128_v41 = vld [vmem:[#allocation12 + $0x2d8] sm:$0xff]  ;;  %v2125_v42 = vld [vmem:[#allocation12 + $0x2c0] sm:$0xff] }
 0x277   :  { %1842 = vmatprep.subr.mxu0 %v1594_v43  ;;  %1913 = vmatprep.subr.mxu1 %v1596_v4  ;;  %v2127_v43 = vld [vmem:[#allocation12 + $0x2d0] sm:$0xff]  ;;  %v2118_v4 = vld [vmem:[#allocation12 + $0x288] sm:$0xff] }
 0x278   :  { %1843 = vmatpush2.msra.mxu0 %v1593_v44  ;;  %1914 = vmatpush2.msra.mxu1 %v1595_v45  ;;  %v2120_v44 = vld [vmem:[#allocation12 + $0x298] sm:$0xff]  ;;  %v2117_v45 = vld [vmem:[#allocation12 + $0x280] sm:$0xff] }
 0x279   :  { %1844 = vmatprep.subr.mxu0 %v1586_v46  ;;  %1915 = vmatprep.subr.mxu1 %v1588_v47  ;;  %v2119_v46 = vld [vmem:[#allocation12 + $0x290] sm:$0xff]  ;;  %v2110_v47 = vld [vmem:[#allocation12 + $0x248] sm:$0xff] }
 0x27a   :  { %1845 = vmatpush2.msra.mxu0 %v1585_v48  ;;  %1916 = vmatpush2.msra.mxu1 %v1587_v49  ;;  %v2112_v48 = vld [vmem:[#allocation12 + $0x258] sm:$0xff]  ;;  %v2109_v49 = vld [vmem:[#allocation12 + $0x240] sm:$0xff] }
 0x27b   :  { %1846 = vmatprep.subr.mxu0 %v1578_v50  ;;  %1917 = vmatprep.subr.mxu1 %v1580_v51  ;;  %v2111_v50 = vld [vmem:[#allocation12 + $0x250] sm:$0xff]  ;;  %v2102_v51 = vld [vmem:[#allocation12 + $0x208] sm:$0xff] }
 0x27c   :  { %1847 = vmatpush2.msra.mxu0 %v1577_v52  ;;  %1918 = vmatpush2.msra.mxu1 %v1579_v53  ;;  %v2104_v52 = vld [vmem:[#allocation12 + $0x218] sm:$0xff]  ;;  %v2101_v53 = vld [vmem:[#allocation12 + $0x200] sm:$0xff] }
 0x27d   :  { %1848 = vmatprep.subr.mxu0 %v1570_v54  ;;  %1919 = vmatprep.subr.mxu1 %v1572_v55  ;;  %v2103_v54 = vld [vmem:[#allocation12 + $0x210] sm:$0xff]  ;;  %v2094_v55 = vld [vmem:[#allocation12 + $0x1c8] sm:$0xff] }
 0x27e   :  { %1849 = vmatpush2.msra.mxu0 %v1569_v56  ;;  %1920 = vmatpush2.msra.mxu1 %v1571_v57  ;;  %v2096_v56 = vld [vmem:[#allocation12 + $0x1d8] sm:$0xff]  ;;  %v2093_v57 = vld [vmem:[#allocation12 + $0x1c0] sm:$0xff] }
 0x27f   :  { %1850 = vmatprep.subr.mxu0 %v1562_v58  ;;  %1921 = vmatprep.subr.mxu1 %v1564_v59  ;;  %v2095_v58 = vld [vmem:[#allocation12 + $0x1d0] sm:$0xff]  ;;  %v2086_v59 = vld [vmem:[#allocation12 + $0x188] sm:$0xff] }
 0x280   :  { %1851 = vmatpush2.msra.mxu0 %v1561_v60  ;;  %1922 = vmatpush2.msra.mxu1 %v1563_v61  ;;  %v2088_v60 = vld [vmem:[#allocation12 + $0x198] sm:$0xff]  ;;  %v2085_v61 = vld [vmem:[#allocation12 + $0x180] sm:$0xff] }
 0x281   :  { %1852 = vmatprep.subr.mxu0 %v1554_v27  ;;  %1923 = vmatprep.subr.mxu1 %v1556_v62  ;;  %v2087_v27 = vld [vmem:[#allocation12 + $0x190] sm:$0xff]  ;;  %v2078_v62 = vld [vmem:[#allocation12 + $0x148] sm:$0xff] }
 0x282   :  { %1853 = vmatpush2.msra.mxu0 %v1553_v63  ;;  %1924 = vmatpush2.msra.mxu1 %v1555_v0  ;;  %v2080_v63 = vld [vmem:[#allocation12 + $0x158] sm:$0xff]  ;;  %v2077_v0 = vld [vmem:[#allocation12 + $0x140] sm:$0xff] }
 0x283   :  { %1854 = vmatprep.subr.mxu0 %v1546_v1  ;;  %1925 = vmatprep.subr.mxu1 %v1548_v30  ;;  %v2079_v1 = vld [vmem:[#allocation12 + $0x150] sm:$0xff]  ;;  %v2070_v30 = vld [vmem:[#allocation12 + $0x108] sm:$0xff] }
 0x284   :  { %1855 = vmatpush2.msra.mxu0 %v1545_v3  ;;  %1926 = vmatpush2.msra.mxu1 %v1547_v5  ;;  %v2072_v3 = vld [vmem:[#allocation12 + $0x118] sm:$0xff]  ;;  %v2069_v5 = vld [vmem:[#allocation12 + $0x100] sm:$0xff] }
 0x285   :  { %1856 = vmatprep.subr.mxu0 %v1538_v6  ;;  %1927 = vmatprep.subr.mxu1 %v1540_v7  ;;  %v2071_v6 = vld [vmem:[#allocation12 + $0x110] sm:$0xff]  ;;  %v2062_v7 = vld [vmem:[#allocation12 + $0xc8] sm:$0xff] }
 0x286   :  { %1857 = vmatpush2.msra.mxu0 %v1537_v10  ;;  %1928 = vmatpush2.msra.mxu1 %v1539_v12  ;;  %v2064_v10 = vld [vmem:[#allocation12 + $0xd8] sm:$0xff]  ;;  %v2061_v12 = vld [vmem:[#allocation12 + $0xc0] sm:$0xff] }
 0x287   :  { %1858 = vmatprep.subr.mxu0 %v1530_v13  ;;  %1929 = vmatprep.subr.mxu1 %v1532_v15  ;;  %v2063_v13 = vld [vmem:[#allocation12 + $0xd0] sm:$0xff]  ;;  %v2054_v15 = vld [vmem:[#allocation12 + $0x88] sm:$0xff] }
 0x288   :  { %1859 = vmatpush2.msra.mxu0 %v1529_v14  ;;  %1930 = vmatpush2.msra.mxu1 %v1531_v17  ;;  %v2056_v14 = vld [vmem:[#allocation12 + $0x98] sm:$0xff]  ;;  %v2053_v17 = vld [vmem:[#allocation12 + $0x80] sm:$0xff] }
 0x289   :  { %1860 = vmatprep.subr.mxu0 %v1522_v18  ;;  %1931 = vmatprep.subr.mxu1 %v1524_v19  ;;  %v2055_v18 = vld [vmem:[#allocation12 + $0x90] sm:$0xff]  ;;  %v2046_v19 = vld [vmem:[#allocation12 + $0x48] sm:$0xff] }
 0x28a   :  { %1861 = vmatpush2.msra.mxu0 %v1521_v20  ;;  %1932 = vmatpush2.msra.mxu1 %v1523_v22  ;;  %v2048_v20 = vld [vmem:[#allocation12 + $0x58] sm:$0xff]  ;;  %v2045_v22 = vld [vmem:[#allocation12 + $0x40] sm:$0xff] }
 0x28b   :  { %1863 = vmatmul.mubr.f32.vlgmr.msra.gmra.mxu0 %v6537_v8  ;;  %1934 = vmatmul.mubr.f32.vlgmr.msra.gmra.mxu1 %v6537_v8  ;;  %v2141_v8 = vld [vmem:[#allocation12 + $0x340] sm:$0xff] }
 0x28c   :  { %2304 = vmatprep.subr.mxu0 %v2158_v23  ;;  %2375 = vmatprep.subr.mxu1 %v2160_v24  ;;  %v2047_v23 = vld [vmem:[#allocation12 + $0x50] sm:$0xff]  ;;  %v2038_v24 = vld [vmem:[#allocation12 + $0x8] sm:$0xff] }
 0x28d   :  { %2305 = vmatpush1.msra.mxu0 %v2157_v25  ;;  %2376 = vmatpush1.msra.mxu1 %v2159_v28  ;;  %v2040_v25 = vld [vmem:[#allocation12 + $0x18] sm:$0xff]  ;;  %v2037_v28 = vld [vmem:[#allocation12] sm:$0xff] }
 0x28e   :  { %2306 = vmatprep.subr.mxu0 %v2150_v29  ;;  %2377 = vmatprep.subr.mxu1 %v2152_v32  ;;  %v2039_v29 = vld [vmem:[#allocation12 + $0x10] sm:$0xff]  ;;  %v2286_v32 = vld [vmem:[#allocation12 + $0x7c8] sm:$0xff] }
 0x28f   :  { %2307 = vmatpush1.msra.mxu0 %v2149_v9  ;;  %2378 = vmatpush1.msra.mxu1 %v2151_v33  ;;  %v2288_v9 = vld [vmem:[#allocation12 + $0x7d8] sm:$0xff]  ;;  %v2285_v33 = vld [vmem:[#allocation12 + $0x7c0] sm:$0xff] }
 0x290   :  { %2308 = vmatprep.subr.mxu0 %v2142_v34  ;;  %2379 = vmatprep.subr.mxu1 %v2144_v11  ;;  %v2287_v34 = vld [vmem:[#allocation12 + $0x7d0] sm:$0xff]  ;;  %v2278_v11 = vld [vmem:[#allocation12 + $0x788] sm:$0xff] }
 0x291   :  { %2309 = vmatpush1.msra.mxu0 %v2141_v8  ;;  %2380 = vmatpush1.msra.mxu1 %v2143_v35  ;;  %v2280_v8 = vld [vmem:[#allocation12 + $0x798] sm:$0xff]  ;;  %v2277_v35 = vld [vmem:[#allocation12 + $0x780] sm:$0xff] }
 0x292   :  { %2310 = vmatprep.subr.mxu0 %v2134_v36  ;;  %2381 = vmatprep.subr.mxu1 %v2136_v37  ;;  %v2279_v36 = vld [vmem:[#allocation12 + $0x790] sm:$0xff]  ;;  %v2270_v37 = vld [vmem:[#allocation12 + $0x748] sm:$0xff] }
 0x293   :  { %2311 = vmatpush1.msra.mxu0 %v2133_v38  ;;  %2382 = vmatpush1.msra.mxu1 %v2135_v39  ;;  %v2272_v38 = vld [vmem:[#allocation12 + $0x758] sm:$0xff]  ;;  %v2269_v39 = vld [vmem:[#allocation12 + $0x740] sm:$0xff] }
 0x294   :  { %2312 = vmatprep.subr.mxu0 %v2126_v40  ;;  %2383 = vmatprep.subr.mxu1 %v2128_v41  ;;  %v2271_v40 = vld [vmem:[#allocation12 + $0x750] sm:$0xff]  ;;  %v2262_v41 = vld [vmem:[#allocation12 + $0x708] sm:$0xff] }
 0x295   :  { %2313 = vmatpush1.msra.mxu0 %v2125_v42  ;;  %2384 = vmatpush1.msra.mxu1 %v2127_v43  ;;  %v2264_v42 = vld [vmem:[#allocation12 + $0x718] sm:$0xff]  ;;  %v2261_v43 = vld [vmem:[#allocation12 + $0x700] sm:$0xff] }
 0x296   :  { %2314 = vmatprep.subr.mxu0 %v2118_v4  ;;  %2385 = vmatprep.subr.mxu1 %v2120_v44  ;;  %v2263_v4 = vld [vmem:[#allocation12 + $0x710] sm:$0xff]  ;;  %v2254_v44 = vld [vmem:[#allocation12 + $0x6c8] sm:$0xff] }
 0x297   :  { %2315 = vmatpush1.msra.mxu0 %v2117_v45  ;;  %2386 = vmatpush1.msra.mxu1 %v2119_v46  ;;  %v2256_v45 = vld [vmem:[#allocation12 + $0x6d8] sm:$0xff]  ;;  %v2253_v46 = vld [vmem:[#allocation12 + $0x6c0] sm:$0xff] }
 0x298   :  { %2316 = vmatprep.subr.mxu0 %v2110_v47  ;;  %2387 = vmatprep.subr.mxu1 %v2112_v48  ;;  %v2255_v47 = vld [vmem:[#allocation12 + $0x6d0] sm:$0xff]  ;;  %v2246_v48 = vld [vmem:[#allocation12 + $0x688] sm:$0xff] }
 0x299   :  { %2317 = vmatpush1.msra.mxu0 %v2109_v49  ;;  %2388 = vmatpush1.msra.mxu1 %v2111_v50  ;;  %v2248_v49 = vld [vmem:[#allocation12 + $0x698] sm:$0xff]  ;;  %v2245_v50 = vld [vmem:[#allocation12 + $0x680] sm:$0xff] }
 0x29a   :  { %2318 = vmatprep.subr.mxu0 %v2102_v51  ;;  %2389 = vmatprep.subr.mxu1 %v2104_v52  ;;  %v2247_v51 = vld [vmem:[#allocation12 + $0x690] sm:$0xff]  ;;  %v2238_v52 = vld [vmem:[#allocation12 + $0x648] sm:$0xff] }
 0x29b   :  { %2319 = vmatpush1.msra.mxu0 %v2101_v53  ;;  %2390 = vmatpush1.msra.mxu1 %v2103_v54  ;;  %v2240_v53 = vld [vmem:[#allocation12 + $0x658] sm:$0xff]  ;;  %v2237_v54 = vld [vmem:[#allocation12 + $0x640] sm:$0xff] }
 0x29c   :  { %2320 = vmatprep.subr.mxu0 %v2094_v55  ;;  %2391 = vmatprep.subr.mxu1 %v2096_v56  ;;  %v2239_v55 = vld [vmem:[#allocation12 + $0x650] sm:$0xff]  ;;  %v2230_v56 = vld [vmem:[#allocation12 + $0x608] sm:$0xff] }
 0x29d   :  { %2321 = vmatpush1.msra.mxu0 %v2093_v57  ;;  %2392 = vmatpush1.msra.mxu1 %v2095_v58  ;;  %v2232_v57 = vld [vmem:[#allocation12 + $0x618] sm:$0xff]  ;;  %v2229_v58 = vld [vmem:[#allocation12 + $0x600] sm:$0xff] }
 0x29e   :  { %2322 = vmatprep.subr.mxu0 %v2086_v59  ;;  %2393 = vmatprep.subr.mxu1 %v2088_v60  ;;  %v2231_v59 = vld [vmem:[#allocation12 + $0x610] sm:$0xff]  ;;  %v2222_v60 = vld [vmem:[#allocation12 + $0x5c8] sm:$0xff] }
 0x29f   :  { %2323 = vmatpush1.msra.mxu0 %v2085_v61  ;;  %2394 = vmatpush1.msra.mxu1 %v2087_v27  ;;  %v2224_v61 = vld [vmem:[#allocation12 + $0x5d8] sm:$0xff]  ;;  %v2221_v27 = vld [vmem:[#allocation12 + $0x5c0] sm:$0xff] }
 0x2a0   :  { %2324 = vmatprep.subr.mxu0 %v2078_v62  ;;  %2395 = vmatprep.subr.mxu1 %v2080_v63  ;;  %v2223_v62 = vld [vmem:[#allocation12 + $0x5d0] sm:$0xff]  ;;  %v2214_v63 = vld [vmem:[#allocation12 + $0x588] sm:$0xff] }
 0x2a1   :  { %2325 = vmatpush1.msra.mxu0 %v2077_v0  ;;  %2396 = vmatpush1.msra.mxu1 %v2079_v1  ;;  %v2216_v0 = vld [vmem:[#allocation12 + $0x598] sm:$0xff]  ;;  %v2213_v1 = vld [vmem:[#allocation12 + $0x580] sm:$0xff] }
 0x2a2   :  { %2326 = vmatprep.subr.mxu0 %v2070_v30  ;;  %2397 = vmatprep.subr.mxu1 %v2072_v3  ;;  %v2215_v30 = vld [vmem:[#allocation12 + $0x590] sm:$0xff]  ;;  %v2206_v3 = vld [vmem:[#allocation12 + $0x548] sm:$0xff] }
 0x2a3   :  { %2327 = vmatpush1.msra.mxu0 %v2069_v5  ;;  %2398 = vmatpush1.msra.mxu1 %v2071_v6  ;;  %v2208_v5 = vld [vmem:[#allocation12 + $0x558] sm:$0xff]  ;;  %v2205_v6 = vld [vmem:[#allocation12 + $0x540] sm:$0xff] }
 0x2a4   :  { %2328 = vmatprep.subr.mxu0 %v2062_v7  ;;  %2399 = vmatprep.subr.mxu1 %v2064_v10  ;;  %v2207_v7 = vld [vmem:[#allocation12 + $0x550] sm:$0xff]  ;;  %v2198_v10 = vld [vmem:[#allocation12 + $0x508] sm:$0xff] }
 0x2a5   :  { %2329 = vmatpush1.msra.mxu0 %v2061_v12  ;;  %2400 = vmatpush1.msra.mxu1 %v2063_v13  ;;  %v2200_v12 = vld [vmem:[#allocation12 + $0x518] sm:$0xff]  ;;  %v2197_v13 = vld [vmem:[#allocation12 + $0x500] sm:$0xff] }
 0x2a6   :  { %2330 = vmatprep.subr.mxu0 %v2054_v15  ;;  %2401 = vmatprep.subr.mxu1 %v2056_v14  ;;  %v2199_v15 = vld [vmem:[#allocation12 + $0x510] sm:$0xff]  ;;  %v2190_v14 = vld [vmem:[#allocation12 + $0x4c8] sm:$0xff] }
 0x2a7   :  { %2331 = vmatpush1.msra.mxu0 %v2053_v17  ;;  %2402 = vmatpush1.msra.mxu1 %v2055_v18  ;;  %v2192_v17 = vld [vmem:[#allocation12 + $0x4d8] sm:$0xff]  ;;  %v2189_v18 = vld [vmem:[#allocation12 + $0x4c0] sm:$0xff] }
 0x2a8   :  { %2332 = vmatprep.subr.mxu0 %v2046_v19  ;;  %2403 = vmatprep.subr.mxu1 %v2048_v20  ;;  %v2191_v19 = vld [vmem:[#allocation12 + $0x4d0] sm:$0xff]  ;;  %v2182_v20 = vld [vmem:[#allocation12 + $0x488] sm:$0xff] }
 0x2a9   :  { %2333 = vmatpush1.msra.mxu0 %v2045_v22  ;;  %2404 = vmatpush1.msra.mxu1 %v2047_v23  ;;  %v2184_v22 = vld [vmem:[#allocation12 + $0x498] sm:$0xff]  ;;  %v2181_v23 = vld [vmem:[#allocation12 + $0x480] sm:$0xff] }
 0x2aa   :  { %2334 = vmatprep.subr.mxu0 %v2038_v24  ;;  %2405 = vmatprep.subr.mxu1 %v2040_v25  ;;  %v2183_v24 = vld [vmem:[#allocation12 + $0x490] sm:$0xff]  ;;  %v2174_v25 = vld [vmem:[#allocation12 + $0x448] sm:$0xff] }
 0x2ab   :  { %2335 = vmatpush1.msra.mxu0 %v2037_v28  ;;  %2406 = vmatpush1.msra.mxu1 %v2039_v29  ;;  %v2176_v28 = vld [vmem:[#allocation12 + $0x458] sm:$0xff]  ;;  %v2173_v29 = vld [vmem:[#allocation12 + $0x440] sm:$0xff] }
 0x2ac   :  { %2336 = vmatprep.subr.mxu0 %v2286_v32  ;;  %2407 = vmatprep.subr.mxu1 %v2288_v9  ;;  %v2175_v32 = vld [vmem:[#allocation12 + $0x450] sm:$0xff]  ;;  %v2166_v9 = vld [vmem:[#allocation12 + $0x408] sm:$0xff] }
 0x2ad   :  { %2337 = vmatpush2.msra.mxu0 %v2285_v33  ;;  %2408 = vmatpush2.msra.mxu1 %v2287_v34  ;;  %v2168_v33 = vld [vmem:[#allocation12 + $0x418] sm:$0xff]  ;;  %v2165_v34 = vld [vmem:[#allocation12 + $0x400] sm:$0xff] }
 0x2ae   :  { %2338 = vmatprep.subr.mxu0 %v2278_v11  ;;  %2409 = vmatprep.subr.mxu1 %v2280_v8  ;;  %v2167_v11 = vld [vmem:[#allocation12 + $0x410] sm:$0xff]  ;;  %v2162_v8 = vld [vmem:[#allocation12 + $0x3e8] sm:$0xff] }
 0x2af   :  { %2339 = vmatpush2.msra.mxu0 %v2277_v35  ;;  %2410 = vmatpush2.msra.mxu1 %v2279_v36  ;;  %v2164_v35 = vld [vmem:[#allocation12 + $0x3f8] sm:$0xff] }
 0x2b0   :  { %2340 = vmatprep.subr.mxu0 %v2270_v37  ;;  %2411 = vmatprep.subr.mxu1 %v2272_v38 }
 0x2b1   :  { %2341 = vmatpush2.msra.mxu0 %v2269_v39  ;;  %2412 = vmatpush2.msra.mxu1 %v2271_v40 }
 0x2b2   :  { %2342 = vmatprep.subr.mxu0 %v2262_v41  ;;  %2413 = vmatprep.subr.mxu1 %v2264_v42 }
 0x2b3   :  { %2343 = vmatpush2.msra.mxu0 %v2261_v43  ;;  %2414 = vmatpush2.msra.mxu1 %v2263_v4 }
 0x2b4   :  { %2344 = vmatprep.subr.mxu0 %v2254_v44  ;;  %2415 = vmatprep.subr.mxu1 %v2256_v45 }
 0x2b5   :  { %2345 = vmatpush2.msra.mxu0 %v2253_v46  ;;  %2416 = vmatpush2.msra.mxu1 %v2255_v47 }
 0x2b6   :  { %2346 = vmatprep.subr.mxu0 %v2246_v48  ;;  %2417 = vmatprep.subr.mxu1 %v2248_v49 }
 0x2b7   :  { %2347 = vmatpush2.msra.mxu0 %v2245_v50  ;;  %2418 = vmatpush2.msra.mxu1 %v2247_v51 }
 0x2b8   :  { %2348 = vmatprep.subr.mxu0 %v2238_v52  ;;  %2419 = vmatprep.subr.mxu1 %v2240_v53  ;;  %v1387_v53 = vld [vmem:[#allocation3 + $0x1] ss:$8 sm:$0xf0] }
 0x2b9   :  { %2349 = vmatpush2.msra.mxu0 %v2237_v54  ;;  %2420 = vmatpush2.msra.mxu1 %v2239_v55 }
 0x2ba   :  { %2350 = vmatprep.subr.mxu0 %v2230_v56  ;;  %2421 = vmatprep.subr.mxu1 %v2232_v57  ;;  %v1386_v56 = vld [vmem:[#allocation3 + $0x1] ss:$8 sm:$0xf] }
 0x2bb   :  { %2351 = vmatpush2.msra.mxu0 %v2229_v58  ;;  %2422 = vmatpush2.msra.mxu1 %v2231_v59  ;;  %v1388_v57 = vor.u32 %v1387_v53, %v1386_v56  ;;  %v2098_v53 = vld [vmem:[#allocation12 + $0x1e8] sm:$0xff]  ;;  %v2099_v56 = vld [vmem:[#allocation12 + $0x1f0] sm:$0xff] }
 0x2bc   :  { %2352 = vmatprep.subr.mxu0 %v2222_v60  ;;  %2423 = vmatprep.subr.mxu1 %v2224_v61 }
 0x2bd   :  { %2353 = vmatpush2.msra.mxu0 %v2221_v27  ;;  %2424 = vmatpush2.msra.mxu1 %v2223_v62 }
 0x2be   :  { %2354 = vmatprep.subr.mxu0 %v2214_v63  ;;  %2425 = vmatprep.subr.mxu1 %v2216_v0 }
 0x2bf   :  { %2355 = vmatpush2.msra.mxu0 %v2213_v1  ;;  %2426 = vmatpush2.msra.mxu1 %v2215_v30 }
 0x2c0   :  { %2356 = vmatprep.subr.mxu0 %v2206_v3  ;;  %2427 = vmatprep.subr.mxu1 %v2208_v5 }
 0x2c1   :  { %2357 = vmatpush2.msra.mxu0 %v2205_v6  ;;  %2428 = vmatpush2.msra.mxu1 %v2207_v7 }
 0x2c2   :  { %2358 = vmatprep.subr.mxu0 %v2198_v10  ;;  %2429 = vmatprep.subr.mxu1 %v2200_v12 }
 0x2c3   :  { %2359 = vmatpush2.msra.mxu0 %v2197_v13  ;;  %2430 = vmatpush2.msra.mxu1 %v2199_v15 }
 0x2c4   :  { %2360 = vmatprep.subr.mxu0 %v2190_v14  ;;  %2431 = vmatprep.subr.mxu1 %v2192_v17 }
 0x2c5   :  { %2361 = vmatpush2.msra.mxu0 %v2189_v18  ;;  %2432 = vmatpush2.msra.mxu1 %v2191_v19 }
 0x2c6   :  { %2362 = vmatprep.subr.mxu0 %v2182_v20  ;;  %2433 = vmatprep.subr.mxu1 %v2184_v22 }
 0x2c7   :  { %2363 = vmatpush2.msra.mxu0 %v2181_v23  ;;  %2434 = vmatpush2.msra.mxu1 %v2183_v24  ;;  %v2161_v24 = vld [vmem:[#allocation12 + $0x3e0] sm:$0xff] }
 0x2c8   :  { %2364 = vmatprep.subr.mxu0 %v2174_v25  ;;  %2435 = vmatprep.subr.mxu1 %v2176_v28  ;;  %v2163_v25 = vld [vmem:[#allocation12 + $0x3f0] sm:$0xff]  ;;  %v2156_v28 = vld [vmem:[#allocation12 + $0x3b8] sm:$0xff] }
 0x2c9   :  { %2365 = vmatpush2.msra.mxu0 %v2173_v29  ;;  %2436 = vmatpush2.msra.mxu1 %v2175_v32  ;;  %v2153_v29 = vld [vmem:[#allocation12 + $0x3a0] sm:$0xff]  ;;  %v2155_v32 = vld [vmem:[#allocation12 + $0x3b0] sm:$0xff] }
 0x2ca   :  { %2366 = vmatprep.subr.mxu0 %v2166_v9  ;;  %2437 = vmatprep.subr.mxu1 %v2168_v33  ;;  %v2146_v9 = vld [vmem:[#allocation12 + $0x368] sm:$0xff]  ;;  %v2148_v33 = vld [vmem:[#allocation12 + $0x378] sm:$0xff] }
 0x2cb   :  { %2367 = vmatpush2.msra.mxu0 %v2165_v34  ;;  %2438 = vmatpush2.msra.mxu1 %v2167_v11  ;;  %v2145_v34 = vld [vmem:[#allocation12 + $0x360] sm:$0xff]  ;;  %v2147_v11 = vld [vmem:[#allocation12 + $0x370] sm:$0xff] }
 0x2cc   :  { %2446 = vmatprep.subr.mxu0 %v2162_v8  ;;  %2517 = vmatprep.subr.mxu1 %v2164_v35  ;;  %v2138_v8 = vld [vmem:[#allocation12 + $0x328] sm:$0xff]  ;;  %v2140_v35 = vld [vmem:[#allocation12 + $0x338] sm:$0xff] }
 0x30a   :  { %v1722_v36 = vpop.f32.mrf.mxu0  ;;  %v1793_v37 = vpop.f32.mrf.mxu1 }
 0x30c   :  { %v1724_v38 = vpop.f32.mrf.mxu0  ;;  %v1795_v39 = vpop.f32.mrf.mxu1 }
 0x30d   :  { %v1948_v40 = vcombine.low %v1722_v36, %v1724_v38  ;;  %v1949_v41 = vcombine.low %v1793_v37, %v1795_v39  ;;  %v2137_v36 = vld [vmem:[#allocation12 + $0x320] sm:$0xff]  ;;  %v2139_v37 = vld [vmem:[#allocation12 + $0x330] sm:$0xff]  ;;  %v2130_v38 = vld [vmem:[#allocation12 + $0x2e8] sm:$0xff] }
 0x30e   :  { %v2132_v39 = vld [vmem:[#allocation12 + $0x2f8] sm:$0xff] }
 0x30f   :  { %v1958_v4 = vrot.slane %v1948_v40, %v6522_v31  ;;  %v1965_v44 = vrot.slane %v1949_v41, %v6522_v31  ;;  %v2129_v40 = vld [vmem:[#allocation12 + $0x2e0] sm:$0xff]  ;;  %v2131_v41 = vld [vmem:[#allocation12 + $0x2f0] sm:$0xff] }
 0x311   :  { %v1980_v49 = vcombine.low %v1958_v4, %v1965_v44  ;;  %v2121_v4 = vld [vmem:[#allocation12 + $0x2a0] sm:$0xff]  ;;  %v2123_v44 = vld [vmem:[#allocation12 + $0x2b0] sm:$0xff] }
 0x313   :  { %v1988_v54 = vrot.slane %v1980_v49, %v6522_v31  ;;  %v2106_v49 = vld [vmem:[#allocation12 + $0x228] sm:$0xff] }
 0x34b   :  { %v1864_v42 = vpop.f32.mrf.mxu0  ;;  %v1935_v43 = vpop.f32.mrf.mxu1 }
 0x34d   :  { %v1866_v45 = vpop.f32.mrf.mxu0  ;;  %v1937_v46 = vpop.f32.mrf.mxu1 }
 0x34e   :  { %v1950_v47 = vcombine.low %v1864_v42, %v1866_v45  ;;  %v1951_v48 = vcombine.low %v1935_v43, %v1937_v46  ;;  %v2122_v42 = vld [vmem:[#allocation12 + $0x2a8] sm:$0xff]  ;;  %v2124_v43 = vld [vmem:[#allocation12 + $0x2b8] sm:$0xff] }
 0x34f   :  { %v2114_v45 = vld [vmem:[#allocation12 + $0x268] sm:$0xff]  ;;  %v2116_v46 = vld [vmem:[#allocation12 + $0x278] sm:$0xff] }
 0x350   :  { %v1972_v50 = vrot.slane %v1950_v47, %v6522_v31  ;;  %v1979_v51 = vrot.slane %v1951_v48, %v6522_v31  ;;  %v2113_v47 = vld [vmem:[#allocation12 + $0x260] sm:$0xff]  ;;  %v2115_v48 = vld [vmem:[#allocation12 + $0x270] sm:$0xff] }
 0x352   :  { %v1981_v52 = vcombine.low %v1972_v50, %v1979_v51  ;;  %v2108_v50 = vld [vmem:[#allocation12 + $0x238] sm:$0xff]  ;;  %v2105_v51 = vld [vmem:[#allocation12 + $0x220] sm:$0xff] }
 0x354   :  { %v1995_v55 = vrot.slane %v1981_v52, %v6522_v31  ;;  %v2107_v52 = vld [vmem:[#allocation12 + $0x230] sm:$0xff] }
 0x356   :  { %v1996_v58 = vcombine.low %v1988_v54, %v1995_v55  ;;  %v2100_v54 = vld [vmem:[#allocation12 + $0x1f8] sm:$0xff]  ;;  %v2097_v55 = vld [vmem:[#allocation12 + $0x1e0] sm:$0xff] }
 0x358   :  { %v1998_v59 = vadd.f32 %v1996_v58, %v1388_v57  ;;  %v2090_v57 = vld [vmem:[#allocation12 + $0x1a8] sm:$0xff]  ;;  %v2092_v58 = vld [vmem:[#allocation12 + $0x1b8] sm:$0xff] }
 0x35a   :  { %v6001_v60 = vmul.f32 -1.442695, %v1998_v59  ;;  %v2006_v61 = vrot.slane %v1998_v59, 2  ;;  %v2017_v62 = vrot.slane %v1998_v59, 6  ;;  %v2014_v1 = vrot.slane %v1998_v59, 4  ;;  %v2089_v59 = vld [vmem:[#allocation12 + $0x1a0] sm:$0xff] }
 0x35c   :  { %6051 = vpow2.f32 %v6001_v60  ;;  %v6002_v27 = vmul.f32 -1.442695, %v2006_v61  ;;  %v6003_v63 = vmul.f32 -1.442695, %v2017_v62  ;;  %v2091_v60 = vld [vmem:[#allocation12 + $0x1b0] sm:$0xff]  ;;  %v2082_v61 = vld [vmem:[#allocation12 + $0x168] sm:$0xff] }
 0x35d   :  { %v2081_v62 = vld [vmem:[#allocation12 + $0x160] sm:$0xff] }
 0x35e   :  { %6053 = vpow2.f32 %v6002_v27  ;;  %v2084_v27 = vld [vmem:[#allocation12 + $0x178] sm:$0xff] }
 0x35f   :  { %6055 = vpow2.f32 %v6003_v63  ;;  %v2083_v63 = vld [vmem:[#allocation12 + $0x170] sm:$0xff] }
 0x369   :  { %v6052_v0 = vpop.eup %6051 }
 0x36a   :  { %v2002_v30 = vadd.f32 1.0, %v6052_v0  ;;  %v2074_v0 = vld [vmem:[#allocation12 + $0x128] sm:$0xff] }
 0x36b   :  { %v6054_v3 = vpop.eup %6053 }
 0x36c   :  { %6057 = vrcp.f32 %v2002_v30  ;;  %v2011_v5 = vadd.f32 1.0, %v6054_v3  ;;  %v6056_v6 = vpop.eup %6055  ;;  %v2073_v30 = vld [vmem:[#allocation12 + $0x120] sm:$0xff]  ;;  %v2075_v3 = vld [vmem:[#allocation12 + $0x130] sm:$0xff] }
 0x36d   :  { %6059 = vtanh.f32 %v2014_v1  ;;  %v2022_v13 = vadd.f32 1.0, %v6056_v6  ;;  %v2076_v1 = vld [vmem:[#allocation12 + $0x138] sm:$0xff] }
 0x36e   :  { %6061 = vrcp.f32 %v2011_v5  ;;  %v2066_v5 = vld [vmem:[#allocation12 + $0xe8] sm:$0xff]  ;;  %v2068_v6 = vld [vmem:[#allocation12 + $0xf8] sm:$0xff] }
 0x36f   :  { %6063 = vrcp.f32 %v2022_v13  ;;  %v2060_v13 = vld [vmem:[#allocation12 + $0xb8] sm:$0xff] }
 0x379   :  { %v6058_v7 = vpop.eup %6057 }
 0x37a   :  { %v6060_v10 = vpop.eup %6059 }
 0x37b   :  { %v6062_v12 = vpop.eup %6061  ;;  %v2026_v14 = vmul.f32 %v6060_v10, %v6058_v7  ;;  %v2065_v7 = vld [vmem:[#allocation12 + $0xe0] sm:$0xff]  ;;  %v2067_v10 = vld [vmem:[#allocation12 + $0xf0] sm:$0xff] }
 0x37c   :  { %v2025_v15 = vmul.f32 %v6062_v12, %v6530_v2  ;;  %v6064_v18 = vpop.eup %6063  ;;  %v2154_v2 = vld [vmem:[#allocation12 + $0x3a8] sm:$0xff] }
 0x37d   :  { %v2058_v12 = vld [vmem:[#allocation12 + $0xa8] sm:$0xff] }
 0x37e   :  { %v6550_v17 = vadd.f32 %v2026_v14, %v2025_v15  ;;  %v2057_v15 = vld [vmem:[#allocation12 + $0xa0] sm:$0xff]  ;;  %v2059_v14 = vld [vmem:[#allocation12 + $0xb0] sm:$0xff] }
 0x380   :  { %6065 = vtanh.f32 %v6550_v17 }
 0x38d   :  { %v6066_v19 = vpop.eup %6065 }
 0x38e   :  { %v2029_v20 = vmul.f32 %v6066_v19, %v6064_v18  ;;  %v2050_v18 = vld [vmem:[#allocation12 + $0x68] sm:$0xff]  ;;  %v2052_v19 = vld [vmem:[#allocation12 + $0x78] sm:$0xff] }
 0x390   :  { %2031 = vst.msk [vmem:[#allocation14 + $0x1] ss:$8 sm:$0x3] %vm6426_vm0, %v2029_v20  ;;  %v2301_v22 = vrot.slane %v2029_v20, %v6478_v16  ;;  %v6557_v23 = vrot.slane %v2029_v20, %v6484_v21  ;;  %v2049_v20 = vld [vmem:[#allocation12 + $0x60] sm:$0xff] }
 0x392   :  { %2368 = vmatprep.mubr.f32.mxu0 %v2301_v22  ;;  %2439 = vmatprep.mubr.f32.mxu1 %v2301_v22 }
 0x393   :  { %2369 = vmatmul.mubr.f32.vlgmr.msra.gmra.mxu0 %v6557_v23  ;;  %2440 = vmatmul.mubr.f32.vlgmr.msra.gmra.mxu1 %v6557_v23 }
 0x394   :  { %2447 = vmatpush1.msra.mxu0 %v2161_v24  ;;  %2518 = vmatpush1.msra.mxu1 %v2163_v25  ;;  %v2042_v24 = vld [vmem:[#allocation12 + $0x28] sm:$0xff]  ;;  %v2044_v25 = vld [vmem:[#allocation12 + $0x38] sm:$0xff] }
 0x395   :  { %2448 = vmatprep.subr.mxu0 %v2154_v2  ;;  %2510 = vmatprep.mubr.f32.mxu0 %v2301_v22  ;;  %v2041_v2 = vld [vmem:[#allocation12 + $0x20] sm:$0xff] }
 0x396   :  { %2519 = vmatprep.subr.mxu1 %v2156_v28  ;;  %2581 = vmatprep.mubr.f32.mxu1 %v2301_v22  ;;  %v2051_v22 = vld [vmem:[#allocation12 + $0x70] sm:$0xff] }
 0x397   :  { %2449 = vmatpush1.msra.mxu0 %v2153_v29  ;;  %2520 = vmatpush1.msra.mxu1 %v2155_v32  ;;  %v2043_v28 = vld [vmem:[#allocation12 + $0x30] sm:$0xff]  ;;  %v2290_v29 = vld [vmem:[#allocation12 + $0x7e8] sm:$0xff]  ;;  %v2292_v32 = vld [vmem:[#allocation12 + $0x7f8] sm:$0xff] }
 0x398   :  { %2450 = vmatprep.subr.mxu0 %v2146_v9  ;;  %2521 = vmatprep.subr.mxu1 %v2148_v33  ;;  %v2289_v9 = vld [vmem:[#allocation12 + $0x7e0] sm:$0xff]  ;;  %v2291_v33 = vld [vmem:[#allocation12 + $0x7f0] sm:$0xff] }
 0x399   :  { %2451 = vmatpush1.msra.mxu0 %v2145_v34  ;;  %2522 = vmatpush1.msra.mxu1 %v2147_v11  ;;  %v2282_v34 = vld [vmem:[#allocation12 + $0x7a8] sm:$0xff]  ;;  %v2284_v11 = vld [vmem:[#allocation12 + $0x7b8] sm:$0xff] }
 0x39a   :  { %2452 = vmatprep.subr.mxu0 %v2138_v8  ;;  %2523 = vmatprep.subr.mxu1 %v2140_v35  ;;  %v2281_v8 = vld [vmem:[#allocation12 + $0x7a0] sm:$0xff]  ;;  %v2283_v35 = vld [vmem:[#allocation12 + $0x7b0] sm:$0xff] }
 0x39b   :  { %2453 = vmatpush1.msra.mxu0 %v2137_v36  ;;  %2524 = vmatpush1.msra.mxu1 %v2139_v37  ;;  %v2274_v36 = vld [vmem:[#allocation12 + $0x768] sm:$0xff]  ;;  %v2276_v37 = vld [vmem:[#allocation12 + $0x778] sm:$0xff] }
 0x39c   :  { %2454 = vmatprep.subr.mxu0 %v2130_v38  ;;  %2525 = vmatprep.subr.mxu1 %v2132_v39  ;;  %v2273_v38 = vld [vmem:[#allocation12 + $0x760] sm:$0xff]  ;;  %v2275_v39 = vld [vmem:[#allocation12 + $0x770] sm:$0xff] }
 0x39d   :  { %2455 = vmatpush1.msra.mxu0 %v2129_v40  ;;  %2526 = vmatpush1.msra.mxu1 %v2131_v41  ;;  %v2266_v40 = vld [vmem:[#allocation12 + $0x728] sm:$0xff]  ;;  %v2268_v41 = vld [vmem:[#allocation12 + $0x738] sm:$0xff] }
 0x39e   :  { %2456 = vmatprep.subr.mxu0 %v2122_v42  ;;  %2527 = vmatprep.subr.mxu1 %v2124_v43  ;;  %v2265_v42 = vld [vmem:[#allocation12 + $0x720] sm:$0xff]  ;;  %v2267_v43 = vld [vmem:[#allocation12 + $0x730] sm:$0xff] }
 0x39f   :  { %2457 = vmatpush1.msra.mxu0 %v2121_v4  ;;  %2528 = vmatpush1.msra.mxu1 %v2123_v44  ;;  %v2258_v4 = vld [vmem:[#allocation12 + $0x6e8] sm:$0xff]  ;;  %v2260_v44 = vld [vmem:[#allocation12 + $0x6f8] sm:$0xff] }
 0x3a0   :  { %2458 = vmatprep.subr.mxu0 %v2114_v45  ;;  %2529 = vmatprep.subr.mxu1 %v2116_v46  ;;  %v2257_v45 = vld [vmem:[#allocation12 + $0x6e0] sm:$0xff]  ;;  %v2259_v46 = vld [vmem:[#allocation12 + $0x6f0] sm:$0xff] }
 0x3a1   :  { %2459 = vmatpush1.msra.mxu0 %v2113_v47  ;;  %2530 = vmatpush1.msra.mxu1 %v2115_v48  ;;  %v2250_v47 = vld [vmem:[#allocation12 + $0x6a8] sm:$0xff]  ;;  %v2252_v48 = vld [vmem:[#allocation12 + $0x6b8] sm:$0xff] }
 0x3a2   :  { %2460 = vmatprep.subr.mxu0 %v2106_v49  ;;  %2531 = vmatprep.subr.mxu1 %v2108_v50  ;;  %v2249_v49 = vld [vmem:[#allocation12 + $0x6a0] sm:$0xff]  ;;  %v2251_v50 = vld [vmem:[#allocation12 + $0x6b0] sm:$0xff] }
 0x3a3   :  { %2461 = vmatpush1.msra.mxu0 %v2105_v51  ;;  %2532 = vmatpush1.msra.mxu1 %v2107_v52  ;;  %v2242_v51 = vld [vmem:[#allocation12 + $0x668] sm:$0xff]  ;;  %v2244_v52 = vld [vmem:[#allocation12 + $0x678] sm:$0xff] }
 0x3a4   :  { %2462 = vmatprep.subr.mxu0 %v2098_v53  ;;  %2533 = vmatprep.subr.mxu1 %v2100_v54  ;;  %v2241_v53 = vld [vmem:[#allocation12 + $0x660] sm:$0xff]  ;;  %v2243_v54 = vld [vmem:[#allocation12 + $0x670] sm:$0xff] }
 0x3a5   :  { %2463 = vmatpush1.msra.mxu0 %v2097_v55  ;;  %2534 = vmatpush1.msra.mxu1 %v2099_v56  ;;  %v2234_v55 = vld [vmem:[#allocation12 + $0x628] sm:$0xff]  ;;  %v2236_v56 = vld [vmem:[#allocation12 + $0x638] sm:$0xff] }
 0x3a6   :  { %2464 = vmatprep.subr.mxu0 %v2090_v57  ;;  %2535 = vmatprep.subr.mxu1 %v2092_v58  ;;  %v2233_v57 = vld [vmem:[#allocation12 + $0x620] sm:$0xff]  ;;  %v2235_v58 = vld [vmem:[#allocation12 + $0x630] sm:$0xff] }
 0x3a7   :  { %2465 = vmatpush1.msra.mxu0 %v2089_v59  ;;  %2536 = vmatpush1.msra.mxu1 %v2091_v60  ;;  %v2226_v59 = vld [vmem:[#allocation12 + $0x5e8] sm:$0xff]  ;;  %v2228_v60 = vld [vmem:[#allocation12 + $0x5f8] sm:$0xff] }
 0x3a8   :  { %2466 = vmatprep.subr.mxu0 %v2082_v61  ;;  %2537 = vmatprep.subr.mxu1 %v2084_v27  ;;  %v2225_v61 = vld [vmem:[#allocation12 + $0x5e0] sm:$0xff]  ;;  %v2227_v27 = vld [vmem:[#allocation12 + $0x5f0] sm:$0xff] }
 0x3a9   :  { %2467 = vmatpush1.msra.mxu0 %v2081_v62  ;;  %2538 = vmatpush1.msra.mxu1 %v2083_v63  ;;  %v2218_v62 = vld [vmem:[#allocation12 + $0x5a8] sm:$0xff]  ;;  %v2220_v63 = vld [vmem:[#allocation12 + $0x5b8] sm:$0xff] }
 0x3aa   :  { %2468 = vmatprep.subr.mxu0 %v2074_v0  ;;  %2539 = vmatprep.subr.mxu1 %v2076_v1  ;;  %v2217_v0 = vld [vmem:[#allocation12 + $0x5a0] sm:$0xff]  ;;  %v2219_v1 = vld [vmem:[#allocation12 + $0x5b0] sm:$0xff] }
 0x3ab   :  { %2469 = vmatpush1.msra.mxu0 %v2073_v30  ;;  %2540 = vmatpush1.msra.mxu1 %v2075_v3  ;;  %v2210_v30 = vld [vmem:[#allocation12 + $0x568] sm:$0xff]  ;;  %v2212_v3 = vld [vmem:[#allocation12 + $0x578] sm:$0xff] }
 0x3ac   :  { %2470 = vmatprep.subr.mxu0 %v2066_v5  ;;  %2541 = vmatprep.subr.mxu1 %v2068_v6  ;;  %v2209_v5 = vld [vmem:[#allocation12 + $0x560] sm:$0xff]  ;;  %v2211_v6 = vld [vmem:[#allocation12 + $0x570] sm:$0xff] }
 0x3ad   :  { %2471 = vmatpush1.msra.mxu0 %v2065_v7  ;;  %2542 = vmatpush1.msra.mxu1 %v2067_v10  ;;  %v2202_v7 = vld [vmem:[#allocation12 + $0x528] sm:$0xff]  ;;  %v2204_v10 = vld [vmem:[#allocation12 + $0x538] sm:$0xff] }
 0x3ae   :  { %2472 = vmatprep.subr.mxu0 %v2058_v12  ;;  %2543 = vmatprep.subr.mxu1 %v2060_v13  ;;  %v2201_v12 = vld [vmem:[#allocation12 + $0x520] sm:$0xff]  ;;  %v2203_v13 = vld [vmem:[#allocation12 + $0x530] sm:$0xff] }
 0x3af   :  { %2473 = vmatpush1.msra.mxu0 %v2057_v15  ;;  %2544 = vmatpush1.msra.mxu1 %v2059_v14  ;;  %v2194_v15 = vld [vmem:[#allocation12 + $0x4e8] sm:$0xff]  ;;  %v2196_v14 = vld [vmem:[#allocation12 + $0x4f8] sm:$0xff] }
 0x3b0   :  { %2474 = vmatprep.subr.mxu0 %v2050_v18  ;;  %2545 = vmatprep.subr.mxu1 %v2052_v19  ;;  %v2193_v18 = vld [vmem:[#allocation12 + $0x4e0] sm:$0xff]  ;;  %v2195_v19 = vld [vmem:[#allocation12 + $0x4f0] sm:$0xff] }
 0x3b1   :  { %2475 = vmatpush1.msra.mxu0 %v2049_v20  ;;  %2546 = vmatpush1.msra.mxu1 %v2051_v22  ;;  %v2186_v20 = vld [vmem:[#allocation12 + $0x4a8] sm:$0xff]  ;;  %v2188_v22 = vld [vmem:[#allocation12 + $0x4b8] sm:$0xff] }
 0x3b2   :  { %2476 = vmatprep.subr.mxu0 %v2042_v24  ;;  %2547 = vmatprep.subr.mxu1 %v2044_v25  ;;  %v2185_v24 = vld [vmem:[#allocation12 + $0x4a0] sm:$0xff]  ;;  %v2187_v25 = vld [vmem:[#allocation12 + $0x4b0] sm:$0xff] }
 0x3b3   :  { %2477 = vmatpush1.msra.mxu0 %v2041_v2  ;;  %2548 = vmatpush1.msra.mxu1 %v2043_v28  ;;  %v2178_v2 = vld [vmem:[#allocation12 + $0x468] sm:$0xff]  ;;  %v2180_v28 = vld [vmem:[#allocation12 + $0x478] sm:$0xff] }
 0x3b4   :  { %2478 = vmatprep.subr.mxu0 %v2290_v29  ;;  %2549 = vmatprep.subr.mxu1 %v2292_v32  ;;  %v2177_v29 = vld [vmem:[#allocation12 + $0x460] sm:$0xff]  ;;  %v2179_v32 = vld [vmem:[#allocation12 + $0x470] sm:$0xff] }
 0x3b5   :  { %2479 = vmatpush2.msra.mxu0 %v2289_v9  ;;  %2550 = vmatpush2.msra.mxu1 %v2291_v33  ;;  %v2170_v9 = vld [vmem:[#allocation12 + $0x428] sm:$0xff]  ;;  %v2172_v33 = vld [vmem:[#allocation12 + $0x438] sm:$0xff] }
 0x3b6   :  { %2480 = vmatprep.subr.mxu0 %v2282_v34  ;;  %2551 = vmatprep.subr.mxu1 %v2284_v11  ;;  %v2169_v34 = vld [vmem:[#allocation12 + $0x420] sm:$0xff]  ;;  %v2171_v11 = vld [vmem:[#allocation12 + $0x430] sm:$0xff] }
 0x3b7   :  { %2481 = vmatpush2.msra.mxu0 %v2281_v8  ;;  %2552 = vmatpush2.msra.mxu1 %v2283_v35  ;;  %v2806_v8 = vld [vmem:[#allocation12 + $0x3c8] sm:$0xff]  ;;  %v2808_v35 = vld [vmem:[#allocation12 + $0x3d8] sm:$0xff] }
 0x3b8   :  { %2482 = vmatprep.subr.mxu0 %v2274_v36  ;;  %2553 = vmatprep.subr.mxu1 %v2276_v37  ;;  %v2805_v36 = vld [vmem:[#allocation12 + $0x3c0] sm:$0xff]  ;;  %v2807_v37 = vld [vmem:[#allocation12 + $0x3d0] sm:$0xff] }
 0x3b9   :  { %2483 = vmatpush2.msra.mxu0 %v2273_v38  ;;  %2554 = vmatpush2.msra.mxu1 %v2275_v39  ;;  %v2798_v38 = vld [vmem:[#allocation12 + $0x388] sm:$0xff]  ;;  %v2800_v39 = vld [vmem:[#allocation12 + $0x398] sm:$0xff] }
 0x3ba   :  { %2484 = vmatprep.subr.mxu0 %v2266_v40  ;;  %2555 = vmatprep.subr.mxu1 %v2268_v41  ;;  %v2797_v40 = vld [vmem:[#allocation12 + $0x380] sm:$0xff]  ;;  %v2799_v41 = vld [vmem:[#allocation12 + $0x390] sm:$0xff] }
 0x3bb   :  { %2485 = vmatpush2.msra.mxu0 %v2265_v42  ;;  %2556 = vmatpush2.msra.mxu1 %v2267_v43  ;;  %v2790_v42 = vld [vmem:[#allocation12 + $0x348] sm:$0xff]  ;;  %v2792_v43 = vld [vmem:[#allocation12 + $0x358] sm:$0xff] }
 0x3bc   :  { %2486 = vmatprep.subr.mxu0 %v2258_v4  ;;  %2557 = vmatprep.subr.mxu1 %v2260_v44  ;;  %v2791_v4 = vld [vmem:[#allocation12 + $0x350] sm:$0xff]  ;;  %v2782_v44 = vld [vmem:[#allocation12 + $0x308] sm:$0xff] }
 0x3bd   :  { %2487 = vmatpush2.msra.mxu0 %v2257_v45  ;;  %2558 = vmatpush2.msra.mxu1 %v2259_v46  ;;  %v2784_v45 = vld [vmem:[#allocation12 + $0x318] sm:$0xff]  ;;  %v2781_v46 = vld [vmem:[#allocation12 + $0x300] sm:$0xff] }
 0x3be   :  { %2488 = vmatprep.subr.mxu0 %v2250_v47  ;;  %2559 = vmatprep.subr.mxu1 %v2252_v48  ;;  %v2783_v47 = vld [vmem:[#allocation12 + $0x310] sm:$0xff]  ;;  %v2774_v48 = vld [vmem:[#allocation12 + $0x2c8] sm:$0xff] }
 0x3bf   :  { %2489 = vmatpush2.msra.mxu0 %v2249_v49  ;;  %2560 = vmatpush2.msra.mxu1 %v2251_v50  ;;  %v2776_v49 = vld [vmem:[#allocation12 + $0x2d8] sm:$0xff]  ;;  %v2773_v50 = vld [vmem:[#allocation12 + $0x2c0] sm:$0xff] }
 0x3c0   :  { %2490 = vmatprep.subr.mxu0 %v2242_v51  ;;  %2561 = vmatprep.subr.mxu1 %v2244_v52  ;;  %v2775_v51 = vld [vmem:[#allocation12 + $0x2d0] sm:$0xff]  ;;  %v2766_v52 = vld [vmem:[#allocation12 + $0x288] sm:$0xff] }
 0x3c1   :  { %2491 = vmatpush2.msra.mxu0 %v2241_v53  ;;  %2562 = vmatpush2.msra.mxu1 %v2243_v54  ;;  %v2768_v53 = vld [vmem:[#allocation12 + $0x298] sm:$0xff]  ;;  %v2765_v54 = vld [vmem:[#allocation12 + $0x280] sm:$0xff] }
 0x3c2   :  { %2492 = vmatprep.subr.mxu0 %v2234_v55  ;;  %2563 = vmatprep.subr.mxu1 %v2236_v56  ;;  %v2767_v55 = vld [vmem:[#allocation12 + $0x290] sm:$0xff]  ;;  %v2758_v56 = vld [vmem:[#allocation12 + $0x248] sm:$0xff] }
 0x3c3   :  { %2493 = vmatpush2.msra.mxu0 %v2233_v57  ;;  %2564 = vmatpush2.msra.mxu1 %v2235_v58  ;;  %v2760_v57 = vld [vmem:[#allocation12 + $0x258] sm:$0xff]  ;;  %v2757_v58 = vld [vmem:[#allocation12 + $0x240] sm:$0xff] }
 0x3c4   :  { %2494 = vmatprep.subr.mxu0 %v2226_v59  ;;  %2565 = vmatprep.subr.mxu1 %v2228_v60  ;;  %v2759_v59 = vld [vmem:[#allocation12 + $0x250] sm:$0xff]  ;;  %v2750_v60 = vld [vmem:[#allocation12 + $0x208] sm:$0xff] }
 0x3c5   :  { %2495 = vmatpush2.msra.mxu0 %v2225_v61  ;;  %2566 = vmatpush2.msra.mxu1 %v2227_v27  ;;  %v2752_v61 = vld [vmem:[#allocation12 + $0x218] sm:$0xff]  ;;  %v2749_v27 = vld [vmem:[#allocation12 + $0x200] sm:$0xff] }
 0x3c6   :  { %2496 = vmatprep.subr.mxu0 %v2218_v62  ;;  %2567 = vmatprep.subr.mxu1 %v2220_v63  ;;  %v2751_v62 = vld [vmem:[#allocation12 + $0x210] sm:$0xff]  ;;  %v2742_v63 = vld [vmem:[#allocation12 + $0x1c8] sm:$0xff] }
 0x3c7   :  { %2497 = vmatpush2.msra.mxu0 %v2217_v0  ;;  %2568 = vmatpush2.msra.mxu1 %v2219_v1  ;;  %v2744_v0 = vld [vmem:[#allocation12 + $0x1d8] sm:$0xff]  ;;  %v2741_v1 = vld [vmem:[#allocation12 + $0x1c0] sm:$0xff] }
 0x3c8   :  { %2498 = vmatprep.subr.mxu0 %v2210_v30  ;;  %2569 = vmatprep.subr.mxu1 %v2212_v3  ;;  %v2743_v30 = vld [vmem:[#allocation12 + $0x1d0] sm:$0xff]  ;;  %v2734_v3 = vld [vmem:[#allocation12 + $0x188] sm:$0xff] }
 0x3c9   :  { %2499 = vmatpush2.msra.mxu0 %v2209_v5  ;;  %2570 = vmatpush2.msra.mxu1 %v2211_v6  ;;  %v2736_v5 = vld [vmem:[#allocation12 + $0x198] sm:$0xff]  ;;  %v2733_v6 = vld [vmem:[#allocation12 + $0x180] sm:$0xff] }
 0x3ca   :  { %2500 = vmatprep.subr.mxu0 %v2202_v7  ;;  %2571 = vmatprep.subr.mxu1 %v2204_v10  ;;  %v2735_v7 = vld [vmem:[#allocation12 + $0x190] sm:$0xff]  ;;  %v2726_v10 = vld [vmem:[#allocation12 + $0x148] sm:$0xff] }
 0x3cb   :  { %2501 = vmatpush2.msra.mxu0 %v2201_v12  ;;  %2572 = vmatpush2.msra.mxu1 %v2203_v13  ;;  %v2728_v12 = vld [vmem:[#allocation12 + $0x158] sm:$0xff]  ;;  %v2725_v13 = vld [vmem:[#allocation12 + $0x140] sm:$0xff] }
 0x3cc   :  { %2502 = vmatprep.subr.mxu0 %v2194_v15  ;;  %2573 = vmatprep.subr.mxu1 %v2196_v14  ;;  %v2727_v15 = vld [vmem:[#allocation12 + $0x150] sm:$0xff]  ;;  %v2718_v14 = vld [vmem:[#allocation12 + $0x108] sm:$0xff] }
 0x3cd   :  { %2503 = vmatpush2.msra.mxu0 %v2193_v18  ;;  %2574 = vmatpush2.msra.mxu1 %v2195_v19  ;;  %v2720_v18 = vld [vmem:[#allocation12 + $0x118] sm:$0xff]  ;;  %v2717_v19 = vld [vmem:[#allocation12 + $0x100] sm:$0xff] }
 0x3ce   :  { %2504 = vmatprep.subr.mxu0 %v2186_v20  ;;  %2575 = vmatprep.subr.mxu1 %v2188_v22  ;;  %v2719_v20 = vld [vmem:[#allocation12 + $0x110] sm:$0xff]  ;;  %v2710_v22 = vld [vmem:[#allocation12 + $0xc8] sm:$0xff] }
 0x3cf   :  { %2505 = vmatpush2.msra.mxu0 %v2185_v24  ;;  %2576 = vmatpush2.msra.mxu1 %v2187_v25  ;;  %v2712_v24 = vld [vmem:[#allocation12 + $0xd8] sm:$0xff]  ;;  %v2709_v25 = vld [vmem:[#allocation12 + $0xc0] sm:$0xff] }
 0x3d0   :  { %2506 = vmatprep.subr.mxu0 %v2178_v2  ;;  %2577 = vmatprep.subr.mxu1 %v2180_v28  ;;  %v2711_v2 = vld [vmem:[#allocation12 + $0xd0] sm:$0xff]  ;;  %v2702_v28 = vld [vmem:[#allocation12 + $0x88] sm:$0xff] }
 0x3d1   :  { %2507 = vmatpush2.msra.mxu0 %v2177_v29  ;;  %2578 = vmatpush2.msra.mxu1 %v2179_v32  ;;  %v2704_v29 = vld [vmem:[#allocation12 + $0x98] sm:$0xff]  ;;  %v2701_v32 = vld [vmem:[#allocation12 + $0x80] sm:$0xff] }
 0x3d2   :  { %2508 = vmatprep.subr.mxu0 %v2170_v9  ;;  %2579 = vmatprep.subr.mxu1 %v2172_v33  ;;  %v2703_v9 = vld [vmem:[#allocation12 + $0x90] sm:$0xff]  ;;  %v2694_v33 = vld [vmem:[#allocation12 + $0x48] sm:$0xff] }
 0x3d3   :  { %2509 = vmatpush2.msra.mxu0 %v2169_v34  ;;  %2580 = vmatpush2.msra.mxu1 %v2171_v11  ;;  %v2696_v34 = vld [vmem:[#allocation12 + $0x58] sm:$0xff]  ;;  %v2693_v11 = vld [vmem:[#allocation12 + $0x40] sm:$0xff] }
 0x3d4   :  { %2511 = vmatmul.mubr.f32.vlgmr.msra.gmra.mxu0 %v6557_v23  ;;  %2582 = vmatmul.mubr.f32.vlgmr.msra.gmra.mxu1 %v6557_v23  ;;  %v2789_v23 = vld [vmem:[#allocation12 + $0x340] sm:$0xff] }
 0x3d5   :  { %2952 = vmatprep.subr.mxu0 %v2806_v8  ;;  %3023 = vmatprep.subr.mxu1 %v2808_v35  ;;  %v2695_v8 = vld [vmem:[#allocation12 + $0x50] sm:$0xff]  ;;  %v2686_v35 = vld [vmem:[#allocation12 + $0x8] sm:$0xff] }
 0x3d6   :  { %2953 = vmatpush1.msra.mxu0 %v2805_v36  ;;  %3024 = vmatpush1.msra.mxu1 %v2807_v37  ;;  %v2688_v36 = vld [vmem:[#allocation12 + $0x18] sm:$0xff]  ;;  %v2685_v37 = vld [vmem:[#allocation12] sm:$0xff] }
 0x3d7   :  { %2954 = vmatprep.subr.mxu0 %v2798_v38  ;;  %3025 = vmatprep.subr.mxu1 %v2800_v39  ;;  %v2687_v38 = vld [vmem:[#allocation12 + $0x10] sm:$0xff]  ;;  %v2934_v39 = vld [vmem:[#allocation12 + $0x7c8] sm:$0xff] }
 0x3d8   :  { %2955 = vmatpush1.msra.mxu0 %v2797_v40  ;;  %3026 = vmatpush1.msra.mxu1 %v2799_v41  ;;  %v2936_v40 = vld [vmem:[#allocation12 + $0x7d8] sm:$0xff]  ;;  %v2933_v41 = vld [vmem:[#allocation12 + $0x7c0] sm:$0xff] }
 0x3d9   :  { %2956 = vmatprep.subr.mxu0 %v2790_v42  ;;  %3027 = vmatprep.subr.mxu1 %v2792_v43  ;;  %v2935_v42 = vld [vmem:[#allocation12 + $0x7d0] sm:$0xff]  ;;  %v2926_v43 = vld [vmem:[#allocation12 + $0x788] sm:$0xff] }
 0x3da   :  { %2957 = vmatpush1.msra.mxu0 %v2789_v23  ;;  %3028 = vmatpush1.msra.mxu1 %v2791_v4  ;;  %v2928_v23 = vld [vmem:[#allocation12 + $0x798] sm:$0xff]  ;;  %v2925_v4 = vld [vmem:[#allocation12 + $0x780] sm:$0xff] }
 0x3db   :  { %2958 = vmatprep.subr.mxu0 %v2782_v44  ;;  %3029 = vmatprep.subr.mxu1 %v2784_v45  ;;  %v2927_v44 = vld [vmem:[#allocation12 + $0x790] sm:$0xff]  ;;  %v2918_v45 = vld [vmem:[#allocation12 + $0x748] sm:$0xff] }
 0x3dc   :  { %2959 = vmatpush1.msra.mxu0 %v2781_v46  ;;  %3030 = vmatpush1.msra.mxu1 %v2783_v47  ;;  %v2920_v46 = vld [vmem:[#allocation12 + $0x758] sm:$0xff]  ;;  %v2917_v47 = vld [vmem:[#allocation12 + $0x740] sm:$0xff] }
 0x3dd   :  { %2960 = vmatprep.subr.mxu0 %v2774_v48  ;;  %3031 = vmatprep.subr.mxu1 %v2776_v49  ;;  %v2919_v48 = vld [vmem:[#allocation12 + $0x750] sm:$0xff]  ;;  %v2910_v49 = vld [vmem:[#allocation12 + $0x708] sm:$0xff] }
 0x3de   :  { %2961 = vmatpush1.msra.mxu0 %v2773_v50  ;;  %3032 = vmatpush1.msra.mxu1 %v2775_v51  ;;  %v2912_v50 = vld [vmem:[#allocation12 + $0x718] sm:$0xff]  ;;  %v2909_v51 = vld [vmem:[#allocation12 + $0x700] sm:$0xff] }
 0x3df   :  { %2962 = vmatprep.subr.mxu0 %v2766_v52  ;;  %3033 = vmatprep.subr.mxu1 %v2768_v53  ;;  %v2911_v52 = vld [vmem:[#allocation12 + $0x710] sm:$0xff]  ;;  %v2902_v53 = vld [vmem:[#allocation12 + $0x6c8] sm:$0xff] }
 0x3e0   :  { %2963 = vmatpush1.msra.mxu0 %v2765_v54  ;;  %3034 = vmatpush1.msra.mxu1 %v2767_v55  ;;  %v2904_v54 = vld [vmem:[#allocation12 + $0x6d8] sm:$0xff]  ;;  %v2901_v55 = vld [vmem:[#allocation12 + $0x6c0] sm:$0xff] }
 0x3e1   :  { %2964 = vmatprep.subr.mxu0 %v2758_v56  ;;  %3035 = vmatprep.subr.mxu1 %v2760_v57  ;;  %v2903_v56 = vld [vmem:[#allocation12 + $0x6d0] sm:$0xff]  ;;  %v2894_v57 = vld [vmem:[#allocation12 + $0x688] sm:$0xff] }
 0x3e2   :  { %2965 = vmatpush1.msra.mxu0 %v2757_v58  ;;  %3036 = vmatpush1.msra.mxu1 %v2759_v59  ;;  %v2896_v58 = vld [vmem:[#allocation12 + $0x698] sm:$0xff]  ;;  %v2893_v59 = vld [vmem:[#allocation12 + $0x680] sm:$0xff] }
 0x3e3   :  { %2966 = vmatprep.subr.mxu0 %v2750_v60  ;;  %3037 = vmatprep.subr.mxu1 %v2752_v61  ;;  %v2895_v60 = vld [vmem:[#allocation12 + $0x690] sm:$0xff]  ;;  %v2886_v61 = vld [vmem:[#allocation12 + $0x648] sm:$0xff] }
 0x3e4   :  { %2967 = vmatpush1.msra.mxu0 %v2749_v27  ;;  %3038 = vmatpush1.msra.mxu1 %v2751_v62  ;;  %v2888_v27 = vld [vmem:[#allocation12 + $0x658] sm:$0xff]  ;;  %v2885_v62 = vld [vmem:[#allocation12 + $0x640] sm:$0xff] }
 0x3e5   :  { %2968 = vmatprep.subr.mxu0 %v2742_v63  ;;  %3039 = vmatprep.subr.mxu1 %v2744_v0  ;;  %v2887_v63 = vld [vmem:[#allocation12 + $0x650] sm:$0xff]  ;;  %v2878_v0 = vld [vmem:[#allocation12 + $0x608] sm:$0xff] }
 0x3e6   :  { %2969 = vmatpush1.msra.mxu0 %v2741_v1  ;;  %3040 = vmatpush1.msra.mxu1 %v2743_v30  ;;  %v2880_v1 = vld [vmem:[#allocation12 + $0x618] sm:$0xff]  ;;  %v2877_v30 = vld [vmem:[#allocation12 + $0x600] sm:$0xff] }
 0x3e7   :  { %2970 = vmatprep.subr.mxu0 %v2734_v3  ;;  %3041 = vmatprep.subr.mxu1 %v2736_v5  ;;  %v2879_v3 = vld [vmem:[#allocation12 + $0x610] sm:$0xff]  ;;  %v2870_v5 = vld [vmem:[#allocation12 + $0x5c8] sm:$0xff] }
 0x3e8   :  { %2971 = vmatpush1.msra.mxu0 %v2733_v6  ;;  %3042 = vmatpush1.msra.mxu1 %v2735_v7  ;;  %v2872_v6 = vld [vmem:[#allocation12 + $0x5d8] sm:$0xff]  ;;  %v2869_v7 = vld [vmem:[#allocation12 + $0x5c0] sm:$0xff] }
 0x3e9   :  { %2972 = vmatprep.subr.mxu0 %v2726_v10  ;;  %3043 = vmatprep.subr.mxu1 %v2728_v12  ;;  %v2871_v10 = vld [vmem:[#allocation12 + $0x5d0] sm:$0xff]  ;;  %v2862_v12 = vld [vmem:[#allocation12 + $0x588] sm:$0xff] }
 0x3ea   :  { %2973 = vmatpush1.msra.mxu0 %v2725_v13  ;;  %3044 = vmatpush1.msra.mxu1 %v2727_v15  ;;  %v2864_v13 = vld [vmem:[#allocation12 + $0x598] sm:$0xff]  ;;  %v2861_v15 = vld [vmem:[#allocation12 + $0x580] sm:$0xff] }
 0x3eb   :  { %2974 = vmatprep.subr.mxu0 %v2718_v14  ;;  %3045 = vmatprep.subr.mxu1 %v2720_v18  ;;  %v2863_v14 = vld [vmem:[#allocation12 + $0x590] sm:$0xff]  ;;  %v2854_v18 = vld [vmem:[#allocation12 + $0x548] sm:$0xff] }
 0x3ec   :  { %2975 = vmatpush1.msra.mxu0 %v2717_v19  ;;  %3046 = vmatpush1.msra.mxu1 %v2719_v20  ;;  %v2856_v19 = vld [vmem:[#allocation12 + $0x558] sm:$0xff]  ;;  %v2853_v20 = vld [vmem:[#allocation12 + $0x540] sm:$0xff] }
 0x3ed   :  { %2976 = vmatprep.subr.mxu0 %v2710_v22  ;;  %3047 = vmatprep.subr.mxu1 %v2712_v24  ;;  %v2855_v22 = vld [vmem:[#allocation12 + $0x550] sm:$0xff]  ;;  %v2846_v24 = vld [vmem:[#allocation12 + $0x508] sm:$0xff] }
 0x3ee   :  { %2977 = vmatpush1.msra.mxu0 %v2709_v25  ;;  %3048 = vmatpush1.msra.mxu1 %v2711_v2  ;;  %v2848_v25 = vld [vmem:[#allocation12 + $0x518] sm:$0xff]  ;;  %v2845_v2 = vld [vmem:[#allocation12 + $0x500] sm:$0xff] }
 0x3ef   :  { %2978 = vmatprep.subr.mxu0 %v2702_v28  ;;  %3049 = vmatprep.subr.mxu1 %v2704_v29  ;;  %v2847_v28 = vld [vmem:[#allocation12 + $0x510] sm:$0xff]  ;;  %v2838_v29 = vld [vmem:[#allocation12 + $0x4c8] sm:$0xff] }
 0x3f0   :  { %2979 = vmatpush1.msra.mxu0 %v2701_v32  ;;  %3050 = vmatpush1.msra.mxu1 %v2703_v9  ;;  %v2840_v32 = vld [vmem:[#allocation12 + $0x4d8] sm:$0xff]  ;;  %v2837_v9 = vld [vmem:[#allocation12 + $0x4c0] sm:$0xff] }
 0x3f1   :  { %2980 = vmatprep.subr.mxu0 %v2694_v33  ;;  %3051 = vmatprep.subr.mxu1 %v2696_v34  ;;  %v2839_v33 = vld [vmem:[#allocation12 + $0x4d0] sm:$0xff]  ;;  %v2830_v34 = vld [vmem:[#allocation12 + $0x488] sm:$0xff] }
 0x3f2   :  { %2981 = vmatpush1.msra.mxu0 %v2693_v11  ;;  %3052 = vmatpush1.msra.mxu1 %v2695_v8  ;;  %v2832_v11 = vld [vmem:[#allocation12 + $0x498] sm:$0xff]  ;;  %v2829_v8 = vld [vmem:[#allocation12 + $0x480] sm:$0xff] }
 0x3f3   :  { %2982 = vmatprep.subr.mxu0 %v2686_v35  ;;  %3053 = vmatprep.subr.mxu1 %v2688_v36  ;;  %v2831_v35 = vld [vmem:[#allocation12 + $0x490] sm:$0xff]  ;;  %v2822_v36 = vld [vmem:[#allocation12 + $0x448] sm:$0xff] }
 0x3f4   :  { %2983 = vmatpush1.msra.mxu0 %v2685_v37  ;;  %3054 = vmatpush1.msra.mxu1 %v2687_v38  ;;  %v2824_v37 = vld [vmem:[#allocation12 + $0x458] sm:$0xff]  ;;  %v2821_v38 = vld [vmem:[#allocation12 + $0x440] sm:$0xff] }
 0x3f5   :  { %2984 = vmatprep.subr.mxu0 %v2934_v39  ;;  %3055 = vmatprep.subr.mxu1 %v2936_v40  ;;  %v2823_v39 = vld [vmem:[#allocation12 + $0x450] sm:$0xff]  ;;  %v2814_v40 = vld [vmem:[#allocation12 + $0x408] sm:$0xff] }
 0x3f6   :  { %2985 = vmatpush2.msra.mxu0 %v2933_v41  ;;  %3056 = vmatpush2.msra.mxu1 %v2935_v42  ;;  %v2816_v41 = vld [vmem:[#allocation12 + $0x418] sm:$0xff]  ;;  %v2813_v42 = vld [vmem:[#allocation12 + $0x400] sm:$0xff] }
 0x3f7   :  { %2986 = vmatprep.subr.mxu0 %v2926_v43  ;;  %3057 = vmatprep.subr.mxu1 %v2928_v23  ;;  %v2815_v43 = vld [vmem:[#allocation12 + $0x410] sm:$0xff]  ;;  %v2810_v23 = vld [vmem:[#allocation12 + $0x3e8] sm:$0xff] }
 0x3f8   :  { %2987 = vmatpush2.msra.mxu0 %v2925_v4  ;;  %3058 = vmatpush2.msra.mxu1 %v2927_v44  ;;  %v2812_v4 = vld [vmem:[#allocation12 + $0x3f8] sm:$0xff] }
 0x3f9   :  { %2988 = vmatprep.subr.mxu0 %v2918_v45  ;;  %3059 = vmatprep.subr.mxu1 %v2920_v46 }
 0x3fa   :  { %2989 = vmatpush2.msra.mxu0 %v2917_v47  ;;  %3060 = vmatpush2.msra.mxu1 %v2919_v48 }
 0x3fb   :  { %2990 = vmatprep.subr.mxu0 %v2910_v49  ;;  %3061 = vmatprep.subr.mxu1 %v2912_v50 }
 0x3fc   :  { %2991 = vmatpush2.msra.mxu0 %v2909_v51  ;;  %3062 = vmatpush2.msra.mxu1 %v2911_v52 }
 0x3fd   :  { %2992 = vmatprep.subr.mxu0 %v2902_v53  ;;  %3063 = vmatprep.subr.mxu1 %v2904_v54 }
 0x3fe   :  { %2993 = vmatpush2.msra.mxu0 %v2901_v55  ;;  %3064 = vmatpush2.msra.mxu1 %v2903_v56 }
 0x3ff   :  { %2994 = vmatprep.subr.mxu0 %v2894_v57  ;;  %3065 = vmatprep.subr.mxu1 %v2896_v58 }
 0x400   :  { %2995 = vmatpush2.msra.mxu0 %v2893_v59  ;;  %3066 = vmatpush2.msra.mxu1 %v2895_v60 }
 0x401   :  { %2996 = vmatprep.subr.mxu0 %v2886_v61  ;;  %3067 = vmatprep.subr.mxu1 %v2888_v27  ;;  %v2035_v27 = vld [vmem:[#allocation3 + $0x2] ss:$8 sm:$0xf0] }
 0x402   :  { %2997 = vmatpush2.msra.mxu0 %v2885_v62  ;;  %3068 = vmatpush2.msra.mxu1 %v2887_v63 }
 0x403   :  { %2998 = vmatprep.subr.mxu0 %v2878_v0  ;;  %3069 = vmatprep.subr.mxu1 %v2880_v1  ;;  %v2034_v0 = vld [vmem:[#allocation3 + $0x2] ss:$8 sm:$0xf] }
 0x404   :  { %2999 = vmatpush2.msra.mxu0 %v2877_v30  ;;  %3070 = vmatpush2.msra.mxu1 %v2879_v3  ;;  %v2036_v1 = vor.u32 %v2035_v27, %v2034_v0  ;;  %v2746_v27 = vld [vmem:[#allocation12 + $0x1e8] sm:$0xff]  ;;  %v2747_v0 = vld [vmem:[#allocation12 + $0x1f0] sm:$0xff] }
 0x405   :  { %3000 = vmatprep.subr.mxu0 %v2870_v5  ;;  %3071 = vmatprep.subr.mxu1 %v2872_v6 }
 0x406   :  { %3001 = vmatpush2.msra.mxu0 %v2869_v7  ;;  %3072 = vmatpush2.msra.mxu1 %v2871_v10 }
 0x407   :  { %3002 = vmatprep.subr.mxu0 %v2862_v12  ;;  %3073 = vmatprep.subr.mxu1 %v2864_v13 }
 0x408   :  { %3003 = vmatpush2.msra.mxu0 %v2861_v15  ;;  %3074 = vmatpush2.msra.mxu1 %v2863_v14 }
 0x409   :  { %3004 = vmatprep.subr.mxu0 %v2854_v18  ;;  %3075 = vmatprep.subr.mxu1 %v2856_v19 }
 0x40a   :  { %3005 = vmatpush2.msra.mxu0 %v2853_v20  ;;  %3076 = vmatpush2.msra.mxu1 %v2855_v22 }
 0x40b   :  { %3006 = vmatprep.subr.mxu0 %v2846_v24  ;;  %3077 = vmatprep.subr.mxu1 %v2848_v25 }
 0x40c   :  { %3007 = vmatpush2.msra.mxu0 %v2845_v2  ;;  %3078 = vmatpush2.msra.mxu1 %v2847_v28 }
 0x40d   :  { %3008 = vmatprep.subr.mxu0 %v2838_v29  ;;  %3079 = vmatprep.subr.mxu1 %v2840_v32 }
 0x40e   :  { %3009 = vmatpush2.msra.mxu0 %v2837_v9  ;;  %3080 = vmatpush2.msra.mxu1 %v2839_v33 }
 0x40f   :  { %3010 = vmatprep.subr.mxu0 %v2830_v34  ;;  %3081 = vmatprep.subr.mxu1 %v2832_v11 }
 0x410   :  { %3011 = vmatpush2.msra.mxu0 %v2829_v8  ;;  %3082 = vmatpush2.msra.mxu1 %v2831_v35  ;;  %v2809_v35 = vld [vmem:[#allocation12 + $0x3e0] sm:$0xff] }
 0x411   :  { %3012 = vmatprep.subr.mxu0 %v2822_v36  ;;  %3083 = vmatprep.subr.mxu1 %v2824_v37  ;;  %v2811_v36 = vld [vmem:[#allocation12 + $0x3f0] sm:$0xff]  ;;  %v2804_v37 = vld [vmem:[#allocation12 + $0x3b8] sm:$0xff] }
 0x412   :  { %3013 = vmatpush2.msra.mxu0 %v2821_v38  ;;  %3084 = vmatpush2.msra.mxu1 %v2823_v39  ;;  %v2801_v38 = vld [vmem:[#allocation12 + $0x3a0] sm:$0xff]  ;;  %v2803_v39 = vld [vmem:[#allocation12 + $0x3b0] sm:$0xff] }
 0x413   :  { %3014 = vmatprep.subr.mxu0 %v2814_v40  ;;  %3085 = vmatprep.subr.mxu1 %v2816_v41  ;;  %v2794_v40 = vld [vmem:[#allocation12 + $0x368] sm:$0xff]  ;;  %v2796_v41 = vld [vmem:[#allocation12 + $0x378] sm:$0xff] }
 0x414   :  { %3015 = vmatpush2.msra.mxu0 %v2813_v42  ;;  %3086 = vmatpush2.msra.mxu1 %v2815_v43  ;;  %v2793_v42 = vld [vmem:[#allocation12 + $0x360] sm:$0xff]  ;;  %v2795_v43 = vld [vmem:[#allocation12 + $0x370] sm:$0xff] }
 0x415   :  { %3094 = vmatprep.subr.mxu0 %v2810_v23  ;;  %3165 = vmatprep.subr.mxu1 %v2812_v4  ;;  %v2786_v23 = vld [vmem:[#allocation12 + $0x328] sm:$0xff]  ;;  %v2788_v4 = vld [vmem:[#allocation12 + $0x338] sm:$0xff] }
 0x453   :  { %v2370_v44 = vpop.f32.mrf.mxu0  ;;  %v2441_v45 = vpop.f32.mrf.mxu1 }
 0x455   :  { %v2372_v46 = vpop.f32.mrf.mxu0  ;;  %v2443_v47 = vpop.f32.mrf.mxu1 }
 0x456   :  { %v2596_v48 = vcombine.low %v2370_v44, %v2372_v46  ;;  %v2597_v49 = vcombine.low %v2441_v45, %v2443_v47  ;;  %v2785_v44 = vld [vmem:[#allocation12 + $0x320] sm:$0xff]  ;;  %v2787_v45 = vld [vmem:[#allocation12 + $0x330] sm:$0xff]  ;;  %v2778_v46 = vld [vmem:[#allocation12 + $0x2e8] sm:$0xff] }
 0x457   :  { %v2780_v47 = vld [vmem:[#allocation12 + $0x2f8] sm:$0xff] }
 0x458   :  { %v2606_v52 = vrot.slane %v2596_v48, %v6522_v31  ;;  %v2613_v53 = vrot.slane %v2597_v49, %v6522_v31  ;;  %v2777_v48 = vld [vmem:[#allocation12 + $0x2e0] sm:$0xff]  ;;  %v2779_v49 = vld [vmem:[#allocation12 + $0x2f0] sm:$0xff] }
 0x45a   :  { %v2628_v58 = vcombine.low %v2606_v52, %v2613_v53  ;;  %v2769_v52 = vld [vmem:[#allocation12 + $0x2a0] sm:$0xff]  ;;  %v2771_v53 = vld [vmem:[#allocation12 + $0x2b0] sm:$0xff] }
 0x45c   :  { %v2636_v62 = vrot.slane %v2628_v58, %v6522_v31  ;;  %v2754_v58 = vld [vmem:[#allocation12 + $0x228] sm:$0xff] }
 0x494   :  { %v2512_v50 = vpop.f32.mrf.mxu0  ;;  %v2583_v51 = vpop.f32.mrf.mxu1 }
 0x496   :  { %v2514_v54 = vpop.f32.mrf.mxu0  ;;  %v2585_v55 = vpop.f32.mrf.mxu1 }
 0x497   :  { %v2598_v56 = vcombine.low %v2512_v50, %v2514_v54  ;;  %v2599_v57 = vcombine.low %v2583_v51, %v2585_v55  ;;  %v2770_v50 = vld [vmem:[#allocation12 + $0x2a8] sm:$0xff]  ;;  %v2772_v51 = vld [vmem:[#allocation12 + $0x2b8] sm:$0xff] }
 0x498   :  { %v2762_v54 = vld [vmem:[#allocation12 + $0x268] sm:$0xff]  ;;  %v2764_v55 = vld [vmem:[#allocation12 + $0x278] sm:$0xff] }
 0x499   :  { %v2620_v59 = vrot.slane %v2598_v56, %v6522_v31  ;;  %v2627_v60 = vrot.slane %v2599_v57, %v6522_v31  ;;  %v2761_v56 = vld [vmem:[#allocation12 + $0x260] sm:$0xff]  ;;  %v2763_v57 = vld [vmem:[#allocation12 + $0x270] sm:$0xff] }
 0x49b   :  { %v2629_v61 = vcombine.low %v2620_v59, %v2627_v60  ;;  %v2756_v59 = vld [vmem:[#allocation12 + $0x238] sm:$0xff]  ;;  %v2753_v60 = vld [vmem:[#allocation12 + $0x220] sm:$0xff] }
 0x49d   :  { %v2643_v63 = vrot.slane %v2629_v61, %v6522_v31  ;;  %v2755_v61 = vld [vmem:[#allocation12 + $0x230] sm:$0xff] }
 0x49f   :  { %v2644_v30 = vcombine.low %v2636_v62, %v2643_v63  ;;  %v2748_v62 = vld [vmem:[#allocation12 + $0x1f8] sm:$0xff]  ;;  %v2745_v63 = vld [vmem:[#allocation12 + $0x1e0] sm:$0xff] }
 0x4a1   :  { %v2646_v3 = vadd.f32 %v2644_v30, %v2036_v1  ;;  %v2738_v1 = vld [vmem:[#allocation12 + $0x1a8] sm:$0xff]  ;;  %v2740_v30 = vld [vmem:[#allocation12 + $0x1b8] sm:$0xff] }
 0x4a3   :  { %v6004_v5 = vmul.f32 -1.442695, %v2646_v3  ;;  %v2654_v6 = vrot.slane %v2646_v3, 2  ;;  %v2665_v10 = vrot.slane %v2646_v3, 6  ;;  %v2662_v15 = vrot.slane %v2646_v3, 4  ;;  %v2737_v3 = vld [vmem:[#allocation12 + $0x1a0] sm:$0xff] }
 0x4a5   :  { %6067 = vpow2.f32 %v6004_v5  ;;  %v6005_v7 = vmul.f32 -1.442695, %v2654_v6  ;;  %v6006_v12 = vmul.f32 -1.442695, %v2665_v10  ;;  %v2739_v5 = vld [vmem:[#allocation12 + $0x1b0] sm:$0xff]  ;;  %v2730_v6 = vld [vmem:[#allocation12 + $0x168] sm:$0xff] }
 0x4a6   :  { %v2729_v10 = vld [vmem:[#allocation12 + $0x160] sm:$0xff] }
 0x4a7   :  { %6069 = vpow2.f32 %v6005_v7  ;;  %v2732_v7 = vld [vmem:[#allocation12 + $0x178] sm:$0xff] }
 0x4a8   :  { %6071 = vpow2.f32 %v6006_v12  ;;  %v2731_v12 = vld [vmem:[#allocation12 + $0x170] sm:$0xff] }
 0x4b2   :  { %v6068_v13 = vpop.eup %6067 }
 0x4b3   :  { %v2650_v14 = vadd.f32 1.0, %v6068_v13  ;;  %v2722_v13 = vld [vmem:[#allocation12 + $0x128] sm:$0xff] }
 0x4b4   :  { %v6070_v18 = vpop.eup %6069 }
 0x4b5   :  { %6073 = vrcp.f32 %v2650_v14  ;;  %v2659_v19 = vadd.f32 1.0, %v6070_v18  ;;  %v6072_v20 = vpop.eup %6071  ;;  %v2721_v14 = vld [vmem:[#allocation12 + $0x120] sm:$0xff]  ;;  %v2723_v18 = vld [vmem:[#allocation12 + $0x130] sm:$0xff] }
 0x4b6   :  { %6075 = vtanh.f32 %v2662_v15  ;;  %v2670_v2 = vadd.f32 1.0, %v6072_v20  ;;  %v2724_v15 = vld [vmem:[#allocation12 + $0x138] sm:$0xff] }
 0x4b7   :  { %6077 = vrcp.f32 %v2659_v19  ;;  %v2714_v19 = vld [vmem:[#allocation12 + $0xe8] sm:$0xff]  ;;  %v2716_v20 = vld [vmem:[#allocation12 + $0xf8] sm:$0xff] }
 0x4b8   :  { %6079 = vrcp.f32 %v2670_v2  ;;  %v2708_v2 = vld [vmem:[#allocation12 + $0xb8] sm:$0xff] }
 0x4c2   :  { %v6074_v22 = vpop.eup %6073 }
 0x4c3   :  { %v6076_v24 = vpop.eup %6075 }
 0x4c4   :  { %v6078_v25 = vpop.eup %6077  ;;  %v2674_v29 = vmul.f32 %v6076_v24, %v6074_v22  ;;  %v2713_v22 = vld [vmem:[#allocation12 + $0xe0] sm:$0xff]  ;;  %v2715_v24 = vld [vmem:[#allocation12 + $0xf0] sm:$0xff] }
 0x4c5   :  { %v2673_v28 = vmul.f32 %v6078_v25, %v6550_v17  ;;  %v6080_v9 = vpop.eup %6079  ;;  %v2802_v17 = vld [vmem:[#allocation12 + $0x3a8] sm:$0xff] }
 0x4c6   :  { %v2706_v25 = vld [vmem:[#allocation12 + $0xa8] sm:$0xff] }
 0x4c7   :  { %v6570_v32 = vadd.f32 %v2674_v29, %v2673_v28  ;;  %v2705_v28 = vld [vmem:[#allocation12 + $0xa0] sm:$0xff]  ;;  %v2707_v29 = vld [vmem:[#allocation12 + $0xb0] sm:$0xff] }
 0x4c9   :  { %6081 = vtanh.f32 %v6570_v32 }
 0x4d6   :  { %v6082_v33 = vpop.eup %6081 }
 0x4d7   :  { %v2677_v34 = vmul.f32 %v6082_v33, %v6080_v9  ;;  %v2698_v9 = vld [vmem:[#allocation12 + $0x68] sm:$0xff]  ;;  %v2700_v33 = vld [vmem:[#allocation12 + $0x78] sm:$0xff] }
 0x4d9   :  { %2679 = vst.msk [vmem:[#allocation14 + $0x2] ss:$8 sm:$0x3] %vm6426_vm0, %v2677_v34  ;;  %v2949_v11 = vrot.slane %v2677_v34, %v6478_v16  ;;  %v6577_v8 = vrot.slane %v2677_v34, %v6484_v21  ;;  %v2697_v34 = vld [vmem:[#allocation12 + $0x60] sm:$0xff] }
 0x4db   :  { %3016 = vmatprep.mubr.f32.mxu0 %v2949_v11  ;;  %3087 = vmatprep.mubr.f32.mxu1 %v2949_v11 }
 0x4dc   :  { %3017 = vmatmul.mubr.f32.vlgmr.msra.gmra.mxu0 %v6577_v8  ;;  %3088 = vmatmul.mubr.f32.vlgmr.msra.gmra.mxu1 %v6577_v8 }
 0x4dd   :  { %3095 = vmatpush1.msra.mxu0 %v2809_v35  ;;  %3166 = vmatpush1.msra.mxu1 %v2811_v36  ;;  %v2690_v35 = vld [vmem:[#allocation12 + $0x28] sm:$0xff]  ;;  %v2692_v36 = vld [vmem:[#allocation12 + $0x38] sm:$0xff] }
 0x4de   :  { %3096 = vmatprep.subr.mxu0 %v2802_v17  ;;  %3158 = vmatprep.mubr.f32.mxu0 %v2949_v11  ;;  %v2689_v17 = vld [vmem:[#allocation12 + $0x20] sm:$0xff] }
 0x4df   :  { %3167 = vmatprep.subr.mxu1 %v2804_v37  ;;  %3229 = vmatprep.mubr.f32.mxu1 %v2949_v11  ;;  %v2699_v11 = vld [vmem:[#allocation12 + $0x70] sm:$0xff] }
 0x4e0   :  { %3097 = vmatpush1.msra.mxu0 %v2801_v38  ;;  %3168 = vmatpush1.msra.mxu1 %v2803_v39  ;;  %v2691_v37 = vld [vmem:[#allocation12 + $0x30] sm:$0xff]  ;;  %v2938_v38 = vld [vmem:[#allocation12 + $0x7e8] sm:$0xff]  ;;  %v2940_v39 = vld [vmem:[#allocation12 + $0x7f8] sm:$0xff] }
 0x4e1   :  { %3098 = vmatprep.subr.mxu0 %v2794_v40  ;;  %3169 = vmatprep.subr.mxu1 %v2796_v41  ;;  %v2937_v40 = vld [vmem:[#allocation12 + $0x7e0] sm:$0xff]  ;;  %v2939_v41 = vld [vmem:[#allocation12 + $0x7f0] sm:$0xff] }
 0x4e2   :  { %3099 = vmatpush1.msra.mxu0 %v2793_v42  ;;  %3170 = vmatpush1.msra.mxu1 %v2795_v43  ;;  %v2930_v42 = vld [vmem:[#allocation12 + $0x7a8] sm:$0xff]  ;;  %v2932_v43 = vld [vmem:[#allocation12 + $0x7b8] sm:$0xff] }
 0x4e3   :  { %3100 = vmatprep.subr.mxu0 %v2786_v23  ;;  %3171 = vmatprep.subr.mxu1 %v2788_v4  ;;  %v2929_v23 = vld [vmem:[#allocation12 + $0x7a0] sm:$0xff]  ;;  %v2931_v4 = vld [vmem:[#allocation12 + $0x7b0] sm:$0xff] }
 0x4e4   :  { %3101 = vmatpush1.msra.mxu0 %v2785_v44  ;;  %3172 = vmatpush1.msra.mxu1 %v2787_v45  ;;  %v2922_v44 = vld [vmem:[#allocation12 + $0x768] sm:$0xff]  ;;  %v2924_v45 = vld [vmem:[#allocation12 + $0x778] sm:$0xff] }
 0x4e5   :  { %3102 = vmatprep.subr.mxu0 %v2778_v46  ;;  %3173 = vmatprep.subr.mxu1 %v2780_v47  ;;  %v2921_v46 = vld [vmem:[#allocation12 + $0x760] sm:$0xff]  ;;  %v2923_v47 = vld [vmem:[#allocation12 + $0x770] sm:$0xff] }
 0x4e6   :  { %3103 = vmatpush1.msra.mxu0 %v2777_v48  ;;  %3174 = vmatpush1.msra.mxu1 %v2779_v49  ;;  %v2914_v48 = vld [vmem:[#allocation12 + $0x728] sm:$0xff]  ;;  %v2916_v49 = vld [vmem:[#allocation12 + $0x738] sm:$0xff] }
 0x4e7   :  { %3104 = vmatprep.subr.mxu0 %v2770_v50  ;;  %3175 = vmatprep.subr.mxu1 %v2772_v51  ;;  %v2913_v50 = vld [vmem:[#allocation12 + $0x720] sm:$0xff]  ;;  %v2915_v51 = vld [vmem:[#allocation12 + $0x730] sm:$0xff] }
 0x4e8   :  { %3105 = vmatpush1.msra.mxu0 %v2769_v52  ;;  %3176 = vmatpush1.msra.mxu1 %v2771_v53  ;;  %v2906_v52 = vld [vmem:[#allocation12 + $0x6e8] sm:$0xff]  ;;  %v2908_v53 = vld [vmem:[#allocation12 + $0x6f8] sm:$0xff] }
 0x4e9   :  { %3106 = vmatprep.subr.mxu0 %v2762_v54  ;;  %3177 = vmatprep.subr.mxu1 %v2764_v55  ;;  %v2905_v54 = vld [vmem:[#allocation12 + $0x6e0] sm:$0xff]  ;;  %v2907_v55 = vld [vmem:[#allocation12 + $0x6f0] sm:$0xff] }
 0x4ea   :  { %3107 = vmatpush1.msra.mxu0 %v2761_v56  ;;  %3178 = vmatpush1.msra.mxu1 %v2763_v57  ;;  %v2898_v56 = vld [vmem:[#allocation12 + $0x6a8] sm:$0xff]  ;;  %v2900_v57 = vld [vmem:[#allocation12 + $0x6b8] sm:$0xff] }
 0x4eb   :  { %3108 = vmatprep.subr.mxu0 %v2754_v58  ;;  %3179 = vmatprep.subr.mxu1 %v2756_v59  ;;  %v2897_v58 = vld [vmem:[#allocation12 + $0x6a0] sm:$0xff]  ;;  %v2899_v59 = vld [vmem:[#allocation12 + $0x6b0] sm:$0xff] }
 0x4ec   :  { %3109 = vmatpush1.msra.mxu0 %v2753_v60  ;;  %3180 = vmatpush1.msra.mxu1 %v2755_v61  ;;  %v2890_v60 = vld [vmem:[#allocation12 + $0x668] sm:$0xff]  ;;  %v2892_v61 = vld [vmem:[#allocation12 + $0x678] sm:$0xff] }
 0x4ed   :  { %3110 = vmatprep.subr.mxu0 %v2746_v27  ;;  %3181 = vmatprep.subr.mxu1 %v2748_v62  ;;  %v2889_v27 = vld [vmem:[#allocation12 + $0x660] sm:$0xff]  ;;  %v2891_v62 = vld [vmem:[#allocation12 + $0x670] sm:$0xff] }
 0x4ee   :  { %3111 = vmatpush1.msra.mxu0 %v2745_v63  ;;  %3182 = vmatpush1.msra.mxu1 %v2747_v0  ;;  %v2882_v63 = vld [vmem:[#allocation12 + $0x628] sm:$0xff]  ;;  %v2884_v0 = vld [vmem:[#allocation12 + $0x638] sm:$0xff] }
 0x4ef   :  { %3112 = vmatprep.subr.mxu0 %v2738_v1  ;;  %3183 = vmatprep.subr.mxu1 %v2740_v30  ;;  %v2881_v1 = vld [vmem:[#allocation12 + $0x620] sm:$0xff]  ;;  %v2883_v30 = vld [vmem:[#allocation12 + $0x630] sm:$0xff] }
 0x4f0   :  { %3113 = vmatpush1.msra.mxu0 %v2737_v3  ;;  %3184 = vmatpush1.msra.mxu1 %v2739_v5  ;;  %v2874_v3 = vld [vmem:[#allocation12 + $0x5e8] sm:$0xff]  ;;  %v2876_v5 = vld [vmem:[#allocation12 + $0x5f8] sm:$0xff] }
 0x4f1   :  { %3114 = vmatprep.subr.mxu0 %v2730_v6  ;;  %3185 = vmatprep.subr.mxu1 %v2732_v7  ;;  %v2873_v6 = vld [vmem:[#allocation12 + $0x5e0] sm:$0xff]  ;;  %v2875_v7 = vld [vmem:[#allocation12 + $0x5f0] sm:$0xff] }
 0x4f2   :  { %3115 = vmatpush1.msra.mxu0 %v2729_v10  ;;  %3186 = vmatpush1.msra.mxu1 %v2731_v12  ;;  %v2866_v10 = vld [vmem:[#allocation12 + $0x5a8] sm:$0xff]  ;;  %v2868_v12 = vld [vmem:[#allocation12 + $0x5b8] sm:$0xff] }
 0x4f3   :  { %3116 = vmatprep.subr.mxu0 %v2722_v13  ;;  %3187 = vmatprep.subr.mxu1 %v2724_v15  ;;  %v2865_v13 = vld [vmem:[#allocation12 + $0x5a0] sm:$0xff]  ;;  %v2867_v15 = vld [vmem:[#allocation12 + $0x5b0] sm:$0xff] }
 0x4f4   :  { %3117 = vmatpush1.msra.mxu0 %v2721_v14  ;;  %3188 = vmatpush1.msra.mxu1 %v2723_v18  ;;  %v2858_v14 = vld [vmem:[#allocation12 + $0x568] sm:$0xff]  ;;  %v2860_v18 = vld [vmem:[#allocation12 + $0x578] sm:$0xff] }
 0x4f5   :  { %3118 = vmatprep.subr.mxu0 %v2714_v19  ;;  %3189 = vmatprep.subr.mxu1 %v2716_v20  ;;  %v2857_v19 = vld [vmem:[#allocation12 + $0x560] sm:$0xff]  ;;  %v2859_v20 = vld [vmem:[#allocation12 + $0x570] sm:$0xff] }
 0x4f6   :  { %3119 = vmatpush1.msra.mxu0 %v2713_v22  ;;  %3190 = vmatpush1.msra.mxu1 %v2715_v24  ;;  %v2850_v22 = vld [vmem:[#allocation12 + $0x528] sm:$0xff]  ;;  %v2852_v24 = vld [vmem:[#allocation12 + $0x538] sm:$0xff] }
 0x4f7   :  { %3120 = vmatprep.subr.mxu0 %v2706_v25  ;;  %3191 = vmatprep.subr.mxu1 %v2708_v2  ;;  %v2849_v25 = vld [vmem:[#allocation12 + $0x520] sm:$0xff]  ;;  %v2851_v2 = vld [vmem:[#allocation12 + $0x530] sm:$0xff] }
 0x4f8   :  { %3121 = vmatpush1.msra.mxu0 %v2705_v28  ;;  %3192 = vmatpush1.msra.mxu1 %v2707_v29  ;;  %v2842_v28 = vld [vmem:[#allocation12 + $0x4e8] sm:$0xff]  ;;  %v2844_v29 = vld [vmem:[#allocation12 + $0x4f8] sm:$0xff] }
 0x4f9   :  { %3122 = vmatprep.subr.mxu0 %v2698_v9  ;;  %3193 = vmatprep.subr.mxu1 %v2700_v33  ;;  %v2841_v9 = vld [vmem:[#allocation12 + $0x4e0] sm:$0xff]  ;;  %v2843_v33 = vld [vmem:[#allocation12 + $0x4f0] sm:$0xff] }
 0x4fa   :  { %3123 = vmatpush1.msra.mxu0 %v2697_v34  ;;  %3194 = vmatpush1.msra.mxu1 %v2699_v11  ;;  %v2834_v34 = vld [vmem:[#allocation12 + $0x4a8] sm:$0xff]  ;;  %v2836_v11 = vld [vmem:[#allocation12 + $0x4b8] sm:$0xff] }
 0x4fb   :  { %3124 = vmatprep.subr.mxu0 %v2690_v35  ;;  %3195 = vmatprep.subr.mxu1 %v2692_v36  ;;  %v2833_v35 = vld [vmem:[#allocation12 + $0x4a0] sm:$0xff]  ;;  %v2835_v36 = vld [vmem:[#allocation12 + $0x4b0] sm:$0xff] }
 0x4fc   :  { %3125 = vmatpush1.msra.mxu0 %v2689_v17  ;;  %3196 = vmatpush1.msra.mxu1 %v2691_v37  ;;  %v2826_v17 = vld [vmem:[#allocation12 + $0x468] sm:$0xff]  ;;  %v2828_v37 = vld [vmem:[#allocation12 + $0x478] sm:$0xff] }
 0x4fd   :  { %3126 = vmatprep.subr.mxu0 %v2938_v38  ;;  %3197 = vmatprep.subr.mxu1 %v2940_v39  ;;  %v2825_v38 = vld [vmem:[#allocation12 + $0x460] sm:$0xff]  ;;  %v2827_v39 = vld [vmem:[#allocation12 + $0x470] sm:$0xff] }
 0x4fe   :  { %3127 = vmatpush2.msra.mxu0 %v2937_v40  ;;  %3198 = vmatpush2.msra.mxu1 %v2939_v41  ;;  %v2818_v40 = vld [vmem:[#allocation12 + $0x428] sm:$0xff]  ;;  %v2820_v41 = vld [vmem:[#allocation12 + $0x438] sm:$0xff] }
 0x4ff   :  { %3128 = vmatprep.subr.mxu0 %v2930_v42  ;;  %3199 = vmatprep.subr.mxu1 %v2932_v43  ;;  %v2817_v42 = vld [vmem:[#allocation12 + $0x420] sm:$0xff]  ;;  %v2819_v43 = vld [vmem:[#allocation12 + $0x430] sm:$0xff] }
 0x500   :  { %3129 = vmatpush2.msra.mxu0 %v2929_v23  ;;  %3200 = vmatpush2.msra.mxu1 %v2931_v4  ;;  %v3454_v23 = vld [vmem:[#allocation12 + $0x3c8] sm:$0xff]  ;;  %v3456_v4 = vld [vmem:[#allocation12 + $0x3d8] sm:$0xff] }
 0x501   :  { %3130 = vmatprep.subr.mxu0 %v2922_v44  ;;  %3201 = vmatprep.subr.mxu1 %v2924_v45  ;;  %v3453_v44 = vld [vmem:[#allocation12 + $0x3c0] sm:$0xff]  ;;  %v3455_v45 = vld [vmem:[#allocation12 + $0x3d0] sm:$0xff] }
 0x502   :  { %3131 = vmatpush2.msra.mxu0 %v2921_v46  ;;  %3202 = vmatpush2.msra.mxu1 %v2923_v47  ;;  %v3446_v46 = vld [vmem:[#allocation12 + $0x388] sm:$0xff]  ;;  %v3448_v47 = vld [vmem:[#allocation12 + $0x398] sm:$0xff] }
 0x503   :  { %3132 = vmatprep.subr.mxu0 %v2914_v48  ;;  %3203 = vmatprep.subr.mxu1 %v2916_v49  ;;  %v3445_v48 = vld [vmem:[#allocation12 + $0x380] sm:$0xff]  ;;  %v3447_v49 = vld [vmem:[#allocation12 + $0x390] sm:$0xff] }
 0x504   :  { %3133 = vmatpush2.msra.mxu0 %v2913_v50  ;;  %3204 = vmatpush2.msra.mxu1 %v2915_v51  ;;  %v3438_v50 = vld [vmem:[#allocation12 + $0x348] sm:$0xff]  ;;  %v3440_v51 = vld [vmem:[#allocation12 + $0x358] sm:$0xff] }
 0x505   :  { %3134 = vmatprep.subr.mxu0 %v2906_v52  ;;  %3205 = vmatprep.subr.mxu1 %v2908_v53  ;;  %v3439_v52 = vld [vmem:[#allocation12 + $0x350] sm:$0xff]  ;;  %v3430_v53 = vld [vmem:[#allocation12 + $0x308] sm:$0xff] }
 0x506   :  { %3135 = vmatpush2.msra.mxu0 %v2905_v54  ;;  %3206 = vmatpush2.msra.mxu1 %v2907_v55  ;;  %v3432_v54 = vld [vmem:[#allocation12 + $0x318] sm:$0xff]  ;;  %v3429_v55 = vld [vmem:[#allocation12 + $0x300] sm:$0xff] }
 0x507   :  { %3136 = vmatprep.subr.mxu0 %v2898_v56  ;;  %3207 = vmatprep.subr.mxu1 %v2900_v57  ;;  %v3431_v56 = vld [vmem:[#allocation12 + $0x310] sm:$0xff]  ;;  %v3422_v57 = vld [vmem:[#allocation12 + $0x2c8] sm:$0xff] }
 0x508   :  { %3137 = vmatpush2.msra.mxu0 %v2897_v58  ;;  %3208 = vmatpush2.msra.mxu1 %v2899_v59  ;;  %v3424_v58 = vld [vmem:[#allocation12 + $0x2d8] sm:$0xff]  ;;  %v3421_v59 = vld [vmem:[#allocation12 + $0x2c0] sm:$0xff] }
 0x509   :  { %3138 = vmatprep.subr.mxu0 %v2890_v60  ;;  %3209 = vmatprep.subr.mxu1 %v2892_v61  ;;  %v3423_v60 = vld [vmem:[#allocation12 + $0x2d0] sm:$0xff]  ;;  %v3414_v61 = vld [vmem:[#allocation12 + $0x288] sm:$0xff] }
 0x50a   :  { %3139 = vmatpush2.msra.mxu0 %v2889_v27  ;;  %3210 = vmatpush2.msra.mxu1 %v2891_v62  ;;  %v3416_v27 = vld [vmem:[#allocation12 + $0x298] sm:$0xff]  ;;  %v3413_v62 = vld [vmem:[#allocation12 + $0x280] sm:$0xff] }
 0x50b   :  { %3140 = vmatprep.subr.mxu0 %v2882_v63  ;;  %3211 = vmatprep.subr.mxu1 %v2884_v0  ;;  %v3415_v63 = vld [vmem:[#allocation12 + $0x290] sm:$0xff]  ;;  %v3406_v0 = vld [vmem:[#allocation12 + $0x248] sm:$0xff] }
 0x50c   :  { %3141 = vmatpush2.msra.mxu0 %v2881_v1  ;;  %3212 = vmatpush2.msra.mxu1 %v2883_v30  ;;  %v3408_v1 = vld [vmem:[#allocation12 + $0x258] sm:$0xff]  ;;  %v3405_v30 = vld [vmem:[#allocation12 + $0x240] sm:$0xff] }
 0x50d   :  { %3142 = vmatprep.subr.mxu0 %v2874_v3  ;;  %3213 = vmatprep.subr.mxu1 %v2876_v5  ;;  %v3407_v3 = vld [vmem:[#allocation12 + $0x250] sm:$0xff]  ;;  %v3398_v5 = vld [vmem:[#allocation12 + $0x208] sm:$0xff] }
 0x50e   :  { %3143 = vmatpush2.msra.mxu0 %v2873_v6  ;;  %3214 = vmatpush2.msra.mxu1 %v2875_v7  ;;  %v3400_v6 = vld [vmem:[#allocation12 + $0x218] sm:$0xff]  ;;  %v3397_v7 = vld [vmem:[#allocation12 + $0x200] sm:$0xff] }
 0x50f   :  { %3144 = vmatprep.subr.mxu0 %v2866_v10  ;;  %3215 = vmatprep.subr.mxu1 %v2868_v12  ;;  %v3399_v10 = vld [vmem:[#allocation12 + $0x210] sm:$0xff]  ;;  %v3390_v12 = vld [vmem:[#allocation12 + $0x1c8] sm:$0xff] }
 0x510   :  { %3145 = vmatpush2.msra.mxu0 %v2865_v13  ;;  %3216 = vmatpush2.msra.mxu1 %v2867_v15  ;;  %v3392_v13 = vld [vmem:[#allocation12 + $0x1d8] sm:$0xff]  ;;  %v3389_v15 = vld [vmem:[#allocation12 + $0x1c0] sm:$0xff] }
 0x511   :  { %3146 = vmatprep.subr.mxu0 %v2858_v14  ;;  %3217 = vmatprep.subr.mxu1 %v2860_v18  ;;  %v3391_v14 = vld [vmem:[#allocation12 + $0x1d0] sm:$0xff]  ;;  %v3382_v18 = vld [vmem:[#allocation12 + $0x188] sm:$0xff] }
 0x512   :  { %3147 = vmatpush2.msra.mxu0 %v2857_v19  ;;  %3218 = vmatpush2.msra.mxu1 %v2859_v20  ;;  %v3384_v19 = vld [vmem:[#allocation12 + $0x198] sm:$0xff]  ;;  %v3381_v20 = vld [vmem:[#allocation12 + $0x180] sm:$0xff] }
 0x513   :  { %3148 = vmatprep.subr.mxu0 %v2850_v22  ;;  %3219 = vmatprep.subr.mxu1 %v2852_v24  ;;  %v3383_v22 = vld [vmem:[#allocation12 + $0x190] sm:$0xff]  ;;  %v3374_v24 = vld [vmem:[#allocation12 + $0x148] sm:$0xff] }
 0x514   :  { %3149 = vmatpush2.msra.mxu0 %v2849_v25  ;;  %3220 = vmatpush2.msra.mxu1 %v2851_v2  ;;  %v3376_v25 = vld [vmem:[#allocation12 + $0x158] sm:$0xff]  ;;  %v3373_v2 = vld [vmem:[#allocation12 + $0x140] sm:$0xff] }
 0x515   :  { %3150 = vmatprep.subr.mxu0 %v2842_v28  ;;  %3221 = vmatprep.subr.mxu1 %v2844_v29  ;;  %v3375_v28 = vld [vmem:[#allocation12 + $0x150] sm:$0xff]  ;;  %v3366_v29 = vld [vmem:[#allocation12 + $0x108] sm:$0xff] }
 0x516   :  { %3151 = vmatpush2.msra.mxu0 %v2841_v9  ;;  %3222 = vmatpush2.msra.mxu1 %v2843_v33  ;;  %v3368_v9 = vld [vmem:[#allocation12 + $0x118] sm:$0xff]  ;;  %v3365_v33 = vld [vmem:[#allocation12 + $0x100] sm:$0xff] }
 0x517   :  { %3152 = vmatprep.subr.mxu0 %v2834_v34  ;;  %3223 = vmatprep.subr.mxu1 %v2836_v11  ;;  %v3367_v34 = vld [vmem:[#allocation12 + $0x110] sm:$0xff]  ;;  %v3358_v11 = vld [vmem:[#allocation12 + $0xc8] sm:$0xff] }
 0x518   :  { %3153 = vmatpush2.msra.mxu0 %v2833_v35  ;;  %3224 = vmatpush2.msra.mxu1 %v2835_v36  ;;  %v3360_v35 = vld [vmem:[#allocation12 + $0xd8] sm:$0xff]  ;;  %v3357_v36 = vld [vmem:[#allocation12 + $0xc0] sm:$0xff] }
 0x519   :  { %3154 = vmatprep.subr.mxu0 %v2826_v17  ;;  %3225 = vmatprep.subr.mxu1 %v2828_v37  ;;  %v3359_v17 = vld [vmem:[#allocation12 + $0xd0] sm:$0xff]  ;;  %v3350_v37 = vld [vmem:[#allocation12 + $0x88] sm:$0xff] }
 0x51a   :  { %3155 = vmatpush2.msra.mxu0 %v2825_v38  ;;  %3226 = vmatpush2.msra.mxu1 %v2827_v39  ;;  %v3352_v38 = vld [vmem:[#allocation12 + $0x98] sm:$0xff]  ;;  %v3349_v39 = vld [vmem:[#allocation12 + $0x80] sm:$0xff] }
 0x51b   :  { %3156 = vmatprep.subr.mxu0 %v2818_v40  ;;  %3227 = vmatprep.subr.mxu1 %v2820_v41  ;;  %v3351_v40 = vld [vmem:[#allocation12 + $0x90] sm:$0xff]  ;;  %v3342_v41 = vld [vmem:[#allocation12 + $0x48] sm:$0xff] }
 0x51c   :  { %3157 = vmatpush2.msra.mxu0 %v2817_v42  ;;  %3228 = vmatpush2.msra.mxu1 %v2819_v43  ;;  %v3344_v42 = vld [vmem:[#allocation12 + $0x58] sm:$0xff]  ;;  %v3341_v43 = vld [vmem:[#allocation12 + $0x40] sm:$0xff] }
 0x51d   :  { %3159 = vmatmul.mubr.f32.vlgmr.msra.gmra.mxu0 %v6577_v8  ;;  %3230 = vmatmul.mubr.f32.vlgmr.msra.gmra.mxu1 %v6577_v8  ;;  %v3437_v8 = vld [vmem:[#allocation12 + $0x340] sm:$0xff] }
 0x51e   :  { %3600 = vmatprep.subr.mxu0 %v3454_v23  ;;  %3671 = vmatprep.subr.mxu1 %v3456_v4  ;;  %v3343_v23 = vld [vmem:[#allocation12 + $0x50] sm:$0xff]  ;;  %v3334_v4 = vld [vmem:[#allocation12 + $0x8] sm:$0xff] }
 0x51f   :  { %3601 = vmatpush1.msra.mxu0 %v3453_v44  ;;  %3672 = vmatpush1.msra.mxu1 %v3455_v45  ;;  %v3336_v44 = vld [vmem:[#allocation12 + $0x18] sm:$0xff]  ;;  %v3333_v45 = vld [vmem:[#allocation12] sm:$0xff] }
 0x520   :  { %3602 = vmatprep.subr.mxu0 %v3446_v46  ;;  %3673 = vmatprep.subr.mxu1 %v3448_v47  ;;  %v3335_v46 = vld [vmem:[#allocation12 + $0x10] sm:$0xff]  ;;  %v3582_v47 = vld [vmem:[#allocation12 + $0x7c8] sm:$0xff] }
 0x521   :  { %3603 = vmatpush1.msra.mxu0 %v3445_v48  ;;  %3674 = vmatpush1.msra.mxu1 %v3447_v49  ;;  %v3584_v48 = vld [vmem:[#allocation12 + $0x7d8] sm:$0xff]  ;;  %v3581_v49 = vld [vmem:[#allocation12 + $0x7c0] sm:$0xff] }
 0x522   :  { %3604 = vmatprep.subr.mxu0 %v3438_v50  ;;  %3675 = vmatprep.subr.mxu1 %v3440_v51  ;;  %v3583_v50 = vld [vmem:[#allocation12 + $0x7d0] sm:$0xff]  ;;  %v3574_v51 = vld [vmem:[#allocation12 + $0x788] sm:$0xff] }
 0x523   :  { %3605 = vmatpush1.msra.mxu0 %v3437_v8  ;;  %3676 = vmatpush1.msra.mxu1 %v3439_v52  ;;  %v3576_v8 = vld [vmem:[#allocation12 + $0x798] sm:$0xff]  ;;  %v3573_v52 = vld [vmem:[#allocation12 + $0x780] sm:$0xff] }
 0x524   :  { %3606 = vmatprep.subr.mxu0 %v3430_v53  ;;  %3677 = vmatprep.subr.mxu1 %v3432_v54  ;;  %v3575_v53 = vld [vmem:[#allocation12 + $0x790] sm:$0xff]  ;;  %v3566_v54 = vld [vmem:[#allocation12 + $0x748] sm:$0xff] }
 0x525   :  { %3607 = vmatpush1.msra.mxu0 %v3429_v55  ;;  %3678 = vmatpush1.msra.mxu1 %v3431_v56  ;;  %v3568_v55 = vld [vmem:[#allocation12 + $0x758] sm:$0xff]  ;;  %v3565_v56 = vld [vmem:[#allocation12 + $0x740] sm:$0xff] }
 0x526   :  { %3608 = vmatprep.subr.mxu0 %v3422_v57  ;;  %3679 = vmatprep.subr.mxu1 %v3424_v58  ;;  %v3567_v57 = vld [vmem:[#allocation12 + $0x750] sm:$0xff]  ;;  %v3558_v58 = vld [vmem:[#allocation12 + $0x708] sm:$0xff] }
 0x527   :  { %3609 = vmatpush1.msra.mxu0 %v3421_v59  ;;  %3680 = vmatpush1.msra.mxu1 %v3423_v60  ;;  %v3560_v59 = vld [vmem:[#allocation12 + $0x718] sm:$0xff]  ;;  %v3557_v60 = vld [vmem:[#allocation12 + $0x700] sm:$0xff] }
 0x528   :  { %3610 = vmatprep.subr.mxu0 %v3414_v61  ;;  %3681 = vmatprep.subr.mxu1 %v3416_v27  ;;  %v3559_v61 = vld [vmem:[#allocation12 + $0x710] sm:$0xff]  ;;  %v3550_v27 = vld [vmem:[#allocation12 + $0x6c8] sm:$0xff] }
 0x529   :  { %3611 = vmatpush1.msra.mxu0 %v3413_v62  ;;  %3682 = vmatpush1.msra.mxu1 %v3415_v63  ;;  %v3552_v62 = vld [vmem:[#allocation12 + $0x6d8] sm:$0xff]  ;;  %v3549_v63 = vld [vmem:[#allocation12 + $0x6c0] sm:$0xff] }
 0x52a   :  { %3612 = vmatprep.subr.mxu0 %v3406_v0  ;;  %3683 = vmatprep.subr.mxu1 %v3408_v1  ;;  %v3551_v0 = vld [vmem:[#allocation12 + $0x6d0] sm:$0xff]  ;;  %v3542_v1 = vld [vmem:[#allocation12 + $0x688] sm:$0xff] }
 0x52b   :  { %3613 = vmatpush1.msra.mxu0 %v3405_v30  ;;  %3684 = vmatpush1.msra.mxu1 %v3407_v3  ;;  %v3544_v30 = vld [vmem:[#allocation12 + $0x698] sm:$0xff]  ;;  %v3541_v3 = vld [vmem:[#allocation12 + $0x680] sm:$0xff] }
 0x52c   :  { %3614 = vmatprep.subr.mxu0 %v3398_v5  ;;  %3685 = vmatprep.subr.mxu1 %v3400_v6  ;;  %v3543_v5 = vld [vmem:[#allocation12 + $0x690] sm:$0xff]  ;;  %v3534_v6 = vld [vmem:[#allocation12 + $0x648] sm:$0xff] }
 0x52d   :  { %3615 = vmatpush1.msra.mxu0 %v3397_v7  ;;  %3686 = vmatpush1.msra.mxu1 %v3399_v10  ;;  %v3536_v7 = vld [vmem:[#allocation12 + $0x658] sm:$0xff]  ;;  %v3533_v10 = vld [vmem:[#allocation12 + $0x640] sm:$0xff] }
 0x52e   :  { %3616 = vmatprep.subr.mxu0 %v3390_v12  ;;  %3687 = vmatprep.subr.mxu1 %v3392_v13  ;;  %v3535_v12 = vld [vmem:[#allocation12 + $0x650] sm:$0xff]  ;;  %v3526_v13 = vld [vmem:[#allocation12 + $0x608] sm:$0xff] }
 0x52f   :  { %3617 = vmatpush1.msra.mxu0 %v3389_v15  ;;  %3688 = vmatpush1.msra.mxu1 %v3391_v14  ;;  %v3528_v15 = vld [vmem:[#allocation12 + $0x618] sm:$0xff]  ;;  %v3525_v14 = vld [vmem:[#allocation12 + $0x600] sm:$0xff] }
 0x530   :  { %3618 = vmatprep.subr.mxu0 %v3382_v18  ;;  %3689 = vmatprep.subr.mxu1 %v3384_v19  ;;  %v3527_v18 = vld [vmem:[#allocation12 + $0x610] sm:$0xff]  ;;  %v3518_v19 = vld [vmem:[#allocation12 + $0x5c8] sm:$0xff] }
 0x531   :  { %3619 = vmatpush1.msra.mxu0 %v3381_v20  ;;  %3690 = vmatpush1.msra.mxu1 %v3383_v22  ;;  %v3520_v20 = vld [vmem:[#allocation12 + $0x5d8] sm:$0xff]  ;;  %v3517_v22 = vld [vmem:[#allocation12 + $0x5c0] sm:$0xff] }
 0x532   :  { %3620 = vmatprep.subr.mxu0 %v3374_v24  ;;  %3691 = vmatprep.subr.mxu1 %v3376_v25  ;;  %v3519_v24 = vld [vmem:[#allocation12 + $0x5d0] sm:$0xff]  ;;  %v3510_v25 = vld [vmem:[#allocation12 + $0x588] sm:$0xff] }
 0x533   :  { %3621 = vmatpush1.msra.mxu0 %v3373_v2  ;;  %3692 = vmatpush1.msra.mxu1 %v3375_v28  ;;  %v3512_v2 = vld [vmem:[#allocation12 + $0x598] sm:$0xff]  ;;  %v3509_v28 = vld [vmem:[#allocation12 + $0x580] sm:$0xff] }
 0x534   :  { %3622 = vmatprep.subr.mxu0 %v3366_v29  ;;  %3693 = vmatprep.subr.mxu1 %v3368_v9  ;;  %v3511_v29 = vld [vmem:[#allocation12 + $0x590] sm:$0xff]  ;;  %v3502_v9 = vld [vmem:[#allocation12 + $0x548] sm:$0xff] }
 0x535   :  { %3623 = vmatpush1.msra.mxu0 %v3365_v33  ;;  %3694 = vmatpush1.msra.mxu1 %v3367_v34  ;;  %v3504_v33 = vld [vmem:[#allocation12 + $0x558] sm:$0xff]  ;;  %v3501_v34 = vld [vmem:[#allocation12 + $0x540] sm:$0xff] }
 0x536   :  { %3624 = vmatprep.subr.mxu0 %v3358_v11  ;;  %3695 = vmatprep.subr.mxu1 %v3360_v35  ;;  %v3503_v11 = vld [vmem:[#allocation12 + $0x550] sm:$0xff]  ;;  %v3494_v35 = vld [vmem:[#allocation12 + $0x508] sm:$0xff] }
 0x537   :  { %3625 = vmatpush1.msra.mxu0 %v3357_v36  ;;  %3696 = vmatpush1.msra.mxu1 %v3359_v17  ;;  %v3496_v36 = vld [vmem:[#allocation12 + $0x518] sm:$0xff]  ;;  %v3493_v17 = vld [vmem:[#allocation12 + $0x500] sm:$0xff] }
 0x538   :  { %3626 = vmatprep.subr.mxu0 %v3350_v37  ;;  %3697 = vmatprep.subr.mxu1 %v3352_v38  ;;  %v3495_v37 = vld [vmem:[#allocation12 + $0x510] sm:$0xff]  ;;  %v3486_v38 = vld [vmem:[#allocation12 + $0x4c8] sm:$0xff] }
 0x539   :  { %3627 = vmatpush1.msra.mxu0 %v3349_v39  ;;  %3698 = vmatpush1.msra.mxu1 %v3351_v40  ;;  %v3488_v39 = vld [vmem:[#allocation12 + $0x4d8] sm:$0xff]  ;;  %v3485_v40 = vld [vmem:[#allocation12 + $0x4c0] sm:$0xff] }
 0x53a   :  { %3628 = vmatprep.subr.mxu0 %v3342_v41  ;;  %3699 = vmatprep.subr.mxu1 %v3344_v42  ;;  %v3487_v41 = vld [vmem:[#allocation12 + $0x4d0] sm:$0xff]  ;;  %v3478_v42 = vld [vmem:[#allocation12 + $0x488] sm:$0xff] }
 0x53b   :  { %3629 = vmatpush1.msra.mxu0 %v3341_v43  ;;  %3700 = vmatpush1.msra.mxu1 %v3343_v23  ;;  %v3480_v43 = vld [vmem:[#allocation12 + $0x498] sm:$0xff]  ;;  %v3477_v23 = vld [vmem:[#allocation12 + $0x480] sm:$0xff] }
 0x53c   :  { %3630 = vmatprep.subr.mxu0 %v3334_v4  ;;  %3701 = vmatprep.subr.mxu1 %v3336_v44  ;;  %v3479_v4 = vld [vmem:[#allocation12 + $0x490] sm:$0xff]  ;;  %v3470_v44 = vld [vmem:[#allocation12 + $0x448] sm:$0xff] }
 0x53d   :  { %3631 = vmatpush1.msra.mxu0 %v3333_v45  ;;  %3702 = vmatpush1.msra.mxu1 %v3335_v46  ;;  %v3472_v45 = vld [vmem:[#allocation12 + $0x458] sm:$0xff]  ;;  %v3469_v46 = vld [vmem:[#allocation12 + $0x440] sm:$0xff] }
 0x53e   :  { %3632 = vmatprep.subr.mxu0 %v3582_v47  ;;  %3703 = vmatprep.subr.mxu1 %v3584_v48  ;;  %v3471_v47 = vld [vmem:[#allocation12 + $0x450] sm:$0xff]  ;;  %v3462_v48 = vld [vmem:[#allocation12 + $0x408] sm:$0xff] }
 0x53f   :  { %3633 = vmatpush2.msra.mxu0 %v3581_v49  ;;  %3704 = vmatpush2.msra.mxu1 %v3583_v50  ;;  %v3464_v49 = vld [vmem:[#allocation12 + $0x418] sm:$0xff]  ;;  %v3461_v50 = vld [vmem:[#allocation12 + $0x400] sm:$0xff] }
 0x540   :  { %3634 = vmatprep.subr.mxu0 %v3574_v51  ;;  %3705 = vmatprep.subr.mxu1 %v3576_v8  ;;  %v3463_v51 = vld [vmem:[#allocation12 + $0x410] sm:$0xff]  ;;  %v3458_v8 = vld [vmem:[#allocation12 + $0x3e8] sm:$0xff] }
 0x541   :  { %3635 = vmatpush2.msra.mxu0 %v3573_v52  ;;  %3706 = vmatpush2.msra.mxu1 %v3575_v53  ;;  %v3460_v52 = vld [vmem:[#allocation12 + $0x3f8] sm:$0xff] }
 0x542   :  { %3636 = vmatprep.subr.mxu0 %v3566_v54  ;;  %3707 = vmatprep.subr.mxu1 %v3568_v55 }
 0x543   :  { %3637 = vmatpush2.msra.mxu0 %v3565_v56  ;;  %3708 = vmatpush2.msra.mxu1 %v3567_v57 }
 0x544   :  { %3638 = vmatprep.subr.mxu0 %v3558_v58  ;;  %3709 = vmatprep.subr.mxu1 %v3560_v59 }
 0x545   :  { %3639 = vmatpush2.msra.mxu0 %v3557_v60  ;;  %3710 = vmatpush2.msra.mxu1 %v3559_v61 }
 0x546   :  { %3640 = vmatprep.subr.mxu0 %v3550_v27  ;;  %3711 = vmatprep.subr.mxu1 %v3552_v62 }
 0x547   :  { %3641 = vmatpush2.msra.mxu0 %v3549_v63  ;;  %3712 = vmatpush2.msra.mxu1 %v3551_v0 }
 0x548   :  { %3642 = vmatprep.subr.mxu0 %v3542_v1  ;;  %3713 = vmatprep.subr.mxu1 %v3544_v30 }
 0x549   :  { %3643 = vmatpush2.msra.mxu0 %v3541_v3  ;;  %3714 = vmatpush2.msra.mxu1 %v3543_v5 }
 0x54a   :  { %3644 = vmatprep.subr.mxu0 %v3534_v6  ;;  %3715 = vmatprep.subr.mxu1 %v3536_v7  ;;  %v2683_v7 = vld [vmem:[#allocation3 + $0x3] ss:$8 sm:$0xf0] }
 0x54b   :  { %3645 = vmatpush2.msra.mxu0 %v3533_v10  ;;  %3716 = vmatpush2.msra.mxu1 %v3535_v12 }
 0x54c   :  { %3646 = vmatprep.subr.mxu0 %v3526_v13  ;;  %3717 = vmatprep.subr.mxu1 %v3528_v15  ;;  %v2682_v13 = vld [vmem:[#allocation3 + $0x3] ss:$8 sm:$0xf] }
 0x54d   :  { %3647 = vmatpush2.msra.mxu0 %v3525_v14  ;;  %3718 = vmatpush2.msra.mxu1 %v3527_v18  ;;  %v2684_v15 = vor.u32 %v2683_v7, %v2682_v13  ;;  %v3394_v7 = vld [vmem:[#allocation12 + $0x1e8] sm:$0xff]  ;;  %v3395_v13 = vld [vmem:[#allocation12 + $0x1f0] sm:$0xff] }
 0x54e   :  { %3648 = vmatprep.subr.mxu0 %v3518_v19  ;;  %3719 = vmatprep.subr.mxu1 %v3520_v20 }
 0x54f   :  { %3649 = vmatpush2.msra.mxu0 %v3517_v22  ;;  %3720 = vmatpush2.msra.mxu1 %v3519_v24 }
 0x550   :  { %3650 = vmatprep.subr.mxu0 %v3510_v25  ;;  %3721 = vmatprep.subr.mxu1 %v3512_v2 }
 0x551   :  { %3651 = vmatpush2.msra.mxu0 %v3509_v28  ;;  %3722 = vmatpush2.msra.mxu1 %v3511_v29 }
 0x552   :  { %3652 = vmatprep.subr.mxu0 %v3502_v9  ;;  %3723 = vmatprep.subr.mxu1 %v3504_v33 }
 0x553   :  { %3653 = vmatpush2.msra.mxu0 %v3501_v34  ;;  %3724 = vmatpush2.msra.mxu1 %v3503_v11 }
 0x554   :  { %3654 = vmatprep.subr.mxu0 %v3494_v35  ;;  %3725 = vmatprep.subr.mxu1 %v3496_v36 }
 0x555   :  { %3655 = vmatpush2.msra.mxu0 %v3493_v17  ;;  %3726 = vmatpush2.msra.mxu1 %v3495_v37 }
 0x556   :  { %3656 = vmatprep.subr.mxu0 %v3486_v38  ;;  %3727 = vmatprep.subr.mxu1 %v3488_v39 }
 0x557   :  { %3657 = vmatpush2.msra.mxu0 %v3485_v40  ;;  %3728 = vmatpush2.msra.mxu1 %v3487_v41 }
 0x558   :  { %3658 = vmatprep.subr.mxu0 %v3478_v42  ;;  %3729 = vmatprep.subr.mxu1 %v3480_v43 }
 0x559   :  { %3659 = vmatpush2.msra.mxu0 %v3477_v23  ;;  %3730 = vmatpush2.msra.mxu1 %v3479_v4  ;;  %v3457_v4 = vld [vmem:[#allocation12 + $0x3e0] sm:$0xff] }
 0x55a   :  { %3660 = vmatprep.subr.mxu0 %v3470_v44  ;;  %3731 = vmatprep.subr.mxu1 %v3472_v45  ;;  %v3459_v44 = vld [vmem:[#allocation12 + $0x3f0] sm:$0xff]  ;;  %v3452_v45 = vld [vmem:[#allocation12 + $0x3b8] sm:$0xff] }
 0x55b   :  { %3661 = vmatpush2.msra.mxu0 %v3469_v46  ;;  %3732 = vmatpush2.msra.mxu1 %v3471_v47  ;;  %v3449_v46 = vld [vmem:[#allocation12 + $0x3a0] sm:$0xff]  ;;  %v3451_v47 = vld [vmem:[#allocation12 + $0x3b0] sm:$0xff] }
 0x55c   :  { %3662 = vmatprep.subr.mxu0 %v3462_v48  ;;  %3733 = vmatprep.subr.mxu1 %v3464_v49  ;;  %v3442_v48 = vld [vmem:[#allocation12 + $0x368] sm:$0xff]  ;;  %v3444_v49 = vld [vmem:[#allocation12 + $0x378] sm:$0xff] }
 0x55d   :  { %3663 = vmatpush2.msra.mxu0 %v3461_v50  ;;  %3734 = vmatpush2.msra.mxu1 %v3463_v51  ;;  %v3441_v50 = vld [vmem:[#allocation12 + $0x360] sm:$0xff]  ;;  %v3443_v51 = vld [vmem:[#allocation12 + $0x370] sm:$0xff] }
 0x55e   :  { %3742 = vmatprep.subr.mxu0 %v3458_v8  ;;  %3813 = vmatprep.subr.mxu1 %v3460_v52  ;;  %v3434_v8 = vld [vmem:[#allocation12 + $0x328] sm:$0xff]  ;;  %v3436_v52 = vld [vmem:[#allocation12 + $0x338] sm:$0xff] }
 0x59c   :  { %v3018_v53 = vpop.f32.mrf.mxu0  ;;  %v3089_v54 = vpop.f32.mrf.mxu1 }
 0x59e   :  { %v3020_v55 = vpop.f32.mrf.mxu0  ;;  %v3091_v56 = vpop.f32.mrf.mxu1 }
 0x59f   :  { %v3244_v57 = vcombine.low %v3018_v53, %v3020_v55  ;;  %v3245_v58 = vcombine.low %v3089_v54, %v3091_v56  ;;  %v3433_v53 = vld [vmem:[#allocation12 + $0x320] sm:$0xff]  ;;  %v3435_v54 = vld [vmem:[#allocation12 + $0x330] sm:$0xff]  ;;  %v3426_v55 = vld [vmem:[#allocation12 + $0x2e8] sm:$0xff] }
 0x5a0   :  { %v3428_v56 = vld [vmem:[#allocation12 + $0x2f8] sm:$0xff] }
 0x5a1   :  { %v3254_v61 = vrot.slane %v3244_v57, %v6522_v31  ;;  %v3261_v27 = vrot.slane %v3245_v58, %v6522_v31  ;;  %v3425_v57 = vld [vmem:[#allocation12 + $0x2e0] sm:$0xff]  ;;  %v3427_v58 = vld [vmem:[#allocation12 + $0x2f0] sm:$0xff] }
 0x5a3   :  { %v3276_v30 = vcombine.low %v3254_v61, %v3261_v27  ;;  %v3417_v61 = vld [vmem:[#allocation12 + $0x2a0] sm:$0xff]  ;;  %v3419_v27 = vld [vmem:[#allocation12 + $0x2b0] sm:$0xff] }
 0x5a5   :  { %v3284_v10 = vrot.slane %v3276_v30, %v6522_v31  ;;  %v3402_v30 = vld [vmem:[#allocation12 + $0x228] sm:$0xff] }
 0x5dd   :  { %v3160_v59 = vpop.f32.mrf.mxu0  ;;  %v3231_v60 = vpop.f32.mrf.mxu1 }
 0x5df   :  { %v3162_v62 = vpop.f32.mrf.mxu0  ;;  %v3233_v63 = vpop.f32.mrf.mxu1 }
 0x5e0   :  { %v3246_v0 = vcombine.low %v3160_v59, %v3162_v62  ;;  %v3247_v1 = vcombine.low %v3231_v60, %v3233_v63  ;;  %v3418_v59 = vld [vmem:[#allocation12 + $0x2a8] sm:$0xff]  ;;  %v3420_v60 = vld [vmem:[#allocation12 + $0x2b8] sm:$0xff] }
 0x5e1   :  { %v3410_v62 = vld [vmem:[#allocation12 + $0x268] sm:$0xff]  ;;  %v3412_v63 = vld [vmem:[#allocation12 + $0x278] sm:$0xff] }
 0x5e2   :  { %v3268_v3 = vrot.slane %v3246_v0, %v6522_v31  ;;  %v3275_v5 = vrot.slane %v3247_v1, %v6522_v31  ;;  %v3409_v0 = vld [vmem:[#allocation12 + $0x260] sm:$0xff]  ;;  %v3411_v1 = vld [vmem:[#allocation12 + $0x270] sm:$0xff] }
 0x5e4   :  { %v3277_v6 = vcombine.low %v3268_v3, %v3275_v5  ;;  %v3404_v3 = vld [vmem:[#allocation12 + $0x238] sm:$0xff]  ;;  %v3401_v5 = vld [vmem:[#allocation12 + $0x220] sm:$0xff] }
 0x5e6   :  { %v3291_v12 = vrot.slane %v3277_v6, %v6522_v31  ;;  %v3403_v6 = vld [vmem:[#allocation12 + $0x230] sm:$0xff] }
 0x5e8   :  { %v3292_v14 = vcombine.low %v3284_v10, %v3291_v12  ;;  %v3396_v10 = vld [vmem:[#allocation12 + $0x1f8] sm:$0xff]  ;;  %v3393_v12 = vld [vmem:[#allocation12 + $0x1e0] sm:$0xff] }
 0x5ea   :  { %v3294_v18 = vadd.f32 %v3292_v14, %v2684_v15  ;;  %v3386_v15 = vld [vmem:[#allocation12 + $0x1a8] sm:$0xff]  ;;  %v3388_v14 = vld [vmem:[#allocation12 + $0x1b8] sm:$0xff] }
 0x5ec   :  { %v6007_v19 = vmul.f32 -1.442695, %v3294_v18  ;;  %v3302_v20 = vrot.slane %v3294_v18, 2  ;;  %v3313_v24 = vrot.slane %v3294_v18, 6  ;;  %v3310_v28 = vrot.slane %v3294_v18, 4  ;;  %v3385_v18 = vld [vmem:[#allocation12 + $0x1a0] sm:$0xff] }
 0x5ee   :  { %6083 = vpow2.f32 %v6007_v19  ;;  %v6008_v22 = vmul.f32 -1.442695, %v3302_v20  ;;  %v6009_v25 = vmul.f32 -1.442695, %v3313_v24  ;;  %v3387_v19 = vld [vmem:[#allocation12 + $0x1b0] sm:$0xff]  ;;  %v3378_v20 = vld [vmem:[#allocation12 + $0x168] sm:$0xff] }
 0x5ef   :  { %v3377_v24 = vld [vmem:[#allocation12 + $0x160] sm:$0xff] }
 0x5f0   :  { %6085 = vpow2.f32 %v6008_v22  ;;  %v3380_v22 = vld [vmem:[#allocation12 + $0x178] sm:$0xff] }
 0x5f1   :  { %6087 = vpow2.f32 %v6009_v25  ;;  %v3379_v25 = vld [vmem:[#allocation12 + $0x170] sm:$0xff] }
 0x5fb   :  { %v6084_v2 = vpop.eup %6083 }
 0x5fc   :  { %v3298_v29 = vadd.f32 1.0, %v6084_v2  ;;  %v3370_v2 = vld [vmem:[#allocation12 + $0x128] sm:$0xff] }
 0x5fd   :  { %v6086_v9 = vpop.eup %6085 }
 0x5fe   :  { %6089 = vrcp.f32 %v3298_v29  ;;  %v3307_v33 = vadd.f32 1.0, %v6086_v9  ;;  %v6088_v34 = vpop.eup %6087  ;;  %v3369_v29 = vld [vmem:[#allocation12 + $0x120] sm:$0xff]  ;;  %v3371_v9 = vld [vmem:[#allocation12 + $0x130] sm:$0xff] }
 0x5ff   :  { %6091 = vtanh.f32 %v3310_v28  ;;  %v3318_v17 = vadd.f32 1.0, %v6088_v34  ;;  %v3372_v28 = vld [vmem:[#allocation12 + $0x138] sm:$0xff] }
 0x600   :  { %6093 = vrcp.f32 %v3307_v33  ;;  %v3362_v33 = vld [vmem:[#allocation12 + $0xe8] sm:$0xff]  ;;  %v3364_v34 = vld [vmem:[#allocation12 + $0xf8] sm:$0xff] }
 0x601   :  { %6095 = vrcp.f32 %v3318_v17  ;;  %v3356_v17 = vld [vmem:[#allocation12 + $0xb8] sm:$0xff] }
 0x60b   :  { %v6090_v11 = vpop.eup %6089 }
 0x60c   :  { %v6092_v35 = vpop.eup %6091 }
 0x60d   :  { %v6094_v36 = vpop.eup %6093  ;;  %v3322_v38 = vmul.f32 %v6092_v35, %v6090_v11  ;;  %v3361_v11 = vld [vmem:[#allocation12 + $0xe0] sm:$0xff]  ;;  %v3363_v35 = vld [vmem:[#allocation12 + $0xf0] sm:$0xff] }
 0x60e   :  { %v3321_v37 = vmul.f32 %v6094_v36, %v6570_v32  ;;  %v6096_v40 = vpop.eup %6095  ;;  %v3450_v32 = vld [vmem:[#allocation12 + $0x3a8] sm:$0xff] }
 0x60f   :  { %v3354_v36 = vld [vmem:[#allocation12 + $0xa8] sm:$0xff] }
 0x610   :  { %v6590_v39 = vadd.f32 %v3322_v38, %v3321_v37  ;;  %v3353_v37 = vld [vmem:[#allocation12 + $0xa0] sm:$0xff]  ;;  %v3355_v38 = vld [vmem:[#allocation12 + $0xb0] sm:$0xff] }
 0x612   :  { %6097 = vtanh.f32 %v6590_v39 }
 0x61f   :  { %v6098_v41 = vpop.eup %6097 }
 0x620   :  { %v3325_v42 = vmul.f32 %v6098_v41, %v6096_v40  ;;  %v3346_v40 = vld [vmem:[#allocation12 + $0x68] sm:$0xff]  ;;  %v3348_v41 = vld [vmem:[#allocation12 + $0x78] sm:$0xff] }
 0x622   :  { %3327 = vst.msk [vmem:[#allocation14 + $0x3] ss:$8 sm:$0x3] %vm6426_vm0, %v3325_v42  ;;  %v3597_v43 = vrot.slane %v3325_v42, %v6478_v16  ;;  %v6597_v23 = vrot.slane %v3325_v42, %v6484_v21  ;;  %v3345_v42 = vld [vmem:[#allocation12 + $0x60] sm:$0xff] }
 0x624   :  { %3664 = vmatprep.mubr.f32.mxu0 %v3597_v43  ;;  %3735 = vmatprep.mubr.f32.mxu1 %v3597_v43 }
 0x625   :  { %3665 = vmatmul.mubr.f32.vlgmr.msra.gmra.mxu0 %v6597_v23  ;;  %3736 = vmatmul.mubr.f32.vlgmr.msra.gmra.mxu1 %v6597_v23 }
 0x626   :  { %3743 = vmatpush1.msra.mxu0 %v3457_v4  ;;  %3814 = vmatpush1.msra.mxu1 %v3459_v44  ;;  %v3338_v4 = vld [vmem:[#allocation12 + $0x28] sm:$0xff]  ;;  %v3340_v44 = vld [vmem:[#allocation12 + $0x38] sm:$0xff] }
 0x627   :  { %3744 = vmatprep.subr.mxu0 %v3450_v32  ;;  %3806 = vmatprep.mubr.f32.mxu0 %v3597_v43  ;;  %v3337_v32 = vld [vmem:[#allocation12 + $0x20] sm:$0xff] }
 0x628   :  { %3815 = vmatprep.subr.mxu1 %v3452_v45  ;;  %3877 = vmatprep.mubr.f32.mxu1 %v3597_v43  ;;  %v3347_v43 = vld [vmem:[#allocation12 + $0x70] sm:$0xff] }
 0x629   :  { %3745 = vmatpush1.msra.mxu0 %v3449_v46  ;;  %3816 = vmatpush1.msra.mxu1 %v3451_v47  ;;  %v3339_v45 = vld [vmem:[#allocation12 + $0x30] sm:$0xff]  ;;  %v3586_v46 = vld [vmem:[#allocation12 + $0x7e8] sm:$0xff]  ;;  %v3588_v47 = vld [vmem:[#allocation12 + $0x7f8] sm:$0xff] }
 0x62a   :  { %3746 = vmatprep.subr.mxu0 %v3442_v48  ;;  %3817 = vmatprep.subr.mxu1 %v3444_v49  ;;  %v3585_v48 = vld [vmem:[#allocation12 + $0x7e0] sm:$0xff]  ;;  %v3587_v49 = vld [vmem:[#allocation12 + $0x7f0] sm:$0xff] }
 0x62b   :  { %3747 = vmatpush1.msra.mxu0 %v3441_v50  ;;  %3818 = vmatpush1.msra.mxu1 %v3443_v51  ;;  %v3578_v50 = vld [vmem:[#allocation12 + $0x7a8] sm:$0xff]  ;;  %v3580_v51 = vld [vmem:[#allocation12 + $0x7b8] sm:$0xff] }
 0x62c   :  { %3748 = vmatprep.subr.mxu0 %v3434_v8  ;;  %3819 = vmatprep.subr.mxu1 %v3436_v52  ;;  %v3577_v8 = vld [vmem:[#allocation12 + $0x7a0] sm:$0xff]  ;;  %v3579_v52 = vld [vmem:[#allocation12 + $0x7b0] sm:$0xff] }
 0x62d   :  { %3749 = vmatpush1.msra.mxu0 %v3433_v53  ;;  %3820 = vmatpush1.msra.mxu1 %v3435_v54  ;;  %v3570_v53 = vld [vmem:[#allocation12 + $0x768] sm:$0xff]  ;;  %v3572_v54 = vld [vmem:[#allocation12 + $0x778] sm:$0xff] }
 0x62e   :  { %3750 = vmatprep.subr.mxu0 %v3426_v55  ;;  %3821 = vmatprep.subr.mxu1 %v3428_v56  ;;  %v3569_v55 = vld [vmem:[#allocation12 + $0x760] sm:$0xff]  ;;  %v3571_v56 = vld [vmem:[#allocation12 + $0x770] sm:$0xff] }
 0x62f   :  { %3751 = vmatpush1.msra.mxu0 %v3425_v57  ;;  %3822 = vmatpush1.msra.mxu1 %v3427_v58  ;;  %v3562_v57 = vld [vmem:[#allocation12 + $0x728] sm:$0xff]  ;;  %v3564_v58 = vld [vmem:[#allocation12 + $0x738] sm:$0xff] }
 0x630   :  { %3752 = vmatprep.subr.mxu0 %v3418_v59  ;;  %3823 = vmatprep.subr.mxu1 %v3420_v60  ;;  %v3561_v59 = vld [vmem:[#allocation12 + $0x720] sm:$0xff]  ;;  %v3563_v60 = vld [vmem:[#allocation12 + $0x730] sm:$0xff] }
 0x631   :  { %3753 = vmatpush1.msra.mxu0 %v3417_v61  ;;  %3824 = vmatpush1.msra.mxu1 %v3419_v27  ;;  %v3554_v61 = vld [vmem:[#allocation12 + $0x6e8] sm:$0xff]  ;;  %v3556_v27 = vld [vmem:[#allocation12 + $0x6f8] sm:$0xff] }
 0x632   :  { %3754 = vmatprep.subr.mxu0 %v3410_v62  ;;  %3825 = vmatprep.subr.mxu1 %v3412_v63  ;;  %v3553_v62 = vld [vmem:[#allocation12 + $0x6e0] sm:$0xff]  ;;  %v3555_v63 = vld [vmem:[#allocation12 + $0x6f0] sm:$0xff] }
 0x633   :  { %3755 = vmatpush1.msra.mxu0 %v3409_v0  ;;  %3826 = vmatpush1.msra.mxu1 %v3411_v1  ;;  %v3546_v0 = vld [vmem:[#allocation12 + $0x6a8] sm:$0xff]  ;;  %v3548_v1 = vld [vmem:[#allocation12 + $0x6b8] sm:$0xff] }
 0x634   :  { %3756 = vmatprep.subr.mxu0 %v3402_v30  ;;  %3827 = vmatprep.subr.mxu1 %v3404_v3  ;;  %v3545_v30 = vld [vmem:[#allocation12 + $0x6a0] sm:$0xff]  ;;  %v3547_v3 = vld [vmem:[#allocation12 + $0x6b0] sm:$0xff] }
 0x635   :  { %3757 = vmatpush1.msra.mxu0 %v3401_v5  ;;  %3828 = vmatpush1.msra.mxu1 %v3403_v6  ;;  %v3538_v5 = vld [vmem:[#allocation12 + $0x668] sm:$0xff]  ;;  %v3540_v6 = vld [vmem:[#allocation12 + $0x678] sm:$0xff] }
 0x636   :  { %3758 = vmatprep.subr.mxu0 %v3394_v7  ;;  %3829 = vmatprep.subr.mxu1 %v3396_v10  ;;  %v3537_v7 = vld [vmem:[#allocation12 + $0x660] sm:$0xff]  ;;  %v3539_v10 = vld [vmem:[#allocation12 + $0x670] sm:$0xff] }
 0x637   :  { %3759 = vmatpush1.msra.mxu0 %v3393_v12  ;;  %3830 = vmatpush1.msra.mxu1 %v3395_v13  ;;  %v3530_v12 = vld [vmem:[#allocation12 + $0x628] sm:$0xff]  ;;  %v3532_v13 = vld [vmem:[#allocation12 + $0x638] sm:$0xff] }
 0x638   :  { %3760 = vmatprep.subr.mxu0 %v3386_v15  ;;  %3831 = vmatprep.subr.mxu1 %v3388_v14  ;;  %v3529_v15 = vld [vmem:[#allocation12 + $0x620] sm:$0xff]  ;;  %v3531_v14 = vld [vmem:[#allocation12 + $0x630] sm:$0xff] }
 0x639   :  { %3761 = vmatpush1.msra.mxu0 %v3385_v18  ;;  %3832 = vmatpush1.msra.mxu1 %v3387_v19  ;;  %v3522_v18 = vld [vmem:[#allocation12 + $0x5e8] sm:$0xff]  ;;  %v3524_v19 = vld [vmem:[#allocation12 + $0x5f8] sm:$0xff] }
 0x63a   :  { %3762 = vmatprep.subr.mxu0 %v3378_v20  ;;  %3833 = vmatprep.subr.mxu1 %v3380_v22  ;;  %v3521_v20 = vld [vmem:[#allocation12 + $0x5e0] sm:$0xff]  ;;  %v3523_v22 = vld [vmem:[#allocation12 + $0x5f0] sm:$0xff] }
 0x63b   :  { %3763 = vmatpush1.msra.mxu0 %v3377_v24  ;;  %3834 = vmatpush1.msra.mxu1 %v3379_v25  ;;  %v3514_v24 = vld [vmem:[#allocation12 + $0x5a8] sm:$0xff]  ;;  %v3516_v25 = vld [vmem:[#allocation12 + $0x5b8] sm:$0xff] }
 0x63c   :  { %3764 = vmatprep.subr.mxu0 %v3370_v2  ;;  %3835 = vmatprep.subr.mxu1 %v3372_v28  ;;  %v3513_v2 = vld [vmem:[#allocation12 + $0x5a0] sm:$0xff]  ;;  %v3515_v28 = vld [vmem:[#allocation12 + $0x5b0] sm:$0xff] }
 0x63d   :  { %3765 = vmatpush1.msra.mxu0 %v3369_v29  ;;  %3836 = vmatpush1.msra.mxu1 %v3371_v9  ;;  %v3506_v29 = vld [vmem:[#allocation12 + $0x568] sm:$0xff]  ;;  %v3508_v9 = vld [vmem:[#allocation12 + $0x578] sm:$0xff] }
 0x63e   :  { %3766 = vmatprep.subr.mxu0 %v3362_v33  ;;  %3837 = vmatprep.subr.mxu1 %v3364_v34  ;;  %v3505_v33 = vld [vmem:[#allocation12 + $0x560] sm:$0xff]  ;;  %v3507_v34 = vld [vmem:[#allocation12 + $0x570] sm:$0xff] }
 0x63f   :  { %3767 = vmatpush1.msra.mxu0 %v3361_v11  ;;  %3838 = vmatpush1.msra.mxu1 %v3363_v35  ;;  %v3498_v11 = vld [vmem:[#allocation12 + $0x528] sm:$0xff]  ;;  %v3500_v35 = vld [vmem:[#allocation12 + $0x538] sm:$0xff] }
 0x640   :  { %3768 = vmatprep.subr.mxu0 %v3354_v36  ;;  %3839 = vmatprep.subr.mxu1 %v3356_v17  ;;  %v3497_v36 = vld [vmem:[#allocation12 + $0x520] sm:$0xff]  ;;  %v3499_v17 = vld [vmem:[#allocation12 + $0x530] sm:$0xff] }
 0x641   :  { %3769 = vmatpush1.msra.mxu0 %v3353_v37  ;;  %3840 = vmatpush1.msra.mxu1 %v3355_v38  ;;  %v3490_v37 = vld [vmem:[#allocation12 + $0x4e8] sm:$0xff]  ;;  %v3492_v38 = vld [vmem:[#allocation12 + $0x4f8] sm:$0xff] }
 0x642   :  { %3770 = vmatprep.subr.mxu0 %v3346_v40  ;;  %3841 = vmatprep.subr.mxu1 %v3348_v41  ;;  %v3489_v40 = vld [vmem:[#allocation12 + $0x4e0] sm:$0xff]  ;;  %v3491_v41 = vld [vmem:[#allocation12 + $0x4f0] sm:$0xff] }
 0x643   :  { %3771 = vmatpush1.msra.mxu0 %v3345_v42  ;;  %3842 = vmatpush1.msra.mxu1 %v3347_v43  ;;  %v3482_v42 = vld [vmem:[#allocation12 + $0x4a8] sm:$0xff]  ;;  %v3484_v43 = vld [vmem:[#allocation12 + $0x4b8] sm:$0xff] }
 0x644   :  { %3772 = vmatprep.subr.mxu0 %v3338_v4  ;;  %3843 = vmatprep.subr.mxu1 %v3340_v44  ;;  %v3481_v4 = vld [vmem:[#allocation12 + $0x4a0] sm:$0xff]  ;;  %v3483_v44 = vld [vmem:[#allocation12 + $0x4b0] sm:$0xff] }
 0x645   :  { %3773 = vmatpush1.msra.mxu0 %v3337_v32  ;;  %3844 = vmatpush1.msra.mxu1 %v3339_v45  ;;  %v3474_v32 = vld [vmem:[#allocation12 + $0x468] sm:$0xff]  ;;  %v3476_v45 = vld [vmem:[#allocation12 + $0x478] sm:$0xff] }
 0x646   :  { %3774 = vmatprep.subr.mxu0 %v3586_v46  ;;  %3845 = vmatprep.subr.mxu1 %v3588_v47  ;;  %v3473_v46 = vld [vmem:[#allocation12 + $0x460] sm:$0xff]  ;;  %v3475_v47 = vld [vmem:[#allocation12 + $0x470] sm:$0xff] }
 0x647   :  { %3775 = vmatpush2.msra.mxu0 %v3585_v48  ;;  %3846 = vmatpush2.msra.mxu1 %v3587_v49  ;;  %v3466_v48 = vld [vmem:[#allocation12 + $0x428] sm:$0xff]  ;;  %v3468_v49 = vld [vmem:[#allocation12 + $0x438] sm:$0xff] }
 0x648   :  { %3776 = vmatprep.subr.mxu0 %v3578_v50  ;;  %3847 = vmatprep.subr.mxu1 %v3580_v51  ;;  %v3465_v50 = vld [vmem:[#allocation12 + $0x420] sm:$0xff]  ;;  %v3467_v51 = vld [vmem:[#allocation12 + $0x430] sm:$0xff] }
 0x649   :  { %3777 = vmatpush2.msra.mxu0 %v3577_v8  ;;  %3848 = vmatpush2.msra.mxu1 %v3579_v52  ;;  %v4102_v8 = vld [vmem:[#allocation12 + $0x3c8] sm:$0xff]  ;;  %v4104_v52 = vld [vmem:[#allocation12 + $0x3d8] sm:$0xff] }
 0x64a   :  { %3778 = vmatprep.subr.mxu0 %v3570_v53  ;;  %3849 = vmatprep.subr.mxu1 %v3572_v54  ;;  %v4101_v53 = vld [vmem:[#allocation12 + $0x3c0] sm:$0xff]  ;;  %v4103_v54 = vld [vmem:[#allocation12 + $0x3d0] sm:$0xff] }
 0x64b   :  { %3779 = vmatpush2.msra.mxu0 %v3569_v55  ;;  %3850 = vmatpush2.msra.mxu1 %v3571_v56  ;;  %v4094_v55 = vld [vmem:[#allocation12 + $0x388] sm:$0xff]  ;;  %v4096_v56 = vld [vmem:[#allocation12 + $0x398] sm:$0xff] }
 0x64c   :  { %3780 = vmatprep.subr.mxu0 %v3562_v57  ;;  %3851 = vmatprep.subr.mxu1 %v3564_v58  ;;  %v4093_v57 = vld [vmem:[#allocation12 + $0x380] sm:$0xff]  ;;  %v4095_v58 = vld [vmem:[#allocation12 + $0x390] sm:$0xff] }
 0x64d   :  { %3781 = vmatpush2.msra.mxu0 %v3561_v59  ;;  %3852 = vmatpush2.msra.mxu1 %v3563_v60  ;;  %v4086_v59 = vld [vmem:[#allocation12 + $0x348] sm:$0xff]  ;;  %v4088_v60 = vld [vmem:[#allocation12 + $0x358] sm:$0xff] }
 0x64e   :  { %3782 = vmatprep.subr.mxu0 %v3554_v61  ;;  %3853 = vmatprep.subr.mxu1 %v3556_v27  ;;  %v4087_v61 = vld [vmem:[#allocation12 + $0x350] sm:$0xff]  ;;  %v4078_v27 = vld [vmem:[#allocation12 + $0x308] sm:$0xff] }
 0x64f   :  { %3783 = vmatpush2.msra.mxu0 %v3553_v62  ;;  %3854 = vmatpush2.msra.mxu1 %v3555_v63  ;;  %v4080_v62 = vld [vmem:[#allocation12 + $0x318] sm:$0xff]  ;;  %v4077_v63 = vld [vmem:[#allocation12 + $0x300] sm:$0xff] }
 0x650   :  { %3784 = vmatprep.subr.mxu0 %v3546_v0  ;;  %3855 = vmatprep.subr.mxu1 %v3548_v1  ;;  %v4079_v0 = vld [vmem:[#allocation12 + $0x310] sm:$0xff]  ;;  %v4070_v1 = vld [vmem:[#allocation12 + $0x2c8] sm:$0xff] }
 0x651   :  { %3785 = vmatpush2.msra.mxu0 %v3545_v30  ;;  %3856 = vmatpush2.msra.mxu1 %v3547_v3  ;;  %v4072_v30 = vld [vmem:[#allocation12 + $0x2d8] sm:$0xff]  ;;  %v4069_v3 = vld [vmem:[#allocation12 + $0x2c0] sm:$0xff] }
 0x652   :  { %3786 = vmatprep.subr.mxu0 %v3538_v5  ;;  %3857 = vmatprep.subr.mxu1 %v3540_v6  ;;  %v4071_v5 = vld [vmem:[#allocation12 + $0x2d0] sm:$0xff]  ;;  %v4062_v6 = vld [vmem:[#allocation12 + $0x288] sm:$0xff] }
 0x653   :  { %3787 = vmatpush2.msra.mxu0 %v3537_v7  ;;  %3858 = vmatpush2.msra.mxu1 %v3539_v10  ;;  %v4064_v7 = vld [vmem:[#allocation12 + $0x298] sm:$0xff]  ;;  %v4061_v10 = vld [vmem:[#allocation12 + $0x280] sm:$0xff] }
 0x654   :  { %3788 = vmatprep.subr.mxu0 %v3530_v12  ;;  %3859 = vmatprep.subr.mxu1 %v3532_v13  ;;  %v4063_v12 = vld [vmem:[#allocation12 + $0x290] sm:$0xff]  ;;  %v4054_v13 = vld [vmem:[#allocation12 + $0x248] sm:$0xff] }
 0x655   :  { %3789 = vmatpush2.msra.mxu0 %v3529_v15  ;;  %3860 = vmatpush2.msra.mxu1 %v3531_v14  ;;  %v4056_v15 = vld [vmem:[#allocation12 + $0x258] sm:$0xff]  ;;  %v4053_v14 = vld [vmem:[#allocation12 + $0x240] sm:$0xff] }
 0x656   :  { %3790 = vmatprep.subr.mxu0 %v3522_v18  ;;  %3861 = vmatprep.subr.mxu1 %v3524_v19  ;;  %v4055_v18 = vld [vmem:[#allocation12 + $0x250] sm:$0xff]  ;;  %v4046_v19 = vld [vmem:[#allocation12 + $0x208] sm:$0xff] }
 0x657   :  { %3791 = vmatpush2.msra.mxu0 %v3521_v20  ;;  %3862 = vmatpush2.msra.mxu1 %v3523_v22  ;;  %v4048_v20 = vld [vmem:[#allocation12 + $0x218] sm:$0xff]  ;;  %v4045_v22 = vld [vmem:[#allocation12 + $0x200] sm:$0xff] }
 0x658   :  { %3792 = vmatprep.subr.mxu0 %v3514_v24  ;;  %3863 = vmatprep.subr.mxu1 %v3516_v25  ;;  %v4047_v24 = vld [vmem:[#allocation12 + $0x210] sm:$0xff]  ;;  %v4038_v25 = vld [vmem:[#allocation12 + $0x1c8] sm:$0xff] }
 0x659   :  { %3793 = vmatpush2.msra.mxu0 %v3513_v2  ;;  %3864 = vmatpush2.msra.mxu1 %v3515_v28  ;;  %v4040_v2 = vld [vmem:[#allocation12 + $0x1d8] sm:$0xff]  ;;  %v4037_v28 = vld [vmem:[#allocation12 + $0x1c0] sm:$0xff] }
 0x65a   :  { %3794 = vmatprep.subr.mxu0 %v3506_v29  ;;  %3865 = vmatprep.subr.mxu1 %v3508_v9  ;;  %v4039_v29 = vld [vmem:[#allocation12 + $0x1d0] sm:$0xff]  ;;  %v4030_v9 = vld [vmem:[#allocation12 + $0x188] sm:$0xff] }
 0x65b   :  { %3795 = vmatpush2.msra.mxu0 %v3505_v33  ;;  %3866 = vmatpush2.msra.mxu1 %v3507_v34  ;;  %v4032_v33 = vld [vmem:[#allocation12 + $0x198] sm:$0xff]  ;;  %v4029_v34 = vld [vmem:[#allocation12 + $0x180] sm:$0xff] }
 0x65c   :  { %3796 = vmatprep.subr.mxu0 %v3498_v11  ;;  %3867 = vmatprep.subr.mxu1 %v3500_v35  ;;  %v4031_v11 = vld [vmem:[#allocation12 + $0x190] sm:$0xff]  ;;  %v4022_v35 = vld [vmem:[#allocation12 + $0x148] sm:$0xff] }
 0x65d   :  { %3797 = vmatpush2.msra.mxu0 %v3497_v36  ;;  %3868 = vmatpush2.msra.mxu1 %v3499_v17  ;;  %v4024_v36 = vld [vmem:[#allocation12 + $0x158] sm:$0xff]  ;;  %v4021_v17 = vld [vmem:[#allocation12 + $0x140] sm:$0xff] }
 0x65e   :  { %3798 = vmatprep.subr.mxu0 %v3490_v37  ;;  %3869 = vmatprep.subr.mxu1 %v3492_v38  ;;  %v4023_v37 = vld [vmem:[#allocation12 + $0x150] sm:$0xff]  ;;  %v4014_v38 = vld [vmem:[#allocation12 + $0x108] sm:$0xff] }
 0x65f   :  { %3799 = vmatpush2.msra.mxu0 %v3489_v40  ;;  %3870 = vmatpush2.msra.mxu1 %v3491_v41  ;;  %v4016_v40 = vld [vmem:[#allocation12 + $0x118] sm:$0xff]  ;;  %v4013_v41 = vld [vmem:[#allocation12 + $0x100] sm:$0xff] }
 0x660   :  { %3800 = vmatprep.subr.mxu0 %v3482_v42  ;;  %3871 = vmatprep.subr.mxu1 %v3484_v43  ;;  %v4015_v42 = vld [vmem:[#allocation12 + $0x110] sm:$0xff]  ;;  %v4006_v43 = vld [vmem:[#allocation12 + $0xc8] sm:$0xff] }
 0x661   :  { %3801 = vmatpush2.msra.mxu0 %v3481_v4  ;;  %3872 = vmatpush2.msra.mxu1 %v3483_v44  ;;  %v4008_v4 = vld [vmem:[#allocation12 + $0xd8] sm:$0xff]  ;;  %v4005_v44 = vld [vmem:[#allocation12 + $0xc0] sm:$0xff] }
 0x662   :  { %3802 = vmatprep.subr.mxu0 %v3474_v32  ;;  %3873 = vmatprep.subr.mxu1 %v3476_v45  ;;  %v4007_v32 = vld [vmem:[#allocation12 + $0xd0] sm:$0xff]  ;;  %v3998_v45 = vld [vmem:[#allocation12 + $0x88] sm:$0xff] }
 0x663   :  { %3803 = vmatpush2.msra.mxu0 %v3473_v46  ;;  %3874 = vmatpush2.msra.mxu1 %v3475_v47  ;;  %v4000_v46 = vld [vmem:[#allocation12 + $0x98] sm:$0xff]  ;;  %v3997_v47 = vld [vmem:[#allocation12 + $0x80] sm:$0xff] }
 0x664   :  { %3804 = vmatprep.subr.mxu0 %v3466_v48  ;;  %3875 = vmatprep.subr.mxu1 %v3468_v49  ;;  %v3999_v48 = vld [vmem:[#allocation12 + $0x90] sm:$0xff]  ;;  %v3990_v49 = vld [vmem:[#allocation12 + $0x48] sm:$0xff] }
 0x665   :  { %3805 = vmatpush2.msra.mxu0 %v3465_v50  ;;  %3876 = vmatpush2.msra.mxu1 %v3467_v51  ;;  %v3992_v50 = vld [vmem:[#allocation12 + $0x58] sm:$0xff]  ;;  %v3989_v51 = vld [vmem:[#allocation12 + $0x40] sm:$0xff] }
 0x666   :  { %3807 = vmatmul.mubr.f32.vlgmr.msra.gmra.mxu0 %v6597_v23  ;;  %3878 = vmatmul.mubr.f32.vlgmr.msra.gmra.mxu1 %v6597_v23  ;;  %v4085_v23 = vld [vmem:[#allocation12 + $0x340] sm:$0xff] }
 0x667   :  { %4248 = vmatprep.subr.mxu0 %v4102_v8  ;;  %4319 = vmatprep.subr.mxu1 %v4104_v52  ;;  %v3991_v8 = vld [vmem:[#allocation12 + $0x50] sm:$0xff]  ;;  %v3982_v52 = vld [vmem:[#allocation12 + $0x8] sm:$0xff] }
 0x668   :  { %4249 = vmatpush1.msra.mxu0 %v4101_v53  ;;  %4320 = vmatpush1.msra.mxu1 %v4103_v54  ;;  %v3984_v53 = vld [vmem:[#allocation12 + $0x18] sm:$0xff]  ;;  %v3981_v54 = vld [vmem:[#allocation12] sm:$0xff] }
 0x669   :  { %4250 = vmatprep.subr.mxu0 %v4094_v55  ;;  %4321 = vmatprep.subr.mxu1 %v4096_v56  ;;  %v3983_v55 = vld [vmem:[#allocation12 + $0x10] sm:$0xff]  ;;  %v4230_v56 = vld [vmem:[#allocation12 + $0x7c8] sm:$0xff] }
 0x66a   :  { %4251 = vmatpush1.msra.mxu0 %v4093_v57  ;;  %4322 = vmatpush1.msra.mxu1 %v4095_v58  ;;  %v4232_v57 = vld [vmem:[#allocation12 + $0x7d8] sm:$0xff]  ;;  %v4229_v58 = vld [vmem:[#allocation12 + $0x7c0] sm:$0xff] }
 0x66b   :  { %4252 = vmatprep.subr.mxu0 %v4086_v59  ;;  %4323 = vmatprep.subr.mxu1 %v4088_v60  ;;  %v4231_v59 = vld [vmem:[#allocation12 + $0x7d0] sm:$0xff]  ;;  %v4222_v60 = vld [vmem:[#allocation12 + $0x788] sm:$0xff] }
 0x66c   :  { %4253 = vmatpush1.msra.mxu0 %v4085_v23  ;;  %4324 = vmatpush1.msra.mxu1 %v4087_v61  ;;  %v4224_v23 = vld [vmem:[#allocation12 + $0x798] sm:$0xff]  ;;  %v4221_v61 = vld [vmem:[#allocation12 + $0x780] sm:$0xff] }
 0x66d   :  { %4254 = vmatprep.subr.mxu0 %v4078_v27  ;;  %4325 = vmatprep.subr.mxu1 %v4080_v62  ;;  %v4223_v27 = vld [vmem:[#allocation12 + $0x790] sm:$0xff]  ;;  %v4214_v62 = vld [vmem:[#allocation12 + $0x748] sm:$0xff] }
 0x66e   :  { %4255 = vmatpush1.msra.mxu0 %v4077_v63  ;;  %4326 = vmatpush1.msra.mxu1 %v4079_v0  ;;  %v4216_v63 = vld [vmem:[#allocation12 + $0x758] sm:$0xff]  ;;  %v4213_v0 = vld [vmem:[#allocation12 + $0x740] sm:$0xff] }
 0x66f   :  { %4256 = vmatprep.subr.mxu0 %v4070_v1  ;;  %4327 = vmatprep.subr.mxu1 %v4072_v30  ;;  %v4215_v1 = vld [vmem:[#allocation12 + $0x750] sm:$0xff]  ;;  %v4206_v30 = vld [vmem:[#allocation12 + $0x708] sm:$0xff] }
 0x670   :  { %4257 = vmatpush1.msra.mxu0 %v4069_v3  ;;  %4328 = vmatpush1.msra.mxu1 %v4071_v5  ;;  %v4208_v3 = vld [vmem:[#allocation12 + $0x718] sm:$0xff]  ;;  %v4205_v5 = vld [vmem:[#allocation12 + $0x700] sm:$0xff] }
 0x671   :  { %4258 = vmatprep.subr.mxu0 %v4062_v6  ;;  %4329 = vmatprep.subr.mxu1 %v4064_v7  ;;  %v4207_v6 = vld [vmem:[#allocation12 + $0x710] sm:$0xff]  ;;  %v4198_v7 = vld [vmem:[#allocation12 + $0x6c8] sm:$0xff] }
 0x672   :  { %4259 = vmatpush1.msra.mxu0 %v4061_v10  ;;  %4330 = vmatpush1.msra.mxu1 %v4063_v12  ;;  %v4200_v10 = vld [vmem:[#allocation12 + $0x6d8] sm:$0xff]  ;;  %v4197_v12 = vld [vmem:[#allocation12 + $0x6c0] sm:$0xff] }
 0x673   :  { %4260 = vmatprep.subr.mxu0 %v4054_v13  ;;  %4331 = vmatprep.subr.mxu1 %v4056_v15  ;;  %v4199_v13 = vld [vmem:[#allocation12 + $0x6d0] sm:$0xff]  ;;  %v4190_v15 = vld [vmem:[#allocation12 + $0x688] sm:$0xff] }
 0x674   :  { %4261 = vmatpush1.msra.mxu0 %v4053_v14  ;;  %4332 = vmatpush1.msra.mxu1 %v4055_v18  ;;  %v4192_v14 = vld [vmem:[#allocation12 + $0x698] sm:$0xff]  ;;  %v4189_v18 = vld [vmem:[#allocation12 + $0x680] sm:$0xff] }
 0x675   :  { %4262 = vmatprep.subr.mxu0 %v4046_v19  ;;  %4333 = vmatprep.subr.mxu1 %v4048_v20  ;;  %v4191_v19 = vld [vmem:[#allocation12 + $0x690] sm:$0xff]  ;;  %v4182_v20 = vld [vmem:[#allocation12 + $0x648] sm:$0xff] }
 0x676   :  { %4263 = vmatpush1.msra.mxu0 %v4045_v22  ;;  %4334 = vmatpush1.msra.mxu1 %v4047_v24  ;;  %v4184_v22 = vld [vmem:[#allocation12 + $0x658] sm:$0xff]  ;;  %v4181_v24 = vld [vmem:[#allocation12 + $0x640] sm:$0xff] }
 0x677   :  { %4264 = vmatprep.subr.mxu0 %v4038_v25  ;;  %4335 = vmatprep.subr.mxu1 %v4040_v2  ;;  %v4183_v25 = vld [vmem:[#allocation12 + $0x650] sm:$0xff]  ;;  %v4174_v2 = vld [vmem:[#allocation12 + $0x608] sm:$0xff] }
 0x678   :  { %4265 = vmatpush1.msra.mxu0 %v4037_v28  ;;  %4336 = vmatpush1.msra.mxu1 %v4039_v29  ;;  %v4176_v28 = vld [vmem:[#allocation12 + $0x618] sm:$0xff]  ;;  %v4173_v29 = vld [vmem:[#allocation12 + $0x600] sm:$0xff] }
 0x679   :  { %4266 = vmatprep.subr.mxu0 %v4030_v9  ;;  %4337 = vmatprep.subr.mxu1 %v4032_v33  ;;  %v4175_v9 = vld [vmem:[#allocation12 + $0x610] sm:$0xff]  ;;  %v4166_v33 = vld [vmem:[#allocation12 + $0x5c8] sm:$0xff] }
 0x67a   :  { %4267 = vmatpush1.msra.mxu0 %v4029_v34  ;;  %4338 = vmatpush1.msra.mxu1 %v4031_v11  ;;  %v4168_v34 = vld [vmem:[#allocation12 + $0x5d8] sm:$0xff]  ;;  %v4165_v11 = vld [vmem:[#allocation12 + $0x5c0] sm:$0xff] }
 0x67b   :  { %4268 = vmatprep.subr.mxu0 %v4022_v35  ;;  %4339 = vmatprep.subr.mxu1 %v4024_v36  ;;  %v4167_v35 = vld [vmem:[#allocation12 + $0x5d0] sm:$0xff]  ;;  %v4158_v36 = vld [vmem:[#allocation12 + $0x588] sm:$0xff] }
 0x67c   :  { %4269 = vmatpush1.msra.mxu0 %v4021_v17  ;;  %4340 = vmatpush1.msra.mxu1 %v4023_v37  ;;  %v4160_v17 = vld [vmem:[#allocation12 + $0x598] sm:$0xff]  ;;  %v4157_v37 = vld [vmem:[#allocation12 + $0x580] sm:$0xff] }
 0x67d   :  { %4270 = vmatprep.subr.mxu0 %v4014_v38  ;;  %4341 = vmatprep.subr.mxu1 %v4016_v40  ;;  %v4159_v38 = vld [vmem:[#allocation12 + $0x590] sm:$0xff]  ;;  %v4150_v40 = vld [vmem:[#allocation12 + $0x548] sm:$0xff] }
 0x67e   :  { %4271 = vmatpush1.msra.mxu0 %v4013_v41  ;;  %4342 = vmatpush1.msra.mxu1 %v4015_v42  ;;  %v4152_v41 = vld [vmem:[#allocation12 + $0x558] sm:$0xff]  ;;  %v4149_v42 = vld [vmem:[#allocation12 + $0x540] sm:$0xff] }
 0x67f   :  { %4272 = vmatprep.subr.mxu0 %v4006_v43  ;;  %4343 = vmatprep.subr.mxu1 %v4008_v4  ;;  %v4151_v43 = vld [vmem:[#allocation12 + $0x550] sm:$0xff]  ;;  %v4142_v4 = vld [vmem:[#allocation12 + $0x508] sm:$0xff] }
 0x680   :  { %4273 = vmatpush1.msra.mxu0 %v4005_v44  ;;  %4344 = vmatpush1.msra.mxu1 %v4007_v32  ;;  %v4144_v44 = vld [vmem:[#allocation12 + $0x518] sm:$0xff]  ;;  %v4141_v32 = vld [vmem:[#allocation12 + $0x500] sm:$0xff] }
 0x681   :  { %4274 = vmatprep.subr.mxu0 %v3998_v45  ;;  %4345 = vmatprep.subr.mxu1 %v4000_v46  ;;  %v4143_v45 = vld [vmem:[#allocation12 + $0x510] sm:$0xff]  ;;  %v4134_v46 = vld [vmem:[#allocation12 + $0x4c8] sm:$0xff] }
 0x682   :  { %4275 = vmatpush1.msra.mxu0 %v3997_v47  ;;  %4346 = vmatpush1.msra.mxu1 %v3999_v48  ;;  %v4136_v47 = vld [vmem:[#allocation12 + $0x4d8] sm:$0xff]  ;;  %v4133_v48 = vld [vmem:[#allocation12 + $0x4c0] sm:$0xff] }
 0x683   :  { %4276 = vmatprep.subr.mxu0 %v3990_v49  ;;  %4347 = vmatprep.subr.mxu1 %v3992_v50  ;;  %v4135_v49 = vld [vmem:[#allocation12 + $0x4d0] sm:$0xff]  ;;  %v4126_v50 = vld [vmem:[#allocation12 + $0x488] sm:$0xff] }
 0x684   :  { %4277 = vmatpush1.msra.mxu0 %v3989_v51  ;;  %4348 = vmatpush1.msra.mxu1 %v3991_v8  ;;  %v4128_v51 = vld [vmem:[#allocation12 + $0x498] sm:$0xff]  ;;  %v4125_v8 = vld [vmem:[#allocation12 + $0x480] sm:$0xff] }
 0x685   :  { %4278 = vmatprep.subr.mxu0 %v3982_v52  ;;  %4349 = vmatprep.subr.mxu1 %v3984_v53  ;;  %v4127_v52 = vld [vmem:[#allocation12 + $0x490] sm:$0xff]  ;;  %v4118_v53 = vld [vmem:[#allocation12 + $0x448] sm:$0xff] }
 0x686   :  { %4279 = vmatpush1.msra.mxu0 %v3981_v54  ;;  %4350 = vmatpush1.msra.mxu1 %v3983_v55  ;;  %v4120_v54 = vld [vmem:[#allocation12 + $0x458] sm:$0xff]  ;;  %v4117_v55 = vld [vmem:[#allocation12 + $0x440] sm:$0xff] }
 0x687   :  { %4280 = vmatprep.subr.mxu0 %v4230_v56  ;;  %4351 = vmatprep.subr.mxu1 %v4232_v57  ;;  %v4119_v56 = vld [vmem:[#allocation12 + $0x450] sm:$0xff]  ;;  %v4110_v57 = vld [vmem:[#allocation12 + $0x408] sm:$0xff] }
 0x688   :  { %4281 = vmatpush2.msra.mxu0 %v4229_v58  ;;  %4352 = vmatpush2.msra.mxu1 %v4231_v59  ;;  %v4112_v58 = vld [vmem:[#allocation12 + $0x418] sm:$0xff]  ;;  %v4109_v59 = vld [vmem:[#allocation12 + $0x400] sm:$0xff] }
 0x689   :  { %4282 = vmatprep.subr.mxu0 %v4222_v60  ;;  %4353 = vmatprep.subr.mxu1 %v4224_v23  ;;  %v4111_v60 = vld [vmem:[#allocation12 + $0x410] sm:$0xff]  ;;  %v4106_v23 = vld [vmem:[#allocation12 + $0x3e8] sm:$0xff] }
 0x68a   :  { %4283 = vmatpush2.msra.mxu0 %v4221_v61  ;;  %4354 = vmatpush2.msra.mxu1 %v4223_v27  ;;  %v4108_v61 = vld [vmem:[#allocation12 + $0x3f8] sm:$0xff] }
 0x68b   :  { %4284 = vmatprep.subr.mxu0 %v4214_v62  ;;  %4355 = vmatprep.subr.mxu1 %v4216_v63 }
 0x68c   :  { %4285 = vmatpush2.msra.mxu0 %v4213_v0  ;;  %4356 = vmatpush2.msra.mxu1 %v4215_v1 }
 0x68d   :  { %4286 = vmatprep.subr.mxu0 %v4206_v30  ;;  %4357 = vmatprep.subr.mxu1 %v4208_v3 }
 0x68e   :  { %4287 = vmatpush2.msra.mxu0 %v4205_v5  ;;  %4358 = vmatpush2.msra.mxu1 %v4207_v6 }
 0x68f   :  { %4288 = vmatprep.subr.mxu0 %v4198_v7  ;;  %4359 = vmatprep.subr.mxu1 %v4200_v10 }
 0x690   :  { %4289 = vmatpush2.msra.mxu0 %v4197_v12  ;;  %4360 = vmatpush2.msra.mxu1 %v4199_v13 }
 0x691   :  { %4290 = vmatprep.subr.mxu0 %v4190_v15  ;;  %4361 = vmatprep.subr.mxu1 %v4192_v14 }
 0x692   :  { %4291 = vmatpush2.msra.mxu0 %v4189_v18  ;;  %4362 = vmatpush2.msra.mxu1 %v4191_v19 }
 0x693   :  { %4292 = vmatprep.subr.mxu0 %v4182_v20  ;;  %4363 = vmatprep.subr.mxu1 %v4184_v22  ;;  %v3331_v22 = vld [vmem:[#allocation3 + $0x4] ss:$8 sm:$0xf0] }
 0x694   :  { %4293 = vmatpush2.msra.mxu0 %v4181_v24  ;;  %4364 = vmatpush2.msra.mxu1 %v4183_v25 }
 0x695   :  { %4294 = vmatprep.subr.mxu0 %v4174_v2  ;;  %4365 = vmatprep.subr.mxu1 %v4176_v28  ;;  %v3330_v2 = vld [vmem:[#allocation3 + $0x4] ss:$8 sm:$0xf] }
 0x696   :  { %4295 = vmatpush2.msra.mxu0 %v4173_v29  ;;  %4366 = vmatpush2.msra.mxu1 %v4175_v9  ;;  %v3332_v28 = vor.u32 %v3331_v22, %v3330_v2  ;;  %v4042_v22 = vld [vmem:[#allocation12 + $0x1e8] sm:$0xff]  ;;  %v4043_v2 = vld [vmem:[#allocation12 + $0x1f0] sm:$0xff] }
 0x697   :  { %4296 = vmatprep.subr.mxu0 %v4166_v33  ;;  %4367 = vmatprep.subr.mxu1 %v4168_v34 }
 0x698   :  { %4297 = vmatpush2.msra.mxu0 %v4165_v11  ;;  %4368 = vmatpush2.msra.mxu1 %v4167_v35 }
 0x699   :  { %4298 = vmatprep.subr.mxu0 %v4158_v36  ;;  %4369 = vmatprep.subr.mxu1 %v4160_v17 }
 0x69a   :  { %4299 = vmatpush2.msra.mxu0 %v4157_v37  ;;  %4370 = vmatpush2.msra.mxu1 %v4159_v38 }
 0x69b   :  { %4300 = vmatprep.subr.mxu0 %v4150_v40  ;;  %4371 = vmatprep.subr.mxu1 %v4152_v41 }
 0x69c   :  { %4301 = vmatpush2.msra.mxu0 %v4149_v42  ;;  %4372 = vmatpush2.msra.mxu1 %v4151_v43 }
 0x69d   :  { %4302 = vmatprep.subr.mxu0 %v4142_v4  ;;  %4373 = vmatprep.subr.mxu1 %v4144_v44 }
 0x69e   :  { %4303 = vmatpush2.msra.mxu0 %v4141_v32  ;;  %4374 = vmatpush2.msra.mxu1 %v4143_v45 }
 0x69f   :  { %4304 = vmatprep.subr.mxu0 %v4134_v46  ;;  %4375 = vmatprep.subr.mxu1 %v4136_v47 }
 0x6a0   :  { %4305 = vmatpush2.msra.mxu0 %v4133_v48  ;;  %4376 = vmatpush2.msra.mxu1 %v4135_v49 }
 0x6a1   :  { %4306 = vmatprep.subr.mxu0 %v4126_v50  ;;  %4377 = vmatprep.subr.mxu1 %v4128_v51 }
 0x6a2   :  { %4307 = vmatpush2.msra.mxu0 %v4125_v8  ;;  %4378 = vmatpush2.msra.mxu1 %v4127_v52  ;;  %v4105_v52 = vld [vmem:[#allocation12 + $0x3e0] sm:$0xff] }
 0x6a3   :  { %4308 = vmatprep.subr.mxu0 %v4118_v53  ;;  %4379 = vmatprep.subr.mxu1 %v4120_v54  ;;  %v4107_v53 = vld [vmem:[#allocation12 + $0x3f0] sm:$0xff]  ;;  %v4100_v54 = vld [vmem:[#allocation12 + $0x3b8] sm:$0xff] }
 0x6a4   :  { %4309 = vmatpush2.msra.mxu0 %v4117_v55  ;;  %4380 = vmatpush2.msra.mxu1 %v4119_v56  ;;  %v4097_v55 = vld [vmem:[#allocation12 + $0x3a0] sm:$0xff]  ;;  %v4099_v56 = vld [vmem:[#allocation12 + $0x3b0] sm:$0xff] }
 0x6a5   :  { %4310 = vmatprep.subr.mxu0 %v4110_v57  ;;  %4381 = vmatprep.subr.mxu1 %v4112_v58  ;;  %v4090_v57 = vld [vmem:[#allocation12 + $0x368] sm:$0xff]  ;;  %v4092_v58 = vld [vmem:[#allocation12 + $0x378] sm:$0xff] }
 0x6a6   :  { %4311 = vmatpush2.msra.mxu0 %v4109_v59  ;;  %4382 = vmatpush2.msra.mxu1 %v4111_v60  ;;  %v4089_v59 = vld [vmem:[#allocation12 + $0x360] sm:$0xff]  ;;  %v4091_v60 = vld [vmem:[#allocation12 + $0x370] sm:$0xff] }
 0x6a7   :  { %4390 = vmatprep.subr.mxu0 %v4106_v23  ;;  %4461 = vmatprep.subr.mxu1 %v4108_v61  ;;  %v4082_v23 = vld [vmem:[#allocation12 + $0x328] sm:$0xff]  ;;  %v4084_v61 = vld [vmem:[#allocation12 + $0x338] sm:$0xff] }
 0x6e5   :  { %v3666_v27 = vpop.f32.mrf.mxu0  ;;  %v3737_v62 = vpop.f32.mrf.mxu1 }
 0x6e7   :  { %v3668_v63 = vpop.f32.mrf.mxu0  ;;  %v3739_v0 = vpop.f32.mrf.mxu1 }
 0x6e8   :  { %v3892_v1 = vcombine.low %v3666_v27, %v3668_v63  ;;  %v3893_v30 = vcombine.low %v3737_v62, %v3739_v0  ;;  %v4081_v27 = vld [vmem:[#allocation12 + $0x320] sm:$0xff]  ;;  %v4083_v62 = vld [vmem:[#allocation12 + $0x330] sm:$0xff]  ;;  %v4074_v63 = vld [vmem:[#allocation12 + $0x2e8] sm:$0xff] }
 0x6e9   :  { %v4076_v0 = vld [vmem:[#allocation12 + $0x2f8] sm:$0xff] }
 0x6ea   :  { %v3902_v6 = vrot.slane %v3892_v1, %v6522_v31  ;;  %v3909_v7 = vrot.slane %v3893_v30, %v6522_v31  ;;  %v4073_v1 = vld [vmem:[#allocation12 + $0x2e0] sm:$0xff]  ;;  %v4075_v30 = vld [vmem:[#allocation12 + $0x2f0] sm:$0xff] }
 0x6ec   :  { %v3924_v14 = vcombine.low %v3902_v6, %v3909_v7  ;;  %v4065_v6 = vld [vmem:[#allocation12 + $0x2a0] sm:$0xff]  ;;  %v4067_v7 = vld [vmem:[#allocation12 + $0x2b0] sm:$0xff] }
 0x6ee   :  { %v3932_v24 = vrot.slane %v3924_v14, %v6522_v31  ;;  %v4050_v14 = vld [vmem:[#allocation12 + $0x228] sm:$0xff] }
 0x726   :  { %v3808_v3 = vpop.f32.mrf.mxu0  ;;  %v3879_v5 = vpop.f32.mrf.mxu1 }
 0x728   :  { %v3810_v10 = vpop.f32.mrf.mxu0  ;;  %v3881_v12 = vpop.f32.mrf.mxu1 }
 0x729   :  { %v3894_v13 = vcombine.low %v3808_v3, %v3810_v10  ;;  %v3895_v15 = vcombine.low %v3879_v5, %v3881_v12  ;;  %v4066_v3 = vld [vmem:[#allocation12 + $0x2a8] sm:$0xff]  ;;  %v4068_v5 = vld [vmem:[#allocation12 + $0x2b8] sm:$0xff] }
 0x72a   :  { %v4058_v10 = vld [vmem:[#allocation12 + $0x268] sm:$0xff]  ;;  %v4060_v12 = vld [vmem:[#allocation12 + $0x278] sm:$0xff] }
 0x72b   :  { %v3916_v18 = vrot.slane %v3894_v13, %v6522_v31  ;;  %v3923_v19 = vrot.slane %v3895_v15, %v6522_v31  ;;  %v4057_v13 = vld [vmem:[#allocation12 + $0x260] sm:$0xff]  ;;  %v4059_v15 = vld [vmem:[#allocation12 + $0x270] sm:$0xff] }
 0x72d   :  { %v3925_v20 = vcombine.low %v3916_v18, %v3923_v19  ;;  %v4052_v18 = vld [vmem:[#allocation12 + $0x238] sm:$0xff]  ;;  %v4049_v19 = vld [vmem:[#allocation12 + $0x220] sm:$0xff] }
 0x72f   :  { %v3939_v25 = vrot.slane %v3925_v20, %v6522_v31  ;;  %v4051_v20 = vld [vmem:[#allocation12 + $0x230] sm:$0xff] }
 0x731   :  { %v3940_v29 = vcombine.low %v3932_v24, %v3939_v25  ;;  %v4044_v24 = vld [vmem:[#allocation12 + $0x1f8] sm:$0xff]  ;;  %v4041_v25 = vld [vmem:[#allocation12 + $0x1e0] sm:$0xff] }
 0x733   :  { %v3942_v9 = vadd.f32 %v3940_v29, %v3332_v28  ;;  %v4034_v28 = vld [vmem:[#allocation12 + $0x1a8] sm:$0xff]  ;;  %v4036_v29 = vld [vmem:[#allocation12 + $0x1b8] sm:$0xff] }
 0x735   :  { %v6010_v33 = vmul.f32 -1.442695, %v3942_v9  ;;  %v3950_v34 = vrot.slane %v3942_v9, 2  ;;  %v3961_v35 = vrot.slane %v3942_v9, 6  ;;  %v3958_v37 = vrot.slane %v3942_v9, 4  ;;  %v4033_v9 = vld [vmem:[#allocation12 + $0x1a0] sm:$0xff] }
 0x737   :  { %6099 = vpow2.f32 %v6010_v33  ;;  %v6011_v11 = vmul.f32 -1.442695, %v3950_v34  ;;  %v6012_v36 = vmul.f32 -1.442695, %v3961_v35  ;;  %v4035_v33 = vld [vmem:[#allocation12 + $0x1b0] sm:$0xff]  ;;  %v4026_v34 = vld [vmem:[#allocation12 + $0x168] sm:$0xff] }
 0x738   :  { %v4025_v35 = vld [vmem:[#allocation12 + $0x160] sm:$0xff] }
 0x739   :  { %6101 = vpow2.f32 %v6011_v11  ;;  %v4028_v11 = vld [vmem:[#allocation12 + $0x178] sm:$0xff] }
 0x73a   :  { %6103 = vpow2.f32 %v6012_v36  ;;  %v4027_v36 = vld [vmem:[#allocation12 + $0x170] sm:$0xff] }
 0x744   :  { %v6100_v17 = vpop.eup %6099 }
 0x745   :  { %v3946_v38 = vadd.f32 1.0, %v6100_v17  ;;  %v4018_v17 = vld [vmem:[#allocation12 + $0x128] sm:$0xff] }
 0x746   :  { %v6102_v40 = vpop.eup %6101 }
 0x747   :  { %6105 = vrcp.f32 %v3946_v38  ;;  %v3955_v41 = vadd.f32 1.0, %v6102_v40  ;;  %v6104_v42 = vpop.eup %6103  ;;  %v4017_v38 = vld [vmem:[#allocation12 + $0x120] sm:$0xff]  ;;  %v4019_v40 = vld [vmem:[#allocation12 + $0x130] sm:$0xff] }
 0x748   :  { %6107 = vtanh.f32 %v3958_v37  ;;  %v3966_v32 = vadd.f32 1.0, %v6104_v42  ;;  %v4020_v37 = vld [vmem:[#allocation12 + $0x138] sm:$0xff] }
 0x749   :  { %6109 = vrcp.f32 %v3955_v41  ;;  %v4010_v41 = vld [vmem:[#allocation12 + $0xe8] sm:$0xff]  ;;  %v4012_v42 = vld [vmem:[#allocation12 + $0xf8] sm:$0xff] }
 0x74a   :  { %6111 = vrcp.f32 %v3966_v32  ;;  %v4004_v32 = vld [vmem:[#allocation12 + $0xb8] sm:$0xff] }
 0x754   :  { %v6106_v43 = vpop.eup %6105 }
 0x755   :  { %v6108_v4 = vpop.eup %6107 }
 0x756   :  { %v6110_v44 = vpop.eup %6109  ;;  %v3970_v46 = vmul.f32 %v6108_v4, %v6106_v43  ;;  %v4009_v43 = vld [vmem:[#allocation12 + $0xe0] sm:$0xff]  ;;  %v4011_v4 = vld [vmem:[#allocation12 + $0xf0] sm:$0xff] }
 0x757   :  { %v3969_v45 = vmul.f32 %v6110_v44, %v6590_v39  ;;  %v6112_v48 = vpop.eup %6111  ;;  %v4098_v39 = vld [vmem:[#allocation12 + $0x3a8] sm:$0xff] }
 0x758   :  { %v4002_v44 = vld [vmem:[#allocation12 + $0xa8] sm:$0xff] }
 0x759   :  { %v6610_v47 = vadd.f32 %v3970_v46, %v3969_v45  ;;  %v4001_v45 = vld [vmem:[#allocation12 + $0xa0] sm:$0xff]  ;;  %v4003_v46 = vld [vmem:[#allocation12 + $0xb0] sm:$0xff] }
 0x75b   :  { %6113 = vtanh.f32 %v6610_v47 }
 0x768   :  { %v6114_v49 = vpop.eup %6113 }
 0x769   :  { %v3973_v50 = vmul.f32 %v6114_v49, %v6112_v48  ;;  %v3994_v48 = vld [vmem:[#allocation12 + $0x68] sm:$0xff]  ;;  %v3996_v49 = vld [vmem:[#allocation12 + $0x78] sm:$0xff] }
 0x76b   :  { %3975 = vst.msk [vmem:[#allocation14 + $0x4] ss:$8 sm:$0x3] %vm6426_vm0, %v3973_v50  ;;  %v4245_v51 = vrot.slane %v3973_v50, %v6478_v16  ;;  %v6617_v8 = vrot.slane %v3973_v50, %v6484_v21  ;;  %v3993_v50 = vld [vmem:[#allocation12 + $0x60] sm:$0xff] }
 0x76d   :  { %4312 = vmatprep.mubr.f32.mxu0 %v4245_v51  ;;  %4383 = vmatprep.mubr.f32.mxu1 %v4245_v51 }
 0x76e   :  { %4313 = vmatmul.mubr.f32.vlgmr.msra.gmra.mxu0 %v6617_v8  ;;  %4384 = vmatmul.mubr.f32.vlgmr.msra.gmra.mxu1 %v6617_v8 }
 0x76f   :  { %4391 = vmatpush1.msra.mxu0 %v4105_v52  ;;  %4462 = vmatpush1.msra.mxu1 %v4107_v53  ;;  %v3986_v52 = vld [vmem:[#allocation12 + $0x28] sm:$0xff]  ;;  %v3988_v53 = vld [vmem:[#allocation12 + $0x38] sm:$0xff] }
 0x770   :  { %4392 = vmatprep.subr.mxu0 %v4098_v39  ;;  %4454 = vmatprep.mubr.f32.mxu0 %v4245_v51  ;;  %v3985_v39 = vld [vmem:[#allocation12 + $0x20] sm:$0xff] }
 0x771   :  { %4463 = vmatprep.subr.mxu1 %v4100_v54  ;;  %4525 = vmatprep.mubr.f32.mxu1 %v4245_v51  ;;  %v3995_v51 = vld [vmem:[#allocation12 + $0x70] sm:$0xff] }
 0x772   :  { %4393 = vmatpush1.msra.mxu0 %v4097_v55  ;;  %4464 = vmatpush1.msra.mxu1 %v4099_v56  ;;  %v3987_v54 = vld [vmem:[#allocation12 + $0x30] sm:$0xff]  ;;  %v4234_v55 = vld [vmem:[#allocation12 + $0x7e8] sm:$0xff]  ;;  %v4236_v56 = vld [vmem:[#allocation12 + $0x7f8] sm:$0xff] }
 0x773   :  { %4394 = vmatprep.subr.mxu0 %v4090_v57  ;;  %4465 = vmatprep.subr.mxu1 %v4092_v58  ;;  %v4233_v57 = vld [vmem:[#allocation12 + $0x7e0] sm:$0xff]  ;;  %v4235_v58 = vld [vmem:[#allocation12 + $0x7f0] sm:$0xff] }
 0x774   :  { %4395 = vmatpush1.msra.mxu0 %v4089_v59  ;;  %4466 = vmatpush1.msra.mxu1 %v4091_v60  ;;  %v4226_v59 = vld [vmem:[#allocation12 + $0x7a8] sm:$0xff]  ;;  %v4228_v60 = vld [vmem:[#allocation12 + $0x7b8] sm:$0xff] }
 0x775   :  { %4396 = vmatprep.subr.mxu0 %v4082_v23  ;;  %4467 = vmatprep.subr.mxu1 %v4084_v61  ;;  %v4225_v23 = vld [vmem:[#allocation12 + $0x7a0] sm:$0xff]  ;;  %v4227_v61 = vld [vmem:[#allocation12 + $0x7b0] sm:$0xff] }
 0x776   :  { %4397 = vmatpush1.msra.mxu0 %v4081_v27  ;;  %4468 = vmatpush1.msra.mxu1 %v4083_v62  ;;  %v4218_v27 = vld [vmem:[#allocation12 + $0x768] sm:$0xff]  ;;  %v4220_v62 = vld [vmem:[#allocation12 + $0x778] sm:$0xff] }
 0x777   :  { %4398 = vmatprep.subr.mxu0 %v4074_v63  ;;  %4469 = vmatprep.subr.mxu1 %v4076_v0  ;;  %v4217_v63 = vld [vmem:[#allocation12 + $0x760] sm:$0xff]  ;;  %v4219_v0 = vld [vmem:[#allocation12 + $0x770] sm:$0xff] }
 0x778   :  { %4399 = vmatpush1.msra.mxu0 %v4073_v1  ;;  %4470 = vmatpush1.msra.mxu1 %v4075_v30  ;;  %v4210_v1 = vld [vmem:[#allocation12 + $0x728] sm:$0xff]  ;;  %v4212_v30 = vld [vmem:[#allocation12 + $0x738] sm:$0xff] }
 0x779   :  { %4400 = vmatprep.subr.mxu0 %v4066_v3  ;;  %4471 = vmatprep.subr.mxu1 %v4068_v5  ;;  %v4209_v3 = vld [vmem:[#allocation12 + $0x720] sm:$0xff]  ;;  %v4211_v5 = vld [vmem:[#allocation12 + $0x730] sm:$0xff] }
 0x77a   :  { %4401 = vmatpush1.msra.mxu0 %v4065_v6  ;;  %4472 = vmatpush1.msra.mxu1 %v4067_v7  ;;  %v4202_v6 = vld [vmem:[#allocation12 + $0x6e8] sm:$0xff]  ;;  %v4204_v7 = vld [vmem:[#allocation12 + $0x6f8] sm:$0xff] }
 0x77b   :  { %4402 = vmatprep.subr.mxu0 %v4058_v10  ;;  %4473 = vmatprep.subr.mxu1 %v4060_v12  ;;  %v4201_v10 = vld [vmem:[#allocation12 + $0x6e0] sm:$0xff]  ;;  %v4203_v12 = vld [vmem:[#allocation12 + $0x6f0] sm:$0xff] }
 0x77c   :  { %4403 = vmatpush1.msra.mxu0 %v4057_v13  ;;  %4474 = vmatpush1.msra.mxu1 %v4059_v15  ;;  %v4194_v13 = vld [vmem:[#allocation12 + $0x6a8] sm:$0xff]  ;;  %v4196_v15 = vld [vmem:[#allocation12 + $0x6b8] sm:$0xff] }
 0x77d   :  { %4404 = vmatprep.subr.mxu0 %v4050_v14  ;;  %4475 = vmatprep.subr.mxu1 %v4052_v18  ;;  %v4193_v14 = vld [vmem:[#allocation12 + $0x6a0] sm:$0xff]  ;;  %v4195_v18 = vld [vmem:[#allocation12 + $0x6b0] sm:$0xff] }
 0x77e   :  { %4405 = vmatpush1.msra.mxu0 %v4049_v19  ;;  %4476 = vmatpush1.msra.mxu1 %v4051_v20  ;;  %v4186_v19 = vld [vmem:[#allocation12 + $0x668] sm:$0xff]  ;;  %v4188_v20 = vld [vmem:[#allocation12 + $0x678] sm:$0xff] }
 0x77f   :  { %4406 = vmatprep.subr.mxu0 %v4042_v22  ;;  %4477 = vmatprep.subr.mxu1 %v4044_v24  ;;  %v4185_v22 = vld [vmem:[#allocation12 + $0x660] sm:$0xff]  ;;  %v4187_v24 = vld [vmem:[#allocation12 + $0x670] sm:$0xff] }
 0x780   :  { %4407 = vmatpush1.msra.mxu0 %v4041_v25  ;;  %4478 = vmatpush1.msra.mxu1 %v4043_v2  ;;  %v4178_v25 = vld [vmem:[#allocation12 + $0x628] sm:$0xff]  ;;  %v4180_v2 = vld [vmem:[#allocation12 + $0x638] sm:$0xff] }
 0x781   :  { %4408 = vmatprep.subr.mxu0 %v4034_v28  ;;  %4479 = vmatprep.subr.mxu1 %v4036_v29  ;;  %v4177_v28 = vld [vmem:[#allocation12 + $0x620] sm:$0xff]  ;;  %v4179_v29 = vld [vmem:[#allocation12 + $0x630] sm:$0xff] }
 0x782   :  { %4409 = vmatpush1.msra.mxu0 %v4033_v9  ;;  %4480 = vmatpush1.msra.mxu1 %v4035_v33  ;;  %v4170_v9 = vld [vmem:[#allocation12 + $0x5e8] sm:$0xff]  ;;  %v4172_v33 = vld [vmem:[#allocation12 + $0x5f8] sm:$0xff] }
 0x783   :  { %4410 = vmatprep.subr.mxu0 %v4026_v34  ;;  %4481 = vmatprep.subr.mxu1 %v4028_v11  ;;  %v4169_v34 = vld [vmem:[#allocation12 + $0x5e0] sm:$0xff]  ;;  %v4171_v11 = vld [vmem:[#allocation12 + $0x5f0] sm:$0xff] }
 0x784   :  { %4411 = vmatpush1.msra.mxu0 %v4025_v35  ;;  %4482 = vmatpush1.msra.mxu1 %v4027_v36  ;;  %v4162_v35 = vld [vmem:[#allocation12 + $0x5a8] sm:$0xff]  ;;  %v4164_v36 = vld [vmem:[#allocation12 + $0x5b8] sm:$0xff] }
 0x785   :  { %4412 = vmatprep.subr.mxu0 %v4018_v17  ;;  %4483 = vmatprep.subr.mxu1 %v4020_v37  ;;  %v4161_v17 = vld [vmem:[#allocation12 + $0x5a0] sm:$0xff]  ;;  %v4163_v37 = vld [vmem:[#allocation12 + $0x5b0] sm:$0xff] }
 0x786   :  { %4413 = vmatpush1.msra.mxu0 %v4017_v38  ;;  %4484 = vmatpush1.msra.mxu1 %v4019_v40  ;;  %v4154_v38 = vld [vmem:[#allocation12 + $0x568] sm:$0xff]  ;;  %v4156_v40 = vld [vmem:[#allocation12 + $0x578] sm:$0xff] }
 0x787   :  { %4414 = vmatprep.subr.mxu0 %v4010_v41  ;;  %4485 = vmatprep.subr.mxu1 %v4012_v42  ;;  %v4153_v41 = vld [vmem:[#allocation12 + $0x560] sm:$0xff]  ;;  %v4155_v42 = vld [vmem:[#allocation12 + $0x570] sm:$0xff] }
 0x788   :  { %4415 = vmatpush1.msra.mxu0 %v4009_v43  ;;  %4486 = vmatpush1.msra.mxu1 %v4011_v4  ;;  %v4146_v43 = vld [vmem:[#allocation12 + $0x528] sm:$0xff]  ;;  %v4148_v4 = vld [vmem:[#allocation12 + $0x538] sm:$0xff] }
 0x789   :  { %4416 = vmatprep.subr.mxu0 %v4002_v44  ;;  %4487 = vmatprep.subr.mxu1 %v4004_v32  ;;  %v4145_v44 = vld [vmem:[#allocation12 + $0x520] sm:$0xff]  ;;  %v4147_v32 = vld [vmem:[#allocation12 + $0x530] sm:$0xff] }
 0x78a   :  { %4417 = vmatpush1.msra.mxu0 %v4001_v45  ;;  %4488 = vmatpush1.msra.mxu1 %v4003_v46  ;;  %v4138_v45 = vld [vmem:[#allocation12 + $0x4e8] sm:$0xff]  ;;  %v4140_v46 = vld [vmem:[#allocation12 + $0x4f8] sm:$0xff] }
 0x78b   :  { %4418 = vmatprep.subr.mxu0 %v3994_v48  ;;  %4489 = vmatprep.subr.mxu1 %v3996_v49  ;;  %v4137_v48 = vld [vmem:[#allocation12 + $0x4e0] sm:$0xff]  ;;  %v4139_v49 = vld [vmem:[#allocation12 + $0x4f0] sm:$0xff] }
 0x78c   :  { %4419 = vmatpush1.msra.mxu0 %v3993_v50  ;;  %4490 = vmatpush1.msra.mxu1 %v3995_v51  ;;  %v4130_v50 = vld [vmem:[#allocation12 + $0x4a8] sm:$0xff]  ;;  %v4132_v51 = vld [vmem:[#allocation12 + $0x4b8] sm:$0xff] }
 0x78d   :  { %4420 = vmatprep.subr.mxu0 %v3986_v52  ;;  %4491 = vmatprep.subr.mxu1 %v3988_v53  ;;  %v4129_v52 = vld [vmem:[#allocation12 + $0x4a0] sm:$0xff]  ;;  %v4131_v53 = vld [vmem:[#allocation12 + $0x4b0] sm:$0xff] }
 0x78e   :  { %4421 = vmatpush1.msra.mxu0 %v3985_v39  ;;  %4492 = vmatpush1.msra.mxu1 %v3987_v54  ;;  %v4122_v39 = vld [vmem:[#allocation12 + $0x468] sm:$0xff]  ;;  %v4124_v54 = vld [vmem:[#allocation12 + $0x478] sm:$0xff] }
 0x78f   :  { %4422 = vmatprep.subr.mxu0 %v4234_v55  ;;  %4493 = vmatprep.subr.mxu1 %v4236_v56  ;;  %v4121_v55 = vld [vmem:[#allocation12 + $0x460] sm:$0xff]  ;;  %v4123_v56 = vld [vmem:[#allocation12 + $0x470] sm:$0xff] }
 0x790   :  { %4423 = vmatpush2.msra.mxu0 %v4233_v57  ;;  %4494 = vmatpush2.msra.mxu1 %v4235_v58  ;;  %v4114_v57 = vld [vmem:[#allocation12 + $0x428] sm:$0xff]  ;;  %v4116_v58 = vld [vmem:[#allocation12 + $0x438] sm:$0xff] }
 0x791   :  { %4424 = vmatprep.subr.mxu0 %v4226_v59  ;;  %4495 = vmatprep.subr.mxu1 %v4228_v60  ;;  %v4113_v59 = vld [vmem:[#allocation12 + $0x420] sm:$0xff]  ;;  %v4115_v60 = vld [vmem:[#allocation12 + $0x430] sm:$0xff] }
 0x792   :  { %4425 = vmatpush2.msra.mxu0 %v4225_v23  ;;  %4496 = vmatpush2.msra.mxu1 %v4227_v61  ;;  %v4750_v23 = vld [vmem:[#allocation12 + $0x3c8] sm:$0xff]  ;;  %v4752_v61 = vld [vmem:[#allocation12 + $0x3d8] sm:$0xff] }
 0x793   :  { %4426 = vmatprep.subr.mxu0 %v4218_v27  ;;  %4497 = vmatprep.subr.mxu1 %v4220_v62  ;;  %v4749_v27 = vld [vmem:[#allocation12 + $0x3c0] sm:$0xff]  ;;  %v4751_v62 = vld [vmem:[#allocation12 + $0x3d0] sm:$0xff] }
 0x794   :  { %4427 = vmatpush2.msra.mxu0 %v4217_v63  ;;  %4498 = vmatpush2.msra.mxu1 %v4219_v0  ;;  %v4742_v63 = vld [vmem:[#allocation12 + $0x388] sm:$0xff]  ;;  %v4744_v0 = vld [vmem:[#allocation12 + $0x398] sm:$0xff] }
 0x795   :  { %4428 = vmatprep.subr.mxu0 %v4210_v1  ;;  %4499 = vmatprep.subr.mxu1 %v4212_v30  ;;  %v4741_v1 = vld [vmem:[#allocation12 + $0x380] sm:$0xff]  ;;  %v4743_v30 = vld [vmem:[#allocation12 + $0x390] sm:$0xff] }
 0x796   :  { %4429 = vmatpush2.msra.mxu0 %v4209_v3  ;;  %4500 = vmatpush2.msra.mxu1 %v4211_v5  ;;  %v4734_v3 = vld [vmem:[#allocation12 + $0x348] sm:$0xff]  ;;  %v4736_v5 = vld [vmem:[#allocation12 + $0x358] sm:$0xff] }
 0x797   :  { %4430 = vmatprep.subr.mxu0 %v4202_v6  ;;  %4501 = vmatprep.subr.mxu1 %v4204_v7  ;;  %v4735_v6 = vld [vmem:[#allocation12 + $0x350] sm:$0xff]  ;;  %v4726_v7 = vld [vmem:[#allocation12 + $0x308] sm:$0xff] }
 0x798   :  { %4431 = vmatpush2.msra.mxu0 %v4201_v10  ;;  %4502 = vmatpush2.msra.mxu1 %v4203_v12  ;;  %v4728_v10 = vld [vmem:[#allocation12 + $0x318] sm:$0xff]  ;;  %v4725_v12 = vld [vmem:[#allocation12 + $0x300] sm:$0xff] }
 0x799   :  { %4432 = vmatprep.subr.mxu0 %v4194_v13  ;;  %4503 = vmatprep.subr.mxu1 %v4196_v15  ;;  %v4727_v13 = vld [vmem:[#allocation12 + $0x310] sm:$0xff]  ;;  %v4718_v15 = vld [vmem:[#allocation12 + $0x2c8] sm:$0xff] }
 0x79a   :  { %4433 = vmatpush2.msra.mxu0 %v4193_v14  ;;  %4504 = vmatpush2.msra.mxu1 %v4195_v18  ;;  %v4720_v14 = vld [vmem:[#allocation12 + $0x2d8] sm:$0xff]  ;;  %v4717_v18 = vld [vmem:[#allocation12 + $0x2c0] sm:$0xff] }
 0x79b   :  { %4434 = vmatprep.subr.mxu0 %v4186_v19  ;;  %4505 = vmatprep.subr.mxu1 %v4188_v20  ;;  %v4719_v19 = vld [vmem:[#allocation12 + $0x2d0] sm:$0xff]  ;;  %v4710_v20 = vld [vmem:[#allocation12 + $0x288] sm:$0xff] }
 0x79c   :  { %4435 = vmatpush2.msra.mxu0 %v4185_v22  ;;  %4506 = vmatpush2.msra.mxu1 %v4187_v24  ;;  %v4712_v22 = vld [vmem:[#allocation12 + $0x298] sm:$0xff]  ;;  %v4709_v24 = vld [vmem:[#allocation12 + $0x280] sm:$0xff] }
 0x79d   :  { %4436 = vmatprep.subr.mxu0 %v4178_v25  ;;  %4507 = vmatprep.subr.mxu1 %v4180_v2  ;;  %v4711_v25 = vld [vmem:[#allocation12 + $0x290] sm:$0xff]  ;;  %v4702_v2 = vld [vmem:[#allocation12 + $0x248] sm:$0xff] }
 0x79e   :  { %4437 = vmatpush2.msra.mxu0 %v4177_v28  ;;  %4508 = vmatpush2.msra.mxu1 %v4179_v29  ;;  %v4704_v28 = vld [vmem:[#allocation12 + $0x258] sm:$0xff]  ;;  %v4701_v29 = vld [vmem:[#allocation12 + $0x240] sm:$0xff] }
 0x79f   :  { %4438 = vmatprep.subr.mxu0 %v4170_v9  ;;  %4509 = vmatprep.subr.mxu1 %v4172_v33  ;;  %v4703_v9 = vld [vmem:[#allocation12 + $0x250] sm:$0xff]  ;;  %v4694_v33 = vld [vmem:[#allocation12 + $0x208] sm:$0xff] }
 0x7a0   :  { %4439 = vmatpush2.msra.mxu0 %v4169_v34  ;;  %4510 = vmatpush2.msra.mxu1 %v4171_v11  ;;  %v4696_v34 = vld [vmem:[#allocation12 + $0x218] sm:$0xff]  ;;  %v4693_v11 = vld [vmem:[#allocation12 + $0x200] sm:$0xff] }
 0x7a1   :  { %4440 = vmatprep.subr.mxu0 %v4162_v35  ;;  %4511 = vmatprep.subr.mxu1 %v4164_v36  ;;  %v4695_v35 = vld [vmem:[#allocation12 + $0x210] sm:$0xff]  ;;  %v4686_v36 = vld [vmem:[#allocation12 + $0x1c8] sm:$0xff] }
 0x7a2   :  { %4441 = vmatpush2.msra.mxu0 %v4161_v17  ;;  %4512 = vmatpush2.msra.mxu1 %v4163_v37  ;;  %v4688_v17 = vld [vmem:[#allocation12 + $0x1d8] sm:$0xff]  ;;  %v4685_v37 = vld [vmem:[#allocation12 + $0x1c0] sm:$0xff] }
 0x7a3   :  { %4442 = vmatprep.subr.mxu0 %v4154_v38  ;;  %4513 = vmatprep.subr.mxu1 %v4156_v40  ;;  %v4687_v38 = vld [vmem:[#allocation12 + $0x1d0] sm:$0xff]  ;;  %v4678_v40 = vld [vmem:[#allocation12 + $0x188] sm:$0xff] }
 0x7a4   :  { %4443 = vmatpush2.msra.mxu0 %v4153_v41  ;;  %4514 = vmatpush2.msra.mxu1 %v4155_v42  ;;  %v4680_v41 = vld [vmem:[#allocation12 + $0x198] sm:$0xff]  ;;  %v4677_v42 = vld [vmem:[#allocation12 + $0x180] sm:$0xff] }
 0x7a5   :  { %4444 = vmatprep.subr.mxu0 %v4146_v43  ;;  %4515 = vmatprep.subr.mxu1 %v4148_v4  ;;  %v4679_v43 = vld [vmem:[#allocation12 + $0x190] sm:$0xff]  ;;  %v4670_v4 = vld [vmem:[#allocation12 + $0x148] sm:$0xff] }
 0x7a6   :  { %4445 = vmatpush2.msra.mxu0 %v4145_v44  ;;  %4516 = vmatpush2.msra.mxu1 %v4147_v32  ;;  %v4672_v44 = vld [vmem:[#allocation12 + $0x158] sm:$0xff]  ;;  %v4669_v32 = vld [vmem:[#allocation12 + $0x140] sm:$0xff] }
 0x7a7   :  { %4446 = vmatprep.subr.mxu0 %v4138_v45  ;;  %4517 = vmatprep.subr.mxu1 %v4140_v46  ;;  %v4671_v45 = vld [vmem:[#allocation12 + $0x150] sm:$0xff]  ;;  %v4662_v46 = vld [vmem:[#allocation12 + $0x108] sm:$0xff] }
 0x7a8   :  { %4447 = vmatpush2.msra.mxu0 %v4137_v48  ;;  %4518 = vmatpush2.msra.mxu1 %v4139_v49  ;;  %v4664_v48 = vld [vmem:[#allocation12 + $0x118] sm:$0xff]  ;;  %v4661_v49 = vld [vmem:[#allocation12 + $0x100] sm:$0xff] }
 0x7a9   :  { %4448 = vmatprep.subr.mxu0 %v4130_v50  ;;  %4519 = vmatprep.subr.mxu1 %v4132_v51  ;;  %v4663_v50 = vld [vmem:[#allocation12 + $0x110] sm:$0xff]  ;;  %v4654_v51 = vld [vmem:[#allocation12 + $0xc8] sm:$0xff] }
 0x7aa   :  { %4449 = vmatpush2.msra.mxu0 %v4129_v52  ;;  %4520 = vmatpush2.msra.mxu1 %v4131_v53  ;;  %v4656_v52 = vld [vmem:[#allocation12 + $0xd8] sm:$0xff]  ;;  %v4653_v53 = vld [vmem:[#allocation12 + $0xc0] sm:$0xff] }
 0x7ab   :  { %4450 = vmatprep.subr.mxu0 %v4122_v39  ;;  %4521 = vmatprep.subr.mxu1 %v4124_v54  ;;  %v4655_v39 = vld [vmem:[#allocation12 + $0xd0] sm:$0xff]  ;;  %v4646_v54 = vld [vmem:[#allocation12 + $0x88] sm:$0xff] }
 0x7ac   :  { %4451 = vmatpush2.msra.mxu0 %v4121_v55  ;;  %4522 = vmatpush2.msra.mxu1 %v4123_v56  ;;  %v4648_v55 = vld [vmem:[#allocation12 + $0x98] sm:$0xff]  ;;  %v4645_v56 = vld [vmem:[#allocation12 + $0x80] sm:$0xff] }
 0x7ad   :  { %4452 = vmatprep.subr.mxu0 %v4114_v57  ;;  %4523 = vmatprep.subr.mxu1 %v4116_v58  ;;  %v4647_v57 = vld [vmem:[#allocation12 + $0x90] sm:$0xff]  ;;  %v4638_v58 = vld [vmem:[#allocation12 + $0x48] sm:$0xff] }
 0x7ae   :  { %4453 = vmatpush2.msra.mxu0 %v4113_v59  ;;  %4524 = vmatpush2.msra.mxu1 %v4115_v60  ;;  %v4640_v59 = vld [vmem:[#allocation12 + $0x58] sm:$0xff]  ;;  %v4637_v60 = vld [vmem:[#allocation12 + $0x40] sm:$0xff] }
 0x7af   :  { %4455 = vmatmul.mubr.f32.vlgmr.msra.gmra.mxu0 %v6617_v8  ;;  %4526 = vmatmul.mubr.f32.vlgmr.msra.gmra.mxu1 %v6617_v8  ;;  %v4733_v8 = vld [vmem:[#allocation12 + $0x340] sm:$0xff] }
 0x7b0   :  { %4896 = vmatprep.subr.mxu0 %v4750_v23  ;;  %4967 = vmatprep.subr.mxu1 %v4752_v61  ;;  %v4639_v23 = vld [vmem:[#allocation12 + $0x50] sm:$0xff]  ;;  %v4630_v61 = vld [vmem:[#allocation12 + $0x8] sm:$0xff] }
 0x7b1   :  { %4897 = vmatpush1.msra.mxu0 %v4749_v27  ;;  %4968 = vmatpush1.msra.mxu1 %v4751_v62  ;;  %v4632_v27 = vld [vmem:[#allocation12 + $0x18] sm:$0xff]  ;;  %v4629_v62 = vld [vmem:[#allocation12] sm:$0xff] }
 0x7b2   :  { %4898 = vmatprep.subr.mxu0 %v4742_v63  ;;  %4969 = vmatprep.subr.mxu1 %v4744_v0  ;;  %v4631_v63 = vld [vmem:[#allocation12 + $0x10] sm:$0xff]  ;;  %v4878_v0 = vld [vmem:[#allocation12 + $0x7c8] sm:$0xff] }
 0x7b3   :  { %4899 = vmatpush1.msra.mxu0 %v4741_v1  ;;  %4970 = vmatpush1.msra.mxu1 %v4743_v30  ;;  %v4880_v1 = vld [vmem:[#allocation12 + $0x7d8] sm:$0xff]  ;;  %v4877_v30 = vld [vmem:[#allocation12 + $0x7c0] sm:$0xff] }
 0x7b4   :  { %4900 = vmatprep.subr.mxu0 %v4734_v3  ;;  %4971 = vmatprep.subr.mxu1 %v4736_v5  ;;  %v4879_v3 = vld [vmem:[#allocation12 + $0x7d0] sm:$0xff]  ;;  %v4870_v5 = vld [vmem:[#allocation12 + $0x788] sm:$0xff] }
 0x7b5   :  { %4901 = vmatpush1.msra.mxu0 %v4733_v8  ;;  %4972 = vmatpush1.msra.mxu1 %v4735_v6  ;;  %v4872_v8 = vld [vmem:[#allocation12 + $0x798] sm:$0xff]  ;;  %v4869_v6 = vld [vmem:[#allocation12 + $0x780] sm:$0xff] }
 0x7b6   :  { %4902 = vmatprep.subr.mxu0 %v4726_v7  ;;  %4973 = vmatprep.subr.mxu1 %v4728_v10  ;;  %v4871_v7 = vld [vmem:[#allocation12 + $0x790] sm:$0xff]  ;;  %v4862_v10 = vld [vmem:[#allocation12 + $0x748] sm:$0xff] }
 0x7b7   :  { %4903 = vmatpush1.msra.mxu0 %v4725_v12  ;;  %4974 = vmatpush1.msra.mxu1 %v4727_v13  ;;  %v4864_v12 = vld [vmem:[#allocation12 + $0x758] sm:$0xff]  ;;  %v4861_v13 = vld [vmem:[#allocation12 + $0x740] sm:$0xff] }
 0x7b8   :  { %4904 = vmatprep.subr.mxu0 %v4718_v15  ;;  %4975 = vmatprep.subr.mxu1 %v4720_v14  ;;  %v4863_v15 = vld [vmem:[#allocation12 + $0x750] sm:$0xff]  ;;  %v4854_v14 = vld [vmem:[#allocation12 + $0x708] sm:$0xff] }
 0x7b9   :  { %4905 = vmatpush1.msra.mxu0 %v4717_v18  ;;  %4976 = vmatpush1.msra.mxu1 %v4719_v19  ;;  %v4856_v18 = vld [vmem:[#allocation12 + $0x718] sm:$0xff]  ;;  %v4853_v19 = vld [vmem:[#allocation12 + $0x700] sm:$0xff] }
 0x7ba   :  { %4906 = vmatprep.subr.mxu0 %v4710_v20  ;;  %4977 = vmatprep.subr.mxu1 %v4712_v22  ;;  %v4855_v20 = vld [vmem:[#allocation12 + $0x710] sm:$0xff]  ;;  %v4846_v22 = vld [vmem:[#allocation12 + $0x6c8] sm:$0xff] }
 0x7bb   :  { %4907 = vmatpush1.msra.mxu0 %v4709_v24  ;;  %4978 = vmatpush1.msra.mxu1 %v4711_v25  ;;  %v4848_v24 = vld [vmem:[#allocation12 + $0x6d8] sm:$0xff]  ;;  %v4845_v25 = vld [vmem:[#allocation12 + $0x6c0] sm:$0xff] }
 0x7bc   :  { %4908 = vmatprep.subr.mxu0 %v4702_v2  ;;  %4979 = vmatprep.subr.mxu1 %v4704_v28  ;;  %v4847_v2 = vld [vmem:[#allocation12 + $0x6d0] sm:$0xff]  ;;  %v4838_v28 = vld [vmem:[#allocation12 + $0x688] sm:$0xff] }
 0x7bd   :  { %4909 = vmatpush1.msra.mxu0 %v4701_v29  ;;  %4980 = vmatpush1.msra.mxu1 %v4703_v9  ;;  %v4840_v29 = vld [vmem:[#allocation12 + $0x698] sm:$0xff]  ;;  %v4837_v9 = vld [vmem:[#allocation12 + $0x680] sm:$0xff] }
 0x7be   :  { %4910 = vmatprep.subr.mxu0 %v4694_v33  ;;  %4981 = vmatprep.subr.mxu1 %v4696_v34  ;;  %v4839_v33 = vld [vmem:[#allocation12 + $0x690] sm:$0xff]  ;;  %v4830_v34 = vld [vmem:[#allocation12 + $0x648] sm:$0xff] }
 0x7bf   :  { %4911 = vmatpush1.msra.mxu0 %v4693_v11  ;;  %4982 = vmatpush1.msra.mxu1 %v4695_v35  ;;  %v4832_v11 = vld [vmem:[#allocation12 + $0x658] sm:$0xff]  ;;  %v4829_v35 = vld [vmem:[#allocation12 + $0x640] sm:$0xff] }
 0x7c0   :  { %4912 = vmatprep.subr.mxu0 %v4686_v36  ;;  %4983 = vmatprep.subr.mxu1 %v4688_v17  ;;  %v4831_v36 = vld [vmem:[#allocation12 + $0x650] sm:$0xff]  ;;  %v4822_v17 = vld [vmem:[#allocation12 + $0x608] sm:$0xff] }
 0x7c1   :  { %4913 = vmatpush1.msra.mxu0 %v4685_v37  ;;  %4984 = vmatpush1.msra.mxu1 %v4687_v38  ;;  %v4824_v37 = vld [vmem:[#allocation12 + $0x618] sm:$0xff]  ;;  %v4821_v38 = vld [vmem:[#allocation12 + $0x600] sm:$0xff] }
 0x7c2   :  { %4914 = vmatprep.subr.mxu0 %v4678_v40  ;;  %4985 = vmatprep.subr.mxu1 %v4680_v41  ;;  %v4823_v40 = vld [vmem:[#allocation12 + $0x610] sm:$0xff]  ;;  %v4814_v41 = vld [vmem:[#allocation12 + $0x5c8] sm:$0xff] }
 0x7c3   :  { %4915 = vmatpush1.msra.mxu0 %v4677_v42  ;;  %4986 = vmatpush1.msra.mxu1 %v4679_v43  ;;  %v4816_v42 = vld [vmem:[#allocation12 + $0x5d8] sm:$0xff]  ;;  %v4813_v43 = vld [vmem:[#allocation12 + $0x5c0] sm:$0xff] }
 0x7c4   :  { %4916 = vmatprep.subr.mxu0 %v4670_v4  ;;  %4987 = vmatprep.subr.mxu1 %v4672_v44  ;;  %v4815_v4 = vld [vmem:[#allocation12 + $0x5d0] sm:$0xff]  ;;  %v4806_v44 = vld [vmem:[#allocation12 + $0x588] sm:$0xff] }
 0x7c5   :  { %4917 = vmatpush1.msra.mxu0 %v4669_v32  ;;  %4988 = vmatpush1.msra.mxu1 %v4671_v45  ;;  %v4808_v32 = vld [vmem:[#allocation12 + $0x598] sm:$0xff]  ;;  %v4805_v45 = vld [vmem:[#allocation12 + $0x580] sm:$0xff] }
 0x7c6   :  { %4918 = vmatprep.subr.mxu0 %v4662_v46  ;;  %4989 = vmatprep.subr.mxu1 %v4664_v48  ;;  %v4807_v46 = vld [vmem:[#allocation12 + $0x590] sm:$0xff]  ;;  %v4798_v48 = vld [vmem:[#allocation12 + $0x548] sm:$0xff] }
 0x7c7   :  { %4919 = vmatpush1.msra.mxu0 %v4661_v49  ;;  %4990 = vmatpush1.msra.mxu1 %v4663_v50  ;;  %v4800_v49 = vld [vmem:[#allocation12 + $0x558] sm:$0xff]  ;;  %v4797_v50 = vld [vmem:[#allocation12 + $0x540] sm:$0xff] }
 0x7c8   :  { %4920 = vmatprep.subr.mxu0 %v4654_v51  ;;  %4991 = vmatprep.subr.mxu1 %v4656_v52  ;;  %v4799_v51 = vld [vmem:[#allocation12 + $0x550] sm:$0xff]  ;;  %v4790_v52 = vld [vmem:[#allocation12 + $0x508] sm:$0xff] }
 0x7c9   :  { %4921 = vmatpush1.msra.mxu0 %v4653_v53  ;;  %4992 = vmatpush1.msra.mxu1 %v4655_v39  ;;  %v4792_v53 = vld [vmem:[#allocation12 + $0x518] sm:$0xff]  ;;  %v4789_v39 = vld [vmem:[#allocation12 + $0x500] sm:$0xff] }
 0x7ca   :  { %4922 = vmatprep.subr.mxu0 %v4646_v54  ;;  %4993 = vmatprep.subr.mxu1 %v4648_v55  ;;  %v4791_v54 = vld [vmem:[#allocation12 + $0x510] sm:$0xff]  ;;  %v4782_v55 = vld [vmem:[#allocation12 + $0x4c8] sm:$0xff] }
 0x7cb   :  { %4923 = vmatpush1.msra.mxu0 %v4645_v56  ;;  %4994 = vmatpush1.msra.mxu1 %v4647_v57  ;;  %v4784_v56 = vld [vmem:[#allocation12 + $0x4d8] sm:$0xff]  ;;  %v4781_v57 = vld [vmem:[#allocation12 + $0x4c0] sm:$0xff] }
 0x7cc   :  { %4924 = vmatprep.subr.mxu0 %v4638_v58  ;;  %4995 = vmatprep.subr.mxu1 %v4640_v59  ;;  %v4783_v58 = vld [vmem:[#allocation12 + $0x4d0] sm:$0xff]  ;;  %v4774_v59 = vld [vmem:[#allocation12 + $0x488] sm:$0xff] }
 0x7cd   :  { %4925 = vmatpush1.msra.mxu0 %v4637_v60  ;;  %4996 = vmatpush1.msra.mxu1 %v4639_v23  ;;  %v4776_v60 = vld [vmem:[#allocation12 + $0x498] sm:$0xff]  ;;  %v4773_v23 = vld [vmem:[#allocation12 + $0x480] sm:$0xff] }
 0x7ce   :  { %4926 = vmatprep.subr.mxu0 %v4630_v61  ;;  %4997 = vmatprep.subr.mxu1 %v4632_v27  ;;  %v4775_v61 = vld [vmem:[#allocation12 + $0x490] sm:$0xff]  ;;  %v4766_v27 = vld [vmem:[#allocation12 + $0x448] sm:$0xff] }
 0x7cf   :  { %4927 = vmatpush1.msra.mxu0 %v4629_v62  ;;  %4998 = vmatpush1.msra.mxu1 %v4631_v63  ;;  %v4768_v62 = vld [vmem:[#allocation12 + $0x458] sm:$0xff]  ;;  %v4765_v63 = vld [vmem:[#allocation12 + $0x440] sm:$0xff] }
 0x7d0   :  { %4928 = vmatprep.subr.mxu0 %v4878_v0  ;;  %4999 = vmatprep.subr.mxu1 %v4880_v1  ;;  %v4767_v0 = vld [vmem:[#allocation12 + $0x450] sm:$0xff]  ;;  %v4758_v1 = vld [vmem:[#allocation12 + $0x408] sm:$0xff] }
 0x7d1   :  { %4929 = vmatpush2.msra.mxu0 %v4877_v30  ;;  %5000 = vmatpush2.msra.mxu1 %v4879_v3  ;;  %v4760_v30 = vld [vmem:[#allocation12 + $0x418] sm:$0xff]  ;;  %v4757_v3 = vld [vmem:[#allocation12 + $0x400] sm:$0xff] }
 0x7d2   :  { %4930 = vmatprep.subr.mxu0 %v4870_v5  ;;  %5001 = vmatprep.subr.mxu1 %v4872_v8  ;;  %v4759_v5 = vld [vmem:[#allocation12 + $0x410] sm:$0xff]  ;;  %v4754_v8 = vld [vmem:[#allocation12 + $0x3e8] sm:$0xff] }
 0x7d3   :  { %4931 = vmatpush2.msra.mxu0 %v4869_v6  ;;  %5002 = vmatpush2.msra.mxu1 %v4871_v7  ;;  %v4756_v6 = vld [vmem:[#allocation12 + $0x3f8] sm:$0xff] }
 0x7d4   :  { %4932 = vmatprep.subr.mxu0 %v4862_v10  ;;  %5003 = vmatprep.subr.mxu1 %v4864_v12 }
 0x7d5   :  { %4933 = vmatpush2.msra.mxu0 %v4861_v13  ;;  %5004 = vmatpush2.msra.mxu1 %v4863_v15 }
 0x7d6   :  { %4934 = vmatprep.subr.mxu0 %v4854_v14  ;;  %5005 = vmatprep.subr.mxu1 %v4856_v18 }
 0x7d7   :  { %4935 = vmatpush2.msra.mxu0 %v4853_v19  ;;  %5006 = vmatpush2.msra.mxu1 %v4855_v20 }
 0x7d8   :  { %4936 = vmatprep.subr.mxu0 %v4846_v22  ;;  %5007 = vmatprep.subr.mxu1 %v4848_v24 }
 0x7d9   :  { %4937 = vmatpush2.msra.mxu0 %v4845_v25  ;;  %5008 = vmatpush2.msra.mxu1 %v4847_v2 }
 0x7da   :  { %4938 = vmatprep.subr.mxu0 %v4838_v28  ;;  %5009 = vmatprep.subr.mxu1 %v4840_v29 }
 0x7db   :  { %4939 = vmatpush2.msra.mxu0 %v4837_v9  ;;  %5010 = vmatpush2.msra.mxu1 %v4839_v33 }
 0x7dc   :  { %4940 = vmatprep.subr.mxu0 %v4830_v34  ;;  %5011 = vmatprep.subr.mxu1 %v4832_v11  ;;  %v3979_v11 = vld [vmem:[#allocation3 + $0x5] ss:$8 sm:$0xf0] }
 0x7dd   :  { %4941 = vmatpush2.msra.mxu0 %v4829_v35  ;;  %5012 = vmatpush2.msra.mxu1 %v4831_v36 }
 0x7de   :  { %4942 = vmatprep.subr.mxu0 %v4822_v17  ;;  %5013 = vmatprep.subr.mxu1 %v4824_v37  ;;  %v3978_v17 = vld [vmem:[#allocation3 + $0x5] ss:$8 sm:$0xf] }
 0x7df   :  { %4943 = vmatpush2.msra.mxu0 %v4821_v38  ;;  %5014 = vmatpush2.msra.mxu1 %v4823_v40  ;;  %v3980_v37 = vor.u32 %v3979_v11, %v3978_v17  ;;  %v4690_v11 = vld [vmem:[#allocation12 + $0x1e8] sm:$0xff]  ;;  %v4691_v17 = vld [vmem:[#allocation12 + $0x1f0] sm:$0xff] }
 0x7e0   :  { %4944 = vmatprep.subr.mxu0 %v4814_v41  ;;  %5015 = vmatprep.subr.mxu1 %v4816_v42 }
 0x7e1   :  { %4945 = vmatpush2.msra.mxu0 %v4813_v43  ;;  %5016 = vmatpush2.msra.mxu1 %v4815_v4 }
 0x7e2   :  { %4946 = vmatprep.subr.mxu0 %v4806_v44  ;;  %5017 = vmatprep.subr.mxu1 %v4808_v32 }
 0x7e3   :  { %4947 = vmatpush2.msra.mxu0 %v4805_v45  ;;  %5018 = vmatpush2.msra.mxu1 %v4807_v46 }
 0x7e4   :  { %4948 = vmatprep.subr.mxu0 %v4798_v48  ;;  %5019 = vmatprep.subr.mxu1 %v4800_v49 }
 0x7e5   :  { %4949 = vmatpush2.msra.mxu0 %v4797_v50  ;;  %5020 = vmatpush2.msra.mxu1 %v4799_v51 }
 0x7e6   :  { %4950 = vmatprep.subr.mxu0 %v4790_v52  ;;  %5021 = vmatprep.subr.mxu1 %v4792_v53 }
 0x7e7   :  { %4951 = vmatpush2.msra.mxu0 %v4789_v39  ;;  %5022 = vmatpush2.msra.mxu1 %v4791_v54 }
 0x7e8   :  { %4952 = vmatprep.subr.mxu0 %v4782_v55  ;;  %5023 = vmatprep.subr.mxu1 %v4784_v56 }
 0x7e9   :  { %4953 = vmatpush2.msra.mxu0 %v4781_v57  ;;  %5024 = vmatpush2.msra.mxu1 %v4783_v58 }
 0x7ea   :  { %4954 = vmatprep.subr.mxu0 %v4774_v59  ;;  %5025 = vmatprep.subr.mxu1 %v4776_v60 }
 0x7eb   :  { %4955 = vmatpush2.msra.mxu0 %v4773_v23  ;;  %5026 = vmatpush2.msra.mxu1 %v4775_v61  ;;  %v4753_v61 = vld [vmem:[#allocation12 + $0x3e0] sm:$0xff] }
 0x7ec   :  { %4956 = vmatprep.subr.mxu0 %v4766_v27  ;;  %5027 = vmatprep.subr.mxu1 %v4768_v62  ;;  %v4755_v27 = vld [vmem:[#allocation12 + $0x3f0] sm:$0xff]  ;;  %v4748_v62 = vld [vmem:[#allocation12 + $0x3b8] sm:$0xff] }
 0x7ed   :  { %4957 = vmatpush2.msra.mxu0 %v4765_v63  ;;  %5028 = vmatpush2.msra.mxu1 %v4767_v0  ;;  %v4745_v63 = vld [vmem:[#allocation12 + $0x3a0] sm:$0xff]  ;;  %v4747_v0 = vld [vmem:[#allocation12 + $0x3b0] sm:$0xff] }
 0x7ee   :  { %4958 = vmatprep.subr.mxu0 %v4758_v1  ;;  %5029 = vmatprep.subr.mxu1 %v4760_v30  ;;  %v4738_v1 = vld [vmem:[#allocation12 + $0x368] sm:$0xff]  ;;  %v4740_v30 = vld [vmem:[#allocation12 + $0x378] sm:$0xff] }
 0x7ef   :  { %4959 = vmatpush2.msra.mxu0 %v4757_v3  ;;  %5030 = vmatpush2.msra.mxu1 %v4759_v5  ;;  %v4737_v3 = vld [vmem:[#allocation12 + $0x360] sm:$0xff]  ;;  %v4739_v5 = vld [vmem:[#allocation12 + $0x370] sm:$0xff] }
 0x7f0   :  { %5038 = vmatprep.subr.mxu0 %v4754_v8  ;;  %5109 = vmatprep.subr.mxu1 %v4756_v6  ;;  %v4730_v8 = vld [vmem:[#allocation12 + $0x328] sm:$0xff]  ;;  %v4732_v6 = vld [vmem:[#allocation12 + $0x338] sm:$0xff] }
 0x82e   :  { %v4314_v7 = vpop.f32.mrf.mxu0  ;;  %v4385_v10 = vpop.f32.mrf.mxu1 }
 0x830   :  { %v4316_v12 = vpop.f32.mrf.mxu0  ;;  %v4387_v13 = vpop.f32.mrf.mxu1 }
 0x831   :  { %v4540_v15 = vcombine.low %v4314_v7, %v4316_v12  ;;  %v4541_v14 = vcombine.low %v4385_v10, %v4387_v13  ;;  %v4729_v7 = vld [vmem:[#allocation12 + $0x320] sm:$0xff]  ;;  %v4731_v10 = vld [vmem:[#allocation12 + $0x330] sm:$0xff]  ;;  %v4722_v12 = vld [vmem:[#allocation12 + $0x2e8] sm:$0xff] }
 0x832   :  { %v4724_v13 = vld [vmem:[#allocation12 + $0x2f8] sm:$0xff] }
 0x833   :  { %v4550_v20 = vrot.slane %v4540_v15, %v6522_v31  ;;  %v4557_v22 = vrot.slane %v4541_v14, %v6522_v31  ;;  %v4721_v15 = vld [vmem:[#allocation12 + $0x2e0] sm:$0xff]  ;;  %v4723_v14 = vld [vmem:[#allocation12 + $0x2f0] sm:$0xff] }
 0x835   :  { %v4572_v29 = vcombine.low %v4550_v20, %v4557_v22  ;;  %v4713_v20 = vld [vmem:[#allocation12 + $0x2a0] sm:$0xff]  ;;  %v4715_v22 = vld [vmem:[#allocation12 + $0x2b0] sm:$0xff] }
 0x837   :  { %v4580_v35 = vrot.slane %v4572_v29, %v6522_v31  ;;  %v4698_v29 = vld [vmem:[#allocation12 + $0x228] sm:$0xff] }
 0x86f   :  { %v4456_v18 = vpop.f32.mrf.mxu0  ;;  %v4527_v19 = vpop.f32.mrf.mxu1 }
 0x871   :  { %v4458_v24 = vpop.f32.mrf.mxu0  ;;  %v4529_v25 = vpop.f32.mrf.mxu1 }
 0x872   :  { %v4542_v2 = vcombine.low %v4456_v18, %v4458_v24  ;;  %v4543_v28 = vcombine.low %v4527_v19, %v4529_v25  ;;  %v4714_v18 = vld [vmem:[#allocation12 + $0x2a8] sm:$0xff]  ;;  %v4716_v19 = vld [vmem:[#allocation12 + $0x2b8] sm:$0xff] }
 0x873   :  { %v4706_v24 = vld [vmem:[#allocation12 + $0x268] sm:$0xff]  ;;  %v4708_v25 = vld [vmem:[#allocation12 + $0x278] sm:$0xff] }
 0x874   :  { %v4564_v9 = vrot.slane %v4542_v2, %v6522_v31  ;;  %v4571_v33 = vrot.slane %v4543_v28, %v6522_v31  ;;  %v4705_v2 = vld [vmem:[#allocation12 + $0x260] sm:$0xff]  ;;  %v4707_v28 = vld [vmem:[#allocation12 + $0x270] sm:$0xff] }
 0x876   :  { %v4573_v34 = vcombine.low %v4564_v9, %v4571_v33  ;;  %v4700_v9 = vld [vmem:[#allocation12 + $0x238] sm:$0xff]  ;;  %v4697_v33 = vld [vmem:[#allocation12 + $0x220] sm:$0xff] }
 0x878   :  { %v4587_v36 = vrot.slane %v4573_v34, %v6522_v31  ;;  %v4699_v34 = vld [vmem:[#allocation12 + $0x230] sm:$0xff] }
 0x87a   :  { %v4588_v38 = vcombine.low %v4580_v35, %v4587_v36  ;;  %v4692_v35 = vld [vmem:[#allocation12 + $0x1f8] sm:$0xff]  ;;  %v4689_v36 = vld [vmem:[#allocation12 + $0x1e0] sm:$0xff] }
 0x87c   :  { %v4590_v40 = vadd.f32 %v4588_v38, %v3980_v37  ;;  %v4682_v37 = vld [vmem:[#allocation12 + $0x1a8] sm:$0xff]  ;;  %v4684_v38 = vld [vmem:[#allocation12 + $0x1b8] sm:$0xff] }
 0x87e   :  { %v6013_v41 = vmul.f32 -1.442695, %v4590_v40  ;;  %v4598_v42 = vrot.slane %v4590_v40, 2  ;;  %v4609_v4 = vrot.slane %v4590_v40, 6  ;;  %v4606_v45 = vrot.slane %v4590_v40, 4  ;;  %v4681_v40 = vld [vmem:[#allocation12 + $0x1a0] sm:$0xff] }
 0x880   :  { %6115 = vpow2.f32 %v6013_v41  ;;  %v6014_v43 = vmul.f32 -1.442695, %v4598_v42  ;;  %v6015_v44 = vmul.f32 -1.442695, %v4609_v4  ;;  %v4683_v41 = vld [vmem:[#allocation12 + $0x1b0] sm:$0xff]  ;;  %v4674_v42 = vld [vmem:[#allocation12 + $0x168] sm:$0xff] }
 0x881   :  { %v4673_v4 = vld [vmem:[#allocation12 + $0x160] sm:$0xff] }
 0x882   :  { %6117 = vpow2.f32 %v6014_v43  ;;  %v4676_v43 = vld [vmem:[#allocation12 + $0x178] sm:$0xff] }
 0x883   :  { %6119 = vpow2.f32 %v6015_v44  ;;  %v4675_v44 = vld [vmem:[#allocation12 + $0x170] sm:$0xff] }
 0x88d   :  { %v6116_v32 = vpop.eup %6115 }
 0x88e   :  { %v4594_v46 = vadd.f32 1.0, %v6116_v32  ;;  %v4666_v32 = vld [vmem:[#allocation12 + $0x128] sm:$0xff] }
 0x88f   :  { %v6118_v48 = vpop.eup %6117 }
 0x890   :  { %6121 = vrcp.f32 %v4594_v46  ;;  %v4603_v49 = vadd.f32 1.0, %v6118_v48  ;;  %v6120_v50 = vpop.eup %6119  ;;  %v4665_v46 = vld [vmem:[#allocation12 + $0x120] sm:$0xff]  ;;  %v4667_v48 = vld [vmem:[#allocation12 + $0x130] sm:$0xff] }
 0x891   :  { %6123 = vtanh.f32 %v4606_v45  ;;  %v4614_v39 = vadd.f32 1.0, %v6120_v50  ;;  %v4668_v45 = vld [vmem:[#allocation12 + $0x138] sm:$0xff] }
 0x892   :  { %6125 = vrcp.f32 %v4603_v49  ;;  %v4658_v49 = vld [vmem:[#allocation12 + $0xe8] sm:$0xff]  ;;  %v4660_v50 = vld [vmem:[#allocation12 + $0xf8] sm:$0xff] }
 0x893   :  { %6127 = vrcp.f32 %v4614_v39  ;;  %v4652_v39 = vld [vmem:[#allocation12 + $0xb8] sm:$0xff] }
 0x89d   :  { %v6122_v51 = vpop.eup %6121 }
 0x89e   :  { %v6124_v52 = vpop.eup %6123 }
 0x89f   :  { %v6126_v53 = vpop.eup %6125  ;;  %v4618_v55 = vmul.f32 %v6124_v52, %v6122_v51  ;;  %v4657_v51 = vld [vmem:[#allocation12 + $0xe0] sm:$0xff]  ;;  %v4659_v52 = vld [vmem:[#allocation12 + $0xf0] sm:$0xff] }
 0x8a0   :  { %v4617_v54 = vmul.f32 %v6126_v53, %v6610_v47  ;;  %v6128_v57 = vpop.eup %6127  ;;  %v4746_v47 = vld [vmem:[#allocation12 + $0x3a8] sm:$0xff] }
 0x8a1   :  { %v4650_v53 = vld [vmem:[#allocation12 + $0xa8] sm:$0xff] }
 0x8a2   :  { %v6630_v56 = vadd.f32 %v4618_v55, %v4617_v54  ;;  %v4649_v54 = vld [vmem:[#allocation12 + $0xa0] sm:$0xff]  ;;  %v4651_v55 = vld [vmem:[#allocation12 + $0xb0] sm:$0xff] }
 0x8a4   :  { %6129 = vtanh.f32 %v6630_v56 }
 0x8b1   :  { %v6130_v58 = vpop.eup %6129 }
 0x8b2   :  { %v4621_v59 = vmul.f32 %v6130_v58, %v6128_v57  ;;  %v4642_v57 = vld [vmem:[#allocation12 + $0x68] sm:$0xff]  ;;  %v4644_v58 = vld [vmem:[#allocation12 + $0x78] sm:$0xff] }
 0x8b4   :  { %4623 = vst.msk [vmem:[#allocation14 + $0x5] ss:$8 sm:$0x3] %vm6426_vm0, %v4621_v59  ;;  %v4893_v60 = vrot.slane %v4621_v59, %v6478_v16  ;;  %v6637_v23 = vrot.slane %v4621_v59, %v6484_v21  ;;  %v4641_v59 = vld [vmem:[#allocation12 + $0x60] sm:$0xff] }
 0x8b6   :  { %4960 = vmatprep.mubr.f32.mxu0 %v4893_v60  ;;  %5031 = vmatprep.mubr.f32.mxu1 %v4893_v60 }
 0x8b7   :  { %4961 = vmatmul.mubr.f32.vlgmr.msra.gmra.mxu0 %v6637_v23  ;;  %5032 = vmatmul.mubr.f32.vlgmr.msra.gmra.mxu1 %v6637_v23 }
 0x8b8   :  { %5039 = vmatpush1.msra.mxu0 %v4753_v61  ;;  %5110 = vmatpush1.msra.mxu1 %v4755_v27  ;;  %v4634_v61 = vld [vmem:[#allocation12 + $0x28] sm:$0xff]  ;;  %v4636_v27 = vld [vmem:[#allocation12 + $0x38] sm:$0xff] }
 0x8b9   :  { %5040 = vmatprep.subr.mxu0 %v4746_v47  ;;  %5102 = vmatprep.mubr.f32.mxu0 %v4893_v60  ;;  %v4633_v47 = vld [vmem:[#allocation12 + $0x20] sm:$0xff] }
 0x8ba   :  { %5111 = vmatprep.subr.mxu1 %v4748_v62  ;;  %5173 = vmatprep.mubr.f32.mxu1 %v4893_v60  ;;  %v4643_v60 = vld [vmem:[#allocation12 + $0x70] sm:$0xff] }
 0x8bb   :  { %5041 = vmatpush1.msra.mxu0 %v4745_v63  ;;  %5112 = vmatpush1.msra.mxu1 %v4747_v0  ;;  %v4635_v62 = vld [vmem:[#allocation12 + $0x30] sm:$0xff]  ;;  %v4882_v63 = vld [vmem:[#allocation12 + $0x7e8] sm:$0xff]  ;;  %v4884_v0 = vld [vmem:[#allocation12 + $0x7f8] sm:$0xff] }
 0x8bc   :  { %5042 = vmatprep.subr.mxu0 %v4738_v1  ;;  %5113 = vmatprep.subr.mxu1 %v4740_v30  ;;  %v4881_v1 = vld [vmem:[#allocation12 + $0x7e0] sm:$0xff]  ;;  %v4883_v30 = vld [vmem:[#allocation12 + $0x7f0] sm:$0xff] }
 0x8bd   :  { %5043 = vmatpush1.msra.mxu0 %v4737_v3  ;;  %5114 = vmatpush1.msra.mxu1 %v4739_v5  ;;  %v4874_v3 = vld [vmem:[#allocation12 + $0x7a8] sm:$0xff]  ;;  %v4876_v5 = vld [vmem:[#allocation12 + $0x7b8] sm:$0xff] }
 0x8be   :  { %5044 = vmatprep.subr.mxu0 %v4730_v8  ;;  %5115 = vmatprep.subr.mxu1 %v4732_v6  ;;  %v4873_v8 = vld [vmem:[#allocation12 + $0x7a0] sm:$0xff]  ;;  %v4875_v6 = vld [vmem:[#allocation12 + $0x7b0] sm:$0xff] }
 0x8bf   :  { %5045 = vmatpush1.msra.mxu0 %v4729_v7  ;;  %5116 = vmatpush1.msra.mxu1 %v4731_v10  ;;  %v4866_v7 = vld [vmem:[#allocation12 + $0x768] sm:$0xff]  ;;  %v4868_v10 = vld [vmem:[#allocation12 + $0x778] sm:$0xff] }
 0x8c0   :  { %5046 = vmatprep.subr.mxu0 %v4722_v12  ;;  %5117 = vmatprep.subr.mxu1 %v4724_v13  ;;  %v4865_v12 = vld [vmem:[#allocation12 + $0x760] sm:$0xff]  ;;  %v4867_v13 = vld [vmem:[#allocation12 + $0x770] sm:$0xff] }
 0x8c1   :  { %5047 = vmatpush1.msra.mxu0 %v4721_v15  ;;  %5118 = vmatpush1.msra.mxu1 %v4723_v14  ;;  %v4858_v15 = vld [vmem:[#allocation12 + $0x728] sm:$0xff]  ;;  %v4860_v14 = vld [vmem:[#allocation12 + $0x738] sm:$0xff] }
 0x8c2   :  { %5048 = vmatprep.subr.mxu0 %v4714_v18  ;;  %5119 = vmatprep.subr.mxu1 %v4716_v19  ;;  %v4857_v18 = vld [vmem:[#allocation12 + $0x720] sm:$0xff]  ;;  %v4859_v19 = vld [vmem:[#allocation12 + $0x730] sm:$0xff] }
 0x8c3   :  { %5049 = vmatpush1.msra.mxu0 %v4713_v20  ;;  %5120 = vmatpush1.msra.mxu1 %v4715_v22  ;;  %v4850_v20 = vld [vmem:[#allocation12 + $0x6e8] sm:$0xff]  ;;  %v4852_v22 = vld [vmem:[#allocation12 + $0x6f8] sm:$0xff] }
 0x8c4   :  { %5050 = vmatprep.subr.mxu0 %v4706_v24  ;;  %5121 = vmatprep.subr.mxu1 %v4708_v25  ;;  %v4849_v24 = vld [vmem:[#allocation12 + $0x6e0] sm:$0xff]  ;;  %v4851_v25 = vld [vmem:[#allocation12 + $0x6f0] sm:$0xff] }
 0x8c5   :  { %5051 = vmatpush1.msra.mxu0 %v4705_v2  ;;  %5122 = vmatpush1.msra.mxu1 %v4707_v28  ;;  %v4842_v2 = vld [vmem:[#allocation12 + $0x6a8] sm:$0xff]  ;;  %v4844_v28 = vld [vmem:[#allocation12 + $0x6b8] sm:$0xff] }
 0x8c6   :  { %5052 = vmatprep.subr.mxu0 %v4698_v29  ;;  %5123 = vmatprep.subr.mxu1 %v4700_v9  ;;  %v4841_v29 = vld [vmem:[#allocation12 + $0x6a0] sm:$0xff]  ;;  %v4843_v9 = vld [vmem:[#allocation12 + $0x6b0] sm:$0xff] }
 0x8c7   :  { %5053 = vmatpush1.msra.mxu0 %v4697_v33  ;;  %5124 = vmatpush1.msra.mxu1 %v4699_v34  ;;  %v4834_v33 = vld [vmem:[#allocation12 + $0x668] sm:$0xff]  ;;  %v4836_v34 = vld [vmem:[#allocation12 + $0x678] sm:$0xff] }
 0x8c8   :  { %5054 = vmatprep.subr.mxu0 %v4690_v11  ;;  %5125 = vmatprep.subr.mxu1 %v4692_v35  ;;  %v4833_v11 = vld [vmem:[#allocation12 + $0x660] sm:$0xff]  ;;  %v4835_v35 = vld [vmem:[#allocation12 + $0x670] sm:$0xff] }
 0x8c9   :  { %5055 = vmatpush1.msra.mxu0 %v4689_v36  ;;  %5126 = vmatpush1.msra.mxu1 %v4691_v17  ;;  %v4826_v36 = vld [vmem:[#allocation12 + $0x628] sm:$0xff]  ;;  %v4828_v17 = vld [vmem:[#allocation12 + $0x638] sm:$0xff] }
 0x8ca   :  { %5056 = vmatprep.subr.mxu0 %v4682_v37  ;;  %5127 = vmatprep.subr.mxu1 %v4684_v38  ;;  %v4825_v37 = vld [vmem:[#allocation12 + $0x620] sm:$0xff]  ;;  %v4827_v38 = vld [vmem:[#allocation12 + $0x630] sm:$0xff] }
 0x8cb   :  { %5057 = vmatpush1.msra.mxu0 %v4681_v40  ;;  %5128 = vmatpush1.msra.mxu1 %v4683_v41  ;;  %v4818_v40 = vld [vmem:[#allocation12 + $0x5e8] sm:$0xff]  ;;  %v4820_v41 = vld [vmem:[#allocation12 + $0x5f8] sm:$0xff] }
 0x8cc   :  { %5058 = vmatprep.subr.mxu0 %v4674_v42  ;;  %5129 = vmatprep.subr.mxu1 %v4676_v43  ;;  %v4817_v42 = vld [vmem:[#allocation12 + $0x5e0] sm:$0xff]  ;;  %v4819_v43 = vld [vmem:[#allocation12 + $0x5f0] sm:$0xff] }
 0x8cd   :  { %5059 = vmatpush1.msra.mxu0 %v4673_v4  ;;  %5130 = vmatpush1.msra.mxu1 %v4675_v44  ;;  %v4810_v4 = vld [vmem:[#allocation12 + $0x5a8] sm:$0xff]  ;;  %v4812_v44 = vld [vmem:[#allocation12 + $0x5b8] sm:$0xff] }
 0x8ce   :  { %5060 = vmatprep.subr.mxu0 %v4666_v32  ;;  %5131 = vmatprep.subr.mxu1 %v4668_v45  ;;  %v4809_v32 = vld [vmem:[#allocation12 + $0x5a0] sm:$0xff]  ;;  %v4811_v45 = vld [vmem:[#allocation12 + $0x5b0] sm:$0xff] }
 0x8cf   :  { %5061 = vmatpush1.msra.mxu0 %v4665_v46  ;;  %5132 = vmatpush1.msra.mxu1 %v4667_v48  ;;  %v4802_v46 = vld [vmem:[#allocation12 + $0x568] sm:$0xff]  ;;  %v4804_v48 = vld [vmem:[#allocation12 + $0x578] sm:$0xff] }
 0x8d0   :  { %5062 = vmatprep.subr.mxu0 %v4658_v49  ;;  %5133 = vmatprep.subr.mxu1 %v4660_v50  ;;  %v4801_v49 = vld [vmem:[#allocation12 + $0x560] sm:$0xff]  ;;  %v4803_v50 = vld [vmem:[#allocation12 + $0x570] sm:$0xff] }
 0x8d1   :  { %5063 = vmatpush1.msra.mxu0 %v4657_v51  ;;  %5134 = vmatpush1.msra.mxu1 %v4659_v52  ;;  %v4794_v51 = vld [vmem:[#allocation12 + $0x528] sm:$0xff]  ;;  %v4796_v52 = vld [vmem:[#allocation12 + $0x538] sm:$0xff] }
 0x8d2   :  { %5064 = vmatprep.subr.mxu0 %v4650_v53  ;;  %5135 = vmatprep.subr.mxu1 %v4652_v39  ;;  %v4793_v53 = vld [vmem:[#allocation12 + $0x520] sm:$0xff]  ;;  %v4795_v39 = vld [vmem:[#allocation12 + $0x530] sm:$0xff] }
 0x8d3   :  { %5065 = vmatpush1.msra.mxu0 %v4649_v54  ;;  %5136 = vmatpush1.msra.mxu1 %v4651_v55  ;;  %v4786_v54 = vld [vmem:[#allocation12 + $0x4e8] sm:$0xff]  ;;  %v4788_v55 = vld [vmem:[#allocation12 + $0x4f8] sm:$0xff] }
 0x8d4   :  { %5066 = vmatprep.subr.mxu0 %v4642_v57  ;;  %5137 = vmatprep.subr.mxu1 %v4644_v58  ;;  %v4785_v57 = vld [vmem:[#allocation12 + $0x4e0] sm:$0xff]  ;;  %v4787_v58 = vld [vmem:[#allocation12 + $0x4f0] sm:$0xff] }
 0x8d5   :  { %5067 = vmatpush1.msra.mxu0 %v4641_v59  ;;  %5138 = vmatpush1.msra.mxu1 %v4643_v60  ;;  %v4778_v59 = vld [vmem:[#allocation12 + $0x4a8] sm:$0xff]  ;;  %v4780_v60 = vld [vmem:[#allocation12 + $0x4b8] sm:$0xff] }
 0x8d6   :  { %5068 = vmatprep.subr.mxu0 %v4634_v61  ;;  %5139 = vmatprep.subr.mxu1 %v4636_v27  ;;  %v4777_v61 = vld [vmem:[#allocation12 + $0x4a0] sm:$0xff]  ;;  %v4779_v27 = vld [vmem:[#allocation12 + $0x4b0] sm:$0xff] }
 0x8d7   :  { %5069 = vmatpush1.msra.mxu0 %v4633_v47  ;;  %5140 = vmatpush1.msra.mxu1 %v4635_v62  ;;  %v4770_v47 = vld [vmem:[#allocation12 + $0x468] sm:$0xff]  ;;  %v4772_v62 = vld [vmem:[#allocation12 + $0x478] sm:$0xff] }
 0x8d8   :  { %5070 = vmatprep.subr.mxu0 %v4882_v63  ;;  %5141 = vmatprep.subr.mxu1 %v4884_v0  ;;  %v4769_v63 = vld [vmem:[#allocation12 + $0x460] sm:$0xff]  ;;  %v4771_v0 = vld [vmem:[#allocation12 + $0x470] sm:$0xff] }
 0x8d9   :  { %5071 = vmatpush2.msra.mxu0 %v4881_v1  ;;  %5142 = vmatpush2.msra.mxu1 %v4883_v30  ;;  %v4762_v1 = vld [vmem:[#allocation12 + $0x428] sm:$0xff]  ;;  %v4764_v30 = vld [vmem:[#allocation12 + $0x438] sm:$0xff] }
 0x8da   :  { %5072 = vmatprep.subr.mxu0 %v4874_v3  ;;  %5143 = vmatprep.subr.mxu1 %v4876_v5  ;;  %v4761_v3 = vld [vmem:[#allocation12 + $0x420] sm:$0xff]  ;;  %v4763_v5 = vld [vmem:[#allocation12 + $0x430] sm:$0xff] }
 0x8db   :  { %5073 = vmatpush2.msra.mxu0 %v4873_v8  ;;  %5144 = vmatpush2.msra.mxu1 %v4875_v6  ;;  %v5398_v8 = vld [vmem:[#allocation12 + $0x3c8] sm:$0xff]  ;;  %v5400_v6 = vld [vmem:[#allocation12 + $0x3d8] sm:$0xff] }
 0x8dc   :  { %5074 = vmatprep.subr.mxu0 %v4866_v7  ;;  %5145 = vmatprep.subr.mxu1 %v4868_v10  ;;  %v5397_v7 = vld [vmem:[#allocation12 + $0x3c0] sm:$0xff]  ;;  %v5399_v10 = vld [vmem:[#allocation12 + $0x3d0] sm:$0xff] }
 0x8dd   :  { %5075 = vmatpush2.msra.mxu0 %v4865_v12  ;;  %5146 = vmatpush2.msra.mxu1 %v4867_v13  ;;  %v5390_v12 = vld [vmem:[#allocation12 + $0x388] sm:$0xff]  ;;  %v5392_v13 = vld [vmem:[#allocation12 + $0x398] sm:$0xff] }
 0x8de   :  { %5076 = vmatprep.subr.mxu0 %v4858_v15  ;;  %5147 = vmatprep.subr.mxu1 %v4860_v14  ;;  %v5389_v15 = vld [vmem:[#allocation12 + $0x380] sm:$0xff]  ;;  %v5391_v14 = vld [vmem:[#allocation12 + $0x390] sm:$0xff] }
 0x8df   :  { %5077 = vmatpush2.msra.mxu0 %v4857_v18  ;;  %5148 = vmatpush2.msra.mxu1 %v4859_v19  ;;  %v5382_v18 = vld [vmem:[#allocation12 + $0x348] sm:$0xff]  ;;  %v5384_v19 = vld [vmem:[#allocation12 + $0x358] sm:$0xff] }
 0x8e0   :  { %5078 = vmatprep.subr.mxu0 %v4850_v20  ;;  %5149 = vmatprep.subr.mxu1 %v4852_v22  ;;  %v5383_v20 = vld [vmem:[#allocation12 + $0x350] sm:$0xff]  ;;  %v5374_v22 = vld [vmem:[#allocation12 + $0x308] sm:$0xff] }
 0x8e1   :  { %5079 = vmatpush2.msra.mxu0 %v4849_v24  ;;  %5150 = vmatpush2.msra.mxu1 %v4851_v25  ;;  %v5376_v24 = vld [vmem:[#allocation12 + $0x318] sm:$0xff]  ;;  %v5373_v25 = vld [vmem:[#allocation12 + $0x300] sm:$0xff] }
 0x8e2   :  { %5080 = vmatprep.subr.mxu0 %v4842_v2  ;;  %5151 = vmatprep.subr.mxu1 %v4844_v28  ;;  %v5375_v2 = vld [vmem:[#allocation12 + $0x310] sm:$0xff]  ;;  %v5366_v28 = vld [vmem:[#allocation12 + $0x2c8] sm:$0xff] }
 0x8e3   :  { %5081 = vmatpush2.msra.mxu0 %v4841_v29  ;;  %5152 = vmatpush2.msra.mxu1 %v4843_v9  ;;  %v5368_v29 = vld [vmem:[#allocation12 + $0x2d8] sm:$0xff]  ;;  %v5365_v9 = vld [vmem:[#allocation12 + $0x2c0] sm:$0xff] }
 0x8e4   :  { %5082 = vmatprep.subr.mxu0 %v4834_v33  ;;  %5153 = vmatprep.subr.mxu1 %v4836_v34  ;;  %v5367_v33 = vld [vmem:[#allocation12 + $0x2d0] sm:$0xff]  ;;  %v5358_v34 = vld [vmem:[#allocation12 + $0x288] sm:$0xff] }
 0x8e5   :  { %5083 = vmatpush2.msra.mxu0 %v4833_v11  ;;  %5154 = vmatpush2.msra.mxu1 %v4835_v35  ;;  %v5360_v11 = vld [vmem:[#allocation12 + $0x298] sm:$0xff]  ;;  %v5357_v35 = vld [vmem:[#allocation12 + $0x280] sm:$0xff] }
 0x8e6   :  { %5084 = vmatprep.subr.mxu0 %v4826_v36  ;;  %5155 = vmatprep.subr.mxu1 %v4828_v17  ;;  %v5359_v36 = vld [vmem:[#allocation12 + $0x290] sm:$0xff]  ;;  %v5350_v17 = vld [vmem:[#allocation12 + $0x248] sm:$0xff] }
 0x8e7   :  { %5085 = vmatpush2.msra.mxu0 %v4825_v37  ;;  %5156 = vmatpush2.msra.mxu1 %v4827_v38  ;;  %v5352_v37 = vld [vmem:[#allocation12 + $0x258] sm:$0xff]  ;;  %v5349_v38 = vld [vmem:[#allocation12 + $0x240] sm:$0xff] }
 0x8e8   :  { %5086 = vmatprep.subr.mxu0 %v4818_v40  ;;  %5157 = vmatprep.subr.mxu1 %v4820_v41  ;;  %v5351_v40 = vld [vmem:[#allocation12 + $0x250] sm:$0xff]  ;;  %v5342_v41 = vld [vmem:[#allocation12 + $0x208] sm:$0xff] }
 0x8e9   :  { %5087 = vmatpush2.msra.mxu0 %v4817_v42  ;;  %5158 = vmatpush2.msra.mxu1 %v4819_v43  ;;  %v5344_v42 = vld [vmem:[#allocation12 + $0x218] sm:$0xff]  ;;  %v5341_v43 = vld [vmem:[#allocation12 + $0x200] sm:$0xff] }
 0x8ea   :  { %5088 = vmatprep.subr.mxu0 %v4810_v4  ;;  %5159 = vmatprep.subr.mxu1 %v4812_v44  ;;  %v5343_v4 = vld [vmem:[#allocation12 + $0x210] sm:$0xff]  ;;  %v5334_v44 = vld [vmem:[#allocation12 + $0x1c8] sm:$0xff] }
 0x8eb   :  { %5089 = vmatpush2.msra.mxu0 %v4809_v32  ;;  %5160 = vmatpush2.msra.mxu1 %v4811_v45  ;;  %v5336_v32 = vld [vmem:[#allocation12 + $0x1d8] sm:$0xff]  ;;  %v5333_v45 = vld [vmem:[#allocation12 + $0x1c0] sm:$0xff] }
 0x8ec   :  { %5090 = vmatprep.subr.mxu0 %v4802_v46  ;;  %5161 = vmatprep.subr.mxu1 %v4804_v48  ;;  %v5335_v46 = vld [vmem:[#allocation12 + $0x1d0] sm:$0xff]  ;;  %v5326_v48 = vld [vmem:[#allocation12 + $0x188] sm:$0xff] }
 0x8ed   :  { %5091 = vmatpush2.msra.mxu0 %v4801_v49  ;;  %5162 = vmatpush2.msra.mxu1 %v4803_v50  ;;  %v5328_v49 = vld [vmem:[#allocation12 + $0x198] sm:$0xff]  ;;  %v5325_v50 = vld [vmem:[#allocation12 + $0x180] sm:$0xff] }
 0x8ee   :  { %5092 = vmatprep.subr.mxu0 %v4794_v51  ;;  %5163 = vmatprep.subr.mxu1 %v4796_v52  ;;  %v5327_v51 = vld [vmem:[#allocation12 + $0x190] sm:$0xff]  ;;  %v5318_v52 = vld [vmem:[#allocation12 + $0x148] sm:$0xff] }
 0x8ef   :  { %5093 = vmatpush2.msra.mxu0 %v4793_v53  ;;  %5164 = vmatpush2.msra.mxu1 %v4795_v39  ;;  %v5320_v53 = vld [vmem:[#allocation12 + $0x158] sm:$0xff]  ;;  %v5317_v39 = vld [vmem:[#allocation12 + $0x140] sm:$0xff] }
 0x8f0   :  { %5094 = vmatprep.subr.mxu0 %v4786_v54  ;;  %5165 = vmatprep.subr.mxu1 %v4788_v55  ;;  %v5319_v54 = vld [vmem:[#allocation12 + $0x150] sm:$0xff]  ;;  %v5310_v55 = vld [vmem:[#allocation12 + $0x108] sm:$0xff] }
 0x8f1   :  { %5095 = vmatpush2.msra.mxu0 %v4785_v57  ;;  %5166 = vmatpush2.msra.mxu1 %v4787_v58  ;;  %v5312_v57 = vld [vmem:[#allocation12 + $0x118] sm:$0xff]  ;;  %v5309_v58 = vld [vmem:[#allocation12 + $0x100] sm:$0xff] }
 0x8f2   :  { %5096 = vmatprep.subr.mxu0 %v4778_v59  ;;  %5167 = vmatprep.subr.mxu1 %v4780_v60  ;;  %v5311_v59 = vld [vmem:[#allocation12 + $0x110] sm:$0xff]  ;;  %v5302_v60 = vld [vmem:[#allocation12 + $0xc8] sm:$0xff] }
 0x8f3   :  { %5097 = vmatpush2.msra.mxu0 %v4777_v61  ;;  %5168 = vmatpush2.msra.mxu1 %v4779_v27  ;;  %v5304_v61 = vld [vmem:[#allocation12 + $0xd8] sm:$0xff]  ;;  %v5301_v27 = vld [vmem:[#allocation12 + $0xc0] sm:$0xff] }
 0x8f4   :  { %5098 = vmatprep.subr.mxu0 %v4770_v47  ;;  %5169 = vmatprep.subr.mxu1 %v4772_v62  ;;  %v5303_v47 = vld [vmem:[#allocation12 + $0xd0] sm:$0xff]  ;;  %v5294_v62 = vld [vmem:[#allocation12 + $0x88] sm:$0xff] }
 0x8f5   :  { %5099 = vmatpush2.msra.mxu0 %v4769_v63  ;;  %5170 = vmatpush2.msra.mxu1 %v4771_v0  ;;  %v5296_v63 = vld [vmem:[#allocation12 + $0x98] sm:$0xff]  ;;  %v5293_v0 = vld [vmem:[#allocation12 + $0x80] sm:$0xff] }
 0x8f6   :  { %5100 = vmatprep.subr.mxu0 %v4762_v1  ;;  %5171 = vmatprep.subr.mxu1 %v4764_v30  ;;  %v5295_v1 = vld [vmem:[#allocation12 + $0x90] sm:$0xff]  ;;  %v5286_v30 = vld [vmem:[#allocation12 + $0x48] sm:$0xff] }
 0x8f7   :  { %5101 = vmatpush2.msra.mxu0 %v4761_v3  ;;  %5172 = vmatpush2.msra.mxu1 %v4763_v5  ;;  %v5288_v3 = vld [vmem:[#allocation12 + $0x58] sm:$0xff]  ;;  %v5285_v5 = vld [vmem:[#allocation12 + $0x40] sm:$0xff] }
 0x8f8   :  { %5103 = vmatmul.mubr.f32.vlgmr.msra.gmra.mxu0 %v6637_v23  ;;  %5174 = vmatmul.mubr.f32.vlgmr.msra.gmra.mxu1 %v6637_v23  ;;  %v5381_v23 = vld [vmem:[#allocation12 + $0x340] sm:$0xff] }
 0x8f9   :  { %5544 = vmatprep.subr.mxu0 %v5398_v8  ;;  %5615 = vmatprep.subr.mxu1 %v5400_v6  ;;  %v5287_v8 = vld [vmem:[#allocation12 + $0x50] sm:$0xff]  ;;  %v5278_v6 = vld [vmem:[#allocation12 + $0x8] sm:$0xff] }
 0x8fa   :  { %5545 = vmatpush1.msra.mxu0 %v5397_v7  ;;  %5616 = vmatpush1.msra.mxu1 %v5399_v10  ;;  %v5280_v7 = vld [vmem:[#allocation12 + $0x18] sm:$0xff]  ;;  %v5277_v10 = vld [vmem:[#allocation12] sm:$0xff] }
 0x8fb   :  { %5546 = vmatprep.subr.mxu0 %v5390_v12  ;;  %5617 = vmatprep.subr.mxu1 %v5392_v13  ;;  %v5279_v12 = vld [vmem:[#allocation12 + $0x10] sm:$0xff]  ;;  %v5526_v13 = vld [vmem:[#allocation12 + $0x7c8] sm:$0xff] }
 0x8fc   :  { %5547 = vmatpush1.msra.mxu0 %v5389_v15  ;;  %5618 = vmatpush1.msra.mxu1 %v5391_v14  ;;  %v5528_v15 = vld [vmem:[#allocation12 + $0x7d8] sm:$0xff]  ;;  %v5525_v14 = vld [vmem:[#allocation12 + $0x7c0] sm:$0xff] }
 0x8fd   :  { %5548 = vmatprep.subr.mxu0 %v5382_v18  ;;  %5619 = vmatprep.subr.mxu1 %v5384_v19  ;;  %v5527_v18 = vld [vmem:[#allocation12 + $0x7d0] sm:$0xff]  ;;  %v5518_v19 = vld [vmem:[#allocation12 + $0x788] sm:$0xff] }
 0x8fe   :  { %5549 = vmatpush1.msra.mxu0 %v5381_v23  ;;  %5620 = vmatpush1.msra.mxu1 %v5383_v20  ;;  %v5520_v23 = vld [vmem:[#allocation12 + $0x798] sm:$0xff]  ;;  %v5517_v20 = vld [vmem:[#allocation12 + $0x780] sm:$0xff] }
 0x8ff   :  { %5550 = vmatprep.subr.mxu0 %v5374_v22  ;;  %5621 = vmatprep.subr.mxu1 %v5376_v24  ;;  %v5519_v22 = vld [vmem:[#allocation12 + $0x790] sm:$0xff]  ;;  %v5510_v24 = vld [vmem:[#allocation12 + $0x748] sm:$0xff] }
 0x900   :  { %5551 = vmatpush1.msra.mxu0 %v5373_v25  ;;  %5622 = vmatpush1.msra.mxu1 %v5375_v2  ;;  %v5512_v25 = vld [vmem:[#allocation12 + $0x758] sm:$0xff]  ;;  %v5509_v2 = vld [vmem:[#allocation12 + $0x740] sm:$0xff] }
 0x901   :  { %5552 = vmatprep.subr.mxu0 %v5366_v28  ;;  %5623 = vmatprep.subr.mxu1 %v5368_v29  ;;  %v5511_v28 = vld [vmem:[#allocation12 + $0x750] sm:$0xff]  ;;  %v5502_v29 = vld [vmem:[#allocation12 + $0x708] sm:$0xff] }
 0x902   :  { %5553 = vmatpush1.msra.mxu0 %v5365_v9  ;;  %5624 = vmatpush1.msra.mxu1 %v5367_v33  ;;  %v5504_v9 = vld [vmem:[#allocation12 + $0x718] sm:$0xff]  ;;  %v5501_v33 = vld [vmem:[#allocation12 + $0x700] sm:$0xff] }
 0x903   :  { %5554 = vmatprep.subr.mxu0 %v5358_v34  ;;  %5625 = vmatprep.subr.mxu1 %v5360_v11  ;;  %v5503_v34 = vld [vmem:[#allocation12 + $0x710] sm:$0xff]  ;;  %v5494_v11 = vld [vmem:[#allocation12 + $0x6c8] sm:$0xff] }
 0x904   :  { %5555 = vmatpush1.msra.mxu0 %v5357_v35  ;;  %5626 = vmatpush1.msra.mxu1 %v5359_v36  ;;  %v5496_v35 = vld [vmem:[#allocation12 + $0x6d8] sm:$0xff]  ;;  %v5493_v36 = vld [vmem:[#allocation12 + $0x6c0] sm:$0xff] }
 0x905   :  { %5556 = vmatprep.subr.mxu0 %v5350_v17  ;;  %5627 = vmatprep.subr.mxu1 %v5352_v37  ;;  %v5495_v17 = vld [vmem:[#allocation12 + $0x6d0] sm:$0xff]  ;;  %v5486_v37 = vld [vmem:[#allocation12 + $0x688] sm:$0xff] }
 0x906   :  { %5557 = vmatpush1.msra.mxu0 %v5349_v38  ;;  %5628 = vmatpush1.msra.mxu1 %v5351_v40  ;;  %v5488_v38 = vld [vmem:[#allocation12 + $0x698] sm:$0xff]  ;;  %v5485_v40 = vld [vmem:[#allocation12 + $0x680] sm:$0xff] }
 0x907   :  { %5558 = vmatprep.subr.mxu0 %v5342_v41  ;;  %5629 = vmatprep.subr.mxu1 %v5344_v42  ;;  %v5487_v41 = vld [vmem:[#allocation12 + $0x690] sm:$0xff]  ;;  %v5478_v42 = vld [vmem:[#allocation12 + $0x648] sm:$0xff] }
 0x908   :  { %5559 = vmatpush1.msra.mxu0 %v5341_v43  ;;  %5630 = vmatpush1.msra.mxu1 %v5343_v4  ;;  %v5480_v43 = vld [vmem:[#allocation12 + $0x658] sm:$0xff]  ;;  %v5477_v4 = vld [vmem:[#allocation12 + $0x640] sm:$0xff] }
 0x909   :  { %5560 = vmatprep.subr.mxu0 %v5334_v44  ;;  %5631 = vmatprep.subr.mxu1 %v5336_v32  ;;  %v5479_v44 = vld [vmem:[#allocation12 + $0x650] sm:$0xff]  ;;  %v5470_v32 = vld [vmem:[#allocation12 + $0x608] sm:$0xff] }
 0x90a   :  { %5561 = vmatpush1.msra.mxu0 %v5333_v45  ;;  %5632 = vmatpush1.msra.mxu1 %v5335_v46  ;;  %v5472_v45 = vld [vmem:[#allocation12 + $0x618] sm:$0xff]  ;;  %v5469_v46 = vld [vmem:[#allocation12 + $0x600] sm:$0xff] }
 0x90b   :  { %5562 = vmatprep.subr.mxu0 %v5326_v48  ;;  %5633 = vmatprep.subr.mxu1 %v5328_v49  ;;  %v5471_v48 = vld [vmem:[#allocation12 + $0x610] sm:$0xff]  ;;  %v5462_v49 = vld [vmem:[#allocation12 + $0x5c8] sm:$0xff] }
 0x90c   :  { %5563 = vmatpush1.msra.mxu0 %v5325_v50  ;;  %5634 = vmatpush1.msra.mxu1 %v5327_v51  ;;  %v5464_v50 = vld [vmem:[#allocation12 + $0x5d8] sm:$0xff]  ;;  %v5461_v51 = vld [vmem:[#allocation12 + $0x5c0] sm:$0xff] }
 0x90d   :  { %5564 = vmatprep.subr.mxu0 %v5318_v52  ;;  %5635 = vmatprep.subr.mxu1 %v5320_v53  ;;  %v5463_v52 = vld [vmem:[#allocation12 + $0x5d0] sm:$0xff]  ;;  %v5454_v53 = vld [vmem:[#allocation12 + $0x588] sm:$0xff] }
 0x90e   :  { %5565 = vmatpush1.msra.mxu0 %v5317_v39  ;;  %5636 = vmatpush1.msra.mxu1 %v5319_v54  ;;  %v5456_v39 = vld [vmem:[#allocation12 + $0x598] sm:$0xff]  ;;  %v5453_v54 = vld [vmem:[#allocation12 + $0x580] sm:$0xff] }
 0x90f   :  { %5566 = vmatprep.subr.mxu0 %v5310_v55  ;;  %5637 = vmatprep.subr.mxu1 %v5312_v57  ;;  %v5455_v55 = vld [vmem:[#allocation12 + $0x590] sm:$0xff]  ;;  %v5446_v57 = vld [vmem:[#allocation12 + $0x548] sm:$0xff] }
 0x910   :  { %5567 = vmatpush1.msra.mxu0 %v5309_v58  ;;  %5638 = vmatpush1.msra.mxu1 %v5311_v59  ;;  %v5448_v58 = vld [vmem:[#allocation12 + $0x558] sm:$0xff]  ;;  %v5445_v59 = vld [vmem:[#allocation12 + $0x540] sm:$0xff] }
 0x911   :  { %5568 = vmatprep.subr.mxu0 %v5302_v60  ;;  %5639 = vmatprep.subr.mxu1 %v5304_v61  ;;  %v5447_v60 = vld [vmem:[#allocation12 + $0x550] sm:$0xff]  ;;  %v5438_v61 = vld [vmem:[#allocation12 + $0x508] sm:$0xff] }
 0x912   :  { %5569 = vmatpush1.msra.mxu0 %v5301_v27  ;;  %5640 = vmatpush1.msra.mxu1 %v5303_v47  ;;  %v5440_v27 = vld [vmem:[#allocation12 + $0x518] sm:$0xff]  ;;  %v5437_v47 = vld [vmem:[#allocation12 + $0x500] sm:$0xff] }
 0x913   :  { %5570 = vmatprep.subr.mxu0 %v5294_v62  ;;  %5641 = vmatprep.subr.mxu1 %v5296_v63  ;;  %v5439_v62 = vld [vmem:[#allocation12 + $0x510] sm:$0xff]  ;;  %v5430_v63 = vld [vmem:[#allocation12 + $0x4c8] sm:$0xff] }
 0x914   :  { %5571 = vmatpush1.msra.mxu0 %v5293_v0  ;;  %5642 = vmatpush1.msra.mxu1 %v5295_v1  ;;  %v5432_v0 = vld [vmem:[#allocation12 + $0x4d8] sm:$0xff]  ;;  %v5429_v1 = vld [vmem:[#allocation12 + $0x4c0] sm:$0xff] }
 0x915   :  { %5572 = vmatprep.subr.mxu0 %v5286_v30  ;;  %5643 = vmatprep.subr.mxu1 %v5288_v3  ;;  %v5431_v30 = vld [vmem:[#allocation12 + $0x4d0] sm:$0xff]  ;;  %v5422_v3 = vld [vmem:[#allocation12 + $0x488] sm:$0xff] }
 0x916   :  { %5573 = vmatpush1.msra.mxu0 %v5285_v5  ;;  %5644 = vmatpush1.msra.mxu1 %v5287_v8  ;;  %v5424_v5 = vld [vmem:[#allocation12 + $0x498] sm:$0xff]  ;;  %v5421_v8 = vld [vmem:[#allocation12 + $0x480] sm:$0xff] }
 0x917   :  { %5574 = vmatprep.subr.mxu0 %v5278_v6  ;;  %5645 = vmatprep.subr.mxu1 %v5280_v7  ;;  %v5423_v6 = vld [vmem:[#allocation12 + $0x490] sm:$0xff]  ;;  %v5414_v7 = vld [vmem:[#allocation12 + $0x448] sm:$0xff] }
 0x918   :  { %5575 = vmatpush1.msra.mxu0 %v5277_v10  ;;  %5646 = vmatpush1.msra.mxu1 %v5279_v12  ;;  %v5416_v10 = vld [vmem:[#allocation12 + $0x458] sm:$0xff]  ;;  %v5413_v12 = vld [vmem:[#allocation12 + $0x440] sm:$0xff] }
 0x919   :  { %5576 = vmatprep.subr.mxu0 %v5526_v13  ;;  %5647 = vmatprep.subr.mxu1 %v5528_v15  ;;  %v5415_v13 = vld [vmem:[#allocation12 + $0x450] sm:$0xff]  ;;  %v5406_v15 = vld [vmem:[#allocation12 + $0x408] sm:$0xff] }
 0x91a   :  { %5577 = vmatpush2.msra.mxu0 %v5525_v14  ;;  %5648 = vmatpush2.msra.mxu1 %v5527_v18  ;;  %v5408_v14 = vld [vmem:[#allocation12 + $0x418] sm:$0xff]  ;;  %v5405_v18 = vld [vmem:[#allocation12 + $0x400] sm:$0xff] }
 0x91b   :  { %5578 = vmatprep.subr.mxu0 %v5518_v19  ;;  %5649 = vmatprep.subr.mxu1 %v5520_v23  ;;  %v5407_v19 = vld [vmem:[#allocation12 + $0x410] sm:$0xff]  ;;  %v5402_v23 = vld [vmem:[#allocation12 + $0x3e8] sm:$0xff] }
 0x91c   :  { %5579 = vmatpush2.msra.mxu0 %v5517_v20  ;;  %5650 = vmatpush2.msra.mxu1 %v5519_v22  ;;  %v5404_v20 = vld [vmem:[#allocation12 + $0x3f8] sm:$0xff] }
 0x91d   :  { %5580 = vmatprep.subr.mxu0 %v5510_v24  ;;  %5651 = vmatprep.subr.mxu1 %v5512_v25 }
 0x91e   :  { %5581 = vmatpush2.msra.mxu0 %v5509_v2  ;;  %5652 = vmatpush2.msra.mxu1 %v5511_v28 }
 0x91f   :  { %5582 = vmatprep.subr.mxu0 %v5502_v29  ;;  %5653 = vmatprep.subr.mxu1 %v5504_v9 }
 0x920   :  { %5583 = vmatpush2.msra.mxu0 %v5501_v33  ;;  %5654 = vmatpush2.msra.mxu1 %v5503_v34 }
 0x921   :  { %5584 = vmatprep.subr.mxu0 %v5494_v11  ;;  %5655 = vmatprep.subr.mxu1 %v5496_v35 }
 0x922   :  { %5585 = vmatpush2.msra.mxu0 %v5493_v36  ;;  %5656 = vmatpush2.msra.mxu1 %v5495_v17 }
 0x923   :  { %5586 = vmatprep.subr.mxu0 %v5486_v37  ;;  %5657 = vmatprep.subr.mxu1 %v5488_v38 }
 0x924   :  { %5587 = vmatpush2.msra.mxu0 %v5485_v40  ;;  %5658 = vmatpush2.msra.mxu1 %v5487_v41 }
 0x925   :  { %5588 = vmatprep.subr.mxu0 %v5478_v42  ;;  %5659 = vmatprep.subr.mxu1 %v5480_v43  ;;  %v4627_v43 = vld [vmem:[#allocation3 + $0x6] ss:$8 sm:$0xf0] }
 0x926   :  { %5589 = vmatpush2.msra.mxu0 %v5477_v4  ;;  %5660 = vmatpush2.msra.mxu1 %v5479_v44 }
 0x927   :  { %5590 = vmatprep.subr.mxu0 %v5470_v32  ;;  %5661 = vmatprep.subr.mxu1 %v5472_v45  ;;  %v4626_v32 = vld [vmem:[#allocation3 + $0x6] ss:$8 sm:$0xf] }
 0x928   :  { %5591 = vmatpush2.msra.mxu0 %v5469_v46  ;;  %5662 = vmatpush2.msra.mxu1 %v5471_v48  ;;  %v4628_v45 = vor.u32 %v4627_v43, %v4626_v32  ;;  %v5337_v43 = vld [vmem:[#allocation12 + $0x1e0] sm:$0xff]  ;;  %v5332_v32 = vld [vmem:[#allocation12 + $0x1b8] sm:$0xff] }
 0x929   :  { %5592 = vmatprep.subr.mxu0 %v5462_v49  ;;  %5663 = vmatprep.subr.mxu1 %v5464_v50 }
 0x92a   :  { %5593 = vmatpush2.msra.mxu0 %v5461_v51  ;;  %5664 = vmatpush2.msra.mxu1 %v5463_v52 }
 0x92b   :  { %5594 = vmatprep.subr.mxu0 %v5454_v53  ;;  %5665 = vmatprep.subr.mxu1 %v5456_v39 }
 0x92c   :  { %5595 = vmatpush2.msra.mxu0 %v5453_v54  ;;  %5666 = vmatpush2.msra.mxu1 %v5455_v55 }
 0x92d   :  { %5596 = vmatprep.subr.mxu0 %v5446_v57  ;;  %5667 = vmatprep.subr.mxu1 %v5448_v58 }
 0x92e   :  { %5597 = vmatpush2.msra.mxu0 %v5445_v59  ;;  %5668 = vmatpush2.msra.mxu1 %v5447_v60 }
 0x92f   :  { %5598 = vmatprep.subr.mxu0 %v5438_v61  ;;  %5669 = vmatprep.subr.mxu1 %v5440_v27 }
 0x930   :  { %5599 = vmatpush2.msra.mxu0 %v5437_v47  ;;  %5670 = vmatpush2.msra.mxu1 %v5439_v62 }
 0x931   :  { %5600 = vmatprep.subr.mxu0 %v5430_v63  ;;  %5671 = vmatprep.subr.mxu1 %v5432_v0 }
 0x932   :  { %5601 = vmatpush2.msra.mxu0 %v5429_v1  ;;  %5672 = vmatpush2.msra.mxu1 %v5431_v30 }
 0x933   :  { %5602 = vmatprep.subr.mxu0 %v5422_v3  ;;  %5673 = vmatprep.subr.mxu1 %v5424_v5 }
 0x934   :  { %5603 = vmatpush2.msra.mxu0 %v5421_v8  ;;  %5674 = vmatpush2.msra.mxu1 %v5423_v6  ;;  %v5401_v6 = vld [vmem:[#allocation12 + $0x3e0] sm:$0xff] }
 0x935   :  { %5604 = vmatprep.subr.mxu0 %v5414_v7  ;;  %5675 = vmatprep.subr.mxu1 %v5416_v10  ;;  %v5403_v7 = vld [vmem:[#allocation12 + $0x3f0] sm:$0xff]  ;;  %v5396_v10 = vld [vmem:[#allocation12 + $0x3b8] sm:$0xff] }
 0x936   :  { %5605 = vmatpush2.msra.mxu0 %v5413_v12  ;;  %5676 = vmatpush2.msra.mxu1 %v5415_v13  ;;  %v5393_v12 = vld [vmem:[#allocation12 + $0x3a0] sm:$0xff]  ;;  %v5395_v13 = vld [vmem:[#allocation12 + $0x3b0] sm:$0xff] }
 0x937   :  { %5606 = vmatprep.subr.mxu0 %v5406_v15  ;;  %5677 = vmatprep.subr.mxu1 %v5408_v14  ;;  %v5388_v15 = vld [vmem:[#allocation12 + $0x378] sm:$0xff]  ;;  %v5387_v14 = vld [vmem:[#allocation12 + $0x370] sm:$0xff] }
 0x938   :  { %5607 = vmatpush2.msra.mxu0 %v5405_v18  ;;  %5678 = vmatpush2.msra.mxu1 %v5407_v19  ;;  %v5378_v18 = vld [vmem:[#allocation12 + $0x328] sm:$0xff]  ;;  %v5380_v19 = vld [vmem:[#allocation12 + $0x338] sm:$0xff] }
 0x939   :  { %5686 = vmatprep.subr.mxu0 %v5402_v23  ;;  %5757 = vmatprep.subr.mxu1 %v5404_v20  ;;  %v5377_v23 = vld [vmem:[#allocation12 + $0x320] sm:$0xff]  ;;  %v5379_v20 = vld [vmem:[#allocation12 + $0x330] sm:$0xff] }
 0x977   :  { %v4962_v22 = vpop.f32.mrf.mxu0  ;;  %v5033_v24 = vpop.f32.mrf.mxu1 }
 0x979   :  { %v4964_v25 = vpop.f32.mrf.mxu0  ;;  %v5035_v2 = vpop.f32.mrf.mxu1 }
 0x97a   :  { %v5188_v28 = vcombine.low %v4962_v22, %v4964_v25  ;;  %v5189_v29 = vcombine.low %v5033_v24, %v5035_v2  ;;  %v5370_v22 = vld [vmem:[#allocation12 + $0x2e8] sm:$0xff]  ;;  %v5372_v24 = vld [vmem:[#allocation12 + $0x2f8] sm:$0xff]  ;;  %v5369_v25 = vld [vmem:[#allocation12 + $0x2e0] sm:$0xff] }
 0x97b   :  { %v5371_v2 = vld [vmem:[#allocation12 + $0x2f0] sm:$0xff] }
 0x97c   :  { %v5198_v34 = vrot.slane %v5188_v28, %v6522_v31  ;;  %v5205_v11 = vrot.slane %v5189_v29, %v6522_v31  ;;  %v5362_v28 = vld [vmem:[#allocation12 + $0x2a8] sm:$0xff]  ;;  %v5364_v29 = vld [vmem:[#allocation12 + $0x2b8] sm:$0xff] }
 0x97e   :  { %v5220_v38 = vcombine.low %v5198_v34, %v5205_v11  ;;  %v5354_v34 = vld [vmem:[#allocation12 + $0x268] sm:$0xff]  ;;  %v5356_v11 = vld [vmem:[#allocation12 + $0x278] sm:$0xff] }
 0x980   :  { %v5228_v4 = vrot.slane %v5220_v38, %v6522_v31  ;;  %v5345_v38 = vld [vmem:[#allocation12 + $0x220] sm:$0xff] }
 0x9b8   :  { %v5104_v9 = vpop.f32.mrf.mxu0  ;;  %v5175_v33 = vpop.f32.mrf.mxu1 }
 0x9ba   :  { %v5106_v35 = vpop.f32.mrf.mxu0  ;;  %v5177_v36 = vpop.f32.mrf.mxu1 }
 0x9bb   :  { %v5190_v17 = vcombine.low %v5104_v9, %v5106_v35  ;;  %v5191_v37 = vcombine.low %v5175_v33, %v5177_v36  ;;  %v5361_v9 = vld [vmem:[#allocation12 + $0x2a0] sm:$0xff]  ;;  %v5363_v33 = vld [vmem:[#allocation12 + $0x2b0] sm:$0xff] }
 0x9bc   :  { %v5353_v35 = vld [vmem:[#allocation12 + $0x260] sm:$0xff]  ;;  %v5355_v36 = vld [vmem:[#allocation12 + $0x270] sm:$0xff] }
 0x9bd   :  { %v5212_v40 = vrot.slane %v5190_v17, %v6522_v31  ;;  %v5219_v41 = vrot.slane %v5191_v37, %v6522_v31  ;;  %v5346_v17 = vld [vmem:[#allocation12 + $0x228] sm:$0xff]  ;;  %v5348_v37 = vld [vmem:[#allocation12 + $0x238] sm:$0xff] }
 0x9bf   :  { %v5221_v42 = vcombine.low %v5212_v40, %v5219_v41  ;;  %v5347_v40 = vld [vmem:[#allocation12 + $0x230] sm:$0xff]  ;;  %v5338_v41 = vld [vmem:[#allocation12 + $0x1e8] sm:$0xff] }
 0x9c1   :  { %v5235_v44 = vrot.slane %v5221_v42, %v6522_v31  ;;  %v5340_v42 = vld [vmem:[#allocation12 + $0x1f8] sm:$0xff] }
 0x9c3   :  { %v5236_v46 = vcombine.low %v5228_v4, %v5235_v44  ;;  %v5339_v4 = vld [vmem:[#allocation12 + $0x1f0] sm:$0xff]  ;;  %v5330_v44 = vld [vmem:[#allocation12 + $0x1a8] sm:$0xff] }
 0x9c5   :  { %v5238_v48 = vadd.f32 %v5236_v46, %v4628_v45  ;;  %v5329_v45 = vld [vmem:[#allocation12 + $0x1a0] sm:$0xff]  ;;  %v5331_v46 = vld [vmem:[#allocation12 + $0x1b0] sm:$0xff] }
 0x9c7   :  { %v6016_v49 = vmul.f32 -1.442695, %v5238_v48  ;;  %v5246_v50 = vrot.slane %v5238_v48, 2  ;;  %v5257_v52 = vrot.slane %v5238_v48, 6  ;;  %v5254_v54 = vrot.slane %v5238_v48, 4  ;;  %v5322_v48 = vld [vmem:[#allocation12 + $0x168] sm:$0xff] }
 0x9c9   :  { %6131 = vpow2.f32 %v6016_v49  ;;  %v6017_v51 = vmul.f32 -1.442695, %v5246_v50  ;;  %v6018_v53 = vmul.f32 -1.442695, %v5257_v52  ;;  %v5324_v49 = vld [vmem:[#allocation12 + $0x178] sm:$0xff]  ;;  %v5321_v50 = vld [vmem:[#allocation12 + $0x160] sm:$0xff] }
 0x9ca   :  { %v5314_v52 = vld [vmem:[#allocation12 + $0x128] sm:$0xff] }
 0x9cb   :  { %6133 = vpow2.f32 %v6017_v51  ;;  %v5323_v51 = vld [vmem:[#allocation12 + $0x170] sm:$0xff] }
 0x9cc   :  { %6135 = vpow2.f32 %v6018_v53  ;;  %v5316_v53 = vld [vmem:[#allocation12 + $0x138] sm:$0xff] }
 0x9d6   :  { %v6132_v39 = vpop.eup %6131 }
 0x9d7   :  { %v5242_v55 = vadd.f32 1.0, %v6132_v39  ;;  %v5313_v39 = vld [vmem:[#allocation12 + $0x120] sm:$0xff] }
 0x9d8   :  { %v6134_v57 = vpop.eup %6133 }
 0x9d9   :  { %6137 = vrcp.f32 %v5242_v55  ;;  %v5251_v58 = vadd.f32 1.0, %v6134_v57  ;;  %v6136_v59 = vpop.eup %6135  ;;  %v5306_v55 = vld [vmem:[#allocation12 + $0xe8] sm:$0xff]  ;;  %v5308_v57 = vld [vmem:[#allocation12 + $0xf8] sm:$0xff] }
 0x9da   :  { %6139 = vtanh.f32 %v5254_v54  ;;  %v5262_v47 = vadd.f32 1.0, %v6136_v59  ;;  %v5315_v54 = vld [vmem:[#allocation12 + $0x130] sm:$0xff] }
 0x9db   :  { %6141 = vrcp.f32 %v5251_v58  ;;  %v5305_v58 = vld [vmem:[#allocation12 + $0xe0] sm:$0xff]  ;;  %v5307_v59 = vld [vmem:[#allocation12 + $0xf0] sm:$0xff] }
 0x9dc   :  { %6143 = vrcp.f32 %v5262_v47  ;;  %v5299_v47 = vld [vmem:[#allocation12 + $0xb0] sm:$0xff] }
 0x9e6   :  { %v6138_v60 = vpop.eup %6137 }
 0x9e7   :  { %v6140_v61 = vpop.eup %6139 }
 0x9e8   :  { %v6142_v27 = vpop.eup %6141  ;;  %v5266_v63 = vmul.f32 %v6140_v61, %v6138_v60  ;;  %v5298_v60 = vld [vmem:[#allocation12 + $0xa8] sm:$0xff]  ;;  %v5300_v61 = vld [vmem:[#allocation12 + $0xb8] sm:$0xff] }
 0x9e9   :  { %v5265_v62 = vmul.f32 %v6142_v27, %v6630_v56  ;;  %v6144_v1 = vpop.eup %6143  ;;  %v5394_v56 = vld [vmem:[#allocation12 + $0x3a8] sm:$0xff]  ;;  %v5297_v27 = vld [vmem:[#allocation12 + $0xa0] sm:$0xff] }
 0x9eb   :  { %v6650_v0 = vadd.f32 %v5266_v63, %v5265_v62  ;;  %v5290_v62 = vld [vmem:[#allocation12 + $0x68] sm:$0xff]  ;;  %v5292_v63 = vld [vmem:[#allocation12 + $0x78] sm:$0xff] }
 0x9ed   :  { %6145 = vtanh.f32 %v6650_v0 }
 0x9fa   :  { %v6146_v30 = vpop.eup %6145 }
 0x9fb   :  { %v5269_v3 = vmul.f32 %v6146_v30, %v6144_v1  ;;  %v5289_v1 = vld [vmem:[#allocation12 + $0x60] sm:$0xff]  ;;  %v5291_v30 = vld [vmem:[#allocation12 + $0x70] sm:$0xff] }
 0x9fd   :  { %5271 = vst.msk [vmem:[#allocation14 + $0x6] ss:$8 sm:$0x3] %vm6426_vm0, %v5269_v3  ;;  %v5541_v5 = vrot.slane %v5269_v3, %v6478_v16  ;;  %v6657_v8 = vrot.slane %v5269_v3, %v6484_v21  ;;  %v5386_v16 = vld [vmem:[#allocation12 + $0x368] sm:$0xff]  ;;  %v5385_v21 = vld [vmem:[#allocation12 + $0x360] sm:$0xff] }
 0x9fe   :  { %v5282_v3 = vld [vmem:[#allocation12 + $0x28] sm:$0xff] }
 0x9ff   :  { %5608 = vmatprep.mubr.f32.mxu0 %v5541_v5  ;;  %5679 = vmatprep.mubr.f32.mxu1 %v5541_v5 }
 0xa00   :  { %5609 = vmatmul.mubr.f32.vlgmr.msra.gmra.mxu0 %v6657_v8  ;;  %5680 = vmatmul.mubr.f32.vlgmr.msra.gmra.mxu1 %v6657_v8 }
 0xa01   :  { %5687 = vmatpush1.msra.mxu0 %v5401_v6  ;;  %5758 = vmatpush1.msra.mxu1 %v5403_v7  ;;  %v5281_v6 = vld [vmem:[#allocation12 + $0x20] sm:$0xff]  ;;  %v5283_v7 = vld [vmem:[#allocation12 + $0x30] sm:$0xff] }
 0xa02   :  { %5688 = vmatprep.subr.mxu0 %v5394_v56  ;;  %5750 = vmatprep.mubr.f32.mxu0 %v5541_v5  ;;  %v5530_v56 = vld [vmem:[#allocation12 + $0x7e8] sm:$0xff] }
 0xa03   :  { %5759 = vmatprep.subr.mxu1 %v5396_v10  ;;  %5821 = vmatprep.mubr.f32.mxu1 %v5541_v5  ;;  %v5284_v5 = vld [vmem:[#allocation12 + $0x38] sm:$0xff] }
 0xa04   :  { %5689 = vmatpush1.msra.mxu0 %v5393_v12  ;;  %5760 = vmatpush1.msra.mxu1 %v5395_v13  ;;  %v5532_v10 = vld [vmem:[#allocation12 + $0x7f8] sm:$0xff]  ;;  %v5529_v12 = vld [vmem:[#allocation12 + $0x7e0] sm:$0xff]  ;;  %v5531_v13 = vld [vmem:[#allocation12 + $0x7f0] sm:$0xff] }
 0xa05   :  { %5690 = vmatprep.subr.mxu0 %v5386_v16  ;;  %5761 = vmatprep.subr.mxu1 %v5388_v15  ;;  %v5522_v16 = vld [vmem:[#allocation12 + $0x7a8] sm:$0xff]  ;;  %v5524_v15 = vld [vmem:[#allocation12 + $0x7b8] sm:$0xff] }
 0xa06   :  { %5691 = vmatpush1.msra.mxu0 %v5385_v21  ;;  %5762 = vmatpush1.msra.mxu1 %v5387_v14  ;;  %v5521_v21 = vld [vmem:[#allocation12 + $0x7a0] sm:$0xff]  ;;  %v5523_v14 = vld [vmem:[#allocation12 + $0x7b0] sm:$0xff] }
 0xa07   :  { %5692 = vmatprep.subr.mxu0 %v5378_v18  ;;  %5763 = vmatprep.subr.mxu1 %v5380_v19  ;;  %v5514_v18 = vld [vmem:[#allocation12 + $0x768] sm:$0xff]  ;;  %v5516_v19 = vld [vmem:[#allocation12 + $0x778] sm:$0xff] }
 0xa08   :  { %5693 = vmatpush1.msra.mxu0 %v5377_v23  ;;  %5764 = vmatpush1.msra.mxu1 %v5379_v20  ;;  %v5513_v23 = vld [vmem:[#allocation12 + $0x760] sm:$0xff]  ;;  %v5515_v20 = vld [vmem:[#allocation12 + $0x770] sm:$0xff] }
 0xa09   :  { %5694 = vmatprep.subr.mxu0 %v5370_v22  ;;  %5765 = vmatprep.subr.mxu1 %v5372_v24  ;;  %v5506_v22 = vld [vmem:[#allocation12 + $0x728] sm:$0xff]  ;;  %v5508_v24 = vld [vmem:[#allocation12 + $0x738] sm:$0xff] }
 0xa0a   :  { %5695 = vmatpush1.msra.mxu0 %v5369_v25  ;;  %5766 = vmatpush1.msra.mxu1 %v5371_v2  ;;  %v5505_v25 = vld [vmem:[#allocation12 + $0x720] sm:$0xff]  ;;  %v5507_v2 = vld [vmem:[#allocation12 + $0x730] sm:$0xff] }
 0xa0b   :  { %5696 = vmatprep.subr.mxu0 %v5362_v28  ;;  %5767 = vmatprep.subr.mxu1 %v5364_v29  ;;  %v5498_v28 = vld [vmem:[#allocation12 + $0x6e8] sm:$0xff]  ;;  %v5500_v29 = vld [vmem:[#allocation12 + $0x6f8] sm:$0xff] }
 0xa0c   :  { %5697 = vmatpush1.msra.mxu0 %v5361_v9  ;;  %5768 = vmatpush1.msra.mxu1 %v5363_v33  ;;  %v5497_v9 = vld [vmem:[#allocation12 + $0x6e0] sm:$0xff]  ;;  %v5499_v33 = vld [vmem:[#allocation12 + $0x6f0] sm:$0xff] }
 0xa0d   :  { %5698 = vmatprep.subr.mxu0 %v5354_v34  ;;  %5769 = vmatprep.subr.mxu1 %v5356_v11  ;;  %v5490_v34 = vld [vmem:[#allocation12 + $0x6a8] sm:$0xff]  ;;  %v5492_v11 = vld [vmem:[#allocation12 + $0x6b8] sm:$0xff] }
 0xa0e   :  { %5699 = vmatpush1.msra.mxu0 %v5353_v35  ;;  %5770 = vmatpush1.msra.mxu1 %v5355_v36  ;;  %v5489_v35 = vld [vmem:[#allocation12 + $0x6a0] sm:$0xff]  ;;  %v5491_v36 = vld [vmem:[#allocation12 + $0x6b0] sm:$0xff] }
 0xa0f   :  { %5700 = vmatprep.subr.mxu0 %v5346_v17  ;;  %5771 = vmatprep.subr.mxu1 %v5348_v37  ;;  %v5482_v17 = vld [vmem:[#allocation12 + $0x668] sm:$0xff]  ;;  %v5484_v37 = vld [vmem:[#allocation12 + $0x678] sm:$0xff] }
 0xa10   :  { %5701 = vmatpush1.msra.mxu0 %v5345_v38  ;;  %5772 = vmatpush1.msra.mxu1 %v5347_v40  ;;  %v5481_v38 = vld [vmem:[#allocation12 + $0x660] sm:$0xff]  ;;  %v5483_v40 = vld [vmem:[#allocation12 + $0x670] sm:$0xff] }
 0xa11   :  { %5702 = vmatprep.subr.mxu0 %v5338_v41  ;;  %5773 = vmatprep.subr.mxu1 %v5340_v42  ;;  %v5474_v41 = vld [vmem:[#allocation12 + $0x628] sm:$0xff]  ;;  %v5476_v42 = vld [vmem:[#allocation12 + $0x638] sm:$0xff] }
 0xa12   :  { %5703 = vmatpush1.msra.mxu0 %v5337_v43  ;;  %5774 = vmatpush1.msra.mxu1 %v5339_v4  ;;  %v5473_v43 = vld [vmem:[#allocation12 + $0x620] sm:$0xff]  ;;  %v5475_v4 = vld [vmem:[#allocation12 + $0x630] sm:$0xff] }
 0xa13   :  { %5704 = vmatprep.subr.mxu0 %v5330_v44  ;;  %5775 = vmatprep.subr.mxu1 %v5332_v32  ;;  %v5466_v44 = vld [vmem:[#allocation12 + $0x5e8] sm:$0xff]  ;;  %v5468_v32 = vld [vmem:[#allocation12 + $0x5f8] sm:$0xff] }
 0xa14   :  { %5705 = vmatpush1.msra.mxu0 %v5329_v45  ;;  %5776 = vmatpush1.msra.mxu1 %v5331_v46  ;;  %v5465_v45 = vld [vmem:[#allocation12 + $0x5e0] sm:$0xff]  ;;  %v5467_v46 = vld [vmem:[#allocation12 + $0x5f0] sm:$0xff] }
 0xa15   :  { %5706 = vmatprep.subr.mxu0 %v5322_v48  ;;  %5777 = vmatprep.subr.mxu1 %v5324_v49  ;;  %v5458_v48 = vld [vmem:[#allocation12 + $0x5a8] sm:$0xff]  ;;  %v5460_v49 = vld [vmem:[#allocation12 + $0x5b8] sm:$0xff] }
 0xa16   :  { %5707 = vmatpush1.msra.mxu0 %v5321_v50  ;;  %5778 = vmatpush1.msra.mxu1 %v5323_v51  ;;  %v5457_v50 = vld [vmem:[#allocation12 + $0x5a0] sm:$0xff]  ;;  %v5459_v51 = vld [vmem:[#allocation12 + $0x5b0] sm:$0xff] }
 0xa17   :  { %5708 = vmatprep.subr.mxu0 %v5314_v52  ;;  %5779 = vmatprep.subr.mxu1 %v5316_v53  ;;  %v5450_v52 = vld [vmem:[#allocation12 + $0x568] sm:$0xff]  ;;  %v5452_v53 = vld [vmem:[#allocation12 + $0x578] sm:$0xff] }
 0xa18   :  { %5709 = vmatpush1.msra.mxu0 %v5313_v39  ;;  %5780 = vmatpush1.msra.mxu1 %v5315_v54  ;;  %v5449_v39 = vld [vmem:[#allocation12 + $0x560] sm:$0xff]  ;;  %v5451_v54 = vld [vmem:[#allocation12 + $0x570] sm:$0xff] }
 0xa19   :  { %5710 = vmatprep.subr.mxu0 %v5306_v55  ;;  %5781 = vmatprep.subr.mxu1 %v5308_v57  ;;  %v5442_v55 = vld [vmem:[#allocation12 + $0x528] sm:$0xff]  ;;  %v5444_v57 = vld [vmem:[#allocation12 + $0x538] sm:$0xff] }
 0xa1a   :  { %5711 = vmatpush1.msra.mxu0 %v5305_v58  ;;  %5782 = vmatpush1.msra.mxu1 %v5307_v59  ;;  %v5441_v58 = vld [vmem:[#allocation12 + $0x520] sm:$0xff]  ;;  %v5443_v59 = vld [vmem:[#allocation12 + $0x530] sm:$0xff] }
 0xa1b   :  { %5712 = vmatprep.subr.mxu0 %v5298_v60  ;;  %5783 = vmatprep.subr.mxu1 %v5300_v61  ;;  %v5434_v60 = vld [vmem:[#allocation12 + $0x4e8] sm:$0xff]  ;;  %v5436_v61 = vld [vmem:[#allocation12 + $0x4f8] sm:$0xff] }
 0xa1c   :  { %5713 = vmatpush1.msra.mxu0 %v5297_v27  ;;  %5784 = vmatpush1.msra.mxu1 %v5299_v47  ;;  %v5433_v27 = vld [vmem:[#allocation12 + $0x4e0] sm:$0xff]  ;;  %v5435_v47 = vld [vmem:[#allocation12 + $0x4f0] sm:$0xff] }
 0xa1d   :  { %5714 = vmatprep.subr.mxu0 %v5290_v62  ;;  %5785 = vmatprep.subr.mxu1 %v5292_v63  ;;  %v5426_v62 = vld [vmem:[#allocation12 + $0x4a8] sm:$0xff]  ;;  %v5428_v63 = vld [vmem:[#allocation12 + $0x4b8] sm:$0xff] }
 0xa1e   :  { %5715 = vmatpush1.msra.mxu0 %v5289_v1  ;;  %5786 = vmatpush1.msra.mxu1 %v5291_v30  ;;  %v5425_v1 = vld [vmem:[#allocation12 + $0x4a0] sm:$0xff]  ;;  %v5427_v30 = vld [vmem:[#allocation12 + $0x4b0] sm:$0xff] }
 0xa1f   :  { %5716 = vmatprep.subr.mxu0 %v5282_v3  ;;  %5787 = vmatprep.subr.mxu1 %v5284_v5  ;;  %v5418_v3 = vld [vmem:[#allocation12 + $0x468] sm:$0xff]  ;;  %v5420_v5 = vld [vmem:[#allocation12 + $0x478] sm:$0xff] }
 0xa20   :  { %5717 = vmatpush1.msra.mxu0 %v5281_v6  ;;  %5788 = vmatpush1.msra.mxu1 %v5283_v7  ;;  %v5417_v6 = vld [vmem:[#allocation12 + $0x460] sm:$0xff]  ;;  %v5419_v7 = vld [vmem:[#allocation12 + $0x470] sm:$0xff] }
 0xa21   :  { %5718 = vmatprep.subr.mxu0 %v5530_v56  ;;  %5789 = vmatprep.subr.mxu1 %v5532_v10  ;;  %v5410_v56 = vld [vmem:[#allocation12 + $0x428] sm:$0xff]  ;;  %v5412_v10 = vld [vmem:[#allocation12 + $0x438] sm:$0xff] }
 0xa22   :  { %5719 = vmatpush2.msra.mxu0 %v5529_v12  ;;  %5790 = vmatpush2.msra.mxu1 %v5531_v13  ;;  %v5409_v12 = vld [vmem:[#allocation12 + $0x420] sm:$0xff]  ;;  %v5411_v13 = vld [vmem:[#allocation12 + $0x430] sm:$0xff] }
 0xa23   :  { %5720 = vmatprep.subr.mxu0 %v5522_v16  ;;  %5791 = vmatprep.subr.mxu1 %v5524_v15 }
 0xa24   :  { %5721 = vmatpush2.msra.mxu0 %v5521_v21  ;;  %5792 = vmatpush2.msra.mxu1 %v5523_v14 }
 0xa25   :  { %5722 = vmatprep.subr.mxu0 %v5514_v18  ;;  %5793 = vmatprep.subr.mxu1 %v5516_v19 }
 0xa26   :  { %5723 = vmatpush2.msra.mxu0 %v5513_v23  ;;  %5794 = vmatpush2.msra.mxu1 %v5515_v20 }
 0xa27   :  { %5724 = vmatprep.subr.mxu0 %v5506_v22  ;;  %5795 = vmatprep.subr.mxu1 %v5508_v24 }
 0xa28   :  { %5725 = vmatpush2.msra.mxu0 %v5505_v25  ;;  %5796 = vmatpush2.msra.mxu1 %v5507_v2 }
 0xa29   :  { %5726 = vmatprep.subr.mxu0 %v5498_v28  ;;  %5797 = vmatprep.subr.mxu1 %v5500_v29 }
 0xa2a   :  { %5727 = vmatpush2.msra.mxu0 %v5497_v9  ;;  %5798 = vmatpush2.msra.mxu1 %v5499_v33 }
 0xa2b   :  { %5728 = vmatprep.subr.mxu0 %v5490_v34  ;;  %5799 = vmatprep.subr.mxu1 %v5492_v11  ;;  %v5275_v11 = vld [vmem:[#allocation3 + $0x7] ss:$8 sm:$0xf0] }
 0xa2c   :  { %5729 = vmatpush2.msra.mxu0 %v5489_v35  ;;  %5800 = vmatpush2.msra.mxu1 %v5491_v36 }
 0xa2d   :  { %5730 = vmatprep.subr.mxu0 %v5482_v17  ;;  %5801 = vmatprep.subr.mxu1 %v5484_v37  ;;  %v5274_v17 = vld [vmem:[#allocation3 + $0x7] ss:$8 sm:$0xf] }
 0xa2e   :  { %5731 = vmatpush2.msra.mxu0 %v5481_v38  ;;  %5802 = vmatpush2.msra.mxu1 %v5483_v40  ;;  %v5276_v37 = vor.u32 %v5275_v11, %v5274_v17 }
 0xa2f   :  { %5732 = vmatprep.subr.mxu0 %v5474_v41  ;;  %5803 = vmatprep.subr.mxu1 %v5476_v42 }
 0xa30   :  { %5733 = vmatpush2.msra.mxu0 %v5473_v43  ;;  %5804 = vmatpush2.msra.mxu1 %v5475_v4 }
 0xa31   :  { %5734 = vmatprep.subr.mxu0 %v5466_v44  ;;  %5805 = vmatprep.subr.mxu1 %v5468_v32 }
 0xa32   :  { %5735 = vmatpush2.msra.mxu0 %v5465_v45  ;;  %5806 = vmatpush2.msra.mxu1 %v5467_v46 }
 0xa33   :  { %5736 = vmatprep.subr.mxu0 %v5458_v48  ;;  %5807 = vmatprep.subr.mxu1 %v5460_v49 }
 0xa34   :  { %5737 = vmatpush2.msra.mxu0 %v5457_v50  ;;  %5808 = vmatpush2.msra.mxu1 %v5459_v51 }
 0xa35   :  { %5738 = vmatprep.subr.mxu0 %v5450_v52  ;;  %5809 = vmatprep.subr.mxu1 %v5452_v53 }
 0xa36   :  { %5739 = vmatpush2.msra.mxu0 %v5449_v39  ;;  %5810 = vmatpush2.msra.mxu1 %v5451_v54 }
 0xa37   :  { %5740 = vmatprep.subr.mxu0 %v5442_v55  ;;  %5811 = vmatprep.subr.mxu1 %v5444_v57 }
 0xa38   :  { %5741 = vmatpush2.msra.mxu0 %v5441_v58  ;;  %5812 = vmatpush2.msra.mxu1 %v5443_v59 }
 0xa39   :  { %5742 = vmatprep.subr.mxu0 %v5434_v60  ;;  %5813 = vmatprep.subr.mxu1 %v5436_v61 }
 0xa3a   :  { %5743 = vmatpush2.msra.mxu0 %v5433_v27  ;;  %5814 = vmatpush2.msra.mxu1 %v5435_v47 }
 0xa3b   :  { %5744 = vmatprep.subr.mxu0 %v5426_v62  ;;  %5815 = vmatprep.subr.mxu1 %v5428_v63 }
 0xa3c   :  { %5745 = vmatpush2.msra.mxu0 %v5425_v1  ;;  %5816 = vmatpush2.msra.mxu1 %v5427_v30 }
 0xa3d   :  { %5746 = vmatprep.subr.mxu0 %v5418_v3  ;;  %5817 = vmatprep.subr.mxu1 %v5420_v5 }
 0xa3e   :  { %5747 = vmatpush2.msra.mxu0 %v5417_v6  ;;  %5818 = vmatpush2.msra.mxu1 %v5419_v7 }
 0xa3f   :  { %5748 = vmatprep.subr.mxu0 %v5410_v56  ;;  %5819 = vmatprep.subr.mxu1 %v5412_v10 }
 0xa40   :  { %5749 = vmatpush2.msra.mxu0 %v5409_v12  ;;  %5820 = vmatpush2.msra.mxu1 %v5411_v13 }
 0xa41   :  { %5751 = vmatmul.mubr.f32.vlgmr.msra.gmra.mxu0 %v6657_v8  ;;  %5822 = vmatmul.mubr.f32.vlgmr.msra.gmra.mxu1 %v6657_v8 }
 0xac0   :  { %v5610_v16 = vpop.f32.mrf.mxu0  ;;  %v5681_v15 = vpop.f32.mrf.mxu1 }
 0xac2   :  { %v5612_v21 = vpop.f32.mrf.mxu0  ;;  %v5683_v14 = vpop.f32.mrf.mxu1 }
 0xac3   :  { %v5836_v18 = vcombine.low %v5610_v16, %v5612_v21  ;;  %v5837_v19 = vcombine.low %v5681_v15, %v5683_v14 }
 0xac5   :  { %v5846_v22 = vrot.slane %v5836_v18, %v6522_v31  ;;  %v5853_v24 = vrot.slane %v5837_v19, %v6522_v31 }
 0xac7   :  { %v5868_v9 = vcombine.low %v5846_v22, %v5853_v24 }
 0xac9   :  { %v5876_v35 = vrot.slane %v5868_v9, %v6522_v31 }
 0xb01   :  { %v5752_v23 = vpop.f32.mrf.mxu0  ;;  %v5823_v20 = vpop.f32.mrf.mxu1 }
 0xb03   :  { %v5754_v25 = vpop.f32.mrf.mxu0  ;;  %v5825_v2 = vpop.f32.mrf.mxu1 }
 0xb04   :  { %v5838_v28 = vcombine.low %v5752_v23, %v5754_v25  ;;  %v5839_v29 = vcombine.low %v5823_v20, %v5825_v2 }
 0xb06   :  { %v5860_v33 = vrot.slane %v5838_v28, %v6522_v31  ;;  %v5867_v8 = vrot.slane %v5839_v29, %v6522_v31 }
 0xb08   :  { %v5869_v34 = vcombine.low %v5860_v33, %v5867_v8 }
 0xb0a   :  { %v5883_v36 = vrot.slane %v5869_v34, %v6522_v31 }
 0xb0c   :  { %v5884_v38 = vcombine.low %v5876_v35, %v5883_v36 }
 0xb0e   :  { %v5886_v40 = vadd.f32 %v5884_v38, %v5276_v37 }
 0xb10   :  { %v6019_v41 = vmul.f32 -1.442695, %v5886_v40  ;;  %v5894_v42 = vrot.slane %v5886_v40, 2  ;;  %v5905_v4 = vrot.slane %v5886_v40, 6  ;;  %v5902_v45 = vrot.slane %v5886_v40, 4 }
 0xb12   :  { %6147 = vpow2.f32 %v6019_v41  ;;  %v6020_v43 = vmul.f32 -1.442695, %v5894_v42  ;;  %v6021_v44 = vmul.f32 -1.442695, %v5905_v4 }
 0xb14   :  { %6149 = vpow2.f32 %v6020_v43 }
 0xb15   :  { %6151 = vpow2.f32 %v6021_v44 }
 0xb1f   :  { %v6148_v32 = vpop.eup %6147 }
 0xb20   :  { %v5890_v46 = vadd.f32 1.0, %v6148_v32 }
 0xb21   :  { %v6150_v48 = vpop.eup %6149 }
 0xb22   :  { %6153 = vrcp.f32 %v5890_v46  ;;  %v5899_v49 = vadd.f32 1.0, %v6150_v48  ;;  %v6152_v31 = vpop.eup %6151 }
 0xb23   :  { %6155 = vtanh.f32 %v5902_v45  ;;  %v5910_v53 = vadd.f32 1.0, %v6152_v31 }
 0xb24   :  { %6157 = vrcp.f32 %v5899_v49 }
 0xb25   :  { %6159 = vrcp.f32 %v5910_v53 }
 0xb2f   :  { %v6154_v50 = vpop.eup %6153 }
 0xb30   :  { %v6156_v51 = vpop.eup %6155 }
 0xb31   :  { %v6158_v52 = vpop.eup %6157  ;;  %v5914_v54 = vmul.f32 %v6156_v51, %v6154_v50 }
 0xb32   :  { %v5913_v39 = vmul.f32 %v6158_v52, %v6650_v0  ;;  %v6160_v57 = vpop.eup %6159 }
 0xb34   :  { %v5915_v55 = vadd.f32 %v5914_v54, %v5913_v39 }
 0xb36   :  { %6161 = vtanh.f32 %v5915_v55  ;;  %5922 = vst.msk [vmem:[#allocation17] sm:$0x3] %vm6426_vm0, %v5915_v55 }
 0xb43   :  { %v6162_v58 = vpop.eup %6161 }
 0xb44   :  { %v5917_v59 = vmul.f32 %v6162_v58, %v6160_v57 }
 0xb46   :  { %5919 = vst.msk [vmem:[#allocation14 + $0x7] ss:$8 sm:$0x3] %vm6426_vm0, %v5917_v59  ;;  %5921 = vst.msk [vmem:[#allocation15] sm:$0x3] %vm6426_vm0, %v5917_v59 }
 0xb47   :  { %6262 = shalt.err (!%p6259_p10)
}
 0xb48   :  { %5942 = dma.vmem_to_hbm [thread:$0]  %s5940_s5, 32, %s6693_s8, [#allocation16]  }
 0xb49   :  { %s6271_s18 = scalar_lea.vmem %s5930_s13, 256  ;;  %p6276_p12 = scmp.lt.s32.totalorder %s5930_s13, %s5930_s13 }
 0xb4a   :  { %p6272_p11 = scmp.ne.s32.totalorder %s5930_s13, %s6271_s18  ;;  %p6277_p13 = scmp.lt.s32.totalorder %s6271_s18, %s6271_s18 }
 0xb4c   :  { %p6278_p0 = por %p6277_p13, %p6276_p12 }
 0xb4e   :  { %p6279_p1 = pnand %p6278_p0, %p6272_p11 }
 0xb50   :  { %6282 = shalt.err (!%p6279_p1)
}
 0xb51   :  { %5932 = dma.vmem_to_hbm [thread:$0]  %s5930_s13, 256, %s6692_s7, [#allocation8]  }
 0xb52   :  { %s6291_s21 = scalar_lea.vmem %s5950_s15, 32  ;;  %p6296_p3 = scmp.lt.s32.totalorder %s5950_s15, %s5950_s15 }
 0xb53   :  { %p6292_p2 = scmp.ne.s32.totalorder %s5950_s15, %s6291_s21  ;;  %p6297_p4 = scmp.lt.s32.totalorder %s6291_s21, %s6291_s21 }
 0xb55   :  { %p6298_p5 = por %p6297_p4, %p6296_p3 }
 0xb57   :  { %p6299_p6 = pnand %p6298_p5, %p6292_p2 }
 0xb59   :  { %6302 = shalt.err (!%p6299_p6)
}
 0xb5a   :  { %5952 = dma.vmem_to_hbm [thread:$0]  %s5950_s15, 32, %s6694_s9, [#allocation16]  }
 0xb5b   :  { %6319 = dma.done.wait [#allocation8], 256  }
 0xb5c   :  { %6320 = vsyncadd [#allocation8], 4294967040 }
 0xb5d   :  { %6321 = dma.done.wait [#allocation16], 64  }
 0xb5e   :  { %6322 = vsyncadd [#allocation16], 4294967232 }
 0xb5f   :  { %5962 = vsyncpa [#allocation7], 1 }
 0xb60   :  { %5963 = vsyncpa [#allocation10], 1 }
 0xb61   :  { %5964 = vsyncpa [#allocation13], 1 }
 0xb62   :  { %5965 = vsyncpa [#allocation8], 1 }
 0xb63   :  { %5966 = vsyncpa [#allocation16], 1 }

</bundles_post_ra>
